<compile_context>
chip_gen: v7x
topology: tpu7x:2x2x1
jax: 0.10.0
libtpu: 0.0.40
codegen_flags: <defaults>
</compile_context>

<pallas_src>
import math
from functools import partial

import jax
import jax.numpy as jnp
from jax.experimental import pallas as pl
from jax.experimental.pallas import tpu as pltpu

LN_EPS = 1e-5                      # PyTorch LayerNorm default
ACT_DTYPE = jnp.bfloat16           # inter-kernel activation storage


def _vmem_limit_bytes():
    cap = 128 * 1024 * 1024
    try:
        cap = int(pltpu.get_tpu_info().vmem_capacity_bytes)
    except Exception:
        pass
    # ~25% headroom for compiler scratch; 96 MiB cap (v5e/v6e), 48 MiB on v7x.
    return max(32 * 1024 * 1024, min(3 * cap // 4, 96 * 1024 * 1024))


VMEM_LIMIT = _vmem_limit_bytes()


def _mosaic(dims):
    return pltpu.CompilerParams(dimension_semantics=dims,
                                vmem_limit_bytes=VMEM_LIMIT)


# ----------------------------- kernel bodies ---------------------------------

def _ln(x_f32, g, b):
    # single-pass statistics: var = E[x^2] - E[x]^2 (one cross-lane reduction
    # fewer than mean-then-centered-variance).
    mu = jnp.mean(x_f32, axis=-1, keepdims=True)
    ms = jnp.mean(x_f32 * x_f32, axis=-1, keepdims=True)
    var = jnp.maximum(ms - mu * mu, 0.0)
    return (x_f32 - mu) * jax.lax.rsqrt(var + LN_EPS) * g + b


def _gelu_exact(x_f32):
    # exact (erf) gelu, matching nn.TransformerEncoderLayer(activation='gelu')
    return 0.5 * x_f32 * (1.0 + jax.lax.erf(x_f32 * (1.0 / math.sqrt(2.0))))


def pe_ln_kernel(x_ref, pe_ref, g_ref, b_ref, o_ref):
    # LayerNorm_in(x + PE); PE block is reused across batch tiles via index_map.
    x = x_ref[...].astype(jnp.float32) + pe_ref[...]
    o_ref[...] = _ln(x, g_ref[...], b_ref[...]).astype(o_ref.dtype)


def attn_block_kernel(x_ref, w_in_ref, b_in_ref, w_out_ref, b_out_ref,
                      g_ref, beta_ref, o_ref, *, n_heads, scale):
    # One batch element per grid step, everything fused:
    #   qkv = x @ w_in + b_in
    #   per-head softmax(q k^T) v, folded head-wise into the out-projection
    #   LN1(x + attn_out @ w_out + b_out)
    x = x_ref[0]                                      # [T, D] bf16
    d = x.shape[-1]
    dh = d // n_heads

    qkv = jnp.dot(x, w_in_ref[...],
                  preferred_element_type=jnp.float32) + b_in_ref[...]  # [T, 3D]

    y = jnp.zeros(x.shape, jnp.float32)               # out-proj accumulator
    for h in range(n_heads):
        lo = h * dh
        # fold softmax scale into Q ([T, dh] multiply, not [T, T])
        qh = (qkv[:, lo:lo + dh] * scale).astype(x.dtype)
        kh = qkv[:, d + lo:d + lo + dh].astype(x.dtype)
        vh = qkv[:, 2 * d + lo:2 * d + lo + dh].astype(x.dtype)

        s = jax.lax.dot_general(qh, kh, (((1,), (1,)), ((), ())),
                                preferred_element_type=jnp.float32)
        s = s - jnp.max(s, axis=-1, keepdims=True)
        p = jnp.exp(s)
        inv = pl.reciprocal(jnp.sum(p, axis=-1, keepdims=True), approx=True)
        oh = jnp.dot(p.astype(x.dtype), vh,
                     preferred_element_type=jnp.float32) * inv        # [T, dh]

        # this head's contribution to the out-projection (no concatenate)
        y = y + jnp.dot(oh.astype(x.dtype), w_out_ref[lo:lo + dh, :],
                        preferred_element_type=jnp.float32)

    xr = x.astype(jnp.float32) + y + b_out_ref[...]
    o_ref[0] = _ln(xr, g_ref[...], beta_ref[...]).astype(o_ref.dtype)


def ffn_add_ln_kernel(x_ref, w1_ref, b1_ref, w2_ref, b2_ref, g_ref, beta_ref,
                      o_ref, acc_ref):
    # LN2(x + gelu(x @ w1 + b1) @ w2 + b2), K-tiled over d_ff chunks.
    k = pl.program_id(1)

    @pl.when(k == 0)
    def _():
        acc_ref[...] = jnp.zeros_like(acc_ref)

    h = jnp.dot(x_ref[...], w1_ref[...],
                preferred_element_type=jnp.float32) + b1_ref[...]
    h = _gelu_exact(h)
    acc_ref[...] += jnp.dot(h.astype(w2_ref.dtype), w2_ref[...],
                            preferred_element_type=jnp.float32)

    @pl.when(k == pl.num_programs(1) - 1)
    def _():
        xr = x_ref[...].astype(jnp.float32) + acc_ref[...] + b2_ref[...]
        o_ref[...] = _ln(xr, g_ref[...], beta_ref[...]).astype(o_ref.dtype)


def ln_proj_kernel(x_ref, g_ref, b_ref, w_ref, pb_ref, o_ref):
    # decoder_proj(LayerNorm(x))
    y = _ln(x_ref[...].astype(jnp.float32), g_ref[...], b_ref[...])
    out = jnp.dot(y.astype(w_ref.dtype), w_ref[...],
                  preferred_element_type=jnp.float32) + pb_ref[...]
    o_ref[...] = out.astype(o_ref.dtype)


# ----------------------------- wrappers ---------------------------------------

def _largest_tile(n, cap=512):
    # largest multiple-of-8 divisor of n, capped at `cap`
    t = min(cap, n)
    t -= t % 8
    while t >= 8:
        if n % t == 0:
            return t
        t -= 8
    return n


def _pick_ff_tile(f):
    for cand in (1024, 512, 256, 128):
        if f % cand == 0:
            return cand
    return f


def pe_add_layernorm(x2d, pe, g, b, tm, T):
    n, d = x2d.shape
    nblk_t = T // tm
    const = lambda shape: pl.BlockSpec(shape, lambda i: (0, 0),
                                       pipeline_mode=pl.Buffered(1))
    return pl.pallas_call(
        pe_ln_kernel,
        out_shape=jax.ShapeDtypeStruct((n, d), ACT_DTYPE),
        grid=(n // tm,),
        in_specs=[pl.BlockSpec((tm, d), lambda i: (i, 0)),
                  pl.BlockSpec((tm, d), lambda i: (i % nblk_t, 0)),
                  const((1, d)), const((1, d))],
        out_specs=pl.BlockSpec((tm, d), lambda i: (i, 0)),
        compiler_params=_mosaic(("parallel",)),
    )(x2d, pe, g, b)


def attn_block(x3d, w_in, b_in, w_out, b_out, g, beta, n_heads):
    B, T, d = x3d.shape
    dh = d // n_heads
    scale = 1.0 / math.sqrt(dh)
    d3 = w_in.shape[1]
    cost = pl.CostEstimate(
        flops=2 * B * T * d * d3 + 4 * B * T * T * d + 2 * B * T * d * d,
        transcendentals=B * n_heads * T * T,
        bytes_accessed=2 * (2 * B * T * d) + 2 * (d * d3 + d * d))
    xspec = pl.BlockSpec((1, T, d), lambda bi: (bi, 0, 0))
    const = lambda shape: pl.BlockSpec(shape, lambda bi: (0, 0),
                                       pipeline_mode=pl.Buffered(1))
    return pl.pallas_call(
        partial(attn_block_kernel, n_heads=n_heads, scale=scale),
        out_shape=jax.ShapeDtypeStruct((B, T, d), ACT_DTYPE),
        grid=(B,),
        in_specs=[xspec,
                  const((d, d3)), const((1, d3)),
                  const((d, d)), const((1, d)),
                  const((1, d)), const((1, d))],
        out_specs=pl.BlockSpec((1, T, d), lambda bi: (bi, 0, 0)),
        compiler_params=_mosaic(("parallel",)),
        cost_estimate=cost,
    )(x3d, w_in, b_in, w_out, b_out, g, beta)


def ffn_add_ln(x2d, w1, b1, w2, b2, g, beta, tm):
    n, d = x2d.shape
    f = w1.shape[1]
    tf = _pick_ff_tile(f)
    cost = pl.CostEstimate(flops=4 * n * d * f, transcendentals=n * f,
                           bytes_accessed=2 * (2 * n * d + 2 * d * f))
    const = lambda shape: pl.BlockSpec(shape, lambda i, k: (0, 0),
                                       pipeline_mode=pl.Buffered(1))
    return pl.pallas_call(
        ffn_add_ln_kernel,
        out_shape=jax.ShapeDtypeStruct((n, d), ACT_DTYPE),
        grid=(n // tm, f // tf),
        in_specs=[pl.BlockSpec((tm, d), lambda i, k: (i, 0)),
                  pl.BlockSpec((d, tf), lambda i, k: (0, k)),
                  pl.BlockSpec((1, tf), lambda i, k: (0, k)),
                  pl.BlockSpec((tf, d), lambda i, k: (k, 0)),
                  const((1, d)), const((1, d)), const((1, d))],
        out_specs=pl.BlockSpec((tm, d), lambda i, k: (i, 0)),
        scratch_shapes=[pltpu.VMEM((tm, d), jnp.float32)],
        compiler_params=_mosaic(("parallel", "arbitrary")),
        cost_estimate=cost,
    )(x2d, w1, b1, w2, b2, g, beta)


def final_ln_proj(x2d, g, b, w, pb, tm):
    n, d = x2d.shape
    cost = pl.CostEstimate(flops=2 * n * d * d, transcendentals=0,
                           bytes_accessed=2 * n * d + 2 * d * d + 4 * n * d)
    const = lambda shape: pl.BlockSpec(shape, lambda i: (0, 0),
                                       pipeline_mode=pl.Buffered(1))
    return pl.pallas_call(
        ln_proj_kernel,
        out_shape=jax.ShapeDtypeStruct((n, d), jnp.float32),
        grid=(n // tm,),
        in_specs=[pl.BlockSpec((tm, d), lambda i: (i, 0)),
                  const((1, d)), const((1, d)),
                  const((d, d)), const((1, d))],
        out_specs=pl.BlockSpec((tm, d), lambda i: (i, 0)),
        compiler_params=_mosaic(("parallel",)),
        cost_estimate=cost,
    )(x2d, g, b, w, pb)


# ----------------------------- model glue -------------------------------------

def sinusoidal_pe(t, d):
    pos = jnp.arange(t, dtype=jnp.float32)[:, None]
    div = jnp.exp(jnp.arange(0, d, 2, dtype=jnp.float32) * (-math.log(10000.0) / d))
    pe = jnp.zeros((t, d), jnp.float32)
    pe = pe.at[:, 0::2].set(jnp.sin(pos * div))
    pe = pe.at[:, 1::2].set(jnp.cos(pos * div))
    return pe


def init_params(key, d_model, n_layers, d_ff):
    def nrm(k, shape, scale=0.05, dtype=ACT_DTYPE):
        return (scale * jax.random.normal(k, shape, dtype=jnp.float32)).astype(dtype)

    keys = iter(jax.random.split(key, 8 * n_layers + 8))
    params = {
        "norm_in": {"g": jnp.ones((1, d_model), jnp.float32),
                    "b": jnp.zeros((1, d_model), jnp.float32)},
        "norm": {"g": jnp.ones((1, d_model), jnp.float32),
                 "b": jnp.zeros((1, d_model), jnp.float32)},
        # decoder_proj (stored [Din, Dout], bf16 for the MXU)
        "proj_w": nrm(next(keys), (d_model, d_model)),
        "proj_b": nrm(next(keys), (1, d_model), dtype=jnp.float32),
        "layers": [],
    }
    for _ in range(n_layers):
        params["layers"].append({
            # MHA in_proj stored pre-transposed [Din, 3*Dout], Q|K|V order
            "w_in": nrm(next(keys), (d_model, 3 * d_model)),
            "b_in": nrm(next(keys), (1, 3 * d_model), dtype=jnp.float32),
            "w_out": nrm(next(keys), (d_model, d_model)),
            "b_out": nrm(next(keys), (1, d_model), dtype=jnp.float32),
            "ln1_g": jnp.ones((1, d_model), jnp.float32),
            "ln1_b": jnp.zeros((1, d_model), jnp.float32),
            "w1": nrm(next(keys), (d_model, d_ff)),
            "b1": nrm(next(keys), (1, d_ff), dtype=jnp.float32),
            "w2": nrm(next(keys), (d_ff, d_model)),
            "b2": nrm(next(keys), (1, d_model), dtype=jnp.float32),
            "ln2_g": jnp.ones((1, d_model), jnp.float32),
            "ln2_b": jnp.zeros((1, d_model), jnp.float32),
        })
    return params


def encoder_forward(codes, original_embeddings, params, *, n_heads):
    B, T, D = original_embeddings.shape
    assert D % n_heads == 0 and T % 8 == 0
    n = B * T
    tm = _largest_tile(n, 512)       # row tile for FFN / final projection
    tm_pe = _largest_tile(T, 512)    # PE kernel tile must divide T

    pe = sinusoidal_pe(T, D)                          # [T, D], re-indexed per tile
    x2d = original_embeddings.reshape(n, D)           # f32 input slab

    # positional-encoding add + norm_in (PE dropout is identity in eval)
    x2d = pe_add_layernorm(x2d, pe, params["norm_in"]["g"],
                           params["norm_in"]["b"], tm_pe, T)

    for lyr in params["layers"]:
        # --- fused self-attention block (QKV + softmax + out_proj + res + LN1)
        x3d = attn_block(x2d.reshape(B, T, D), lyr["w_in"], lyr["b_in"],
                         lyr["w_out"], lyr["b_out"],
                         lyr["ln1_g"], lyr["ln1_b"], n_heads)
        x2d = x3d.reshape(n, D)

        # --- feed-forward block (post-norm), K-tiled over d_ff ---
        x2d = ffn_add_ln(x2d, lyr["w1"], lyr["b1"], lyr["w2"], lyr["b2"],
                         lyr["ln2_g"], lyr["ln2_b"], tm)

    # final encoder norm (TransformerEncoder(norm=self.norm)) + decoder_proj
    out2d = final_ln_proj(x2d, params["norm"]["g"], params["norm"]["b"],
                          params["proj_w"], params["proj_b"], tm)
    return {"codes": codes, "embeddings": out2d.reshape(B, T, D)}


# ----------------------------- main -------------------------------------------

if __name__ == "__main__":
    # small shapes consistent with the module's forward:
    #   codes [B, K, T], original_embeddings [B, T, d_model]
    B, K, T = 2, 4, 64
    d_model, n_heads, n_layers = 128, 4, 2
    d_ff = 2048   # nn.TransformerEncoderLayer default dim_feedforward

    key = jax.random.PRNGKey(0)
    k_codes, k_emb, k_params = jax.random.split(key, 3)

    codes = jax.random.randint(k_codes, (B, K, T), 0, 16, dtype=jnp.int32)
    original_embeddings = jax.random.normal(k_emb, (B, T, d_model),
                                            dtype=jnp.float32)

    params = init_params(k_params, d_model, n_layers, d_ff)

    fwd = jax.jit(partial(encoder_forward, n_heads=n_heads))
    out = fwd(codes, original_embeddings, params)
    jax.block_until_ready(out["embeddings"])
    jax.block_until_ready(out["codes"])

    assert out["embeddings"].shape == (B, T, d_model)
    assert out["embeddings"].dtype == jnp.float32
    assert out["codes"].shape == (B, K, T)
    assert bool(jnp.all(jnp.isfinite(out["embeddings"])))
    print("KERNEL_OK")
</pallas_src>

<mosaic_0001>
module attributes {stable_mosaic.version = 11 : i64} {
  func.func @pe_ln_kernel(%arg0: i32, %arg1: memref<64x128xf32, #tpu.memory_space<vmem>>, %arg2: memref<64x128xf32, #tpu.memory_space<vmem>>, %arg3: memref<1x128xf32, #tpu.memory_space<vmem>>, %arg4: memref<1x128xf32, #tpu.memory_space<vmem>>, %arg5: memref<64x128xbf16, #tpu.memory_space<vmem>>) attributes {dimension_semantics = [#tpu.dimension_semantics<parallel>], iteration_bounds = array<i64: 2>, scalar_prefetch = 0 : i64, scratch_operands = 0 : i64, tpu.core_type = #tpu.core_type<tc>, window_params = [{transform_indices = @transform_0, window_bounds = array<i64: 64, 128>}, {transform_indices = @transform_1, window_bounds = array<i64: 64, 128>}, {pipeline_mode = #tpu.pipeline_mode<synchronous>, transform_indices = @transform_2, window_bounds = array<i64: 1, 128>}, {pipeline_mode = #tpu.pipeline_mode<synchronous>, transform_indices = @transform_3, window_bounds = array<i64: 1, 128>}, {transform_indices = @transform_4, window_bounds = array<i64: 64, 128>}]} {
    %c0 = arith.constant 0 : index
    %c0_0 = arith.constant 0 : index
    %0 = vector.load %arg1[%c0, %c0_0] : memref<64x128xf32, #tpu.memory_space<vmem>>, vector<64x128xf32>
    %c0_1 = arith.constant 0 : index
    %c0_2 = arith.constant 0 : index
    %1 = vector.load %arg2[%c0_1, %c0_2] : memref<64x128xf32, #tpu.memory_space<vmem>>, vector<64x128xf32>
    %2 = arith.addf %0, %1 : vector<64x128xf32>
    %c0_3 = arith.constant 0 : index
    %c0_4 = arith.constant 0 : index
    %3 = vector.load %arg3[%c0_3, %c0_4] : memref<1x128xf32, #tpu.memory_space<vmem>>, vector<1x128xf32>
    %c0_5 = arith.constant 0 : index
    %c0_6 = arith.constant 0 : index
    %4 = vector.load %arg4[%c0_5, %c0_6] : memref<1x128xf32, #tpu.memory_space<vmem>>, vector<1x128xf32>
    %cst = arith.constant dense<0.000000e+00> : vector<64xf32>
    %5 = vector.multi_reduction <add>, %2, %cst [1] : vector<64x128xf32> to vector<64xf32>
    %6 = vector.shape_cast %5 : vector<64xf32> to vector<64x1xf32>
    %cst_7 = arith.constant 1.280000e+02 : f32
    %7 = vector.broadcast %cst_7 : f32 to vector<64x1xf32>
    %8 = arith.divf %6, %7 : vector<64x1xf32>
    %9 = arith.mulf %2, %2 : vector<64x128xf32>
    %cst_8 = arith.constant dense<0.000000e+00> : vector<64xf32>
    %10 = vector.multi_reduction <add>, %9, %cst_8 [1] : vector<64x128xf32> to vector<64xf32>
    %11 = vector.shape_cast %10 : vector<64xf32> to vector<64x1xf32>
    %cst_9 = arith.constant 1.280000e+02 : f32
    %12 = vector.broadcast %cst_9 : f32 to vector<64x1xf32>
    %13 = arith.divf %11, %12 : vector<64x1xf32>
    %14 = arith.mulf %8, %8 : vector<64x1xf32>
    %15 = arith.subf %13, %14 : vector<64x1xf32>
    %cst_10 = arith.constant 0.000000e+00 : f32
    %16 = vector.broadcast %cst_10 : f32 to vector<64x1xf32>
    %17 = arith.maximumf %15, %16 : vector<64x1xf32>
    %18 = vector.broadcast %8 : vector<64x1xf32> to vector<64x128xf32>
    %19 = arith.subf %2, %18 : vector<64x128xf32>
    %cst_11 = arith.constant 9.99999974E-6 : f32
    %20 = vector.broadcast %cst_11 : f32 to vector<64x1xf32>
    %21 = arith.addf %17, %20 : vector<64x1xf32>
    %22 = math.rsqrt %21 : vector<64x1xf32>
    %23 = vector.broadcast %22 : vector<64x1xf32> to vector<64x128xf32>
    %24 = arith.mulf %19, %23 : vector<64x128xf32>
    %25 = vector.broadcast %3 : vector<1x128xf32> to vector<64x128xf32>
    %26 = arith.mulf %24, %25 : vector<64x128xf32>
    %27 = vector.broadcast %4 : vector<1x128xf32> to vector<64x128xf32>
    %28 = arith.addf %26, %27 : vector<64x128xf32>
    %29 = arith.truncf %28 : vector<64x128xf32> to vector<64x128xbf16>
    %c0_12 = arith.constant 0 : index
    %c0_13 = arith.constant 0 : index
    %30 = vector.load %arg5[%c0_12, %c0_13] : memref<64x128xbf16, #tpu.memory_space<vmem>>, vector<64x128xbf16>
    tpu.vector_store %arg5[%c0_12, %c0_13], %29 {strides = array<i32>} : memref<64x128xbf16, #tpu.memory_space<vmem>>, vector<64x128xbf16>,
    return
  }
  func.func @transform_0(%arg0: i32) -> (i32, i32) {
    %c0_i32 = arith.constant 0 : i32
    %c0_i32_0 = arith.constant 0 : i32
    return %arg0, %c0_i32 : i32, i32
  }
  func.func @transform_1(%arg0: i32) -> (i32, i32) {
    %c1_i32 = arith.constant 1 : i32
    %c0_i32 = arith.constant 0 : i32
    %0 = arith.cmpi eq, %c1_i32, %c0_i32 : i32
    %c1_i32_0 = arith.constant 1 : i32
    %1 = arith.select %0, %c1_i32_0, %c1_i32 : i32
    %2 = arith.remsi %arg0, %1 : i32
    %c0_i32_1 = arith.constant 0 : i32
    %3 = arith.cmpi ne, %2, %c0_i32_1 : i32
    %c0_i32_2 = arith.constant 0 : i32
    %4 = arith.cmpi slt, %2, %c0_i32_2 : i32
    %c0_i32_3 = arith.constant 0 : i32
    %5 = arith.cmpi slt, %1, %c0_i32_3 : i32
    %6 = arith.xori %4, %5 : i1
    %7 = arith.andi %6, %3 : i1
    %8 = arith.addi %2, %1 : i32
    %9 = arith.select %7, %8, %2 : i32
    %c0_i32_4 = arith.constant 0 : i32
    %c0_i32_5 = arith.constant 0 : i32
    return %9, %c0_i32_4 : i32, i32
  }
  func.func @transform_2(%arg0: i32) -> (i32, i32) {
    %c0_i32 = arith.constant 0 : i32
    %c0_i32_0 = arith.constant 0 : i32
    %c0_i32_1 = arith.constant 0 : i32
    return %c0_i32, %c0_i32_0 : i32, i32
  }
  func.func @transform_3(%arg0: i32) -> (i32, i32) {
    %c0_i32 = arith.constant 0 : i32
    %c0_i32_0 = arith.constant 0 : i32
    %c0_i32_1 = arith.constant 0 : i32
    return %c0_i32, %c0_i32_0 : i32, i32
  }
  func.func @transform_4(%arg0: i32) -> (i32, i32) {
    %c0_i32 = arith.constant 0 : i32
    %c0_i32_0 = arith.constant 0 : i32
    return %arg0, %c0_i32 : i32, i32
  }
}

module attributes {stable_mosaic.version = 11 : i64} {
  func.func @attn_block_kernel(%arg0: i32, %arg1: memref<1x64x128xbf16, #tpu.memory_space<vmem>>, %arg2: memref<128x384xbf16, #tpu.memory_space<vmem>>, %arg3: memref<1x384xf32, #tpu.memory_space<vmem>>, %arg4: memref<128x128xbf16, #tpu.memory_space<vmem>>, %arg5: memref<1x128xf32, #tpu.memory_space<vmem>>, %arg6: memref<1x128xf32, #tpu.memory_space<vmem>>, %arg7: memref<1x128xf32, #tpu.memory_space<vmem>>, %arg8: memref<1x64x128xbf16, #tpu.memory_space<vmem>>) attributes {dimension_semantics = [#tpu.dimension_semantics<parallel>], iteration_bounds = array<i64: 2>, scalar_prefetch = 0 : i64, scratch_operands = 0 : i64, tpu.core_type = #tpu.core_type<tc>, window_params = [{transform_indices = @transform_0, window_bounds = array<i64: 1, 64, 128>}, {pipeline_mode = #tpu.pipeline_mode<synchronous>, transform_indices = @transform_1, window_bounds = array<i64: 128, 384>}, {pipeline_mode = #tpu.pipeline_mode<synchronous>, transform_indices = @transform_2, window_bounds = array<i64: 1, 384>}, {pipeline_mode = #tpu.pipeline_mode<synchronous>, transform_indices = @transform_3, window_bounds = array<i64: 128, 128>}, {pipeline_mode = #tpu.pipeline_mode<synchronous>, transform_indices = @transform_4, window_bounds = array<i64: 1, 128>}, {pipeline_mode = #tpu.pipeline_mode<synchronous>, transform_indices = @transform_5, window_bounds = array<i64: 1, 128>}, {pipeline_mode = #tpu.pipeline_mode<synchronous>, transform_indices = @transform_6, window_bounds = array<i64: 1, 128>}, {transform_indices = @transform_7, window_bounds = array<i64: 1, 64, 128>}]} {
    %c0 = arith.constant 0 : index
    %c0_0 = arith.constant 0 : index
    %c0_1 = arith.constant 0 : index
    %0 = vector.load %arg1[%c0, %c0_0, %c0_1] : memref<1x64x128xbf16, #tpu.memory_space<vmem>>, vector<1x64x128xbf16>
    %1 = vector.shape_cast %0 : vector<1x64x128xbf16> to vector<64x128xbf16>
    %c0_2 = arith.constant 0 : index
    %c0_3 = arith.constant 0 : index
    %2 = vector.load %arg2[%c0_2, %c0_3] : memref<128x384xbf16, #tpu.memory_space<vmem>>, vector<128x384xbf16>
    %cst = arith.constant dense<0.000000e+00> : vector<64x384xf32>
    %3 = tpu.matmul %1, %2, %cst {dimension_numbers = #tpu.dot_dimension_numbers<[1], [0], [0], [1], [0, 0, 1, 1], [], []>} : vector<64x128xbf16>, vector<128x384xbf16>, vector<64x384xf32> -> vector<64x384xf32>
    %c0_4 = arith.constant 0 : index
    %c0_5 = arith.constant 0 : index
    %4 = vector.load %arg3[%c0_4, %c0_5] : memref<1x384xf32, #tpu.memory_space<vmem>>, vector<1x384xf32>
    %5 = vector.broadcast %4 : vector<1x384xf32> to vector<64x384xf32>
    %6 = arith.addf %3, %5 : vector<64x384xf32>
    %cst_6 = arith.constant 0.000000e+00 : f32
    %7 = vector.broadcast %cst_6 : f32 to vector<64x128xf32>
    %8 = vector.extract_strided_slice %6 {offsets = [0, 0], sizes = [64, 32], strides = [1, 1]} : vector<64x384xf32> to vector<64x32xf32>
    %cst_7 = arith.constant 0.176776692 : f32
    %9 = vector.broadcast %cst_7 : f32 to vector<64x32xf32>
    %10 = arith.mulf %8, %9 : vector<64x32xf32>
    %11 = arith.truncf %10 : vector<64x32xf32> to vector<64x32xbf16>
    %12 = vector.extract_strided_slice %6 {offsets = [0, 128], sizes = [64, 32], strides = [1, 1]} : vector<64x384xf32> to vector<64x32xf32>
    %13 = arith.truncf %12 : vector<64x32xf32> to vector<64x32xbf16>
    %14 = vector.extract_strided_slice %6 {offsets = [0, 256], sizes = [64, 32], strides = [1, 1]} : vector<64x384xf32> to vector<64x32xf32>
    %15 = arith.truncf %14 : vector<64x32xf32> to vector<64x32xbf16>
    %cst_8 = arith.constant dense<0.000000e+00> : vector<64x64xf32>
    %16 = tpu.matmul %11, %13, %cst_8 {dimension_numbers = #tpu.dot_dimension_numbers<[1], [1], [0], [0], [0, 0, 1, 0], [], []>} : vector<64x32xbf16>, vector<64x32xbf16>, vector<64x64xf32> -> vector<64x64xf32>
    %cst_9 = arith.constant dense<0xFF800000> : vector<64xf32>
    %17 = vector.multi_reduction <maximumf>, %16, %cst_9 [1] : vector<64x64xf32> to vector<64xf32>
    %18 = vector.shape_cast %17 : vector<64xf32> to vector<64x1xf32>
    %19 = vector.broadcast %18 : vector<64x1xf32> to vector<64x64xf32>
    %20 = arith.subf %16, %19 : vector<64x64xf32>
    %21 = math.exp %20 : vector<64x64xf32>
    %cst_10 = arith.constant dense<0.000000e+00> : vector<64xf32>
    %22 = vector.multi_reduction <add>, %21, %cst_10 [1] : vector<64x64xf32> to vector<64xf32>
    %23 = vector.shape_cast %22 : vector<64xf32> to vector<64x1xf32>
    %24 = tpu.reciprocal %23 {approx = true} : vector<64x1xf32> -> vector<64x1xf32>
    %25 = arith.truncf %21 : vector<64x64xf32> to vector<64x64xbf16>
    %cst_11 = arith.constant dense<0.000000e+00> : vector<64x32xf32>
    %26 = tpu.matmul %25, %15, %cst_11 {dimension_numbers = #tpu.dot_dimension_numbers<[1], [0], [0], [1], [0, 0, 1, 1], [], []>} : vector<64x64xbf16>, vector<64x32xbf16>, vector<64x32xf32> -> vector<64x32xf32>
    %27 = vector.broadcast %24 : vector<64x1xf32> to vector<64x32xf32>
    %28 = arith.mulf %26, %27 : vector<64x32xf32>
    %29 = arith.truncf %28 : vector<64x32xf32> to vector<64x32xbf16>
    %c0_12 = arith.constant 0 : index
    %c0_13 = arith.constant 0 : index
    %30 = vector.load %arg4[%c0_12, %c0_13] : memref<128x128xbf16, #tpu.memory_space<vmem>>, vector<32x128xbf16>
    %cst_14 = arith.constant dense<0.000000e+00> : vector<64x128xf32>
    %31 = tpu.matmul %29, %30, %cst_14 {dimension_numbers = #tpu.dot_dimension_numbers<[1], [0], [0], [1], [0, 0, 1, 1], [], []>} : vector<64x32xbf16>, vector<32x128xbf16>, vector<64x128xf32> -> vector<64x128xf32>
    %32 = arith.addf %7, %31 : vector<64x128xf32>
    %33 = vector.extract_strided_slice %6 {offsets = [0, 32], sizes = [64, 32], strides = [1, 1]} : vector<64x384xf32> to vector<64x32xf32>
    %cst_15 = arith.constant 0.176776692 : f32
    %34 = vector.broadcast %cst_15 : f32 to vector<64x32xf32>
    %35 = arith.mulf %33, %34 : vector<64x32xf32>
    %36 = arith.truncf %35 : vector<64x32xf32> to vector<64x32xbf16>
    %37 = vector.extract_strided_slice %6 {offsets = [0, 160], sizes = [64, 32], strides = [1, 1]} : vector<64x384xf32> to vector<64x32xf32>
    %38 = arith.truncf %37 : vector<64x32xf32> to vector<64x32xbf16>
    %39 = vector.extract_strided_slice %6 {offsets = [0, 288], sizes = [64, 32], strides = [1, 1]} : vector<64x384xf32> to vector<64x32xf32>
    %40 = arith.truncf %39 : vector<64x32xf32> to vector<64x32xbf16>
    %cst_16 = arith.constant dense<0.000000e+00> : vector<64x64xf32>
    %41 = tpu.matmul %36, %38, %cst_16 {dimension_numbers = #tpu.dot_dimension_numbers<[1], [1], [0], [0], [0, 0, 1, 0], [], []>} : vector<64x32xbf16>, vector<64x32xbf16>, vector<64x64xf32> -> vector<64x64xf32>
    %cst_17 = arith.constant dense<0xFF800000> : vector<64xf32>
    %42 = vector.multi_reduction <maximumf>, %41, %cst_17 [1] : vector<64x64xf32> to vector<64xf32>
    %43 = vector.shape_cast %42 : vector<64xf32> to vector<64x1xf32>
    %44 = vector.broadcast %43 : vector<64x1xf32> to vector<64x64xf32>
    %45 = arith.subf %41, %44 : vector<64x64xf32>
    %46 = math.exp %45 : vector<64x64xf32>
    %cst_18 = arith.constant dense<0.000000e+00> : vector<64xf32>
    %47 = vector.multi_reduction <add>, %46, %cst_18 [1] : vector<64x64xf32> to vector<64xf32>
    %48 = vector.shape_cast %47 : vector<64xf32> to vector<64x1xf32>
    %49 = tpu.reciprocal %48 {approx = true} : vector<64x1xf32> -> vector<64x1xf32>
    %50 = arith.truncf %46 : vector<64x64xf32> to vector<64x64xbf16>
    %cst_19 = arith.constant dense<0.000000e+00> : vector<64x32xf32>
    %51 = tpu.matmul %50, %40, %cst_19 {dimension_numbers = #tpu.dot_dimension_numbers<[1], [0], [0], [1], [0, 0, 1, 1], [], []>} : vector<64x64xbf16>, vector<64x32xbf16>, vector<64x32xf32> -> vector<64x32xf32>
    %52 = vector.broadcast %49 : vector<64x1xf32> to vector<64x32xf32>
    %53 = arith.mulf %51, %52 : vector<64x32xf32>
    %54 = arith.truncf %53 : vector<64x32xf32> to vector<64x32xbf16>
    %c32 = arith.constant 32 : index
    %c0_20 = arith.constant 0 : index
    %55 = vector.load %arg4[%c32, %c0_20] : memref<128x128xbf16, #tpu.memory_space<vmem>>, vector<32x128xbf16>
    %cst_21 = arith.constant dense<0.000000e+00> : vector<64x128xf32>
    %56 = tpu.matmul %54, %55, %cst_21 {dimension_numbers = #tpu.dot_dimension_numbers<[1], [0], [0], [1], [0, 0, 1, 1], [], []>} : vector<64x32xbf16>, vector<32x128xbf16>, vector<64x128xf32> -> vector<64x128xf32>
    %57 = arith.addf %32, %56 : vector<64x128xf32>
    %58 = vector.extract_strided_slice %6 {offsets = [0, 64], sizes = [64, 32], strides = [1, 1]} : vector<64x384xf32> to vector<64x32xf32>
    %cst_22 = arith.constant 0.176776692 : f32
    %59 = vector.broadcast %cst_22 : f32 to vector<64x32xf32>
    %60 = arith.mulf %58, %59 : vector<64x32xf32>
    %61 = arith.truncf %60 : vector<64x32xf32> to vector<64x32xbf16>
    %62 = vector.extract_strided_slice %6 {offsets = [0, 192], sizes = [64, 32], strides = [1, 1]} : vector<64x384xf32> to vector<64x32xf32>
    %63 = arith.truncf %62 : vector<64x32xf32> to vector<64x32xbf16>
    %64 = vector.extract_strided_slice %6 {offsets = [0, 320], sizes = [64, 32], strides = [1, 1]} : vector<64x384xf32> to vector<64x32xf32>
    %65 = arith.truncf %64 : vector<64x32xf32> to vector<64x32xbf16>
    %cst_23 = arith.constant dense<0.000000e+00> : vector<64x64xf32>
    %66 = tpu.matmul %61, %63, %cst_23 {dimension_numbers = #tpu.dot_dimension_numbers<[1], [1], [0], [0], [0, 0, 1, 0], [], []>} : vector<64x32xbf16>, vector<64x32xbf16>, vector<64x64xf32> -> vector<64x64xf32>
    %cst_24 = arith.constant dense<0xFF800000> : vector<64xf32>
    %67 = vector.multi_reduction <maximumf>, %66, %cst_24 [1] : vector<64x64xf32> to vector<64xf32>
    %68 = vector.shape_cast %67 : vector<64xf32> to vector<64x1xf32>
    %69 = vector.broadcast %68 : vector<64x1xf32> to vector<64x64xf32>
    %70 = arith.subf %66, %69 : vector<64x64xf32>
    %71 = math.exp %70 : vector<64x64xf32>
    %cst_25 = arith.constant dense<0.000000e+00> : vector<64xf32>
    %72 = vector.multi_reduction <add>, %71, %cst_25 [1] : vector<64x64xf32> to vector<64xf32>
    %73 = vector.shape_cast %72 : vector<64xf32> to vector<64x1xf32>
    %74 = tpu.reciprocal %73 {approx = true} : vector<64x1xf32> -> vector<64x1xf32>
    %75 = arith.truncf %71 : vector<64x64xf32> to vector<64x64xbf16>
    %cst_26 = arith.constant dense<0.000000e+00> : vector<64x32xf32>
    %76 = tpu.matmul %75, %65, %cst_26 {dimension_numbers = #tpu.dot_dimension_numbers<[1], [0], [0], [1], [0, 0, 1, 1], [], []>} : vector<64x64xbf16>, vector<64x32xbf16>, vector<64x32xf32> -> vector<64x32xf32>
    %77 = vector.broadcast %74 : vector<64x1xf32> to vector<64x32xf32>
    %78 = arith.mulf %76, %77 : vector<64x32xf32>
    %79 = arith.truncf %78 : vector<64x32xf32> to vector<64x32xbf16>
    %c64 = arith.constant 64 : index
    %c0_27 = arith.constant 0 : index
    %80 = vector.load %arg4[%c64, %c0_27] : memref<128x128xbf16, #tpu.memory_space<vmem>>, vector<32x128xbf16>
    %cst_28 = arith.constant dense<0.000000e+00> : vector<64x128xf32>
    %81 = tpu.matmul %79, %80, %cst_28 {dimension_numbers = #tpu.dot_dimension_numbers<[1], [0], [0], [1], [0, 0, 1, 1], [], []>} : vector<64x32xbf16>, vector<32x128xbf16>, vector<64x128xf32> -> vector<64x128xf32>
    %82 = arith.addf %57, %81 : vector<64x128xf32>
    %83 = vector.extract_strided_slice %6 {offsets = [0, 96], sizes = [64, 32], strides = [1, 1]} : vector<64x384xf32> to vector<64x32xf32>
    %cst_29 = arith.constant 0.176776692 : f32
    %84 = vector.broadcast %cst_29 : f32 to vector<64x32xf32>
    %85 = arith.mulf %83, %84 : vector<64x32xf32>
    %86 = arith.truncf %85 : vector<64x32xf32> to vector<64x32xbf16>
    %87 = vector.extract_strided_slice %6 {offsets = [0, 224], sizes = [64, 32], strides = [1, 1]} : vector<64x384xf32> to vector<64x32xf32>
    %88 = arith.truncf %87 : vector<64x32xf32> to vector<64x32xbf16>
    %89 = vector.extract_strided_slice %6 {offsets = [0, 352], sizes = [64, 32], strides = [1, 1]} : vector<64x384xf32> to vector<64x32xf32>
    %90 = arith.truncf %89 : vector<64x32xf32> to vector<64x32xbf16>
    %cst_30 = arith.constant dense<0.000000e+00> : vector<64x64xf32>
    %91 = tpu.matmul %86, %88, %cst_30 {dimension_numbers = #tpu.dot_dimension_numbers<[1], [1], [0], [0], [0, 0, 1, 0], [], []>} : vector<64x32xbf16>, vector<64x32xbf16>, vector<64x64xf32> -> vector<64x64xf32>
    %cst_31 = arith.constant dense<0xFF800000> : vector<64xf32>
    %92 = vector.multi_reduction <maximumf>, %91, %cst_31 [1] : vector<64x64xf32> to vector<64xf32>
    %93 = vector.shape_cast %92 : vector<64xf32> to vector<64x1xf32>
    %94 = vector.broadcast %93 : vector<64x1xf32> to vector<64x64xf32>
    %95 = arith.subf %91, %94 : vector<64x64xf32>
    %96 = math.exp %95 : vector<64x64xf32>
    %cst_32 = arith.constant dense<0.000000e+00> : vector<64xf32>
    %97 = vector.multi_reduction <add>, %96, %cst_32 [1] : vector<64x64xf32> to vector<64xf32>
    %98 = vector.shape_cast %97 : vector<64xf32> to vector<64x1xf32>
    %99 = tpu.reciprocal %98 {approx = true} : vector<64x1xf32> -> vector<64x1xf32>
    %100 = arith.truncf %96 : vector<64x64xf32> to vector<64x64xbf16>
    %cst_33 = arith.constant dense<0.000000e+00> : vector<64x32xf32>
    %101 = tpu.matmul %100, %90, %cst_33 {dimension_numbers = #tpu.dot_dimension_numbers<[1], [0], [0], [1], [0, 0, 1, 1], [], []>} : vector<64x64xbf16>, vector<64x32xbf16>, vector<64x32xf32> -> vector<64x32xf32>
    %102 = vector.broadcast %99 : vector<64x1xf32> to vector<64x32xf32>
    %103 = arith.mulf %101, %102 : vector<64x32xf32>
    %104 = arith.truncf %103 : vector<64x32xf32> to vector<64x32xbf16>
    %c96 = arith.constant 96 : index
    %c0_34 = arith.constant 0 : index
    %105 = vector.load %arg4[%c96, %c0_34] : memref<128x128xbf16, #tpu.memory_space<vmem>>, vector<32x128xbf16>
    %cst_35 = arith.constant dense<0.000000e+00> : vector<64x128xf32>
    %106 = tpu.matmul %104, %105, %cst_35 {dimension_numbers = #tpu.dot_dimension_numbers<[1], [0], [0], [1], [0, 0, 1, 1], [], []>} : vector<64x32xbf16>, vector<32x128xbf16>, vector<64x128xf32> -> vector<64x128xf32>
    %107 = arith.addf %82, %106 : vector<64x128xf32>
    %108 = arith.extf %1 : vector<64x128xbf16> to vector<64x128xf32>
    %109 = arith.addf %108, %107 : vector<64x128xf32>
    %c0_36 = arith.constant 0 : index
    %c0_37 = arith.constant 0 : index
    %110 = vector.load %arg5[%c0_36, %c0_37] : memref<1x128xf32, #tpu.memory_space<vmem>>, vector<1x128xf32>
    %111 = vector.broadcast %110 : vector<1x128xf32> to vector<64x128xf32>
    %112 = arith.addf %109, %111 : vector<64x128xf32>
    %c0_38 = arith.constant 0 : index
    %c0_39 = arith.constant 0 : index
    %113 = vector.load %arg6[%c0_38, %c0_39] : memref<1x128xf32, #tpu.memory_space<vmem>>, vector<1x128xf32>
    %c0_40 = arith.constant 0 : index
    %c0_41 = arith.constant 0 : index
    %114 = vector.load %arg7[%c0_40, %c0_41] : memref<1x128xf32, #tpu.memory_space<vmem>>, vector<1x128xf32>
    %cst_42 = arith.constant dense<0.000000e+00> : vector<64xf32>
    %115 = vector.multi_reduction <add>, %112, %cst_42 [1] : vector<64x128xf32> to vector<64xf32>
    %116 = vector.shape_cast %115 : vector<64xf32> to vector<64x1xf32>
    %cst_43 = arith.constant 1.280000e+02 : f32
    %117 = vector.broadcast %cst_43 : f32 to vector<64x1xf32>
    %118 = arith.divf %116, %117 : vector<64x1xf32>
    %119 = arith.mulf %112, %112 : vector<64x128xf32>
    %cst_44 = arith.constant dense<0.000000e+00> : vector<64xf32>
    %120 = vector.multi_reduction <add>, %119, %cst_44 [1] : vector<64x128xf32> to vector<64xf32>
    %121 = vector.shape_cast %120 : vector<64xf32> to vector<64x1xf32>
    %cst_45 = arith.constant 1.280000e+02 : f32
    %122 = vector.broadcast %cst_45 : f32 to vector<64x1xf32>
    %123 = arith.divf %121, %122 : vector<64x1xf32>
    %124 = arith.mulf %118, %118 : vector<64x1xf32>
    %125 = arith.subf %123, %124 : vector<64x1xf32>
    %cst_46 = arith.constant 0.000000e+00 : f32
    %126 = vector.broadcast %cst_46 : f32 to vector<64x1xf32>
    %127 = arith.maximumf %125, %126 : vector<64x1xf32>
    %128 = vector.broadcast %118 : vector<64x1xf32> to vector<64x128xf32>
    %129 = arith.subf %112, %128 : vector<64x128xf32>
    %cst_47 = arith.constant 9.99999974E-6 : f32
    %130 = vector.broadcast %cst_47 : f32 to vector<64x1xf32>
    %131 = arith.addf %127, %130 : vector<64x1xf32>
    %132 = math.rsqrt %131 : vector<64x1xf32>
    %133 = vector.broadcast %132 : vector<64x1xf32> to vector<64x128xf32>
    %134 = arith.mulf %129, %133 : vector<64x128xf32>
    %135 = vector.broadcast %113 : vector<1x128xf32> to vector<64x128xf32>
    %136 = arith.mulf %134, %135 : vector<64x128xf32>
    %137 = vector.broadcast %114 : vector<1x128xf32> to vector<64x128xf32>
    %138 = arith.addf %136, %137 : vector<64x128xf32>
    %139 = arith.truncf %138 : vector<64x128xf32> to vector<64x128xbf16>
    %c0_48 = arith.constant 0 : index
    %c0_49 = arith.constant 0 : index
    %c0_50 = arith.constant 0 : index
    %140 = vector.load %arg8[%c0_48, %c0_49, %c0_50] : memref<1x64x128xbf16, #tpu.memory_space<vmem>>, vector<1x64x128xbf16>
    %141 = vector.shape_cast %140 : vector<1x64x128xbf16> to vector<64x128xbf16>
    %142 = vector.shape_cast %139 : vector<64x128xbf16> to vector<1x64x128xbf16>
    tpu.vector_store %arg8[%c0_48, %c0_49, %c0_50], %142 {strides = array<i32>} : memref<1x64x128xbf16, #tpu.memory_space<vmem>>, vector<1x64x128xbf16>,
    return
  }
  func.func @transform_0(%arg0: i32) -> (i32, i32, i32) {
    %c0_i32 = arith.constant 0 : i32
    %c0_i32_0 = arith.constant 0 : i32
    %c0_i32_1 = arith.constant 0 : i32
    return %arg0, %c0_i32, %c0_i32_0 : i32, i32, i32
  }
  func.func @transform_1(%arg0: i32) -> (i32, i32) {
    %c0_i32 = arith.constant 0 : i32
    %c0_i32_0 = arith.constant 0 : i32
    %c0_i32_1 = arith.constant 0 : i32
    return %c0_i32, %c0_i32_0 : i32, i32
  }
  func.func @transform_2(%arg0: i32) -> (i32, i32) {
    %c0_i32 = arith.constant 0 : i32
    %c0_i32_0 = arith.constant 0 : i32
    %c0_i32_1 = arith.constant 0 : i32
    return %c0_i32, %c0_i32_0 : i32, i32
  }
  func.func @transform_3(%arg0: i32) -> (i32, i32) {
    %c0_i32 = arith.constant 0 : i32
    %c0_i32_0 = arith.constant 0 : i32
    %c0_i32_1 = arith.constant 0 : i32
    return %c0_i32, %c0_i32_0 : i32, i32
  }
  func.func @transform_4(%arg0: i32) -> (i32, i32) {
    %c0_i32 = arith.constant 0 : i32
    %c0_i32_0 = arith.constant 0 : i32
    %c0_i32_1 = arith.constant 0 : i32
    return %c0_i32, %c0_i32_0 : i32, i32
  }
  func.func @transform_5(%arg0: i32) -> (i32, i32) {
    %c0_i32 = arith.constant 0 : i32
    %c0_i32_0 = arith.constant 0 : i32
    %c0_i32_1 = arith.constant 0 : i32
    return %c0_i32, %c0_i32_0 : i32, i32
  }
  func.func @transform_6(%arg0: i32) -> (i32, i32) {
    %c0_i32 = arith.constant 0 : i32
    %c0_i32_0 = arith.constant 0 : i32
    %c0_i32_1 = arith.constant 0 : i32
    return %c0_i32, %c0_i32_0 : i32, i32
  }
  func.func @transform_7(%arg0: i32) -> (i32, i32, i32) {
    %c0_i32 = arith.constant 0 : i32
    %c0_i32_0 = arith.constant 0 : i32
    %c0_i32_1 = arith.constant 0 : i32
    return %arg0, %c0_i32, %c0_i32_0 : i32, i32, i32
  }
}

module attributes {stable_mosaic.version = 11 : i64} {
  func.func @ffn_add_ln_kernel(%arg0: i32, %arg1: i32, %arg2: memref<128x128xbf16, #tpu.memory_space<vmem>>, %arg3: memref<128x1024xbf16, #tpu.memory_space<vmem>>, %arg4: memref<1x1024xf32, #tpu.memory_space<vmem>>, %arg5: memref<1024x128xbf16, #tpu.memory_space<vmem>>, %arg6: memref<1x128xf32, #tpu.memory_space<vmem>>, %arg7: memref<1x128xf32, #tpu.memory_space<vmem>>, %arg8: memref<1x128xf32, #tpu.memory_space<vmem>>, %arg9: memref<128x128xbf16, #tpu.memory_space<vmem>>, %arg10: memref<128x128xf32, #tpu.memory_space<vmem>>) attributes {dimension_semantics = [#tpu.dimension_semantics<parallel>, #tpu.dimension_semantics<arbitrary>], iteration_bounds = array<i64: 1, 2>, scalar_prefetch = 0 : i64, scratch_operands = 1 : i64, tpu.core_type = #tpu.core_type<tc>, window_params = [{transform_indices = @transform_0, window_bounds = array<i64: 128, 128>}, {transform_indices = @transform_1, window_bounds = array<i64: 128, 1024>}, {transform_indices = @transform_2, window_bounds = array<i64: 1, 1024>}, {transform_indices = @transform_3, window_bounds = array<i64: 1024, 128>}, {pipeline_mode = #tpu.pipeline_mode<synchronous>, transform_indices = @transform_4, window_bounds = array<i64: 1, 128>}, {pipeline_mode = #tpu.pipeline_mode<synchronous>, transform_indices = @transform_5, window_bounds = array<i64: 1, 128>}, {pipeline_mode = #tpu.pipeline_mode<synchronous>, transform_indices = @transform_6, window_bounds = array<i64: 1, 128>}, {transform_indices = @transform_7, window_bounds = array<i64: 128, 128>}]} {
    %c0_i32 = arith.constant 0 : i32
    %0 = arith.cmpi eq, %arg1, %c0_i32 : i32
    %1 = arith.extui %0 : i1 to i32
    %c0_i32_0 = arith.constant 0 : i32
    %2 = arith.cmpi ne, %1, %c0_i32_0 : i32
    scf.if %2 {
      %cst_17 = arith.constant 0.000000e+00 : f32
      %26 = vector.broadcast %cst_17 : f32 to vector<128x128xf32>
      %c0_18 = arith.constant 0 : index
      %c0_19 = arith.constant 0 : index
      %27 = vector.load %arg10[%c0_18, %c0_19] : memref<128x128xf32, #tpu.memory_space<vmem>>, vector<128x128xf32>
      tpu.vector_store %arg10[%c0_18, %c0_19], %26 {strides = array<i32>} : memref<128x128xf32, #tpu.memory_space<vmem>>, vector<128x128xf32>,
    } else {
    }
    %c0 = arith.constant 0 : index
    %c0_1 = arith.constant 0 : index
    %3 = vector.load %arg2[%c0, %c0_1] : memref<128x128xbf16, #tpu.memory_space<vmem>>, vector<128x128xbf16>
    %c0_2 = arith.constant 0 : index
    %c0_3 = arith.constant 0 : index
    %4 = vector.load %arg3[%c0_2, %c0_3] : memref<128x1024xbf16, #tpu.memory_space<vmem>>, vector<128x1024xbf16>
    %cst = arith.constant dense<0.000000e+00> : vector<128x1024xf32>
    %5 = tpu.matmul %3, %4, %cst {dimension_numbers = #tpu.dot_dimension_numbers<[1], [0], [0], [1], [0, 0, 1, 1], [], []>} : vector<128x128xbf16>, vector<128x1024xbf16>, vector<128x1024xf32> -> vector<128x1024xf32>
    %c0_4 = arith.constant 0 : index
    %c0_5 = arith.constant 0 : index
    %6 = vector.load %arg4[%c0_4, %c0_5] : memref<1x1024xf32, #tpu.memory_space<vmem>>, vector<1x1024xf32>
    %7 = vector.broadcast %6 : vector<1x1024xf32> to vector<128x1024xf32>
    %8 = arith.addf %5, %7 : vector<128x1024xf32>
    %cst_6 = arith.constant 5.000000e-01 : f32
    %9 = vector.broadcast %cst_6 : f32 to vector<128x1024xf32>
    %10 = arith.mulf %9, %8 : vector<128x1024xf32>
    %cst_7 = arith.constant 0.707106769 : f32
    %11 = vector.broadcast %cst_7 : f32 to vector<128x1024xf32>
    %12 = arith.mulf %8, %11 : vector<128x1024xf32>
    %13 = math.erf %12 : vector<128x1024xf32>
    %cst_8 = arith.constant 1.000000e+00 : f32
    %14 = vector.broadcast %cst_8 : f32 to vector<128x1024xf32>
    %15 = arith.addf %14, %13 : vector<128x1024xf32>
    %16 = arith.mulf %10, %15 : vector<128x1024xf32>
    %c0_9 = arith.constant 0 : index
    %c0_10 = arith.constant 0 : index
    %17 = vector.load %arg10[%c0_9, %c0_10] : memref<128x128xf32, #tpu.memory_space<vmem>>, vector<128x128xf32>
    %18 = arith.truncf %16 : vector<128x1024xf32> to vector<128x1024xbf16>
    %c0_11 = arith.constant 0 : index
    %c0_12 = arith.constant 0 : index
    %19 = vector.load %arg5[%c0_11, %c0_12] : memref<1024x128xbf16, #tpu.memory_space<vmem>>, vector<1024x128xbf16>
    %cst_13 = arith.constant dense<0.000000e+00> : vector<128x128xf32>
    %20 = tpu.matmul %18, %19, %cst_13 {dimension_numbers = #tpu.dot_dimension_numbers<[1], [0], [0], [1], [0, 0, 1, 1], [], []>} : vector<128x1024xbf16>, vector<1024x128xbf16>, vector<128x128xf32> -> vector<128x128xf32>
    %21 = arith.addf %17, %20 : vector<128x128xf32>
    %c0_14 = arith.constant 0 : index
    %c0_15 = arith.constant 0 : index
    %22 = vector.load %arg10[%c0_14, %c0_15] : memref<128x128xf32, #tpu.memory_space<vmem>>, vector<128x128xf32>
    tpu.vector_store %arg10[%c0_14, %c0_15], %21 {strides = array<i32>} : memref<128x128xf32, #tpu.memory_space<vmem>>, vector<128x128xf32>,
    %c1_i32 = arith.constant 1 : i32
    %23 = arith.cmpi eq, %arg1, %c1_i32 : i32
    %24 = arith.extui %23 : i1 to i32
    %c0_i32_16 = arith.constant 0 : i32
    %25 = arith.cmpi ne, %24, %c0_i32_16 : i32
    scf.if %25 {
      %c0_17 = arith.constant 0 : index
      %c0_18 = arith.constant 0 : index
      %26 = vector.load %arg2[%c0_17, %c0_18] : memref<128x128xbf16, #tpu.memory_space<vmem>>, vector<128x128xbf16>
      %27 = arith.extf %26 : vector<128x128xbf16> to vector<128x128xf32>
      %c0_19 = arith.constant 0 : index
      %c0_20 = arith.constant 0 : index
      %28 = vector.load %arg10[%c0_19, %c0_20] : memref<128x128xf32, #tpu.memory_space<vmem>>, vector<128x128xf32>
      %29 = arith.addf %27, %28 : vector<128x128xf32>
      %c0_21 = arith.constant 0 : index
      %c0_22 = arith.constant 0 : index
      %30 = vector.load %arg6[%c0_21, %c0_22] : memref<1x128xf32, #tpu.memory_space<vmem>>, vector<1x128xf32>
      %31 = vector.broadcast %30 : vector<1x128xf32> to vector<128x128xf32>
      %32 = arith.addf %29, %31 : vector<128x128xf32>
      %c0_23 = arith.constant 0 : index
      %c0_24 = arith.constant 0 : index
      %33 = vector.load %arg7[%c0_23, %c0_24] : memref<1x128xf32, #tpu.memory_space<vmem>>, vector<1x128xf32>
      %c0_25 = arith.constant 0 : index
      %c0_26 = arith.constant 0 : index
      %34 = vector.load %arg8[%c0_25, %c0_26] : memref<1x128xf32, #tpu.memory_space<vmem>>, vector<1x128xf32>
      %cst_27 = arith.constant dense<0.000000e+00> : vector<128xf32>
      %35 = vector.multi_reduction <add>, %32, %cst_27 [1] : vector<128x128xf32> to vector<128xf32>
      %36 = vector.shape_cast %35 : vector<128xf32> to vector<128x1xf32>
      %cst_28 = arith.constant 1.280000e+02 : f32
      %37 = vector.broadcast %cst_28 : f32 to vector<128x1xf32>
      %38 = arith.divf %36, %37 : vector<128x1xf32>
      %39 = arith.mulf %32, %32 : vector<128x128xf32>
      %cst_29 = arith.constant dense<0.000000e+00> : vector<128xf32>
      %40 = vector.multi_reduction <add>, %39, %cst_29 [1] : vector<128x128xf32> to vector<128xf32>
      %41 = vector.shape_cast %40 : vector<128xf32> to vector<128x1xf32>
      %cst_30 = arith.constant 1.280000e+02 : f32
      %42 = vector.broadcast %cst_30 : f32 to vector<128x1xf32>
      %43 = arith.divf %41, %42 : vector<128x1xf32>
      %44 = arith.mulf %38, %38 : vector<128x1xf32>
      %45 = arith.subf %43, %44 : vector<128x1xf32>
      %cst_31 = arith.constant 0.000000e+00 : f32
      %46 = vector.broadcast %cst_31 : f32 to vector<128x1xf32>
      %47 = arith.maximumf %45, %46 : vector<128x1xf32>
      %48 = vector.broadcast %38 : vector<128x1xf32> to vector<128x128xf32>
      %49 = arith.subf %32, %48 : vector<128x128xf32>
      %cst_32 = arith.constant 9.99999974E-6 : f32
      %50 = vector.broadcast %cst_32 : f32 to vector<128x1xf32>
      %51 = arith.addf %47, %50 : vector<128x1xf32>
      %52 = math.rsqrt %51 : vector<128x1xf32>
      %53 = vector.broadcast %52 : vector<128x1xf32> to vector<128x128xf32>
      %54 = arith.mulf %49, %53 : vector<128x128xf32>
      %55 = vector.broadcast %33 : vector<1x128xf32> to vector<128x128xf32>
      %56 = arith.mulf %54, %55 : vector<128x128xf32>
      %57 = vector.broadcast %34 : vector<1x128xf32> to vector<128x128xf32>
      %58 = arith.addf %56, %57 : vector<128x128xf32>
      %59 = arith.truncf %58 : vector<128x128xf32> to vector<128x128xbf16>
      %c0_33 = arith.constant 0 : index
      %c0_34 = arith.constant 0 : index
      %60 = vector.load %arg9[%c0_33, %c0_34] : memref<128x128xbf16, #tpu.memory_space<vmem>>, vector<128x128xbf16>
      tpu.vector_store %arg9[%c0_33, %c0_34], %59 {strides = array<i32>} : memref<128x128xbf16, #tpu.memory_space<vmem>>, vector<128x128xbf16>,
    } else {
    }
    return
  }
  func.func @transform_0(%arg0: i32, %arg1: i32) -> (i32, i32) {
    %c0_i32 = arith.constant 0 : i32
    %c0_i32_0 = arith.constant 0 : i32
    return %arg0, %c0_i32 : i32, i32
  }
  func.func @transform_1(%arg0: i32, %arg1: i32) -> (i32, i32) {
    %c0_i32 = arith.constant 0 : i32
    %c0_i32_0 = arith.constant 0 : i32
    return %c0_i32, %arg1 : i32, i32
  }
  func.func @transform_2(%arg0: i32, %arg1: i32) -> (i32, i32) {
    %c0_i32 = arith.constant 0 : i32
    %c0_i32_0 = arith.constant 0 : i32
    return %c0_i32, %arg1 : i32, i32
  }
  func.func @transform_3(%arg0: i32, %arg1: i32) -> (i32, i32) {
    %c0_i32 = arith.constant 0 : i32
    %c0_i32_0 = arith.constant 0 : i32
    return %arg1, %c0_i32 : i32, i32
  }
  func.func @transform_4(%arg0: i32, %arg1: i32) -> (i32, i32) {
    %c0_i32 = arith.constant 0 : i32
    %c0_i32_0 = arith.constant 0 : i32
    %c0_i32_1 = arith.constant 0 : i32
    return %c0_i32, %c0_i32_0 : i32, i32
  }
  func.func @transform_5(%arg0: i32, %arg1: i32) -> (i32, i32) {
    %c0_i32 = arith.constant 0 : i32
    %c0_i32_0 = arith.constant 0 : i32
    %c0_i32_1 = arith.constant 0 : i32
    return %c0_i32, %c0_i32_0 : i32, i32
  }
  func.func @transform_6(%arg0: i32, %arg1: i32) -> (i32, i32) {
    %c0_i32 = arith.constant 0 : i32
    %c0_i32_0 = arith.constant 0 : i32
    %c0_i32_1 = arith.constant 0 : i32
    return %c0_i32, %c0_i32_0 : i32, i32
  }
  func.func @transform_7(%arg0: i32, %arg1: i32) -> (i32, i32) {
    %c0_i32 = arith.constant 0 : i32
    %c0_i32_0 = arith.constant 0 : i32
    return %arg0, %c0_i32 : i32, i32
  }
}

module attributes {stable_mosaic.version = 11 : i64} {
  func.func @ln_proj_kernel(%arg0: i32, %arg1: memref<128x128xbf16, #tpu.memory_space<vmem>>, %arg2: memref<1x128xf32, #tpu.memory_space<vmem>>, %arg3: memref<1x128xf32, #tpu.memory_space<vmem>>, %arg4: memref<128x128xbf16, #tpu.memory_space<vmem>>, %arg5: memref<1x128xf32, #tpu.memory_space<vmem>>, %arg6: memref<128x128xf32, #tpu.memory_space<vmem>>) attributes {dimension_semantics = [#tpu.dimension_semantics<parallel>], iteration_bounds = array<i64: 1>, scalar_prefetch = 0 : i64, scratch_operands = 0 : i64, tpu.core_type = #tpu.core_type<tc>, window_params = [{transform_indices = @transform_0, window_bounds = array<i64: 128, 128>}, {pipeline_mode = #tpu.pipeline_mode<synchronous>, transform_indices = @transform_1, window_bounds = array<i64: 1, 128>}, {pipeline_mode = #tpu.pipeline_mode<synchronous>, transform_indices = @transform_2, window_bounds = array<i64: 1, 128>}, {pipeline_mode = #tpu.pipeline_mode<synchronous>, transform_indices = @transform_3, window_bounds = array<i64: 128, 128>}, {pipeline_mode = #tpu.pipeline_mode<synchronous>, transform_indices = @transform_4, window_bounds = array<i64: 1, 128>}, {transform_indices = @transform_5, window_bounds = array<i64: 128, 128>}]} {
    %c0 = arith.constant 0 : index
    %c0_0 = arith.constant 0 : index
    %0 = vector.load %arg1[%c0, %c0_0] : memref<128x128xbf16, #tpu.memory_space<vmem>>, vector<128x128xbf16>
    %1 = arith.extf %0 : vector<128x128xbf16> to vector<128x128xf32>
    %c0_1 = arith.constant 0 : index
    %c0_2 = arith.constant 0 : index
    %2 = vector.load %arg2[%c0_1, %c0_2] : memref<1x128xf32, #tpu.memory_space<vmem>>, vector<1x128xf32>
    %c0_3 = arith.constant 0 : index
    %c0_4 = arith.constant 0 : index
    %3 = vector.load %arg3[%c0_3, %c0_4] : memref<1x128xf32, #tpu.memory_space<vmem>>, vector<1x128xf32>
    %cst = arith.constant dense<0.000000e+00> : vector<128xf32>
    %4 = vector.multi_reduction <add>, %1, %cst [1] : vector<128x128xf32> to vector<128xf32>
    %5 = vector.shape_cast %4 : vector<128xf32> to vector<128x1xf32>
    %cst_5 = arith.constant 1.280000e+02 : f32
    %6 = vector.broadcast %cst_5 : f32 to vector<128x1xf32>
    %7 = arith.divf %5, %6 : vector<128x1xf32>
    %8 = arith.mulf %1, %1 : vector<128x128xf32>
    %cst_6 = arith.constant dense<0.000000e+00> : vector<128xf32>
    %9 = vector.multi_reduction <add>, %8, %cst_6 [1] : vector<128x128xf32> to vector<128xf32>
    %10 = vector.shape_cast %9 : vector<128xf32> to vector<128x1xf32>
    %cst_7 = arith.constant 1.280000e+02 : f32
    %11 = vector.broadcast %cst_7 : f32 to vector<128x1xf32>
    %12 = arith.divf %10, %11 : vector<128x1xf32>
    %13 = arith.mulf %7, %7 : vector<128x1xf32>
    %14 = arith.subf %12, %13 : vector<128x1xf32>
    %cst_8 = arith.constant 0.000000e+00 : f32
    %15 = vector.broadcast %cst_8 : f32 to vector<128x1xf32>
    %16 = arith.maximumf %14, %15 : vector<128x1xf32>
    %17 = vector.broadcast %7 : vector<128x1xf32> to vector<128x128xf32>
    %18 = arith.subf %1, %17 : vector<128x128xf32>
    %cst_9 = arith.constant 9.99999974E-6 : f32
    %19 = vector.broadcast %cst_9 : f32 to vector<128x1xf32>
    %20 = arith.addf %16, %19 : vector<128x1xf32>
    %21 = math.rsqrt %20 : vector<128x1xf32>
    %22 = vector.broadcast %21 : vector<128x1xf32> to vector<128x128xf32>
    %23 = arith.mulf %18, %22 : vector<128x128xf32>
    %24 = vector.broadcast %2 : vector<1x128xf32> to vector<128x128xf32>
    %25 = arith.mulf %23, %24 : vector<128x128xf32>
    %26 = vector.broadcast %3 : vector<1x128xf32> to vector<128x128xf32>
    %27 = arith.addf %25, %26 : vector<128x128xf32>
    %28 = arith.truncf %27 : vector<128x128xf32> to vector<128x128xbf16>
    %c0_10 = arith.constant 0 : index
    %c0_11 = arith.constant 0 : index
    %29 = vector.load %arg4[%c0_10, %c0_11] : memref<128x128xbf16, #tpu.memory_space<vmem>>, vector<128x128xbf16>
    %cst_12 = arith.constant dense<0.000000e+00> : vector<128x128xf32>
    %30 = tpu.matmul %28, %29, %cst_12 {dimension_numbers = #tpu.dot_dimension_numbers<[1], [0], [0], [1], [0, 0, 1, 1], [], []>} : vector<128x128xbf16>, vector<128x128xbf16>, vector<128x128xf32> -> vector<128x128xf32>
    %c0_13 = arith.constant 0 : index
    %c0_14 = arith.constant 0 : index
    %31 = vector.load %arg5[%c0_13, %c0_14] : memref<1x128xf32, #tpu.memory_space<vmem>>, vector<1x128xf32>
    %32 = vector.broadcast %31 : vector<1x128xf32> to vector<128x128xf32>
    %33 = arith.addf %30, %32 : vector<128x128xf32>
    %c0_15 = arith.constant 0 : index
    %c0_16 = arith.constant 0 : index
    %34 = vector.load %arg6[%c0_15, %c0_16] : memref<128x128xf32, #tpu.memory_space<vmem>>, vector<128x128xf32>
    tpu.vector_store %arg6[%c0_15, %c0_16], %33 {strides = array<i32>} : memref<128x128xf32, #tpu.memory_space<vmem>>, vector<128x128xf32>,
    return
  }
  func.func @transform_0(%arg0: i32) -> (i32, i32) {
    %c0_i32 = arith.constant 0 : i32
    %c0_i32_0 = arith.constant 0 : i32
    return %arg0, %c0_i32 : i32, i32
  }
  func.func @transform_1(%arg0: i32) -> (i32, i32) {
    %c0_i32 = arith.constant 0 : i32
    %c0_i32_0 = arith.constant 0 : i32
    %c0_i32_1 = arith.constant 0 : i32
    return %c0_i32, %c0_i32_0 : i32, i32
  }
  func.func @transform_2(%arg0: i32) -> (i32, i32) {
    %c0_i32 = arith.constant 0 : i32
    %c0_i32_0 = arith.constant 0 : i32
    %c0_i32_1 = arith.constant 0 : i32
    return %c0_i32, %c0_i32_0 : i32, i32
  }
  func.func @transform_3(%arg0: i32) -> (i32, i32) {
    %c0_i32 = arith.constant 0 : i32
    %c0_i32_0 = arith.constant 0 : i32
    %c0_i32_1 = arith.constant 0 : i32
    return %c0_i32, %c0_i32_0 : i32, i32
  }
  func.func @transform_4(%arg0: i32) -> (i32, i32) {
    %c0_i32 = arith.constant 0 : i32
    %c0_i32_0 = arith.constant 0 : i32
    %c0_i32_1 = arith.constant 0 : i32
    return %c0_i32, %c0_i32_0 : i32, i32
  }
  func.func @transform_5(%arg0: i32) -> (i32, i32) {
    %c0_i32 = arith.constant 0 : i32
    %c0_i32_0 = arith.constant 0 : i32
    return %arg0, %c0_i32 : i32, i32
  }
}

</mosaic_0001>

<bundles_post_ra>
// kernel: encoder_forward.6
= control target key start
LH: loop header
LB: loop body
LE: loop exit
PB: predicated region body
PF: predicated region fallthrough
CT: control target
= control target key end

     0   :  { %9 = vsyncpa [#allocation3], 0  ;;  %s1330_s0 = inlined_call_operand.hbm [shape: f32[128,128], index: 0, kind: input, shape index: {}]   ;;  %s1331_s1 = inlined_call_operand.hbm [shape: f32[64,128], index: 1, kind: input, shape index: {}]   ;;  %s1332_s2 = inlined_call_operand.hbm [shape: f32[1,128], index: 2, kind: input, shape index: {}]   ;;  %s1333_s3 = inlined_call_operand.hbm [shape: f32[1,128], index: 3, kind: input, shape index: {}]   ;;  %s1334_s4 = inlined_call_operand.hbm [shape: bf16[128,128], index: 4, kind: output, shape index: {}]  }
   0x1   :  { %11 = vsyncpa [#allocation3 + $0x1], 0 }
   0x2   :  { %12 = vsyncpa [#allocation6], 0 }
   0x3   :  { %13 = vsyncpa [#allocation9], 0 }
   0x4   :  { %14 = vsyncpa [#allocation4], 0 }
   0x5   :  { %16 = vsyncpa [#allocation4 + $0x1], 0  ;;  %s965_s15 = smov 0   ;;  %s967_s16 = smov 0  }
   0x6   :  { %s969_s17 = smov 0   ;;  %s971_s18 = smov 0  }
   0x7 LB: > { %s986_s19 = sadd.s32 4294967295, %s929_s18   ;;  %s581_s20 = sadd.s32 4294967294, %s929_s18   ;;  %s929_s18 = sphi %s971_s18, %s1357_s18   ;;  %s925_s17 = sphi %s969_s17, %s1356_s17   ;;  %s921_s16 = sphi %s967_s16, %s1355_s16   ;;  %s917_s15 = sphi %s965_s15, %s1354_s15  }
   0x8   : > { %p42_p0 = scmp.ne.s32.totalorder %s921_s16, %s917_s15  ;;  %p1335_p1 = scmp.eq.s32.totalorder %s986_s19, 0 }
   0x9   : > { %p135_p3 = scmp.eq.s32.totalorder %s581_s20, 1  ;;  %p582_p5 = scmp.ge.s32.totalorder %s929_s18, 1 }
   0xa   : > { %p995_p4 = por %p1335_p1, %p42_p0  ;;  %p142_p7 = scmp.lt.s32.totalorder %s929_s18, 3 }
   0xb   : > { %p1000_p6 = por %p135_p3, %p42_p0  ;;  %s931_s24 = smov [#allocation5]  }
   0xc   : > { %s1338_s21 = scalar_select %p995_p4, 1, 0 }
   0xd   : > { %s1339_s22 = scalar_select %p1000_p6, 1, 0 }
   0xe   : > { %p1005_p8 = pnand %p582_p5, %p142_p7  ;;  %s154_s25 = sshll.u32 %s931_s24, 4  ;;  %s1009_s25 = int_to_ptr.vmem [resolvable:$true] %s154_s25 }
   0xf   : > { %s932_s27 = smov [#allocation7]   ;;  %s933_s29 = smov [#allocation8]  }
  0x10   : > { %s1340_s23 = scalar_select %p1005_p8, 1, 0 }
  0x11   : > { %p660_p9 = pneg %p1005_p8  ;;  %s168_s28 = sshll.u32 %s932_s27, 4  ;;  %s1020_s28 = int_to_ptr.vmem [resolvable:$true] %s168_s28 }
  0x12   : > { %s1022_s30 = sshll.u32 %s933_s29, 4  ;;  %s741_s7 = scalar_lea.hbm %s1331_s1, 1024  ;;  %s180_s30 = int_to_ptr.vmem [resolvable:$true] %s1022_s30 }
  0x13   : > { %p1016_p11 = pnand %p660_p9, %p1335_p1  ;;  %p742_p12 = scmp.ne.s32.totalorder %s1331_s1, %s741_s7 }
  0x14   : > { %p748_p5 = scmp.lt.u32.totalorder %s741_s7, %s1331_s1 }
  0x15   : > { %p1032_p13 = pneg %p1016_p11 }
  0x17   : > { %p744_p0 = pnand %p1032_p13, %p742_p12 }
  0x19   : > { %p745_p3 = pneg %p744_p0 }
  0x1b   : > { %p750_p7 = pnand %p748_p5, %p745_p3 }
  0x1d   : > { %753 = shalt.err (!%p750_p7)
}
  0x1e   : > { %s754_s13 = scalar_lea.vmem %s1009_s25, 1024  ;;  %p762_p2 = scmp.lt.s32.totalorder %s1009_s25, %s1009_s25 }
  0x1f   : > { %p755_p9 = scmp.ne.s32.totalorder %s1009_s25, %s754_s13  ;;  %p763_p6 = scmp.lt.s32.totalorder %s754_s13, %s754_s13 }
  0x21   : > { %p757_p10 = pnand %p755_p9, %p1032_p13  ;;  %p764_p12 = por %p763_p6, %p762_p2 }
  0x23   : > { %p758_p1 = pneg %p757_p10 }
  0x25   : > { %p765_p0 = pnand %p764_p12, %p758_p1 }
  0x27   : > { %768 = shalt.err (!%p765_p0)
}
  0x28   : > { %s934_s14 = smov 128   ;;  %s935_s20 = smov 8  }
  0x29   : > { %663 = dma.hbm_to_vmem [thread:$0]  (!%p1016_p11), %s1331_s1, 1024, %s1009_s25, [#allocation6], %s934_s14, %s934_s14, %s935_s20  }
  0x2a   : > { %s769_s6 = scalar_lea.hbm %s1332_s2, 16 }
  0x2b   : > { %p770_p1 = scmp.ne.s32.totalorder %s1332_s2, %s769_s6  ;;  %p776_p10 = scmp.lt.u32.totalorder %s769_s6, %s1332_s2 }
  0x2d   : > { %p772_p2 = pnand %p770_p1, %p1032_p13 }
  0x2f   : > { %p773_p6 = pneg %p772_p2 }
  0x31   : > { %p778_p3 = pnand %p776_p10, %p773_p6 }
  0x33   : > { %781 = shalt.err (!%p778_p3)
}
  0x34   : > { %s782_s25 = scalar_lea.vmem %s1020_s28, 16  ;;  %s789_s12 = scalar_lea.vmem %s1020_s28, 32 }
  0x35   : > { %p783_p5 = scmp.ne.s32.totalorder %s1020_s28, %s782_s25  ;;  %p790_p12 = scmp.lt.s32.totalorder %s1020_s28, %s1020_s28 }
  0x36   : > { %p791_p0 = scmp.lt.s32.totalorder %s789_s12, %s782_s25 }
  0x37   : > { %p785_p7 = pnand %p783_p5, %p1032_p13 }
  0x38   : > { %p792_p1 = por %p791_p0, %p790_p12 }
  0x39   : > { %p786_p9 = pneg %p785_p7 }
  0x3b   : > { %p793_p2 = pnand %p792_p1, %p786_p9 }
  0x3d   : > { %796 = shalt.err (!%p793_p2)
}
  0x3e   : > { %666 = dma.hbm_to_vmem [thread:$0]  (!%p1016_p11), %s1332_s2, 16, %s1020_s28, [#allocation6]  }
  0x3f   : > { %s797_s5 = scalar_lea.hbm %s1333_s3, 16 }
  0x40   : > { %p798_p6 = scmp.ne.s32.totalorder %s1333_s3, %s797_s5  ;;  %p804_p5 = scmp.lt.u32.totalorder %s797_s5, %s1333_s3 }
  0x42   : > { %p800_p10 = pnand %p798_p6, %p1032_p13 }
  0x44   : > { %p801_p3 = pneg %p800_p10 }
  0x46   : > { %p806_p7 = pnand %p804_p5, %p801_p3 }
  0x48   : > { %809 = shalt.err (!%p806_p7)
}
  0x49   : > { %s810_s11 = scalar_lea.vmem %s180_s30, 16  ;;  %s817_s28 = scalar_lea.vmem %s180_s30, 32 }
  0x4a   : > { %p811_p9 = scmp.ne.s32.totalorder %s180_s30, %s810_s11  ;;  %p818_p1 = scmp.lt.s32.totalorder %s180_s30, %s180_s30 }
  0x4b   : > { %p819_p2 = scmp.lt.s32.totalorder %s817_s28, %s810_s11 }
  0x4c   : > { %p813_p12 = pnand %p811_p9, %p1032_p13 }
  0x4d   : > { %p820_p4 = por %p819_p2, %p818_p1 }
  0x4e   : > { %p814_p0 = pneg %p813_p12 }
  0x50   : > { %p821_p8 = pnand %p820_p4, %p814_p0 }
  0x52   : > { %824 = shalt.err (!%p821_p8)
}
  0x53   : > { %669 = dma.hbm_to_vmem [thread:$0]  (!%p1016_p11), %s1333_s3, 16, %s180_s30, [#allocation9]  }
  0x54   : > { %s1100_s10 = sadd.s32 1, %s929_s18   ;;  %s29_s26 = sadd.s32 1, %s925_s17 }
  0x55   : > { %s26_s13 = ssub.s32 %s929_s18, %s1100_s10  ;;  %p36_p8 = scmp.ne.s32.totalorder %s925_s17, %s921_s16 }
  0x56   : > { %p27_p4 = scmp.eq.s32.totalorder %s26_s13, 0  ;;  %p37_p13 = scmp.eq.s32.totalorder %s929_s18, 0 }
  0x57   : > { %p681_p6 = scmp.lt.s32.totalorder %s929_s18, 2  ;;  %p1343_p3 = scmp.eq.s32.totalorder %s986_s19, 1 }
  0x58   : > { %s1110_s24 = scalar_select %p27_p4, %s925_s17, %s29_s26  }
  0x59   : > { %p38_p10 = por %p37_p13, %p36_p8  ;;  %p1114_p5 = por %p1343_p3, %p36_p8 }
  0x5a   : > { %s190_s29 = sand.u32 1, %s925_s17   ;;  %s611_s5 = sshll.u32 %s929_s18, 10 }
  0x5b   : > { %s587_s30 = sshll.u32 %s190_s29, 6  ;;  %s1123_s8 = scalar_lea.hbm %s1330_s0, %s611_s5 }
  0x5c   : > { %s194_s9 = scalar_lea.vmem [#allocation2], %s587_s30  ;;  %p1125_p11 = pnand %p681_p6, %p38_p10 }
  0x5d   : > { %s201_s11 = sshll.u32 %s194_s9, 4  ;;  %s1131_s25 = scalar_lea.sflag [#allocation3], %s190_s29  ;;  %s1129_s11 = int_to_ptr.vmem [resolvable:$true] %s201_s11 }
  0x5e   : > { %s825_s12 = scalar_lea.hbm %s1123_s8, 1024  ;;  %p827_p9 = pneg %p1125_p11 }
  0x5f   : > { %p826_p7 = scmp.ne.s32.totalorder %s1123_s8, %s825_s12  ;;  %s830_s5 = scalar_lea.hbm %s1330_s0, 2048 }
  0x60   : > { %p831_p1 = scmp.lt.u32.totalorder %s1123_s8, %s1330_s0  ;;  %p832_p2 = scmp.lt.u32.totalorder %s830_s5, %s825_s12 }
  0x61   : > { %p828_p12 = pnand %p827_p9, %p826_p7  ;;  %p834_p8 = scmp.lt.u32.totalorder %s825_s12, %s1123_s8 }
  0x62   : > { %p833_p4 = por %p832_p2, %p831_p1 }
  0x63   : > { %p829_p0 = pneg %p828_p12 }
  0x64   : > { %p835_p13 = por %p834_p8, %p833_p4 }
  0x66   : > { %p836_p6 = pnand %p835_p13, %p829_p0 }
  0x68   : > { %839 = shalt.err (!%p836_p6)
}
  0x69   : > { %s840_s29 = scalar_lea.vmem %s1129_s11, 1024  ;;  %s936_s7 = smov [#allocation2]  }
  0x6a   : > { %p841_p10 = scmp.ne.s32.totalorder %s1129_s11, %s840_s29  ;;  %s845_s9 = sshll.u32 %s936_s7, 4  ;;  %s846_s9 = int_to_ptr.vmem [resolvable:$false] %s845_s9 }
  0x6b   : > { %s847_s13 = scalar_lea.vmem %s846_s9, 2048  ;;  %p848_p12 = scmp.lt.s32.totalorder %s1129_s11, %s846_s9 }
  0x6c   : > { %p843_p3 = pnand %p841_p10, %p827_p9  ;;  %p849_p1 = scmp.lt.s32.totalorder %s847_s13, %s840_s29 }
  0x6e   : > { %p844_p7 = pneg %p843_p3  ;;  %p850_p2 = por %p849_p1, %p848_p12 }
  0x70   : > { %p851_p4 = pnand %p850_p2, %p844_p7 }
  0x72   : > { %854 = shalt.err (!%p851_p4)
}
  0x73   : > { %673 = dma.hbm_to_vmem [thread:$0]  (!%p1125_p11), %s1123_s8, 1024, %s1129_s11, %s1131_s25, %s934_s14, %s934_s14, %s935_s20  }
  0x74   : > { %p1346_p9 = scmp.ne.s32.totalorder %s1340_s23, 0 }
  0x75   : > { %s1165_s12 = sand.u32 (!%p1346_p9), 1, %s921_s16   ;;  %p1347_p0 = scmp.ne.s32.totalorder (!%p1346_p9), %s1338_s21, 0 }
  0x76   : > { %213 = sbr.rel (%p1346_p9) target bundleno = 350 (0x15e), region = 36  ;;  %s591_s26 = sshll.u32 (!%p1346_p9), %s1165_s12, 6 }
  0x77   : > { %s216_s5 = scalar_lea.sflag (!%p1346_p9), [#allocation3], %s1165_s12  ;;  %s1169_s30 = scalar_lea.vmem (!%p1346_p9), [#allocation2], %s591_s26 }
  0x7d   : > { %900 = dma.done.wait (%p1347_p0), %s216_s5, 1024  }
  0x7e   : > { %902 = vsyncadd (%p1347_p0), %s216_s5, 4294966272  ;;  %p1348_p11 = scmp.eq.s32.totalorder %s986_s19, 0 }
  0x80   : > { %904 = dma.done.wait (%p1348_p11), [#allocation6], 1040   ;;  %p1349_p8 = pmov %p1348_p11 }
  0x82   : > { %906 = vsyncadd (%p1349_p8), [#allocation6], 4294966256  ;;  %p1350_p13 = pmov %p1349_p8 }
  0x83   : > { %p1351_p6 = pmov %p1349_p8 }
  0x84   : > { %908 = dma.done.wait (%p1350_p13), [#allocation9], 16  }
  0x85   : > { %910 = vsyncadd (%p1351_p6), [#allocation9], 4294967280  ;;  %v260_v0 = vld [vmem:[%s1169_s30 + $0x10] sm:$0xff]  ;;  %v258_v2 = vld [vmem:[%s1169_s30] sm:$0xff]  ;;  %s595_s21 = sshll.u32 %s1165_s12, 5  ;;  %s620_s14 = sshll.u32 %s986_s19, 9 }
  0x86   : > { %v268_v1 = vld [vmem:[#allocation5 + $0x10] sm:$0xff]  ;;  %v266_v4 = vld [vmem:[#allocation5] sm:$0xff]  ;;  %v261_v5 = vld [vmem:[%s1169_s30 + $0x18] sm:$0xff]  ;;  %s255_s23 = scalar_lea.vmem [#allocation10], %s595_s21  ;;  %s1284_s28 = scalar_lea.hbm %s1334_s4, %s620_s14 }
  0x87   : > { %v1185_v3 = vadd.f32 %v268_v1, %v260_v0  ;;  %v269_v6 = vld [vmem:[#allocation5 + $0x18] sm:$0xff]  ;;  %v1188_v7 = vadd.f32 %v266_v4, %v258_v2  ;;  %v259_v8 = vld [vmem:[%s1169_s30 + $0x8] sm:$0xff]  ;;  %v262_v14 = vld [vmem:[%s1169_s30 + $0x20] sm:$0xff]  ;;  %s479_s20 = sshll.u32 %s255_s23, 4  ;;  %s466_s25 = scalar_lea.sflag [#allocation4], %s1165_s12  ;;  %s1286_s20 = int_to_ptr.vmem [resolvable:$true] %s479_s20 }
  0x88   : > { %v267_v9 = vld [vmem:[#allocation5 + $0x8] sm:$0xff]  ;;  %v1192_v10 = vadd.f32 %v269_v6, %v261_v5  ;;  %v270_v15 = vld [vmem:[#allocation5 + $0x20] sm:$0xff]  ;;  %v265_v18 = vld [vmem:[%s1169_s30 + $0x38] sm:$0xff]  ;;  %s855_s6 = scalar_lea.vmem %s1286_s20, 512  ;;  %s937_s19 = smov [#allocation10]  }
  0x89   : > { %288 = vadd.xlane.f32.xlu1 %v1185_v3  ;;  %284 = vadd.xlane.f32.xlu0 %v1188_v7  ;;  %v1195_v11 = vadd.f32 %v267_v9, %v259_v8  ;;  %v263_v12 = vld [vmem:[%s1169_s30 + $0x28] sm:$0xff]  ;;  %v1203_v17 = vadd.f32 %v270_v15, %v262_v14  ;;  %v273_v19 = vld [vmem:[#allocation5 + $0x38] sm:$0xff]  ;;  %v264_v20 = vld [vmem:[%s1169_s30 + $0x30] sm:$0xff]  ;;  %v309_v25 = vmul.f32 %v1188_v7, %v1188_v7  ;;  %p856_p10 = scmp.ne.s32.totalorder %s1286_s20, %s855_s6  ;;  %s859_s29 = sshll.u32 %s937_s19, 4  ;;  %s860_s29 = int_to_ptr.vmem [resolvable:$false] %s859_s29 }
  0x8a   : > { %v271_v13 = vld [vmem:[#allocation5 + $0x28] sm:$0xff]  ;;  %v272_v21 = vld [vmem:[#allocation5 + $0x30] sm:$0xff]  ;;  %v1208_v22 = vadd.f32 %v273_v19, %v265_v18  ;;  %v312_v26 = vmul.f32 %v1192_v10, %v1192_v10  ;;  %v311_v27 = vmul.f32 %v1185_v3, %v1185_v3  ;;  %s861_s7 = scalar_lea.vmem %s860_s29, 1024  ;;  %p862_p12 = scmp.lt.s32.totalorder %s1286_s20, %s860_s29 }
  0x8b   : > { %v1200_v16 = vadd.f32 %v271_v13, %v263_v12  ;;  %v1211_v23 = vadd.f32 %v272_v21, %v264_v20  ;;  %v310_v24 = vmul.f32 %v1195_v11, %v1195_v11  ;;  %v313_v29 = vmul.f32 %v1203_v17, %v1203_v17  ;;  %p857_p3 = pnand %p856_p10, %p1114_p5  ;;  %p863_p1 = scmp.lt.s32.totalorder %s861_s7, %s855_s6 }
  0x8c   : > { %v316_v30 = vmul.f32 %v1208_v22, %v1208_v22 }
  0x8d   : > { %290 = vadd.xlane.f32.xlu1 %v1192_v10  ;;  %286 = vadd.xlane.f32.xlu0 %v1195_v11  ;;  %v314_v28 = vmul.f32 %v1200_v16, %v1200_v16  ;;  %v315_v31 = vmul.f32 %v1211_v23, %v1211_v23  ;;  %p858_p7 = pneg %p857_p3  ;;  %p864_p2 = por %p863_p1, %p862_p12 }
  0x8f   : > { %p865_p4 = pnand %p864_p2, %p858_p7 }
  0x91   : > { %294 = vadd.xlane.f32.xlu1 %v1200_v16  ;;  %292 = vadd.xlane.f32.xlu0 %v1203_v17 }
  0x95   : > { %298 = vadd.xlane.f32.xlu1 %v1208_v22  ;;  %296 = vadd.xlane.f32.xlu0 %v1211_v23 }
  0x99   : > { %319 = vadd.xlane.f32.xlu1 %v310_v24  ;;  %317 = vadd.xlane.f32.xlu0 %v309_v25 }
  0x9d   : > { %323 = vadd.xlane.f32.xlu1 %v312_v26  ;;  %321 = vadd.xlane.f32.xlu0 %v311_v27 }
  0xa1   : > { %327 = vadd.xlane.f32.xlu1 %v314_v28  ;;  %325 = vadd.xlane.f32.xlu0 %v313_v29 }
  0xa5   : > { %331 = vadd.xlane.f32.xlu1 %v316_v30  ;;  %329 = vadd.xlane.f32.xlu0 %v315_v31 }
 0x116   : > { %v289_v32 = vpop.xlane.xlu1 %288  ;;  %v285_v33 = vpop.xlane.xlu0 %284 }
 0x117   : > { %v1233_v41 = vmul.f32 0.0078125, %v285_v33  ;;  %v1239_v47 = vmul.f32 0.0078125, %v289_v32 }
 0x119   : > { %v341_v48 = vmul.f32 %v1233_v41, %v1233_v41  ;;  %v343_v59 = vmul.f32 %v1239_v47, %v1239_v47 }
 0x11a   : > { %v291_v34 = vpop.xlane.xlu1 %290  ;;  %v287_v35 = vpop.xlane.xlu0 %286 }
 0x11b   : > { %v1231_v39 = vmul.f32 0.0078125, %v287_v35  ;;  %v1235_v43 = vmul.f32 0.0078125, %v291_v34 }
 0x11d   : > { %v342_v44 = vmul.f32 %v1231_v39, %v1231_v39  ;;  %v344_v55 = vmul.f32 %v1235_v43, %v1235_v43 }
 0x11e   : > { %v295_v36 = vpop.xlane.xlu1 %294  ;;  %v293_v37 = vpop.xlane.xlu0 %292 }
 0x11f   : > { %v1243_v51 = vmul.f32 0.0078125, %v295_v36  ;;  %v1245_v52 = vmul.f32 0.0078125, %v293_v37  ;;  %v366_v37 = vsub.f32 %v1195_v11, %v1231_v39  ;;  %v367_v39 = vsub.f32 %v1185_v3, %v1239_v47 }
 0x121   : > { %v346_v0 = vmul.f32 %v1243_v51, %v1243_v51  ;;  %v345_v1 = vmul.f32 %v1245_v52, %v1245_v52 }
 0x122   : > { %v299_v38 = vpop.xlane.xlu1 %298  ;;  %v297_v40 = vpop.xlane.xlu0 %296 }
 0x123   : > { %v1255_v6 = vmul.f32 0.0078125, %v299_v38  ;;  %v1257_v13 = vmul.f32 0.0078125, %v297_v40 }
 0x125   : > { %v348_v25 = vmul.f32 %v1255_v6, %v1255_v6  ;;  %v347_v29 = vmul.f32 %v1257_v13, %v1257_v13 }
 0x126   : > { %v320_v42 = vpop.xlane.xlu1 %319  ;;  %v318_v46 = vpop.xlane.xlu0 %317 }
 0x127   : > { %v334_v45 = vmul.f32 0.0078125, %v320_v42  ;;  %v333_v49 = vmul.f32 0.0078125, %v318_v46  ;;  %v365_v42 = vsub.f32 %v1188_v7, %v1233_v41 }
 0x129   : > { %v350_v50 = vsub.f32 %v334_v45, %v342_v44  ;;  %v349_v53 = vsub.f32 %v333_v49, %v341_v48  ;;  %v596_v44 = vld [vmem:[#allocation7] ss:$0 sm:$0xff] }
 0x12a   : > { %v324_v54 = vpop.xlane.xlu1 %323  ;;  %v322_v58 = vpop.xlane.xlu0 %321 }
 0x12b   : > { %v358_v56 = vmax.f32 %v350_v50, 0.0  ;;  %v336_v57 = vmul.f32 0.0078125, %v324_v54  ;;  %v357_v60 = vmax.f32 %v349_v53, 0.0  ;;  %v335_v61 = vmul.f32 0.0078125, %v322_v58  ;;  %v597_v50 = vld [vmem:[#allocation8] ss:$0 sm:$0xff] }
 0x12c   : > { %v368_v54 = vsub.f32 %v1192_v10, %v1235_v43  ;;  %v369_v10 = vsub.f32 %v1203_v17, %v1245_v52 }
 0x12d   : > { %v374_v62 = vadd.f32 1e-05, %v358_v56  ;;  %v352_v63 = vsub.f32 %v336_v57, %v344_v55  ;;  %v373_v2 = vadd.f32 1e-05, %v357_v60  ;;  %v351_v4 = vsub.f32 %v335_v61, %v343_v59 }
 0x12e   : > { %v328_v5 = vpop.xlane.xlu1 %327  ;;  %v326_v12 = vpop.xlane.xlu0 %325  ;;  %v370_v60 = vsub.f32 %v1200_v16, %v1243_v51  ;;  %v371_v51 = vsub.f32 %v1211_v23, %v1257_v13 }
 0x12f   : > { %725 = vrsqrt.f32 %v374_v62  ;;  %v360_v8 = vmax.f32 %v352_v63, 0.0  ;;  %v338_v9 = vmul.f32 0.0078125, %v328_v5  ;;  %v359_v14 = vmax.f32 %v351_v4, 0.0 }
 0x130   : > { %727 = vrsqrt.f32 %v373_v2  ;;  %v337_v15 = vmul.f32 0.0078125, %v326_v12  ;;  %v372_v4 = vsub.f32 %v1208_v22, %v1255_v6 }
 0x131   : > { %v376_v18 = vadd.f32 1e-05, %v360_v8  ;;  %v354_v19 = vsub.f32 %v338_v9, %v346_v0  ;;  %v375_v20 = vadd.f32 1e-05, %v359_v14 }
 0x132   : > { %v353_v21 = vsub.f32 %v337_v15, %v345_v1  ;;  %v332_v24 = vpop.xlane.xlu1 %331  ;;  %v330_v28 = vpop.xlane.xlu0 %329 }
 0x133   : > { %729 = vrsqrt.f32 %v376_v18  ;;  %v362_v26 = vmax.f32 %v354_v19, 0.0  ;;  %v340_v27 = vmul.f32 0.0078125, %v332_v24  ;;  %v339_v31 = vmul.f32 0.0078125, %v330_v28 }
 0x134   : > { %731 = vrsqrt.f32 %v375_v20  ;;  %v361_v30 = vmax.f32 %v353_v21, 0.0 }
 0x135   : > { %v378_v32 = vadd.f32 1e-05, %v362_v26  ;;  %v356_v33 = vsub.f32 %v340_v27, %v348_v25  ;;  %v355_v35 = vsub.f32 %v339_v31, %v347_v29 }
 0x136   : > { %v377_v34 = vadd.f32 1e-05, %v361_v30 }
 0x137   : > { %733 = vrsqrt.f32 %v378_v32  ;;  %v364_v36 = vmax.f32 %v356_v33, 0.0  ;;  %v363_v38 = vmax.f32 %v355_v35, 0.0 }
 0x138   : > { %735 = vrsqrt.f32 %v377_v34 }
 0x139   : > { %v726_v40 = vpop.eup %725  ;;  %v380_v45 = vadd.f32 1e-05, %v364_v36  ;;  %v379_v49 = vadd.f32 1e-05, %v363_v38 }
 0x13a   : > { %v728_v46 = vpop.eup %727  ;;  %v390_v48 = vmul.f32 %v726_v40, %v366_v37 }
 0x13b   : > { %v389_v53 = vmul.f32 %v728_v46, %v365_v42  ;;  %737 = vrsqrt.f32 %v380_v45 }
 0x13c   : > { %v404_v55 = vmul.f32 %v596_v44, %v390_v48  ;;  %739 = vrsqrt.f32 %v379_v49 }
 0x13d   : > { %v730_v11 = vpop.eup %729  ;;  %v403_v56 = vmul.f32 %v596_v44, %v389_v53 }
 0x13e   : > { %v732_v7 = vpop.eup %731  ;;  %v418_v41 = vadd.f32 %v597_v50, %v404_v55  ;;  %v392_v57 = vmul.f32 %v730_v11, %v368_v54 }
 0x13f   : > { %v417_v58 = vadd.f32 %v597_v50, %v403_v56  ;;  %v391_v59 = vmul.f32 %v732_v7, %v367_v39 }
 0x140   : > { %v406_v61 = vmul.f32 %v596_v44, %v392_v57 }
 0x141   : > { %v734_v62 = vpop.eup %733  ;;  %v624_v43 = vpack.c.bf16 %v418_v41, %v417_v58  ;;  %v405_v63 = vmul.f32 %v596_v44, %v391_v59 }
 0x142   : > { %v736_v0 = vpop.eup %735  ;;  %v420_v1 = vadd.f32 %v597_v50, %v406_v61  ;;  %v394_v3 = vmul.f32 %v734_v62, %v370_v60 }
 0x143   : > { %v419_v47 = vadd.f32 %v597_v50, %v405_v63  ;;  %v393_v2 = vmul.f32 %v736_v0, %v369_v10  ;;  %625 = vst [vmem:[%s255_s23] sm:$0xff] %v624_v43  }
 0x144   : > { %v408_v5 = vmul.f32 %v596_v44, %v394_v3 }
 0x145   : > { %v738_v16 = vpop.eup %737  ;;  %v629_v8 = vpack.c.bf16 %v420_v1, %v419_v47  ;;  %v407_v17 = vmul.f32 %v596_v44, %v393_v2 }
 0x146   : > { %v740_v52 = vpop.eup %739  ;;  %v422_v9 = vadd.f32 %v597_v50, %v408_v5  ;;  %v396_v12 = vmul.f32 %v738_v16, %v372_v4 }
 0x147   : > { %v421_v14 = vadd.f32 %v597_v50, %v407_v17  ;;  %v395_v15 = vmul.f32 %v740_v52, %v371_v51  ;;  %641 = vst [vmem:[%s255_s23 + $0x8] sm:$0xff] %v629_v8  }
 0x148   : > { %v410_v18 = vmul.f32 %v596_v44, %v396_v12 }
 0x149   : > { %v634_v19 = vpack.c.bf16 %v422_v9, %v421_v14  ;;  %v409_v20 = vmul.f32 %v596_v44, %v395_v15 }
 0x14a   : > { %v424_v22 = vadd.f32 %v597_v50, %v410_v18 }
 0x14b   : > { %v423_v6 = vadd.f32 %v597_v50, %v409_v20  ;;  %642 = vst [vmem:[%s255_s23 + $0x10] sm:$0xff] %v634_v19  }
 0x14d   : > { %v639_v23 = vpack.c.bf16 %v424_v22, %v423_v6 }
 0x14f   : > { %643 = vst [vmem:[%s255_s23 + $0x18] sm:$0xff] %v639_v23  }
 0x150   : > { %868 = shalt.err (!%p865_p4)
}
 0x151   : > { %s869_s9 = scalar_lea.hbm %s1284_s28, 512  ;;  %s873_s5 = scalar_lea.hbm %s1334_s4, 1024 }
 0x152   : > { %p870_p9 = scmp.ne.s32.totalorder %s1284_s28, %s869_s9  ;;  %p874_p8 = scmp.lt.u32.totalorder %s1284_s28, %s1334_s4 }
 0x153   : > { %p875_p13 = scmp.lt.u32.totalorder %s873_s5, %s869_s9  ;;  %p877_p10 = scmp.lt.u32.totalorder %s869_s9, %s1284_s28 }
 0x154   : > { %p871_p0 = pnand %p870_p9, %p1114_p5 }
 0x155   : > { %p876_p6 = por %p875_p13, %p874_p8 }
 0x156   : > { %p872_p11 = pneg %p871_p0 }
 0x157   : > { %p878_p3 = por %p877_p10, %p876_p6 }
 0x159   : > { %p879_p7 = pnand %p878_p3, %p872_p11 }
 0x15b   : > { %882 = shalt.err (!%p879_p7)
}
 0x15c   : > { %s938_s23 = smov 64   ;;  %s939_s14 = smov 4  }
 0x15d   : > { %658 = dma.vmem_to_hbm [thread:$0]  (%p1114_p5), %s1286_s20, 512, %s1284_s28, %s466_s25, %s938_s23, %s938_s23, %s939_s14  }
 0x15e PF: > { %s494_s8 = sand.u32 1, %s917_s15   ;;  %p1352_p12 = scmp.ne.s32.totalorder %s1339_s22, 0 }
 0x15f   : > { %p1353_p1 = scmp.ge.s32.totalorder %s929_s18, 2  ;;  %s495_s11 = scalar_lea.sflag [#allocation4], %s494_s8 }
 0x161   : > { %p675_p2 = pnand %p1353_p1, %p1352_p12 }
 0x163   : > { %912 = dma.done.wait (!%p675_p2), %s495_s11, 512  }
 0x164   : > { %914 = vsyncadd (!%p675_p2), %s495_s11, 4294966784  ;;  %p19_p4 = scmp.ge.s32.totalorder %s1100_s10, 4   ;;  %s1354_s15 = smov %s921_s16 }
 0x165   : > { %s1355_s16 = smov %s925_s17  ;;  %s1356_s17 = smov %s1110_s24 }
 0x166   : > { %s1357_s18 = smov %s1100_s10  ;;  %21 = sbr.rel (!%p19_p4) target bundleno = 7 (0x7), region = 93 }
 0x16d   :  { %500 = vsyncpa [#allocation3], 1 }
 0x16e   :  { %502 = vsyncpa [#allocation3 + $0x1], 1 }
 0x16f   :  { %503 = vsyncpa [#allocation6], 1 }
 0x170   :  { %504 = vsyncpa [#allocation9], 1 }
 0x171   :  { %505 = vsyncpa [#allocation4], 1 }
 0x172   :  { %507 = vsyncpa [#allocation4 + $0x1], 1 }

// kernel: encoder_forward.7
= control target key start
LH: loop header
LB: loop body
LE: loop exit
PB: predicated region body
PF: predicated region fallthrough
CT: control target
= control target key end

     0   :  { %12 = vsyncpa [#allocation3], 0  ;;  %s4697_s0 = inlined_call_operand.hbm [shape: bf16[2,64,128], index: 0, kind: input, shape index: {}]   ;;  %s4698_s1 = inlined_call_operand.hbm [shape: bf16[128,384], index: 1, kind: input, shape index: {}]   ;;  %s4699_s2 = inlined_call_operand.hbm [shape: f32[1,384], index: 2, kind: input, shape index: {}]   ;;  %s4700_s3 = inlined_call_operand.hbm [shape: bf16[128,128], index: 3, kind: input, shape index: {}]   ;;  %s4701_s4 = inlined_call_operand.hbm [shape: f32[1,128], index: 4, kind: input, shape index: {}]   ;;  %s4702_s5 = inlined_call_operand.hbm [shape: f32[1,128], index: 5, kind: input, shape index: {}]   ;;  %s4703_s6 = inlined_call_operand.hbm [shape: f32[1,128], index: 6, kind: input, shape index: {}]   ;;  %s4704_s7 = inlined_call_operand.hbm [shape: bf16[2,64,128], index: 7, kind: output, shape index: {}]  }
   0x1   :  { %14 = vsyncpa [#allocation3 + $0x1], 0 }
   0x2   :  { %15 = vsyncpa [#allocation6], 0 }
   0x3   :  { %16 = vsyncpa [#allocation9], 0 }
   0x4   :  { %17 = vsyncpa [#allocation12], 0 }
   0x5   :  { %18 = vsyncpa [#allocation4], 0 }
   0x6   :  { %20 = vsyncpa [#allocation4 + $0x1], 0  ;;  %s3777_s24 = smov 0   ;;  %s3779_s25 = smov 0  }
   0x7   :  { %s3781_s26 = smov 0   ;;  %s3783_s27 = smov 0  }
   0x8 LB: > { %s3720_s28 = smov [#allocation5]   ;;  %s3798_s30 = sadd.s32 4294967295, %s3718_s27   ;;  %s3718_s27 = sphi %s3783_s27, %s4732_s27   ;;  %s3714_s26 = sphi %s3781_s26, %s4731_s26   ;;  %s3710_s25 = sphi %s3779_s25, %s4730_s25   ;;  %s3706_s24 = sphi %s3777_s24, %s4729_s24  }
   0x9   : > { %s221_s29 = sshll.u32 %s3720_s28, 4  ;;  %p2637_p0 = scmp.ge.s32.totalorder %s3718_s27, 1  ;;  %s3803_s29 = int_to_ptr.vmem [resolvable:$true] %s221_s29 }
   0xa   : > { %p4705_p1 = scmp.eq.s32.totalorder %s3798_s30, 0  ;;  %p209_p2 = scmp.lt.s32.totalorder %s3718_s27, 3 }
   0xb   : > { %s3721_s9 = smov [#allocation8]   ;;  %s3722_s12 = smov [#allocation11]  }
   0xc   : > { %p3805_p3 = pnand %p2637_p0, %p209_p2  ;;  %s245_s10 = sshll.u32 %s3721_s9, 4  ;;  %s3818_s10 = int_to_ptr.vmem [resolvable:$true] %s245_s10 }
   0xd   : > { %s3820_s13 = sshll.u32 %s3722_s12, 4  ;;  %s3442_s16 = scalar_lea.hbm %s4698_s1, 3072  ;;  %s271_s13 = int_to_ptr.vmem [resolvable:$true] %s3820_s13 }
   0xe   : > { %s4709_s8 = scalar_select %p3805_p3, 1, 0 }
   0xf   : > { %p3158_p5 = pneg %p3805_p3  ;;  %p3443_p7 = scmp.ne.s32.totalorder %s4698_s1, %s3442_s16 }
  0x10   : > { %p3449_p11 = scmp.lt.u32.totalorder %s3442_s16, %s4698_s1 }
  0x11   : > { %p3814_p6 = pnand %p3158_p5, %p4705_p1 }
  0x13   : > { %p3830_p8 = pneg %p3814_p6 }
  0x15   : > { %p3445_p9 = pnand %p3830_p8, %p3443_p7 }
  0x17   : > { %p3446_p10 = pneg %p3445_p9 }
  0x19   : > { %p3451_p12 = pnand %p3449_p11, %p3446_p10 }
  0x1b   : > { %3454 = shalt.err (!%p3451_p12)
}
  0x1c   : > { %s3455_s22 = scalar_lea.vmem %s3803_s29, 3072  ;;  %p3463_p5 = scmp.lt.s32.totalorder %s3803_s29, %s3803_s29 }
  0x1d   : > { %p3456_p13 = scmp.ne.s32.totalorder %s3803_s29, %s3455_s22  ;;  %p3464_p4 = scmp.lt.s32.totalorder %s3455_s22, %s3455_s22 }
  0x1f   : > { %p3458_p0 = pnand %p3456_p13, %p3830_p8  ;;  %p3465_p7 = por %p3464_p4, %p3463_p5 }
  0x21   : > { %p3459_p2 = pneg %p3458_p0 }
  0x23   : > { %p3466_p9 = pnand %p3465_p7, %p3459_p2 }
  0x25   : > { %3469 = shalt.err (!%p3466_p9)
}
  0x26   : > { %s3723_s23 = smov 192   ;;  %s3724_s28 = smov 12  }
  0x27   : > { %3161 = dma.hbm_to_vmem [thread:$0]  (!%p3814_p6), %s4698_s1, 3072, %s3803_s29, [#allocation6], %s3723_s23, %s3723_s23, %s3724_s28  }
  0x28   : > { %s3470_s16 = scalar_lea.hbm %s4700_s3, 1024 }
  0x29   : > { %p3471_p4 = scmp.ne.s32.totalorder %s4700_s3, %s3470_s16  ;;  %p3477_p12 = scmp.lt.u32.totalorder %s3470_s16, %s4700_s3 }
  0x2b   : > { %p3473_p10 = pnand %p3471_p4, %p3830_p8 }
  0x2d   : > { %p3474_p11 = pneg %p3473_p10 }
  0x2f   : > { %p3479_p13 = pnand %p3477_p12, %p3474_p11 }
  0x31   : > { %3482 = shalt.err (!%p3479_p13)
}
  0x32   : > { %s3483_s29 = scalar_lea.vmem %s3818_s10, 1024  ;;  %p3491_p7 = scmp.lt.s32.totalorder %s3818_s10, %s3818_s10 }
  0x33   : > { %p3484_p0 = scmp.ne.s32.totalorder %s3818_s10, %s3483_s29  ;;  %p3492_p9 = scmp.lt.s32.totalorder %s3483_s29, %s3483_s29 }
  0x35   : > { %p3486_p2 = pnand %p3484_p0, %p3830_p8  ;;  %p3493_p4 = por %p3492_p9, %p3491_p7 }
  0x37   : > { %p3487_p5 = pneg %p3486_p2 }
  0x39   : > { %p3494_p10 = pnand %p3493_p4, %p3487_p5 }
  0x3b   : > { %3497 = shalt.err (!%p3494_p10)
}
  0x3c   : > { %s4707_s22 = smov 64   ;;  %s3726_s23 = smov 4  }
  0x3d   : > { %3167 = dma.hbm_to_vmem [thread:$0]  (!%p3814_p6), %s4700_s3, 1024, %s3818_s10, [#allocation9], %s4707_s22, %s4707_s22, %s3726_s23  }
  0x3e   : > { %s3498_s15 = scalar_lea.hbm %s4702_s5, 16 }
  0x3f   : > { %p3499_p11 = scmp.ne.s32.totalorder %s4702_s5, %s3498_s15  ;;  %p3505_p0 = scmp.lt.u32.totalorder %s3498_s15, %s4702_s5 }
  0x41   : > { %p3501_p12 = pnand %p3499_p11, %p3830_p8 }
  0x43   : > { %p3502_p13 = pneg %p3501_p12 }
  0x45   : > { %p3507_p2 = pnand %p3505_p0, %p3502_p13 }
  0x47   : > { %3510 = shalt.err (!%p3507_p2)
}
  0x48   : > { %s3511_s21 = scalar_lea.vmem %s271_s13, 16  ;;  %s3518_s10 = scalar_lea.vmem %s271_s13, 32 }
  0x49   : > { %p3512_p5 = scmp.ne.s32.totalorder %s271_s13, %s3511_s21  ;;  %p3519_p4 = scmp.lt.s32.totalorder %s271_s13, %s271_s13 }
  0x4a   : > { %p3520_p10 = scmp.lt.s32.totalorder %s3518_s10, %s3511_s21 }
  0x4b   : > { %p3514_p7 = pnand %p3512_p5, %p3830_p8 }
  0x4c   : > { %p3521_p1 = por %p3520_p10, %p3519_p4 }
  0x4d   : > { %p3515_p9 = pneg %p3514_p7 }
  0x4f   : > { %p3522_p3 = pnand %p3521_p1, %p3515_p9 }
  0x51   : > { %3525 = shalt.err (!%p3522_p3)
}
  0x52   : > { %3173 = dma.hbm_to_vmem [thread:$0]  (!%p3814_p6), %s4702_s5, 16, %s271_s13, [#allocation12]  }
  0x53   : > { %s3727_s9 = smov [#allocation7]   ;;  %s3728_s14 = smov [#allocation10]  }
  0x54   : > { %s235_s12 = sshll.u32 %s3727_s9, 4  ;;  %s259_s15 = sshll.u32 %s3728_s14, 4  ;;  %s236_s12 = int_to_ptr.vmem [resolvable:$true] %s235_s12  ;;  %s260_s15 = int_to_ptr.vmem [resolvable:$true] %s259_s15 }
  0x55   : > { %s3526_s18 = scalar_lea.hbm %s4699_s2, 48 }
  0x56   : > { %p3527_p1 = scmp.ne.s32.totalorder %s4699_s2, %s3526_s18  ;;  %p3533_p12 = scmp.lt.u32.totalorder %s3526_s18, %s4699_s2 }
  0x58   : > { %p3529_p3 = pnand %p3527_p1, %p3830_p8 }
  0x5a   : > { %p3530_p11 = pneg %p3529_p3 }
  0x5c   : > { %p3535_p13 = pnand %p3533_p12, %p3530_p11 }
  0x5e   : > { %3538 = shalt.err (!%p3535_p13)
}
  0x5f   : > { %s3539_s13 = scalar_lea.vmem %s236_s12, 48  ;;  %s3546_s28 = scalar_lea.vmem %s236_s12, 64 }
  0x60   : > { %p3540_p0 = scmp.ne.s32.totalorder %s236_s12, %s3539_s13  ;;  %p3547_p7 = scmp.lt.s32.totalorder %s236_s12, %s236_s12 }
  0x61   : > { %p3548_p9 = scmp.lt.s32.totalorder %s3546_s28, %s3539_s13 }
  0x62   : > { %p3542_p2 = pnand %p3540_p0, %p3830_p8 }
  0x63   : > { %p3549_p4 = por %p3548_p9, %p3547_p7 }
  0x64   : > { %p3543_p5 = pneg %p3542_p2 }
  0x66   : > { %p3550_p10 = pnand %p3549_p4, %p3543_p5 }
  0x68   : > { %3553 = shalt.err (!%p3550_p10)
}
  0x69   : > { %3164 = dma.hbm_to_vmem [thread:$0]  (!%p3814_p6), %s4699_s2, 48, %s236_s12, [#allocation6]  }
  0x6a   : > { %s3554_s18 = scalar_lea.hbm %s4701_s4, 16 }
  0x6b   : > { %p3555_p1 = scmp.ne.s32.totalorder %s4701_s4, %s3554_s18  ;;  %p3561_p12 = scmp.lt.u32.totalorder %s3554_s18, %s4701_s4 }
  0x6d   : > { %p3557_p3 = pnand %p3555_p1, %p3830_p8 }
  0x6f   : > { %p3558_p11 = pneg %p3557_p3 }
  0x71   : > { %p3563_p13 = pnand %p3561_p12, %p3558_p11 }
  0x73   : > { %3566 = shalt.err (!%p3563_p13)
}
  0x74   : > { %s3567_s13 = scalar_lea.vmem %s260_s15, 16  ;;  %s3574_s12 = scalar_lea.vmem %s260_s15, 32 }
  0x75   : > { %p3568_p0 = scmp.ne.s32.totalorder %s260_s15, %s3567_s13  ;;  %p3575_p7 = scmp.lt.s32.totalorder %s260_s15, %s260_s15 }
  0x76   : > { %p3576_p9 = scmp.lt.s32.totalorder %s3574_s12, %s3567_s13 }
  0x77   : > { %p3570_p2 = pnand %p3568_p0, %p3830_p8 }
  0x78   : > { %p3577_p4 = por %p3576_p9, %p3575_p7 }
  0x79   : > { %p3571_p5 = pneg %p3570_p2 }
  0x7b   : > { %p3578_p10 = pnand %p3577_p4, %p3571_p5 }
  0x7d   : > { %3581 = shalt.err (!%p3578_p10)
}
  0x7e   : > { %3170 = dma.hbm_to_vmem [thread:$0]  (!%p3814_p6), %s4701_s4, 16, %s260_s15, [#allocation9]  }
  0x7f   : > { %s3729_s14 = smov [#allocation13]   ;;  %s3582_s20 = scalar_lea.hbm %s4703_s6, 16 }
  0x80   : > { %s281_s16 = sshll.u32 %s3729_s14, 4  ;;  %p3583_p1 = scmp.ne.s32.totalorder %s4703_s6, %s3582_s20  ;;  %s282_s16 = int_to_ptr.vmem [resolvable:$true] %s281_s16 }
  0x81   : > { %p3589_p12 = scmp.lt.u32.totalorder %s3582_s20, %s4703_s6 }
  0x82   : > { %p3585_p3 = pnand %p3583_p1, %p3830_p8 }
  0x84   : > { %p3586_p11 = pneg %p3585_p3 }
  0x86   : > { %p3591_p13 = pnand %p3589_p12, %p3586_p11 }
  0x88   : > { %3594 = shalt.err (!%p3591_p13)
}
  0x89   : > { %s3595_s15 = scalar_lea.vmem %s282_s16, 16  ;;  %s3602_s12 = scalar_lea.vmem %s282_s16, 32 }
  0x8a   : > { %p3596_p0 = scmp.ne.s32.totalorder %s282_s16, %s3595_s15  ;;  %p3603_p7 = scmp.lt.s32.totalorder %s282_s16, %s282_s16 }
  0x8b   : > { %p3604_p9 = scmp.lt.s32.totalorder %s3602_s12, %s3595_s15 }
  0x8c   : > { %p3598_p2 = pnand %p3596_p0, %p3830_p8 }
  0x8d   : > { %p3605_p4 = por %p3604_p9, %p3603_p7 }
  0x8e   : > { %p3599_p5 = pneg %p3598_p2 }
  0x90   : > { %p3606_p10 = pnand %p3605_p4, %p3599_p5 }
  0x92   : > { %3609 = shalt.err (!%p3606_p10)
}
  0x93   : > { %3176 = dma.hbm_to_vmem [thread:$0]  (!%p3814_p6), %s4703_s6, 16, %s282_s16, [#allocation12]  }
  0x94   : > { %s2636_s19 = sadd.s32 4294967294, %s3718_s27   ;;  %s3952_s11 = sadd.s32 1, %s3718_s27  }
  0x95   : > { %s30_s14 = ssub.s32 %s3718_s27, %s3952_s11  ;;  %s33_s17 = sadd.s32 1, %s3714_s26 }
  0x96   : > { %p31_p8 = scmp.eq.s32.totalorder %s30_s14, 0  ;;  %p40_p1 = scmp.ne.s32.totalorder %s3714_s26, %s3710_s25 }
  0x97   : > { %p41_p3 = scmp.eq.s32.totalorder %s3718_s27, 0  ;;  %p46_p11 = scmp.ne.s32.totalorder %s3710_s25, %s3706_s24 }
  0x98   : > { %s3963_s18 = scalar_select %p31_p8, %s3714_s26, %s33_s17  }
  0x99   : > { %p3965_p12 = por %p41_p3, %p40_p1  ;;  %p4713_p13 = scmp.eq.s32.totalorder %s3798_s30, 0 }
  0x9a   : > { %p196_p0 = scmp.eq.s32.totalorder %s3798_s30, 1  ;;  %p202_p2 = scmp.eq.s32.totalorder %s2636_s19, 1 }
  0x9b   : > { %p3971_p6 = por %p4713_p13, %p46_p11  ;;  %p3191_p5 = scmp.lt.s32.totalorder %s3718_s27, 2 }
  0x9c   : > { %s292_s21 = sand.u32 1, %s3714_s26   ;;  %p3978_p7 = por %p196_p0, %p40_p1 }
  0x9d   : > { %p3982_p9 = por %p202_p2, %p46_p11  ;;  %s2645_s13 = sshll.u32 %s292_s21, 5 }
  0x9e   : > { %s4715_s10 = scalar_select %p3978_p7, 1, 0 }
  0x9f   : > { %s4716_s29 = scalar_select %p3982_p9, 1, 0 }
  0xa0   : > { %s2757_s15 = sshll.u32 %s3718_s27, 9  ;;  %s296_s19 = scalar_lea.vmem [#allocation2], %s2645_s13 }
  0xa1   : > { %s3990_s9 = scalar_lea.hbm %s4697_s0, %s2757_s15  ;;  %s303_s14 = sshll.u32 %s296_s19, 4  ;;  %s3992_s14 = int_to_ptr.vmem [resolvable:$true] %s303_s14 }
  0xa2   : > { %p3996_p4 = pnand %p3191_p5, %p3965_p12  ;;  %s4000_s22 = scalar_lea.sflag [#allocation3], %s292_s21 }
  0xa3   : > { %s3610_s12 = scalar_lea.hbm %s3990_s9, 512  ;;  %s3615_s20 = scalar_lea.hbm %s4697_s0, 1024 }
  0xa4   : > { %p3611_p10 = scmp.ne.s32.totalorder %s3990_s9, %s3610_s12  ;;  %p3612_p8 = pneg %p3996_p4 }
  0xa5   : > { %p3616_p11 = scmp.lt.u32.totalorder %s3990_s9, %s4697_s0  ;;  %p3617_p12 = scmp.lt.u32.totalorder %s3615_s20, %s3610_s12 }
  0xa6   : > { %p3613_p1 = pnand %p3612_p8, %p3611_p10  ;;  %p3619_p0 = scmp.lt.u32.totalorder %s3610_s12, %s3990_s9 }
  0xa7   : > { %p3618_p13 = por %p3617_p12, %p3616_p11 }
  0xa8   : > { %p3614_p3 = pneg %p3613_p1 }
  0xa9   : > { %p3620_p2 = por %p3619_p0, %p3618_p13 }
  0xab   : > { %p3621_p5 = pnand %p3620_p2, %p3614_p3 }
  0xad   : > { %3624 = shalt.err (!%p3621_p5)
}
  0xae   : > { %s3625_s21 = scalar_lea.vmem %s3992_s14, 512  ;;  %s3730_s13 = smov [#allocation2]  }
  0xaf   : > { %p3626_p10 = scmp.ne.s32.totalorder %s3992_s14, %s3625_s21  ;;  %s3630_s15 = sshll.u32 %s3730_s13, 4  ;;  %s3631_s15 = int_to_ptr.vmem [resolvable:$false] %s3630_s15 }
  0xb0   : > { %s3632_s28 = scalar_lea.vmem %s3631_s15, 1024  ;;  %p3633_p7 = scmp.lt.s32.totalorder %s3992_s14, %s3631_s15 }
  0xb1   : > { %p3628_p1 = pnand %p3626_p10, %p3612_p8  ;;  %p3634_p11 = scmp.lt.s32.totalorder %s3632_s28, %s3625_s21 }
  0xb3   : > { %p3629_p9 = pneg %p3628_p1  ;;  %p3635_p12 = por %p3634_p11, %p3633_p7 }
  0xb5   : > { %p3636_p13 = pnand %p3635_p12, %p3629_p9 }
  0xb7   : > { %3639 = shalt.err (!%p3636_p13)
}
  0xb8   : > { %s4718_s12 = smov 64   ;;  %p4719_p8 = scmp.ne.s32.totalorder %s4709_s8, 0 }
  0xb9   : > { %3180 = dma.hbm_to_vmem [thread:$0]  (!%p3996_p4), %s3990_s9, 512, %s3992_s14, %s4000_s22, %s4718_s12, %s4718_s12, %s3726_s23  }
  0xba   : > { %315 = sbr.rel (%p4719_p8) target bundleno = 2642 (0xa52), region = 48  ;;  %s4034_s20 = sand.u32 (!%p4719_p8), 1, %s3710_s25  }
  0xbb   : > { %s2649_s19 = sshll.u32 (!%p4719_p8), %s4034_s20, 5  ;;  %s318_s21 = scalar_lea.sflag (!%p4719_p8), [#allocation3], %s4034_s20 }
  0xbc   : > { %s4040_s17 = scalar_lea.vmem (!%p4719_p8), [#allocation2], %s2649_s19 }
  0xc1   : > { %3685 = dma.done.wait (%p3971_p6), %s318_s21, 512  }
  0xc2   : > { %3687 = vsyncadd (%p3971_p6), %s318_s21, 4294966784  ;;  %p4720_p7 = scmp.eq.s32.totalorder %s3798_s30, 0 }
  0xc4   : > { %3689 = dma.done.wait (%p4720_p7), [#allocation6], 3120   ;;  %p4721_p9 = pmov %p4720_p7 }
  0xc5   : > { %p4722_p4 = pmov %p4720_p7 }
  0xc6   : > { %3691 = vsyncadd (%p4721_p9), [#allocation6], 4294964176 }
  0xc7   : > { %3693 = dma.done.wait (%p4722_p4), [#allocation9], 1040   ;;  %p4723_p3 = pmov %p4722_p4 }
  0xc9   : > { %3695 = vsyncadd (%p4723_p3), [#allocation9], 4294966256  ;;  %p4724_p0 = pmov %p4723_p3 }
  0xcb   : > { %3697 = dma.done.wait (%p4724_p0), [#allocation12], 32   ;;  %p4725_p2 = pmov %p4724_p0 }
  0xcc   : > { %v3731_v0 = vmov 0   ;;  %v3246_v1 = vld [vmem:[#allocation5 + $0x4] ss:$12 sps:$4 sm:$0xff]   ;;  %v3248_v2 = vld [vmem:[#allocation5] ss:$12 sps:$4 sm:$0xff]   ;;  %v383_v20 = vld [vmem:[%s4040_s17 + $0x18] sm:$0xff]   ;;  %v419_v29 = vlaneseq }
  0xcd   : > { %3699 = vsyncadd (%p4725_p2), [#allocation12], 4294967264  ;;  %618 = vmatprep.mubr.bf16.mxu0 %v3731_v0  ;;  %586 = vmatprep.subr.bf16.mxu0 %v3246_v1  ;;  %v3249_v3 = vld [vmem:[#allocation5 + $0x1c] ss:$12 sps:$4 sm:$0xff]   ;;  %v3251_v4 = vld [vmem:[#allocation5 + $0x18] ss:$12 sps:$4 sm:$0xff]  }
  0xce   : > { %587 = vmatpush1.bf16.msra.mxu0 %v3248_v2  ;;  %v3252_v5 = vld [vmem:[#allocation5 + $0x34] ss:$12 sps:$4 sm:$0xff]   ;;  %v3254_v6 = vld [vmem:[#allocation5 + $0x30] ss:$12 sps:$4 sm:$0xff]   ;;  %v3255_v7 = vld [vmem:[#allocation5 + $0x4c] ss:$12 sps:$4 sm:$0xff]  }
  0xcf   : > { %588 = vmatprep.subr.bf16.mxu0 %v3249_v3  ;;  %v377_v8 = vld [vmem:[%s4040_s17] sm:$0xff]   ;;  %v3257_v9 = vld [vmem:[#allocation5 + $0x48] ss:$12 sps:$4 sm:$0xff]   ;;  %v3266_v15 = vld [vmem:[#allocation5 + $0x90] ss:$12 sps:$4 sm:$0xff]   ;;  %v4062_v30 = vshrl.u32 %v419_v29, 7 }
  0xd0   : > { %v3258_v10 = vld [vmem:[#allocation5 + $0x64] ss:$12 sps:$4 sm:$0xff]   ;;  %v3260_v11 = vld [vmem:[#allocation5 + $0x60] ss:$12 sps:$4 sm:$0xff]   ;;  %2906 = vmatprep.mubr.bf16.mxu1 %v377_v8  ;;  %v3261_v12 = vld [vmem:[#allocation5 + $0x7c] ss:$12 sps:$4 sm:$0xff]  }
  0xd1   : > { %v3263_v13 = vld [vmem:[#allocation5 + $0x78] ss:$12 sps:$4 sm:$0xff]   ;;  %v3264_v14 = vld [vmem:[#allocation5 + $0x94] ss:$12 sps:$4 sm:$0xff]   ;;  %v379_v18 = vld [vmem:[%s4040_s17 + $0x8] sm:$0xff]   ;;  %v421_v31 = vsub.s32 0, %v4062_v30 }
  0xd2   : > { %589 = vmatpush1.bf16.msra.mxu0 %v3251_v4  ;;  %v3267_v16 = vld [vmem:[#allocation5 + $0xac] ss:$12 sps:$4 sm:$0xff]   ;;  %v3269_v17 = vld [vmem:[#allocation5 + $0xa8] ss:$12 sps:$4 sm:$0xff]   ;;  %v3277_v24 = vld [vmem:[#allocation5 + $0x50] ss:$12 sps:$4 sm:$0xff]  }
  0xd3   : > { %590 = vmatprep.subr.bf16.mxu0 %v3252_v5  ;;  %v381_v19 = vld [vmem:[%s4040_s17 + $0x10] sm:$0xff]   ;;  %v3275_v22 = vld [vmem:[#allocation5 + $0x20] ss:$12 sps:$4 sm:$0xff]   ;;  %v3276_v23 = vld [vmem:[#allocation5 + $0x38] ss:$12 sps:$4 sm:$0xff]   ;;  %v425_v33 = vsub.s32 1, %v4062_v30 }
  0xd4   : > { %v3274_v21 = vld [vmem:[#allocation5 + $0x8] ss:$12 sps:$4 sm:$0xff]   ;;  %v3279_v26 = vld [vmem:[#allocation5 + $0x80] ss:$12 sps:$4 sm:$0xff]   ;;  %v3280_v27 = vld [vmem:[#allocation5 + $0x98] ss:$12 sps:$4 sm:$0xff]  }
  0xd5   : > { %2890 = vmatprep.subr.bf16.mxu1 %v3274_v21  ;;  %v3278_v25 = vld [vmem:[#allocation5 + $0x68] ss:$12 sps:$4 sm:$0xff]   ;;  %v3281_v28 = vld [vmem:[#allocation5 + $0xb0] ss:$12 sps:$4 sm:$0xff]   ;;  %v4065_v32 = vld [vmem:[#allocation7] sm:$0x7] }
  0xd6   : > { %591 = vmatpush1.bf16.msra.mxu0 %v3254_v6  ;;  %2891 = vmatpush3.bf16.msra.mxu1 %v3274_v21  ;;  %v422_v34 = vrot.slane %v4065_v32, %v421_v31  ;;  %v426_v36 = vrot.slane %v4065_v32, %v425_v33  ;;  %vm744_vm0 = vcmask 261120   ;;  %vm834_vm1 = vcmask 523264   ;;  %s3732_s8 = smov 96   ;;  %s3733_s22 = smov 64  }
  0xd7   : > { %592 = vmatprep.subr.bf16.mxu0 %v3255_v7  ;;  %2892 = vmatprep.subr.bf16.mxu1 %v3275_v22  ;;  %s3734_s23 = smov 32   ;;  %s4626_s16 = scalar_lea.vmem [#allocation14], %s2649_s19 }
  0xd8   : > { %s2766_s9 = sshll.u32 %s3798_s30, 9  ;;  %s2506_s14 = sshll.u32 %s4626_s16, 4  ;;  %s4650_s14 = int_to_ptr.vmem [resolvable:$true] %s2506_s14 }
  0xd9   : > { %s4648_s28 = scalar_lea.hbm %s4704_s7, %s2766_s9  ;;  %s2493_s12 = scalar_lea.sflag [#allocation4], %s4034_s20 }
  0xda   : > { %593 = vmatpush1.bf16.msra.mxu0 %v3257_v9  ;;  %2893 = vmatpush3.bf16.msra.mxu1 %v3275_v22  ;;  %s3640_s19 = scalar_lea.vmem %s4650_s14, 512  ;;  %p4726_p5 = scmp.ne.s32.totalorder %s4715_s10, 0 }
  0xdb   : > { %594 = vmatprep.subr.bf16.mxu0 %v3258_v10  ;;  %2894 = vmatprep.subr.bf16.mxu1 %v3276_v23  ;;  %p3641_p6 = scmp.ne.s32.totalorder %s4650_s14, %s3640_s19  ;;  %s3735_s30 = smov [#allocation14]  }
  0xdc   : > { %s3644_s21 = sshll.u32 %s3735_s30, 4  ;;  %s3645_s21 = int_to_ptr.vmem [resolvable:$false] %s3644_s21 }
  0xdd   : > { %p3642_p10 = pnand %p3641_p6, %p4726_p5  ;;  %p3647_p11 = scmp.lt.s32.totalorder %s4650_s14, %s3645_s21 }
  0xde   : > { %595 = vmatpush1.bf16.msra.mxu0 %v3260_v11  ;;  %2895 = vmatpush3.bf16.msra.mxu1 %v3276_v23 }
  0xdf   : > { %596 = vmatprep.subr.bf16.mxu0 %v3261_v12  ;;  %2896 = vmatprep.subr.bf16.mxu1 %v3277_v24  ;;  %p3643_p1 = pneg %p3642_p10 }
  0xe2   : > { %597 = vmatpush1.bf16.msra.mxu0 %v3263_v13  ;;  %2897 = vmatpush3.bf16.msra.mxu1 %v3277_v24  ;;  %v429_v24 = vsub.s32 2, %v4062_v30 }
  0xe3   : > { %598 = vmatprep.subr.bf16.mxu0 %v3264_v14  ;;  %2898 = vmatprep.subr.bf16.mxu1 %v3278_v25 }
  0xe6   : > { %599 = vmatpush1.bf16.msra.mxu0 %v3266_v15  ;;  %2899 = vmatpush3.bf16.msra.mxu1 %v3278_v25 }
  0xe7   : > { %600 = vmatprep.subr.bf16.mxu0 %v3267_v16  ;;  %2900 = vmatprep.subr.bf16.mxu1 %v3279_v26 }
  0xea   : > { %601 = vmatpush1.bf16.msra.mxu0 %v3269_v17  ;;  %2901 = vmatpush3.bf16.msra.mxu1 %v3279_v26 }
  0xeb   : > { %2902 = vmatprep.subr.bf16.mxu1 %v3280_v27 }
  0xed   : > { %619 = vmatmul.mubr.bf16.vlgmr.msra.gmra.mrb[0].mxu0 %v377_v8 }
  0xee   : > { %628 = vmatprep.mubr.bf16.mxu0 %v3731_v0  ;;  %2903 = vmatpush3.bf16.msra.mxu1 %v3280_v27  ;;  %v430_v27 = vrot.slane %v4065_v32, %v429_v24 }
  0xef   : > { %2904 = vmatprep.subr.bf16.mxu1 %v3281_v28 }
  0xf2   : > { %2905 = vmatpush3.bf16.msra.mxu1 %v3281_v28 }
  0xf5   : > { %629 = vmatmul.mubr.bf16.gmra.mrb[4].mxu0 %v379_v18  ;;  %2907 = vmatmul.mubr.bf16.vlgmr.msra.gmra.mrb[0].mxu1 %v379_v18 }
  0xf6   : > { %638 = vmatprep.mubr.bf16.mxu0 %v3731_v0  ;;  %2910 = vmatprep.mubr.bf16.mxu1 %v381_v19 }
  0xfd   : > { %639 = vmatmul.mubr.bf16.gmra.mrb[8].mxu0 %v381_v19  ;;  %2911 = vmatmul.mubr.bf16.gmra.mrb[4].mxu1 %v383_v20 }
  0xfe   : > { %648 = vmatprep.mubr.bf16.mxu0 %v3731_v0 }
 0x105   : > { %649 = vmatmul.mubr.bf16.gmra.mrb[12].mxu0 %v383_v20 }
 0x1c0   : > { %v620_v35 = vpop.f32.mrb[0].mxu0 }
 0x1c1   : > { %v621_v37 = vadd.f32 %v620_v35, %v422_v34  ;;  %v622_v38 = vpop.f32.mrb[1].mxu0 }
 0x1c2   : > { %v624_v39 = vpop.f32.mrb[2].mxu0  ;;  %v623_v42 = vadd.f32 %v622_v38, %v426_v36 }
 0x1c3   : > { %v625_v40 = vadd.f32 %v624_v39, %v422_v34  ;;  %v626_v41 = vpop.f32.mrb[3].mxu0  ;;  %v724_v44 = vmul.f32 0.17677669, %v621_v37 }
 0x1c4   : > { %v627_v43 = vadd.f32 %v626_v41, %v426_v36 }
 0x1c5   : > { %v725_v45 = vmul.f32 0.17677669, %v625_v40 }
 0x1c6   : > { %v4070_v46 = vpack.c.bf16 %v627_v43, %v623_v42 }
 0x1c7   : > { %v4072_v47 = vpack.c.bf16 %v725_v45, %v724_v44 }
 0x1c8   : > { %v630_v48 = vpop.f32.mrb[4].mxu0  ;;  %3114 = vmatprep.subr.msk.bf16.mxu0 %vm744_vm0, %v4070_v46  ;;  %v758_v49 = vsel %vm744_vm0, %v4070_v46, 0  ;;  %v2908_v25 = vpop.f32.mrb[0].mxu1 }
 0x1c9   : > { %v631_v50 = vadd.f32 %v630_v48, %v422_v34  ;;  %v632_v51 = vpop.f32.mrb[5].mxu0  ;;  %2915 = vmatpush3.bf16.xpose.msra.mxu0 %v758_v49  ;;  %2922 = vmatprep.mubr.msk.bf16.mxu0 %vm744_vm0, %v4072_v47  ;;  %v693_v26 = vpop.f32.mrb[1].mxu1  ;;  %v702_v31 = vadd.f32 %v2908_v25, %v430_v27 }
 0x1ca   : > { %v634_v52 = vpop.f32.mrb[6].mxu0  ;;  %v633_v55 = vadd.f32 %v632_v51, %v426_v36  ;;  %v2909_v28 = vpop.f32.mrb[2].mxu1  ;;  %v694_v33 = vadd.f32 %v693_v26, %v430_v27 }
 0x1cb   : > { %v635_v53 = vadd.f32 %v634_v52, %v422_v34  ;;  %v636_v54 = vpop.f32.mrb[7].mxu0  ;;  %v726_v57 = vmul.f32 0.17677669, %v631_v50  ;;  %v696_v29 = vpop.f32.mrb[3].mxu1 }
 0x1cc   : > { %v637_v56 = vadd.f32 %v636_v54, %v426_v36  ;;  %v697_v35 = vadd.f32 %v696_v29, %v430_v27 }
 0x1cd   : > { %v727_v58 = vmul.f32 0.17677669, %v635_v53 }
 0x1ce   : > { %v4080_v59 = vpack.c.bf16 %v637_v56, %v633_v55  ;;  %v4114_v37 = vpack.c.bf16 %v697_v35, %v694_v33 }
 0x1cf   : > { %v4082_v60 = vpack.c.bf16 %v727_v58, %v726_v57 }
 0x1d0   : > { %v640_v61 = vpop.f32.mrb[8].mxu0  ;;  %3115 = vmatprep.subr.msk.bf16.mxu0 %vm744_vm0, %v4080_v59  ;;  %v761_v62 = vsel %vm744_vm0, %v4080_v59, 0  ;;  %2930 = vmatprep.subr.bf16.mxu1 %v4114_v37  ;;  %v2912_v52 = vpop.f32.mrb[4].mxu1 }
 0x1d1   : > { %v641_v63 = vadd.f32 %v640_v61, %v422_v34  ;;  %v642_v0 = vpop.f32.mrb[9].mxu0  ;;  %2917 = vmatpush3.bf16.xpose.msra.mxu0 %v761_v62  ;;  %2931 = vmatpush3.bf16.msra.mxu1 %v4114_v37  ;;  %v709_v53 = vpop.f32.mrb[5].mxu1  ;;  %v718_v56 = vadd.f32 %v2912_v52, %v430_v27 }
 0x1d2   : > { %v644_v1 = vpop.f32.mrb[10].mxu0  ;;  %v643_v4 = vadd.f32 %v642_v0, %v426_v36  ;;  %v2913_v54 = vpop.f32.mrb[6].mxu1  ;;  %v710_v57 = vadd.f32 %v709_v53, %v430_v27 }
 0x1d3   : > { %v645_v2 = vadd.f32 %v644_v1, %v422_v34  ;;  %v646_v3 = vpop.f32.mrb[11].mxu0  ;;  %v728_v6 = vmul.f32 0.17677669, %v641_v63  ;;  %v712_v55 = vpop.f32.mrb[7].mxu1  ;;  %v721_v58 = vadd.f32 %v2913_v54, %v430_v27 }
 0x1d4   : > { %v647_v5 = vadd.f32 %v646_v3, %v426_v36  ;;  %v713_v61 = vadd.f32 %v712_v55, %v430_v27 }
 0x1d5   : > { %v729_v7 = vmul.f32 0.17677669, %v645_v2  ;;  %v4137_v62 = vpack.c.bf16 %v721_v58, %v718_v56 }
 0x1d6   : > { %v4088_v8 = vpack.c.bf16 %v647_v5, %v643_v4  ;;  %v4139_v63 = vpack.c.bf16 %v713_v61, %v710_v57 }
 0x1d7   : > { %v4090_v9 = vpack.c.bf16 %v729_v7, %v728_v6 }
 0x1d8   : > { %v650_v10 = vpop.f32.mrb[12].mxu0  ;;  %3116 = vmatprep.subr.msk.bf16.mxu0 %vm744_vm0, %v4088_v8  ;;  %v764_v11 = vsel %vm744_vm0, %v4088_v8, 0 }
 0x1d9   : > { %v651_v12 = vadd.f32 %v650_v10, %v422_v34  ;;  %v652_v13 = vpop.f32.mrb[13].mxu0  ;;  %2919 = vmatpush3.bf16.xpose.msra.mxu0 %v764_v11 }
 0x1da   : > { %v654_v14 = vpop.f32.mrb[14].mxu0  ;;  %v653_v17 = vadd.f32 %v652_v13, %v426_v36 }
 0x1db   : > { %v655_v15 = vadd.f32 %v654_v14, %v422_v34  ;;  %v656_v16 = vpop.f32.mrb[15].mxu0  ;;  %v730_v19 = vmul.f32 0.17677669, %v651_v12  ;;  %v705_v34 = vadd.f32 %v2909_v28, %v430_v27 }
 0x1dc   : > { %v657_v18 = vadd.f32 %v656_v16, %v426_v36 }
 0x1dd   : > { %v731_v20 = vmul.f32 0.17677669, %v655_v15  ;;  %v4112_v36 = vpack.c.bf16 %v705_v34, %v702_v31 }
 0x1de   : > { %v4096_v21 = vpack.c.bf16 %v657_v18, %v653_v17 }
 0x1df   : > { %v4098_v22 = vpack.c.bf16 %v731_v20, %v730_v19  ;;  %2932 = vmatprep.subr.bf16.mxu1 %v4112_v36 }
 0x1e0   : > { %3117 = vmatprep.subr.msk.bf16.mxu0 %vm744_vm0, %v4096_v21  ;;  %v767_v23 = vsel %vm744_vm0, %v4096_v21, 0  ;;  %2933 = vmatpush3.bf16.msra.mxu1 %v4112_v36 }
 0x1e1   : > { %2921 = vmatpush3.bf16.xpose.msra.mxu0 %v767_v23  ;;  %2934 = vmatprep.subr.bf16.mxu1 %v4139_v63 }
 0x1e4   : > { %2935 = vmatpush3.bf16.msra.mxu1 %v4139_v63 }
 0x1e5   : > { %2936 = vmatprep.subr.bf16.mxu1 %v4137_v62 }
 0x1e8   : > { %2923 = vmatmul.mubr.msk.bf16.vlgmr.msra.gmra.mrb[16].mxu0 %vm744_vm0, %v4082_v60  ;;  %2937 = vmatpush3.bf16.msra.mxu1 %v4137_v62 }
 0x1e9   : > { %2926 = vmatprep.mubr.msk.bf16.mxu0 %vm744_vm0, %v4090_v9 }
 0x1f0   : > { %2927 = vmatmul.mubr.msk.bf16.gmra.mrb[20].mxu0 %vm744_vm0, %v4098_v22 }
 0x2bb   : > { %v2924_v30 = vpop.f32.mrb[16].mxu0 }
 0x2bc   : > { %v803_v32 = vpop.f32.mrb[17].mxu0  ;;  %v841_v38 = vsel %vm834_vm1, %v2924_v30, -inf }
 0x2bd   : > { %842 = vmax.xlane.f32.xlu1 %v841_v38  ;;  %v2925_v39 = vpop.f32.mrb[18].mxu0  ;;  %v835_v40 = vsel %vm834_vm1, %v803_v32, -inf }
 0x2be   : > { %836 = vmax.xlane.f32.xlu0 %v835_v40  ;;  %v806_v41 = vpop.f32.mrb[19].mxu0  ;;  %v844_v42 = vsel %vm834_vm1, %v2925_v39, -inf }
 0x2bf   : > { %v838_v43 = vsel %vm834_vm1, %v806_v41, -inf }
 0x2c1   : > { %845 = vmax.xlane.f32.xlu1 %v844_v42 }
 0x2c2   : > { %839 = vmax.xlane.f32.xlu0 %v838_v43 }
 0x2c3   : > { %v4124_v44 = vpop.f32.mrb[20].mxu0 }
 0x2c4   : > { %v4126_v45 = vpop.f32.mrb[21].mxu0  ;;  %v853_v48 = vsel %vm834_vm1, %v4124_v44, -inf }
 0x2c5   : > { %v4130_v49 = vpop.f32.mrb[22].mxu0  ;;  %v847_v51 = vsel %vm834_vm1, %v4126_v45, -inf }
 0x2c6   : > { %854 = vmax.xlane.f32.xlu0 %v853_v48  ;;  %v4132_v50 = vpop.f32.mrb[23].mxu0  ;;  %v856_v0 = vsel %vm834_vm1, %v4130_v49, -inf }
 0x2c7   : > { %v850_v1 = vsel %vm834_vm1, %v4132_v50, -inf }
 0x2ca   : > { %848 = vmax.xlane.f32.xlu0 %v847_v51 }
 0x2d2   : > { %1030 = vrot.lane.b32.xlu1 %v4080_v59, %s3732_s8 }
 0x2d6   : > { %1032 = vrot.lane.b32.xlu1 %v4088_v8, %s3732_s8 }
 0x2e0   : > { %1028 = vrot.lane.b32.xlu0 %v4070_v46, %s3732_s8 }
 0x2e4   : > { %1016 = vrot.lane.b32.xlu0 %v4072_v47, %s3732_s8 }
 0x2e8   : > { %1020 = vrot.lane.b32.xlu0 %v4090_v9, %s3732_s8 }
 0x2ec   : > { %1213 = vrot.lane.b32.xlu0 %v4114_v37, %s3732_s8 }
 0x2fa   : > { %857 = vmax.xlane.f32.xlu1 %v856_v0 }
 0x2fe   : > { %851 = vmax.xlane.f32.xlu1 %v850_v1 }
 0x30f   : > { %1034 = vrot.lane.b32.xlu1 %v4096_v21, %s3732_s8 }
 0x313   : > { %1018 = vrot.lane.b32.xlu1 %v4082_v60, %s3732_s8 }
 0x317   : > { %1022 = vrot.lane.b32.xlu1 %v4098_v22, %s3732_s8 }
 0x31b   : > { %1215 = vrot.lane.b32.xlu1 %v4112_v36, %s3732_s8 }
 0x31f   : > { %1217 = vrot.lane.b32.xlu1 %v4139_v63, %s3732_s8 }
 0x323   : > { %1219 = vrot.lane.b32.xlu1 %v4137_v62, %s3732_s8 }
 0x34a   : > { %v843_v2 = vpop.xlane.xlu1 %842 }
 0x34b   : > { %v861_v3 = vsub.f32 %v2924_v30, %v843_v2  ;;  %v837_v4 = vpop.xlane.xlu0 %836 }
 0x34c   : > { %v859_v5 = vsub.f32 %v803_v32, %v837_v4 }
 0x34d   : > { %v871_v6 = vmul.f32 1.442695, %v861_v3 }
 0x34e   : > { %v867_v7 = vmul.f32 1.442695, %v859_v5  ;;  %v846_v10 = vpop.xlane.xlu1 %845 }
 0x34f   : > { %v862_v11 = vsub.f32 %v2925_v39, %v846_v10  ;;  %v840_v12 = vpop.xlane.xlu0 %839  ;;  %3294 = vpow2.f32 %v871_v6 }
 0x350   : > { %v860_v13 = vsub.f32 %v806_v41, %v840_v12  ;;  %3296 = vpow2.f32 %v867_v7 }
 0x351   : > { %v873_v14 = vmul.f32 1.442695, %v862_v11 }
 0x352   : > { %v869_v15 = vmul.f32 1.442695, %v860_v13  ;;  %v1031_v28 = vpop.permute.xlu1 %1030 }
 0x353   : > { %3298 = vpow2.f32 %v873_v14  ;;  %v855_v16 = vpop.xlane.xlu0 %854  ;;  %v1052_v29 = vsel %vm744_vm0, %v1031_v28, 0 }
 0x354   : > { %3300 = vpow2.f32 %v869_v15  ;;  %v865_v34 = vsub.f32 %v4124_v44, %v855_v16 }
 0x356   : > { %v1033_v31 = vpop.permute.xlu1 %1032  ;;  %v879_v30 = vmul.f32 1.442695, %v865_v34 }
 0x357   : > { %v849_v17 = vpop.xlane.xlu0 %848  ;;  %v1055_v33 = vsel %vm744_vm0, %v1033_v31, 0 }
 0x358   : > { %v863_v32 = vsub.f32 %v4126_v45, %v849_v17  ;;  %3302 = vpow2.f32 %v879_v30 }
 0x359   : > { %v4160_v18 = vpop.eup %3294 }
 0x35a   : > { %v4162_v20 = vpop.eup %3296  ;;  %v875_v41 = vmul.f32 1.442695, %v863_v32 }
 0x35b   : > { %v1029_v19 = vpop.permute.xlu0 %1028 }
 0x35c   : > { %3118 = vmatprep.subr.msk.bf16.mxu1 %vm744_vm0, %v1029_v19  ;;  %v1049_v27 = vsel %vm744_vm0, %v1029_v19, 0 }
 0x35d   : > { %v4165_v23 = vpop.eup %3298 }
 0x35e   : > { %v4167_v24 = vpop.eup %3300  ;;  %v916_v25 = vpack.c.bf16 %v4165_v23, %v4160_v18 }
 0x35f   : > { %v915_v26 = vpack.c.bf16 %v4167_v24, %v4162_v20  ;;  %v1017_v35 = vpop.permute.xlu0 %1016 }
 0x361   : > { %2938 = vmatprep.mubr.msk.bf16.mxu1 %vm834_vm1, %v915_v26 }
 0x362   : > { %2939 = vmatmul.mubr.msk.bf16.vlgmr.msra.gmra.mrb[8].mxu1 %vm834_vm1, %v916_v25  ;;  %v4186_v45 = vpop.eup %3302 }
 0x363   : > { %2947 = vmatpush3.bf16.xpose.msra.mxu1 %v1049_v27  ;;  %v1021_v42 = vpop.permute.xlu0 %1020 }
 0x364   : > { %3119 = vmatprep.subr.msk.bf16.mxu1 %vm744_vm0, %v1031_v28 }
 0x367   : > { %v1214_v53 = vpop.permute.xlu0 %1213 }
 0x36b   : > { %2949 = vmatpush3.bf16.xpose.msra.mxu1 %v1052_v29 }
 0x36c   : > { %3120 = vmatprep.subr.msk.bf16.mxu1 %vm744_vm0, %v1033_v31 }
 0x373   : > { %2951 = vmatpush3.bf16.xpose.msra.mxu1 %v1055_v33 }
 0x387   : > { %v858_v38 = vpop.xlane.xlu1 %857 }
 0x388   : > { %v866_v39 = vsub.f32 %v4130_v49, %v858_v38 }
 0x38a   : > { %v881_v40 = vmul.f32 1.442695, %v866_v39 }
 0x38b   : > { %v852_v43 = vpop.xlane.xlu1 %851 }
 0x38c   : > { %3304 = vpow2.f32 %v881_v40  ;;  %v864_v48 = vsub.f32 %v4132_v50, %v852_v43 }
 0x38d   : > { %3306 = vpow2.f32 %v875_v41 }
 0x38e   : > { %v877_v51 = vmul.f32 1.442695, %v864_v48  ;;  %v901_v48 = vsel %vm834_vm1, %v4186_v45, 0.0 }
 0x38f   : > { %v1035_v52 = vpop.permute.xlu1 %1034 }
 0x390   : > { %3308 = vpow2.f32 %v877_v51  ;;  %3121 = vmatprep.subr.msk.bf16.mxu1 %vm744_vm0, %v1035_v52  ;;  %v1058_v44 = vsel %vm744_vm0, %v1035_v52, 0 }
 0x391   : > { %2953 = vmatpush3.bf16.xpose.msra.mxu1 %v1058_v44 }
 0x392   : > { %2962 = vmatprep.subr.bf16.mxu1 %v1214_v53 }
 0x393   : > { %v1019_v54 = vpop.permute.xlu1 %1018 }
 0x396   : > { %v4188_v49 = vpop.eup %3304 }
 0x397   : > { %v918_v55 = vpack.c.bf16 %v4188_v49, %v4186_v45  ;;  %v4192_v50 = vpop.eup %3306  ;;  %v1023_v58 = vpop.permute.xlu1 %1022 }
 0x39a   : > { %v4194_v56 = vpop.eup %3308 }
 0x39b   : > { %v917_v57 = vpack.c.bf16 %v4194_v56, %v4192_v50  ;;  %v1216_v61 = vpop.permute.xlu1 %1215 }
 0x39d   : > { %2942 = vmatprep.mubr.msk.bf16.mxu1 %vm834_vm1, %v917_v57 }
 0x39e   : > { %2943 = vmatmul.mubr.msk.bf16.gmra.mrb[12].mxu1 %vm834_vm1, %v918_v55  ;;  %v904_v55 = vsel %vm834_vm1, %v4188_v49, 0.0 }
 0x39f   : > { %2954 = vmatprep.mubr.msk.bf16.mxu1 %vm744_vm0, %v1017_v35  ;;  %v1218_v0 = vpop.permute.xlu1 %1217 }
 0x3a3   : > { %v1220_v1 = vpop.permute.xlu1 %1219 }
 0x3a6   : > { %2955 = vmatmul.mubr.msk.bf16.vlgmr.msra.gmra.mrb[16].mxu1 %vm744_vm0, %v1019_v54 }
 0x3a7   : > { %2958 = vmatprep.mubr.msk.bf16.mxu1 %vm744_vm0, %v1021_v42  ;;  %2963 = vmatpush3.bf16.msra.mxu1 %v1214_v53 }
 0x3a8   : > { %2964 = vmatprep.subr.bf16.mxu1 %v1216_v61 }
 0x3ab   : > { %2965 = vmatpush3.bf16.msra.mxu1 %v1216_v61 }
 0x3ac   : > { %2966 = vmatprep.subr.bf16.mxu1 %v1218_v0 }
 0x3ae   : > { %2959 = vmatmul.mubr.msk.bf16.gmra.mrb[20].mxu1 %vm744_vm0, %v1023_v58 }
 0x3af   : > { %2967 = vmatpush3.bf16.msra.mxu1 %v1218_v0 }
 0x3b0   : > { %2968 = vmatprep.subr.bf16.mxu1 %v1220_v1 }
 0x3b3   : > { %2969 = vmatpush3.bf16.msra.mxu1 %v1220_v1 }
 0x435   : > { %v4204_v2 = vpop.f32.mrb[8].mxu1 }
 0x436   : > { %v4206_v3 = vpop.f32.mrb[9].mxu1 }
 0x437   : > { %v4208_v4 = vpop.f32.mrb[10].mxu1 }
 0x438   : > { %v4210_v5 = vpop.f32.mrb[11].mxu1 }
 0x471   : > { %v4212_v6 = vpop.f32.mrb[12].mxu1 }
 0x472   : > { %v4214_v7 = vpop.f32.mrb[13].mxu1 }
 0x473   : > { %v4216_v10 = vpop.f32.mrb[14].mxu1 }
 0x474   : > { %v4218_v11 = vpop.f32.mrb[15].mxu1 }
 0x479   : > { %v2956_v12 = vpop.f32.mrb[16].mxu1 }
 0x47a   : > { %v1094_v13 = vpop.f32.mrb[17].mxu1  ;;  %v1131_v14 = vsel %vm834_vm1, %v2956_v12, -inf }
 0x47b   : > { %1132 = vmax.xlane.f32.xlu0 %v1131_v14  ;;  %v2957_v15 = vpop.f32.mrb[18].mxu1  ;;  %v1125_v19 = vsel %vm834_vm1, %v1094_v13, -inf }
 0x47c   : > { %v1097_v16 = vpop.f32.mrb[19].mxu1  ;;  %v1134_v27 = vsel %vm834_vm1, %v2957_v15, -inf }
 0x47d   : > { %v1128_v17 = vsel %vm834_vm1, %v1097_v16, -inf }
 0x47e   : > { %1129 = vmax.xlane.f32.xlu1 %v1128_v17 }
 0x47f   : > { %1126 = vmax.xlane.f32.xlu0 %v1125_v19 }
 0x481   : > { %v4223_v25 = vpop.f32.mrb[20].mxu1 }
 0x482   : > { %v4225_v26 = vpop.f32.mrb[21].mxu1  ;;  %v1143_v31 = vsel %vm834_vm1, %v4223_v25, -inf }
 0x483   : > { %1135 = vmax.xlane.f32.xlu0 %v1134_v27  ;;  %v4228_v28 = vpop.f32.mrb[22].mxu1  ;;  %v1137_v33 = vsel %vm834_vm1, %v4225_v26, -inf }
 0x484   : > { %v4230_v29 = vpop.f32.mrb[23].mxu1  ;;  %v1146_v34 = vsel %vm834_vm1, %v4228_v28, -inf }
 0x485   : > { %v1140_v35 = vsel %vm834_vm1, %v4230_v29, -inf }
 0x487   : > { %1144 = vmax.xlane.f32.xlu0 %v1143_v31 }
 0x48b   : > { %1138 = vmax.xlane.f32.xlu0 %v1137_v33 }
 0x48f   : > { %1506 = vrot.lane.b32.xlu1 %v4080_v59, %s3733_s22  ;;  %1147 = vmax.xlane.f32.xlu0 %v1146_v34 }
 0x493   : > { %1508 = vrot.lane.b32.xlu1 %v4088_v8, %s3733_s22 }
 0x4a5   : > { %1504 = vrot.lane.b32.xlu0 %v4070_v46, %s3733_s22 }
 0x4a9   : > { %1496 = vrot.lane.b32.xlu0 %v4072_v47, %s3733_s22 }
 0x4ad   : > { %1500 = vrot.lane.b32.xlu0 %v4090_v9, %s3733_s22 }
 0x4b1   : > { %1895 = vrot.lane.b32.xlu0 %v4070_v46, %s3734_s23  ;;  %v883_v46 = vsel %vm834_vm1, %v4162_v20, 0.0 }
 0x4b5   : > { %1899 = vrot.lane.b32.xlu0 %v4088_v8, %s3734_s23  ;;  %v889_v8 = vsel %vm834_vm1, %v4160_v18, 0.0 }
 0x4b7   : > { %1141 = vmax.xlane.f32.xlu1 %v1140_v35 }
 0x4b9   : > { %1887 = vrot.lane.b32.xlu0 %v4072_v47, %s3734_s23  ;;  %v886_v47 = vsel %vm834_vm1, %v4167_v24, 0.0  ;;  %v895_v24 = vsel %vm834_vm1, %v4192_v50, 0.0 }
 0x4bd   : > { %1891 = vrot.lane.b32.xlu0 %v4090_v9, %s3734_s23 }
 0x4c1   : > { %1893 = vrot.lane.b32.xlu0 %v4098_v22, %s3734_s23 }
 0x4c8   : > { %1510 = vrot.lane.b32.xlu1 %v4096_v21, %s3733_s22 }
 0x4cc   : > { %1498 = vrot.lane.b32.xlu1 %v4082_v60, %s3733_s22 }
 0x4d0   : > { %1502 = vrot.lane.b32.xlu1 %v4098_v22, %s3733_s22 }
 0x4d4   : > { %1897 = vrot.lane.b32.xlu1 %v4080_v59, %s3734_s23 }
 0x4d8   : > { %1901 = vrot.lane.b32.xlu1 %v4096_v21, %s3734_s23  ;;  %v892_v21 = vsel %vm834_vm1, %v4165_v23, 0.0  ;;  %v898_v23 = vsel %vm834_vm1, %v4194_v56, 0.0 }
 0x4dc   : > { %1889 = vrot.lane.b32.xlu1 %v4082_v60, %s3734_s23 }
 0x500   : > { %884 = vadd.xlane.f32.xlu1 %v883_v46 }
 0x504   : > { %887 = vadd.xlane.f32.xlu1 %v886_v47 }
 0x508   : > { %v1133_v9 = vpop.xlane.xlu0 %1132  ;;  %890 = vadd.xlane.f32.xlu1 %v889_v8 }
 0x509   : > { %v1151_v59 = vsub.f32 %v2956_v12, %v1133_v9 }
 0x50b   : > { %v1130_v22 = vpop.xlane.xlu1 %1129  ;;  %v1161_v20 = vmul.f32 1.442695, %v1151_v59 }
 0x50c   : > { %v1150_v30 = vsub.f32 %v1097_v16, %v1130_v22  ;;  %v1127_v60 = vpop.xlane.xlu0 %1126  ;;  %893 = vadd.xlane.f32.xlu1 %v892_v21 }
 0x50d   : > { %v1149_v32 = vsub.f32 %v1094_v13, %v1127_v60 }
 0x50e   : > { %v1159_v38 = vmul.f32 1.442695, %v1150_v30 }
 0x50f   : > { %v1157_v39 = vmul.f32 1.442695, %v1149_v32 }
 0x510   : > { %3310 = vpow2.f32 %v1159_v38  ;;  %v1136_v40 = vpop.xlane.xlu0 %1135  ;;  %896 = vadd.xlane.f32.xlu1 %v895_v24 }
 0x511   : > { %3312 = vpow2.f32 %v1157_v39  ;;  %v1152_v18 = vsub.f32 %v2957_v15, %v1136_v40  ;;  %v1507_v15 = vpop.permute.xlu1 %1506 }
 0x512   : > { %3314 = vpow2.f32 %v1161_v20 }
 0x513   : > { %v1163_v41 = vmul.f32 1.442695, %v1152_v18 }
 0x514   : > { %v1145_v42 = vpop.xlane.xlu0 %1144  ;;  %899 = vadd.xlane.f32.xlu1 %v898_v23 }
 0x515   : > { %3316 = vpow2.f32 %v1163_v41  ;;  %v1155_v43 = vsub.f32 %v4223_v25, %v1145_v42  ;;  %v1528_v25 = vsel %vm744_vm0, %v1507_v15, 0  ;;  %v1509_v27 = vpop.permute.xlu1 %1508 }
 0x516   : > { %v1531_v46 = vsel %vm744_vm0, %v1509_v27, 0 }
 0x517   : > { %v1169_v53 = vmul.f32 1.442695, %v1155_v43 }
 0x518   : > { %v1139_v51 = vpop.xlane.xlu0 %1138  ;;  %902 = vadd.xlane.f32.xlu1 %v901_v48  ;;  %v3282_v48 = vld [vmem:[#allocation8 + $0x10] sm:$0xff]  }
 0x519   : > { %v1153_v44 = vsub.f32 %v4225_v26, %v1139_v51  ;;  %3318 = vpow2.f32 %v1169_v53  ;;  %2978 = vmatprep.subr.bf16.mxu0 %v3282_v48  ;;  %v4329_v53 = vld [vmem:[#allocation8] sm:$0xff]  }
 0x51a   : > { %v3311_v52 = vpop.eup %3310  ;;  %2979 = vmatpush3.bf16.msra.mxu0 %v3282_v48 }
 0x51b   : > { %v3313_v54 = vpop.eup %3312  ;;  %v1176_v50 = vsel %vm834_vm1, %v3311_v52, 0.0  ;;  %v1165_v45 = vmul.f32 1.442695, %v1153_v44 }
 0x51c   : > { %v3315_v56 = vpop.eup %3314  ;;  %v1148_v57 = vpop.xlane.xlu0 %1147  ;;  %905 = vadd.xlane.f32.xlu1 %v904_v55  ;;  %1177 = vadd.xlane.f32.xlu0 %v1176_v50  ;;  %v1205_v58 = vpack.c.bf16 %v3311_v52, %v3313_v54  ;;  %v1173_v16 = vsel %vm834_vm1, %v3313_v54, 0.0  ;;  %v3283_v52 = vld [vmem:[#allocation8 + $0x18] sm:$0xff]  }
 0x51d   : > { %v1156_v61 = vsub.f32 %v4228_v28, %v1148_v57  ;;  %v1179_v12 = vsel %vm834_vm1, %v3315_v56, 0.0  ;;  %2980 = vmatprep.subr.bf16.mxu0 %v3283_v52 }
 0x51e   : > { %2970 = vmatprep.mubr.msk.bf16.mxu1 %vm834_vm1, %v1205_v58  ;;  %2981 = vmatpush3.bf16.msra.mxu0 %v3283_v52 }
 0x51f   : > { %v3317_v0 = vpop.eup %3316  ;;  %v1171_v1 = vmul.f32 1.442695, %v1156_v61  ;;  %2990 = vmatprep.subr.bf16.mxu0 %v4329_v53 }
 0x520   : > { %v1206_v13 = vpack.c.bf16 %v3317_v0, %v3315_v56  ;;  %v1505_v14 = vpop.permute.xlu0 %1504  ;;  %1180 = vadd.xlane.f32.xlu1 %v1179_v12  ;;  %v1182_v17 = vsel %vm834_vm1, %v3317_v0, 0.0 }
 0x521   : > { %3320 = vpow2.f32 %v1171_v1  ;;  %v1525_v49 = vsel %vm744_vm0, %v1505_v14, 0  ;;  %3122 = vmatprep.subr.msk.bf16.mxu1 %vm744_vm0, %v1505_v14 }
 0x522   : > { %3322 = vpow2.f32 %v1165_v45  ;;  %2971 = vmatmul.mubr.msk.bf16.vlgmr.msra.gmra.mrb[24].mxu1 %vm834_vm1, %v1206_v13 }
 0x523   : > { %3003 = vmatpush3.bf16.xpose.msra.mxu1 %v1525_v49  ;;  %v3319_v19 = vpop.eup %3318 }
 0x524   : > { %3123 = vmatprep.subr.msk.bf16.mxu1 %vm744_vm0, %v1507_v15  ;;  %1174 = vadd.xlane.f32.xlu1 %v1173_v16  ;;  %v1191_v28 = vsel %vm834_vm1, %v3319_v19, 0.0  ;;  %v1497_v47 = vpop.permute.xlu0 %1496 }
 0x528   : > { %1183 = vadd.xlane.f32.xlu1 %v1182_v17  ;;  %v1501_v8 = vpop.permute.xlu0 %1500 }
 0x52b   : > { %v3321_v26 = vpop.eup %3320  ;;  %3005 = vmatpush3.bf16.xpose.msra.mxu1 %v1528_v25 }
 0x52c   : > { %v3323_v31 = vpop.eup %3322  ;;  %3124 = vmatprep.subr.msk.bf16.mxu1 %vm744_vm0, %v1509_v27  ;;  %1192 = vadd.xlane.f32.xlu1 %v1191_v28  ;;  %v1194_v33 = vsel %vm834_vm1, %v3321_v26, 0.0  ;;  %v1208_v34 = vpack.c.bf16 %v3321_v26, %v3319_v19  ;;  %v1896_v60 = vpop.permute.xlu0 %1895 }
 0x52d   : > { %1195 = vadd.xlane.f32.xlu0 %v1194_v33  ;;  %v1185_v35 = vsel %vm834_vm1, %v3323_v31, 0.0  ;;  %v1916_v39 = vsel %vm744_vm0, %v1896_v60, 0 }
 0x530   : > { %1186 = vadd.xlane.f32.xlu1 %v1185_v35  ;;  %v1900_v40 = vpop.permute.xlu0 %1899 }
 0x531   : > { %v1922_v42 = vsel %vm744_vm0, %v1900_v40, 0 }
 0x533   : > { %3007 = vmatpush3.bf16.xpose.msra.mxu1 %v1531_v46 }
 0x534   : > { %v1888_v41 = vpop.permute.xlu0 %1887 }
 0x538   : > { %v1892_v54 = vpop.permute.xlu0 %1891 }
 0x53c   : > { %v1894_v55 = vpop.permute.xlu0 %1893 }
 0x541   : > { %1687 = vrot.lane.b32.xlu1 %v4112_v36, %s3733_s22 }
 0x543   : > { %1685 = vrot.lane.b32.xlu0 %v4114_v37, %s3733_s22 }
 0x544   : > { %v1142_v9 = vpop.xlane.xlu1 %1141 }
 0x545   : > { %v1154_v59 = vsub.f32 %v4230_v29, %v1142_v9 }
 0x547   : > { %v1167_v22 = vmul.f32 1.442695, %v1154_v59 }
 0x548   : > { %v1511_v21 = vpop.permute.xlu1 %1510 }
 0x549   : > { %3324 = vpow2.f32 %v1167_v22  ;;  %v1534_v30 = vsel %vm744_vm0, %v1511_v21, 0  ;;  %3125 = vmatprep.subr.msk.bf16.mxu1 %vm744_vm0, %v1511_v21 }
 0x54a   : > { %3009 = vmatpush3.bf16.xpose.msra.mxu1 %v1534_v30 }
 0x54b   : > { %3126 = vmatprep.subr.msk.bf16.mxu1 %vm744_vm0, %v1896_v60 }
 0x54c   : > { %v1499_v20 = vpop.permute.xlu1 %1498 }
 0x550   : > { %v1503_v29 = vpop.permute.xlu1 %1502 }
 0x553   : > { %v3325_v32 = vpop.eup %3324 }
 0x554   : > { %v1207_v38 = vpack.c.bf16 %v3325_v32, %v3323_v31  ;;  %v1898_v24 = vpop.permute.xlu1 %1897  ;;  %v1188_v18 = vsel %vm834_vm1, %v3325_v32, 0.0 }
 0x555   : > { %v1919_v23 = vsel %vm744_vm0, %v1898_v24, 0 }
 0x556   : > { %2974 = vmatprep.mubr.msk.bf16.mxu1 %vm834_vm1, %v1207_v38 }
 0x557   : > { %2975 = vmatmul.mubr.msk.bf16.gmra.mrb[28].mxu1 %vm834_vm1, %v1208_v34 }
 0x558   : > { %3010 = vmatprep.mubr.msk.bf16.mxu1 %vm744_vm0, %v1497_v47  ;;  %v1902_v43 = vpop.permute.xlu1 %1901 }
 0x559   : > { %v1925_v51 = vsel %vm744_vm0, %v1902_v43, 0 }
 0x55c   : > { %v1890_v44 = vpop.permute.xlu1 %1889 }
 0x55f   : > { %3011 = vmatmul.mubr.msk.bf16.vlgmr.msra.gmra.mrb[32].mxu1 %vm744_vm0, %v1499_v20 }
 0x560   : > { %3047 = vmatpush3.bf16.xpose.msra.mxu1 %v1916_v39  ;;  %3014 = vmatprep.mubr.msk.bf16.mxu1 %vm744_vm0, %v1501_v8 }
 0x561   : > { %3127 = vmatprep.subr.msk.bf16.mxu1 %vm744_vm0, %v1898_v24  ;;  %v3285_v24 = vld [vmem:[#allocation8 + $0x8] sm:$0xff]  }
 0x565   : > { %1189 = vadd.xlane.f32.xlu1 %v1188_v18 }
 0x567   : > { %3015 = vmatmul.mubr.msk.bf16.gmra.mrb[36].mxu1 %vm744_vm0, %v1503_v29 }
 0x568   : > { %3049 = vmatpush3.bf16.xpose.msra.mxu1 %v1919_v23  ;;  %3054 = vmatprep.mubr.msk.bf16.mxu1 %vm744_vm0, %v1888_v41 }
 0x569   : > { %3128 = vmatprep.subr.msk.bf16.mxu1 %vm744_vm0, %v1900_v40 }
 0x570   : > { %3051 = vmatpush3.bf16.xpose.msra.mxu1 %v1922_v42 }
 0x571   : > { %3129 = vmatprep.subr.msk.bf16.mxu1 %vm744_vm0, %v1902_v43 }
 0x578   : > { %3053 = vmatpush3.bf16.xpose.msra.mxu1 %v1925_v51 }
 0x57f   : > { %3055 = vmatmul.mubr.msk.bf16.vlgmr.msra.gmra.mrb[40].mxu1 %vm744_vm0, %v1890_v44 }
 0x580   : > { %3058 = vmatprep.mubr.msk.bf16.mxu1 %vm744_vm0, %v1892_v54 }
 0x587   : > { %3059 = vmatmul.mubr.msk.bf16.gmra.mrb[44].mxu1 %vm744_vm0, %v1894_v55 }
 0x58d   : > { %v885_v50 = vpop.xlane.xlu1 %884 }
 0x58e   : > { %3326 = vrcp.f32 %v885_v50 }
 0x591   : > { %v888_v56 = vpop.xlane.xlu1 %887 }
 0x592   : > { %3328 = vrcp.f32 %v888_v56 }
 0x595   : > { %v891_v57 = vpop.xlane.xlu1 %890 }
 0x596   : > { %3330 = vrcp.f32 %v891_v57 }
 0x598   : > { %v3327_v58 = vpop.eup %3326 }
 0x599   : > { %v894_v61 = vpop.xlane.xlu1 %893  ;;  %v4336_v45 = vmul.f32 %v3327_v58, %v4206_v3 }
 0x59a   : > { %3332 = vrcp.f32 %v894_v61 }
 0x59c   : > { %v3329_v0 = vpop.eup %3328 }
 0x59d   : > { %v897_v1 = vpop.xlane.xlu1 %896  ;;  %v4339_v12 = vmul.f32 %v3329_v0, %v4210_v5 }
 0x59e   : > { %3334 = vrcp.f32 %v897_v1 }
 0x59f   : > { %v1004_v13 = vpack.c.bf16 %v4339_v12, %v4336_v45 }
 0x5a0   : > { %v3331_v14 = vpop.eup %3330 }
 0x5a1   : > { %v4344_v49 = vmul.f32 %v3331_v14, %v4204_v2  ;;  %v900_v15 = vpop.xlane.xlu1 %899 }
 0x5a2   : > { %3336 = vrcp.f32 %v900_v15 }
 0x5a4   : > { %v3333_v16 = vpop.eup %3332 }
 0x5a5   : > { %v4347_v3 = vmul.f32 %v3333_v16, %v4208_v4  ;;  %v903_v17 = vpop.xlane.xlu1 %902 }
 0x5a6   : > { %3338 = vrcp.f32 %v903_v17 }
 0x5a7   : > { %v1005_v5 = vpack.c.bf16 %v4347_v3, %v4344_v49 }
 0x5a8   : > { %v3335_v19 = vpop.eup %3334 }
 0x5a9   : > { %v906_v25 = vpop.xlane.xlu1 %905  ;;  %v4352_v26 = vmul.f32 %v3335_v19, %v4214_v7  ;;  %v1178_v47 = vpop.xlane.xlu0 %1177 }
 0x5aa   : > { %3340 = vrcp.f32 %v906_v25 }
 0x5ab   : > { %3342 = vrcp.f32 %v1178_v47 }
 0x5ac   : > { %v3337_v27 = vpop.eup %3336 }
 0x5ad   : > { %v4355_v2 = vmul.f32 %v3337_v27, %v4218_v11  ;;  %v1181_v35 = vpop.xlane.xlu1 %1180 }
 0x5ae   : > { %3344 = vrcp.f32 %v1181_v35 }
 0x5af   : > { %v1006_v28 = vpack.c.bf16 %v4355_v2, %v4352_v26 }
 0x5b0   : > { %v3339_v4 = vpop.eup %3338 }
 0x5b1   : > { %v4360_v31 = vmul.f32 %v3339_v4, %v4212_v6  ;;  %v1175_v46 = vpop.xlane.xlu1 %1174 }
 0x5b4   : > { %v3341_v33 = vpop.eup %3340 }
 0x5b5   : > { %v4363_v34 = vmul.f32 %v3341_v33, %v4216_v10  ;;  %v1184_v8 = vpop.xlane.xlu1 %1183  ;;  %v3343_v11 = vpop.eup %3342 }
 0x5b6   : > { %3346 = vrcp.f32 %v1184_v8 }
 0x5b7   : > { %v1007_v7 = vpack.c.bf16 %v4363_v34, %v4360_v31  ;;  %3348 = vrcp.f32 %v1175_v46 }
 0x5b8   : > { %v3345_v59 = vpop.eup %3344 }
 0x5b9   : > { %v1193_v41 = vpop.xlane.xlu1 %1192 }
 0x5ba   : > { %v1196_v40 = vpop.xlane.xlu0 %1195  ;;  %3350 = vrcp.f32 %v1193_v41 }
 0x5bb   : > { %3352 = vrcp.f32 %v1196_v40 }
 0x5bd   : > { %v1187_v23 = vpop.xlane.xlu1 %1186 }
 0x5be   : > { %v1686_v18 = vpop.permute.xlu0 %1685  ;;  %3354 = vrcp.f32 %v1187_v23 }
 0x5c0   : > { %v3347_v22 = vpop.eup %3346 }
 0x5c1   : > { %v3349_v30 = vpop.eup %3348  ;;  %v1688_v42 = vpop.permute.xlu1 %1687 }
 0x5c4   : > { %v3351_v48 = vpop.eup %3350 }
 0x5c5   : > { %v3353_v52 = vpop.eup %3352 }
 0x5c8   : > { %v3355_v54 = vpop.eup %3354 }
 0x5f2   : > { %v1190_v43 = vpop.xlane.xlu1 %1189 }
 0x5f3   : > { %3356 = vrcp.f32 %v1190_v43 }
 0x5f5   : > { %v2972_v9 = vpop.f32.mrb[24].mxu1 }
 0x5f6   : > { %v1271_v6 = vpop.f32.mrb[25].mxu1  ;;  %v1304_v10 = vmul.f32 %v3345_v59, %v2972_v9 }
 0x5f7   : > { %v2973_v21 = vpop.f32.mrb[26].mxu1  ;;  %v1302_v20 = vmul.f32 %v3349_v30, %v1271_v6 }
 0x5f8   : > { %v1305_v60 = vmul.f32 %v3347_v22, %v2973_v21  ;;  %v1274_v32 = vpop.f32.mrb[27].mxu1 }
 0x5f9   : > { %v1303_v38 = vmul.f32 %v3343_v11, %v1274_v32 }
 0x5fa   : > { %v1311_v29 = vpack.c.bf16 %v1305_v60, %v1304_v10 }
 0x5fb   : > { %v1310_v39 = vpack.c.bf16 %v1303_v38, %v1302_v20 }
 0x5fd   : > { %2982 = vmatprep.mubr.msk.bf16.mxu0 %vm744_vm0, %v1310_v39  ;;  %v3357_v50 = vpop.eup %3356 }
 0x5fe   : > { %2983 = vmatmul.mubr.msk.bf16.vlgmr.msra.gmra.mrb[24].mxu0 %vm744_vm0, %v1311_v29 }
 0x5ff   : > { %2991 = vmatpush3.bf16.msra.mxu0 %v4329_v53 }
 0x600   : > { %2992 = vmatprep.subr.bf16.mxu0 %v3285_v24 }
 0x603   : > { %2993 = vmatpush3.bf16.msra.mxu0 %v3285_v24 }
 0x604   : > { %3018 = vmatprep.subr.bf16.mxu0 %v1686_v18 }
 0x62a   : > { %v2976_v51 = vpop.f32.mrb[28].mxu1 }
 0x62b   : > { %v1287_v44 = vpop.f32.mrb[29].mxu1  ;;  %v1308_v53 = vmul.f32 %v3351_v48, %v2976_v51 }
 0x62c   : > { %v2977_v55 = vpop.f32.mrb[30].mxu1  ;;  %v1306_v58 = vmul.f32 %v3355_v54, %v1287_v44 }
 0x62d   : > { %v1309_v56 = vmul.f32 %v3353_v52, %v2977_v55  ;;  %v1290_v57 = vpop.f32.mrb[31].mxu1 }
 0x62e   : > { %v1307_v61 = vmul.f32 %v3357_v50, %v1290_v57 }
 0x62f   : > { %v1313_v0 = vpack.c.bf16 %v1309_v56, %v1308_v53 }
 0x630   : > { %v1312_v1 = vpack.c.bf16 %v1307_v61, %v1306_v58 }
 0x632   : > { %2986 = vmatprep.mubr.msk.bf16.mxu0 %vm744_vm0, %v1312_v1  ;;  %v3012_v14 = vpop.f32.mrb[32].mxu1 }
 0x633   : > { %2987 = vmatmul.mubr.msk.bf16.gmra.mrb[28].mxu0 %vm744_vm0, %v1313_v0  ;;  %v4372_v15 = vpop.f32.mrb[33].mxu1  ;;  %v1607_v16 = vsel %vm834_vm1, %v3012_v14, -inf }
 0x634   : > { %1608 = vmax.xlane.f32.xlu0 %v1607_v16  ;;  %2994 = vmatprep.mubr.msk.bf16.mxu0 %vm744_vm0, %v1004_v13  ;;  %v3013_v17 = vpop.f32.mrb[34].mxu1  ;;  %v1601_v27 = vsel %vm834_vm1, %v4372_v15, -inf }
 0x635   : > { %v4379_v19 = vpop.f32.mrb[35].mxu1  ;;  %v1610_v25 = vsel %vm834_vm1, %v3013_v17, -inf }
 0x636   : > { %1611 = vmax.xlane.f32.xlu1 %v1610_v25  ;;  %v1604_v4 = vsel %vm834_vm1, %v4379_v19, -inf }
 0x638   : > { %1602 = vmax.xlane.f32.xlu0 %v1601_v27 }
 0x63a   : > { %1605 = vmax.xlane.f32.xlu1 %v1604_v4  ;;  %v4386_v33 = vpop.f32.mrb[36].mxu1 }
 0x63b   : > { %2995 = vmatmul.mubr.msk.bf16.vlgmr.msra.gmra.mrb[24].mxu0 %vm744_vm0, %v1005_v5  ;;  %v4392_v45 = vpop.f32.mrb[37].mxu1  ;;  %v1619_v12 = vsel %vm834_vm1, %v4386_v33, -inf }
 0x63c   : > { %3019 = vmatpush3.bf16.msra.mxu0 %v1686_v18  ;;  %1620 = vmax.xlane.f32.xlu0 %v1619_v12  ;;  %v3017_v13 = vpop.f32.mrb[38].mxu1  ;;  %v1613_v3 = vsel %vm834_vm1, %v4392_v45, -inf }
 0x63d   : > { %2998 = vmatprep.mubr.msk.bf16.mxu0 %vm744_vm0, %v1006_v28  ;;  %3020 = vmatprep.subr.bf16.mxu0 %v1688_v42  ;;  %v4400_v35 = vpop.f32.mrb[39].mxu1  ;;  %v1622_v49 = vsel %vm834_vm1, %v3017_v13, -inf }
 0x63e   : > { %1623 = vmax.xlane.f32.xlu1 %v1622_v49  ;;  %v1616_v5 = vsel %vm834_vm1, %v4400_v35, -inf }
 0x640   : > { %3021 = vmatpush3.bf16.msra.mxu0 %v1688_v42  ;;  %1614 = vmax.xlane.f32.xlu0 %v1613_v3 }
 0x642   : > { %1617 = vmax.xlane.f32.xlu1 %v1616_v5 }
 0x643   : > { %2999 = vmatmul.mubr.msk.bf16.gmra.mrb[28].mxu0 %vm744_vm0, %v1007_v7 }
 0x652   : > { %v4411_v26 = vpop.f32.mrb[40].mxu1 }
 0x653   : > { %v4413_v2 = vpop.f32.mrb[41].mxu1  ;;  %1689 = vrot.lane.b32.xlu1 %v4139_v63, %s3733_s22  ;;  %v1998_v7 = vsel %vm834_vm1, %v4411_v26, -inf }
 0x654   : > { %v4417_v28 = vpop.f32.mrb[42].mxu1  ;;  %v1992_v9 = vsel %vm834_vm1, %v4413_v2, -inf }
 0x655   : > { %v4419_v46 = vpop.f32.mrb[43].mxu1  ;;  %v2001_v11 = vsel %vm834_vm1, %v4417_v28, -inf }
 0x656   : > { %1691 = vrot.lane.b32.xlu0 %v4137_v62, %s3733_s22  ;;  %v1995_v59 = vsel %vm834_vm1, %v4419_v46, -inf }
 0x65a   : > { %v4423_v47 = vpop.f32.mrb[44].mxu1 }
 0x65b   : > { %v4425_v8 = vpop.f32.mrb[45].mxu1  ;;  %v2010_v6 = vsel %vm834_vm1, %v4423_v47, -inf }
 0x65c   : > { %v4427_v31 = vpop.f32.mrb[46].mxu1  ;;  %v2004_v21 = vsel %vm834_vm1, %v4425_v8, -inf }
 0x65d   : > { %v4429_v34 = vpop.f32.mrb[47].mxu1  ;;  %v2013_v22 = vsel %vm834_vm1, %v4427_v31, -inf }
 0x65e   : > { %v2007_v30 = vsel %vm834_vm1, %v4429_v34, -inf }
 0x675   : > { %1999 = vmax.xlane.f32.xlu0 %v1998_v7  ;;  %v3286_v7 = vld [vmem:[#allocation8 + $0x20] sm:$0xff]  }
 0x677   : > { %2002 = vmax.xlane.f32.xlu1 %v2001_v11  ;;  %v3287_v11 = vld [vmem:[#allocation8 + $0x28] sm:$0xff]  }
 0x679   : > { %1993 = vmax.xlane.f32.xlu0 %v1992_v9 }
 0x67b   : > { %1996 = vmax.xlane.f32.xlu1 %v1995_v59 }
 0x67d   : > { %2011 = vmax.xlane.f32.xlu0 %v2010_v6 }
 0x67f   : > { %2014 = vmax.xlane.f32.xlu1 %v2013_v22 }
 0x681   : > { %2005 = vmax.xlane.f32.xlu0 %v2004_v21 }
 0x683   : > { %2008 = vmax.xlane.f32.xlu1 %v2007_v30 }
 0x6c1   : > { %v1609_v10 = vpop.xlane.xlu0 %1608 }
 0x6c2   : > { %v1627_v60 = vsub.f32 %v3012_v14, %v1609_v10 }
 0x6c3   : > { %v1612_v32 = vpop.xlane.xlu1 %1611 }
 0x6c4   : > { %v1637_v20 = vmul.f32 1.442695, %v1627_v60  ;;  %v1628_v38 = vsub.f32 %v3013_v17, %v1612_v32 }
 0x6c5   : > { %v1603_v29 = vpop.xlane.xlu0 %1602 }
 0x6c6   : > { %3358 = vpow2.f32 %v1637_v20  ;;  %v1639_v39 = vmul.f32 1.442695, %v1628_v38  ;;  %v1625_v24 = vsub.f32 %v4372_v15, %v1603_v29 }
 0x6c7   : > { %v1606_v40 = vpop.xlane.xlu1 %1605 }
 0x6c8   : > { %3360 = vpow2.f32 %v1639_v39  ;;  %v1633_v18 = vmul.f32 1.442695, %v1625_v24  ;;  %v1626_v41 = vsub.f32 %v4379_v19, %v1606_v40 }
 0x6c9   : > { %v1621_v23 = vpop.xlane.xlu0 %1620 }
 0x6ca   : > { %3362 = vpow2.f32 %v1633_v18  ;;  %v1635_v42 = vmul.f32 1.442695, %v1626_v41  ;;  %v1631_v43 = vsub.f32 %v4386_v33, %v1621_v23 }
 0x6cb   : > { %v1624_v48 = vpop.xlane.xlu1 %1623 }
 0x6cc   : > { %3364 = vpow2.f32 %v1635_v42  ;;  %v1645_v51 = vmul.f32 1.442695, %v1631_v43  ;;  %v1632_v52 = vsub.f32 %v3017_v13, %v1624_v48 }
 0x6cd   : > { %v1615_v44 = vpop.xlane.xlu0 %1614 }
 0x6ce   : > { %3366 = vpow2.f32 %v1645_v51  ;;  %v1647_v54 = vmul.f32 1.442695, %v1632_v52  ;;  %v1629_v55 = vsub.f32 %v4392_v45, %v1615_v44 }
 0x6cf   : > { %v1618_v50 = vpop.xlane.xlu1 %1617 }
 0x6d0   : > { %v3359_v53 = vpop.eup %3358  ;;  %3368 = vpow2.f32 %v1647_v54  ;;  %v1641_v56 = vmul.f32 1.442695, %v1629_v55  ;;  %v1630_v57 = vsub.f32 %v4400_v35, %v1618_v50 }
 0x6d1   : > { %v1655_v58 = vsel %vm834_vm1, %v3359_v53, 0.0  ;;  %v1692_v16 = vpop.permute.xlu0 %1691 }
 0x6d2   : > { %v3361_v61 = vpop.eup %3360  ;;  %3370 = vpow2.f32 %v1641_v56  ;;  %v1643_v0 = vmul.f32 1.442695, %v1630_v57  ;;  %1656 = vadd.xlane.f32.xlu0 %v1655_v58 }
 0x6d3   : > { %v1682_v1 = vpack.c.bf16 %v3361_v61, %v3359_v53  ;;  %v1690_v14 = vpop.permute.xlu1 %1689  ;;  %v1658_v33 = vsel %vm834_vm1, %v3361_v61, 0.0 }
 0x6d4   : > { %v3363_v15 = vpop.eup %3362  ;;  %3372 = vpow2.f32 %v1643_v0  ;;  %3022 = vmatprep.subr.bf16.mxu0 %v1690_v14 }
 0x6d5   : > { %3023 = vmatpush3.bf16.msra.mxu0 %v1690_v14  ;;  %v1649_v17 = vsel %vm834_vm1, %v3363_v15, 0.0 }
 0x6d6   : > { %v3365_v19 = vpop.eup %3364  ;;  %1650 = vadd.xlane.f32.xlu1 %v1649_v17  ;;  %3024 = vmatprep.subr.bf16.mxu0 %v1692_v16 }
 0x6d7   : > { %v1652_v25 = vsel %vm834_vm1, %v3365_v19, 0.0  ;;  %v1681_v27 = vpack.c.bf16 %v3365_v19, %v3363_v15 }
 0x6d8   : > { %v3367_v4 = vpop.eup %3366  ;;  %1653 = vadd.xlane.f32.xlu0 %v1652_v25 }
 0x6d9   : > { %3025 = vmatpush3.bf16.msra.mxu0 %v1692_v16  ;;  %3026 = vmatprep.mubr.msk.bf16.mxu0 %vm834_vm1, %v1681_v27  ;;  %v1667_v12 = vsel %vm834_vm1, %v3367_v4, 0.0 }
 0x6da   : > { %v3369_v45 = vpop.eup %3368  ;;  %1659 = vadd.xlane.f32.xlu1 %v1658_v33  ;;  %3034 = vmatprep.subr.bf16.mxu0 %v3286_v7 }
 0x6db   : > { %v1684_v13 = vpack.c.bf16 %v3369_v45, %v3367_v4  ;;  %v1670_v24 = vsel %vm834_vm1, %v3369_v45, 0.0 }
 0x6dc   : > { %v3371_v35 = vpop.eup %3370  ;;  %1668 = vadd.xlane.f32.xlu0 %v1667_v12  ;;  %3027 = vmatmul.mubr.msk.bf16.vlgmr.msra.gmra.mrb[32].mxu0 %vm834_vm1, %v1682_v1 }
 0x6dd   : > { %v1661_v3 = vsel %vm834_vm1, %v3371_v35, 0.0  ;;  %3035 = vmatpush3.bf16.msra.mxu0 %v3286_v7 }
 0x6de   : > { %v3373_v49 = vpop.eup %3372  ;;  %3036 = vmatprep.subr.bf16.mxu0 %v3287_v11 }
 0x6df   : > { %v1683_v5 = vpack.c.bf16 %v3373_v49, %v3371_v35  ;;  %v1664_v23 = vsel %vm834_vm1, %v3373_v49, 0.0 }
 0x6e0   : > { %1662 = vadd.xlane.f32.xlu0 %v1661_v3 }
 0x6e1   : > { %3030 = vmatprep.mubr.msk.bf16.mxu0 %vm834_vm1, %v1683_v5  ;;  %3037 = vmatpush3.bf16.msra.mxu0 %v3287_v11 }
 0x6e4   : > { %3031 = vmatmul.mubr.msk.bf16.gmra.mrb[36].mxu0 %vm834_vm1, %v1684_v13 }
 0x6eb   : > { %2078 = vrot.lane.b32.xlu1 %v4112_v36, %s3734_s23 }
 0x6f6   : > { %2076 = vrot.lane.b32.xlu0 %v4114_v37, %s3734_s23 }
 0x6fa   : > { %2082 = vrot.lane.b32.xlu0 %v4137_v62, %s3734_s23 }
 0x702   : > { %v2000_v9 = vpop.xlane.xlu0 %1999 }
 0x703   : > { %v2018_v59 = vsub.f32 %v4411_v26, %v2000_v9 }
 0x704   : > { %v2003_v6 = vpop.xlane.xlu1 %2002 }
 0x705   : > { %v2028_v22 = vmul.f32 1.442695, %v2018_v59  ;;  %v2019_v21 = vsub.f32 %v4417_v28, %v2003_v6 }
 0x706   : > { %v1994_v36 = vpop.xlane.xlu0 %1993 }
 0x707   : > { %v2030_v30 = vmul.f32 1.442695, %v2019_v21  ;;  %v2016_v10 = vsub.f32 %v4413_v2, %v1994_v36  ;;  %3374 = vpow2.f32 %v2028_v22 }
 0x708   : > { %v1997_v60 = vpop.xlane.xlu1 %1996 }
 0x709   : > { %3376 = vpow2.f32 %v2030_v30  ;;  %v2024_v32 = vmul.f32 1.442695, %v2016_v10  ;;  %v2017_v37 = vsub.f32 %v4419_v46, %v1997_v60 }
 0x70a   : > { %v2012_v20 = vpop.xlane.xlu0 %2011 }
 0x70b   : > { %v2026_v38 = vmul.f32 1.442695, %v2017_v37  ;;  %v2022_v62 = vsub.f32 %v4423_v47, %v2012_v20  ;;  %3378 = vpow2.f32 %v2024_v32 }
 0x70c   : > { %v2015_v26 = vpop.xlane.xlu1 %2014 }
 0x70d   : > { %3380 = vpow2.f32 %v2026_v38  ;;  %v2036_v29 = vmul.f32 1.442695, %v2022_v62  ;;  %v2023_v28 = vsub.f32 %v4427_v31, %v2015_v26 }
 0x70e   : > { %v2006_v39 = vpop.xlane.xlu0 %2005 }
 0x70f   : > { %v2038_v2 = vmul.f32 1.442695, %v2023_v28  ;;  %v2020_v40 = vsub.f32 %v4425_v8, %v2006_v39  ;;  %1671 = vadd.xlane.f32.xlu1 %v1670_v24  ;;  %3382 = vpow2.f32 %v2036_v29 }
 0x710   : > { %v2009_v18 = vpop.xlane.xlu1 %2008 }
 0x711   : > { %3384 = vpow2.f32 %v2038_v2  ;;  %v2032_v46 = vmul.f32 1.442695, %v2020_v40  ;;  %v2021_v41 = vsub.f32 %v4429_v34, %v2009_v18  ;;  %v4477_v47 = vpop.eup %3374 }
 0x712   : > { %v2046_v54 = vsel %vm834_vm1, %v4477_v47, 0.0 }
 0x713   : > { %v4480_v42 = vpop.eup %3376  ;;  %3386 = vpow2.f32 %v2032_v46  ;;  %v2034_v31 = vmul.f32 1.442695, %v2021_v41  ;;  %1665 = vadd.xlane.f32.xlu1 %v1664_v23  ;;  %v3288_v46 = vld [vmem:[#allocation8 + $0x30] sm:$0xff]   ;;  %v3289_v41 = vld [vmem:[#allocation8 + $0x38] sm:$0xff]  }
 0x714   : > { %v2073_v43 = vpack.c.bf16 %v4480_v42, %v4477_v47  ;;  %v2049_v0 = vsel %vm834_vm1, %v4480_v42, 0.0 }
 0x715   : > { %3388 = vpow2.f32 %v2034_v31  ;;  %v4484_v8 = vpop.eup %3378 }
 0x716   : > { %v2040_v61 = vsel %vm834_vm1, %v4484_v8, 0.0 }
 0x717   : > { %v4486_v48 = vpop.eup %3380 }
 0x718   : > { %v2043_v34 = vsel %vm834_vm1, %v4486_v48, 0.0  ;;  %v2072_v51 = vpack.c.bf16 %v4486_v48, %v4484_v8 }
 0x719   : > { %2044 = vadd.xlane.f32.xlu0 %v2043_v34  ;;  %v4492_v52 = vpop.eup %3382 }
 0x71a   : > { %v2058_v58 = vsel %vm834_vm1, %v4492_v52, 0.0 }
 0x71b   : > { %v4494_v44 = vpop.eup %3384 }
 0x71c   : > { %v2075_v55 = vpack.c.bf16 %v4494_v44, %v4492_v52  ;;  %v2061_v14 = vsel %vm834_vm1, %v4494_v44, 0.0 }
 0x71d   : > { %v4500_v50 = vpop.eup %3386  ;;  %2047 = vadd.xlane.f32.xlu0 %v2046_v54 }
 0x71e   : > { %v2052_v56 = vsel %vm834_vm1, %v4500_v50, 0.0 }
 0x71f   : > { %v4502_v53 = vpop.eup %3388 }
 0x720   : > { %v2074_v57 = vpack.c.bf16 %v4502_v53, %v4500_v50  ;;  %v2055_v1 = vsel %vm834_vm1, %v4502_v53, 0.0 }
 0x721   : > { %2053 = vadd.xlane.f32.xlu0 %v2052_v56 }
 0x724   : > { %2080 = vrot.lane.b32.xlu1 %v4139_v63, %s3734_s23 }
 0x725   : > { %2059 = vadd.xlane.f32.xlu0 %v2058_v58 }
 0x748   : > { %2041 = vadd.xlane.f32.xlu1 %v2040_v61 }
 0x74c   : > { %2050 = vadd.xlane.f32.xlu1 %v2049_v0 }
 0x750   : > { %2056 = vadd.xlane.f32.xlu1 %v2055_v1 }
 0x754   : > { %2062 = vadd.xlane.f32.xlu1 %v2061_v14 }
 0x75f   : > { %v1657_v63 = vpop.xlane.xlu0 %1656 }
 0x760   : > { %3390 = vrcp.f32 %v1657_v63 }
 0x763   : > { %v1651_v25 = vpop.xlane.xlu1 %1650 }
 0x764   : > { %3392 = vrcp.f32 %v1651_v25 }
 0x765   : > { %v1654_v15 = vpop.xlane.xlu0 %1653 }
 0x767   : > { %v1660_v27 = vpop.xlane.xlu1 %1659 }
 0x768   : > { %3394 = vrcp.f32 %v1660_v27 }
 0x769   : > { %v1669_v16 = vpop.xlane.xlu0 %1668  ;;  %3396 = vrcp.f32 %v1654_v15 }
 0x76a   : > { %3398 = vrcp.f32 %v1669_v16  ;;  %v3391_v12 = vpop.eup %3390 }
 0x76b   : > { %v2079_v4 = vpop.permute.xlu1 %2078 }
 0x76d   : > { %v1663_v17 = vpop.xlane.xlu0 %1662 }
 0x76e   : > { %3400 = vrcp.f32 %v1663_v17  ;;  %v3393_v35 = vpop.eup %3392 }
 0x771   : > { %v2077_v19 = vpop.permute.xlu0 %2076 }
 0x772   : > { %3062 = vmatprep.subr.bf16.mxu0 %v2077_v19  ;;  %v3395_v5 = vpop.eup %3394 }
 0x773   : > { %v3397_v11 = vpop.eup %3396 }
 0x774   : > { %v3399_v30 = vpop.eup %3398 }
 0x775   : > { %v2083_v18 = vpop.permute.xlu0 %2082 }
 0x778   : > { %v3401_v60 = vpop.eup %3400 }
 0x79c   : > { %v1672_v33 = vpop.xlane.xlu1 %1671 }
 0x79d   : > { %3402 = vrcp.f32 %v1672_v33 }
 0x7a0   : > { %v1666_v45 = vpop.xlane.xlu1 %1665 }
 0x7a1   : > { %3404 = vrcp.f32 %v1666_v45 }
 0x7a4   : > { %v2081_v2 = vpop.permute.xlu1 %2080 }
 0x7a6   : > { %v2045_v23 = vpop.xlane.xlu0 %2044 }
 0x7a7   : > { %v3403_v20 = vpop.eup %3402  ;;  %3406 = vrcp.f32 %v2045_v23 }
 0x7aa   : > { %v2048_v8 = vpop.xlane.xlu0 %2047 }
 0x7ab   : > { %v3405_v26 = vpop.eup %3404  ;;  %3408 = vrcp.f32 %v2048_v8 }
 0x7ae   : > { %v2054_v42 = vpop.xlane.xlu0 %2053 }
 0x7af   : > { %v3028_v13 = vpop.f32.mrb[32].mxu0 }
 0x7b0   : > { %v1776_v49 = vmul.f32 %v3391_v12, %v3028_v13  ;;  %v1743_v3 = vpop.f32.mrb[33].mxu0 }
 0x7b1   : > { %v3029_v7 = vpop.f32.mrb[34].mxu0  ;;  %v1774_v6 = vmul.f32 %v3393_v35, %v1743_v3  ;;  %v3438_v3 = vld [vmem:[%s4040_s17 + $0x8] sm:$0xff]  }
 0x7b2   : > { %v1777_v9 = vmul.f32 %v3395_v5, %v3029_v7  ;;  %v1746_v59 = vpop.f32.mrb[35].mxu0  ;;  %v2060_v48 = vpop.xlane.xlu0 %2059  ;;  %v2280_v5 = vunpack.c.l.bf16 %v3438_v3  ;;  %v3439_v7 = vld [vmem:[%s4040_s17] sm:$0xff]  }
 0x7b3   : > { %v1775_v22 = vmul.f32 %v3397_v11, %v1746_v59  ;;  %v2278_v11 = vunpack.c.l.bf16 %v3439_v7 }
 0x7b4   : > { %v1783_v21 = vpack.c.bf16 %v1777_v9, %v1776_v49  ;;  %v2281_v9 = vunpack.c.h.bf16 %v3438_v3 }
 0x7b5   : > { %v1782_v36 = vpack.c.bf16 %v1775_v22, %v1774_v6  ;;  %v2741_v6 = vld [vmem:[#allocation10] ss:$0 sm:$0xff] }
 0x7b7   : > { %v3032_v10 = vpop.f32.mrb[36].mxu0  ;;  %3038 = vmatprep.mubr.msk.bf16.mxu0 %vm744_vm0, %v1782_v36  ;;  %v2279_v36 = vunpack.c.h.bf16 %v3439_v7 }
 0x7b8   : > { %v1780_v32 = vmul.f32 %v3399_v30, %v3032_v10  ;;  %v1759_v37 = vpop.f32.mrb[37].mxu0  ;;  %3039 = vmatmul.mubr.msk.bf16.vlgmr.msra.gmra.mrb[24].mxu0 %vm744_vm0, %v1783_v21 }
 0x7b9   : > { %v1778_v38 = vmul.f32 %v3401_v60, %v1759_v37  ;;  %3063 = vmatpush3.bf16.msra.mxu0 %v2077_v19  ;;  %v3033_v62 = vpop.f32.mrb[38].mxu0 }
 0x7ba   : > { %v1781_v29 = vmul.f32 %v3403_v20, %v3033_v62  ;;  %3064 = vmatprep.subr.bf16.mxu0 %v2079_v4  ;;  %v1762_v28 = vpop.f32.mrb[39].mxu0 }
 0x7bb   : > { %v1779_v39 = vmul.f32 %v3405_v26, %v1762_v28 }
 0x7bc   : > { %v1785_v24 = vpack.c.bf16 %v1781_v29, %v1780_v32 }
 0x7bd   : > { %v1784_v40 = vpack.c.bf16 %v1779_v39, %v1778_v38  ;;  %3065 = vmatpush3.bf16.msra.mxu0 %v2079_v4 }
 0x7be   : > { %3066 = vmatprep.subr.bf16.mxu0 %v2081_v2 }
 0x7bf   : > { %3042 = vmatprep.mubr.msk.bf16.mxu0 %vm744_vm0, %v1784_v40 }
 0x7c0   : > { %3043 = vmatmul.mubr.msk.bf16.gmra.mrb[28].mxu0 %vm744_vm0, %v1785_v24  ;;  %v3440_v24 = vld [vmem:[%s4040_s17 + $0x18] sm:$0xff]  }
 0x7c1   : > { %3067 = vmatpush3.bf16.msra.mxu0 %v2081_v2  ;;  %3070 = vmatprep.mubr.msk.bf16.mxu0 %vm834_vm1, %v2072_v51  ;;  %v3407_v51 = vpop.eup %3406  ;;  %v2284_v2 = vunpack.c.l.bf16 %v3440_v24 }
 0x7c2   : > { %3068 = vmatprep.subr.bf16.mxu0 %v2083_v18  ;;  %v3409_v44 = vpop.eup %3408 }
 0x7c5   : > { %3069 = vmatpush3.bf16.msra.mxu0 %v2083_v18 }
 0x7c6   : > { %3078 = vmatprep.subr.bf16.mxu0 %v3288_v46 }
 0x7c8   : > { %3071 = vmatmul.mubr.msk.bf16.vlgmr.msra.gmra.mrb[40].mxu0 %vm834_vm1, %v2073_v43 }
 0x7c9   : > { %3074 = vmatprep.mubr.msk.bf16.mxu0 %vm834_vm1, %v2074_v57  ;;  %3079 = vmatpush3.bf16.msra.mxu0 %v3288_v46  ;;  %v2285_v46 = vunpack.c.h.bf16 %v3440_v24 }
 0x7ca   : > { %3080 = vmatprep.subr.bf16.mxu0 %v3289_v41 }
 0x7cd   : > { %3081 = vmatpush3.bf16.msra.mxu0 %v3289_v41 }
 0x7d0   : > { %3075 = vmatmul.mubr.msk.bf16.gmra.mrb[44].mxu0 %vm834_vm1, %v2075_v55 }
 0x7d5   : > { %v2042_v31 = vpop.xlane.xlu1 %2041 }
 0x7d9   : > { %v2051_v47 = vpop.xlane.xlu1 %2050 }
 0x7da   : > { %3410 = vrcp.f32 %v2051_v47 }
 0x7db   : > { %3412 = vrcp.f32 %v2042_v31  ;;  %v3441_v31 = vld [vmem:[%s4040_s17 + $0x10] sm:$0xff]   ;;  %s3646_s17 = scalar_lea.vmem %s3645_s21, 1024 }
 0x7dc   : > { %3414 = vrcp.f32 %v2054_v42  ;;  %v2282_v8 = vunpack.c.l.bf16 %v3441_v31  ;;  %p3648_p12 = scmp.lt.s32.totalorder %s3646_s17, %s3640_s19 }
 0x7dd   : > { %v2057_v43 = vpop.xlane.xlu1 %2056  ;;  %3416 = vrcp.f32 %v2060_v48 }
 0x7de   : > { %p3649_p13 = por %p3648_p12, %p3647_p11 }
 0x7e0   : > { %p3650_p8 = pnand %p3649_p13, %p3643_p1 }
 0x7e1   : > { %v2063_v34 = vpop.xlane.xlu1 %2062 }
 0x7e2   : > { %3418 = vrcp.f32 %v2063_v34 }
 0x7e3   : > { %3420 = vrcp.f32 %v2057_v43  ;;  %v2283_v43 = vunpack.c.h.bf16 %v3441_v31 }
 0x7e4   : > { %v3411_v55 = vpop.eup %3410 }
 0x7e5   : > { %v3413_v53 = vpop.eup %3412 }
 0x7e6   : > { %v3415_v63 = vpop.eup %3414 }
 0x7e7   : > { %v3417_v16 = vpop.eup %3416 }
 0x7ec   : > { %v3419_v19 = vpop.eup %3418 }
 0x7ed   : > { %v3421_v27 = vpop.eup %3420 }
 0x89b   : > { %v3072_v52 = vpop.f32.mrb[40].mxu0 }
 0x89c   : > { %v2134_v54 = vpop.f32.mrb[41].mxu0  ;;  %v2167_v56 = vmul.f32 %v3409_v44, %v3072_v52 }
 0x89d   : > { %v3073_v50 = vpop.f32.mrb[42].mxu0  ;;  %v2165_v61 = vmul.f32 %v3413_v53, %v2134_v54 }
 0x89e   : > { %v2168_v57 = vmul.f32 %v3411_v55, %v3073_v50  ;;  %v2137_v58 = vpop.f32.mrb[43].mxu0 }
 0x89f   : > { %v2166_v0 = vmul.f32 %v3407_v51, %v2137_v58 }
 0x8a0   : > { %v2174_v1 = vpack.c.bf16 %v2168_v57, %v2167_v56 }
 0x8a1   : > { %v2173_v14 = vpack.c.bf16 %v2166_v0, %v2165_v61 }
 0x8a3   : > { %v3076_v15 = vpop.f32.mrb[44].mxu0  ;;  %3082 = vmatprep.mubr.msk.bf16.mxu0 %vm744_vm0, %v2173_v14 }
 0x8a4   : > { %v2150_v17 = vpop.f32.mrb[45].mxu0  ;;  %3083 = vmatmul.mubr.msk.bf16.vlgmr.msra.gmra.mrb[24].mxu0 %vm744_vm0, %v2174_v1  ;;  %v2171_v4 = vmul.f32 %v3417_v16, %v3076_v15 }
 0x8a5   : > { %v3077_v25 = vpop.f32.mrb[46].mxu0  ;;  %v2169_v12 = vmul.f32 %v3415_v63, %v2150_v17 }
 0x8a6   : > { %v2172_v33 = vmul.f32 %v3419_v19, %v3077_v25  ;;  %v2153_v45 = vpop.f32.mrb[47].mxu0 }
 0x8a7   : > { %v2170_v13 = vmul.f32 %v3421_v27, %v2153_v45 }
 0x8a8   : > { %v2176_v35 = vpack.c.bf16 %v2172_v33, %v2171_v4 }
 0x8a9   : > { %v2175_v49 = vpack.c.bf16 %v2170_v13, %v2169_v12 }
 0x8ab   : > { %3086 = vmatprep.mubr.msk.bf16.mxu0 %vm744_vm0, %v2175_v49 }
 0x8ac   : > { %3087 = vmatmul.mubr.msk.bf16.gmra.mrb[28].mxu0 %vm744_vm0, %v2176_v35 }
 0x977   : > { %v3084_v59 = vpop.f32.mrb[24].mxu0 }
 0x978   : > { %v2288_v22 = vadd.f32 %v3084_v59, %v2280_v5  ;;  %v2239_v21 = vpop.f32.mrb[25].mxu0 }
 0x979   : > { %v3085_v30 = vpop.f32.mrb[26].mxu0  ;;  %v2286_v60 = vadd.f32 %v2278_v11, %v2239_v21 }
 0x97a   : > { %v4546_v10 = vadd.f32 %v2741_v6, %v2288_v22  ;;  %v2289_v32 = vadd.f32 %v3085_v30, %v2281_v9  ;;  %v2242_v37 = vpop.f32.mrb[27].mxu0 }
 0x97b   : > { %v2287_v38 = vadd.f32 %v2279_v36, %v2242_v37  ;;  %v4551_v62 = vadd.f32 %v2741_v6, %v2286_v60 }
 0x97c   : > { %v4548_v20 = vadd.f32 %v2741_v6, %v2289_v32  ;;  %2315 = vadd.xlane.f32.xlu0 %v4546_v10  ;;  %v2338_v18 = vmul.f32 %v4546_v10, %v4546_v10 }
 0x97d   : > { %v4554_v29 = vadd.f32 %v2741_v6, %v2287_v38  ;;  %v2336_v47 = vmul.f32 %v4551_v62, %v4551_v62 }
 0x97e   : > { %2317 = vadd.xlane.f32.xlu1 %v4548_v20  ;;  %v2339_v41 = vmul.f32 %v4548_v20, %v4548_v20 }
 0x97f   : > { %v3088_v26 = vpop.f32.mrb[28].mxu0  ;;  %v2337_v48 = vmul.f32 %v4554_v29, %v4554_v29 }
 0x980   : > { %2311 = vadd.xlane.f32.xlu0 %v4551_v62  ;;  %v2255_v28 = vpop.f32.mrb[29].mxu0  ;;  %v2292_v23 = vadd.f32 %v3088_v26, %v2284_v2 }
 0x981   : > { %v3089_v39 = vpop.f32.mrb[30].mxu0  ;;  %v2290_v51 = vadd.f32 %v2282_v8, %v2255_v28 }
 0x982   : > { %2313 = vadd.xlane.f32.xlu1 %v4554_v29  ;;  %v2258_v40 = vpop.f32.mrb[31].mxu0  ;;  %v2293_v42 = vadd.f32 %v3089_v39, %v2285_v46  ;;  %v4568_v34 = vadd.f32 %v2741_v6, %v2292_v23 }
 0x983   : > { %v2291_v44 = vadd.f32 %v2283_v43, %v2258_v40  ;;  %v4573_v54 = vadd.f32 %v2741_v6, %v2290_v51 }
 0x984   : > { %2348 = vadd.xlane.f32.xlu0 %v2338_v18  ;;  %v4570_v52 = vadd.f32 %v2741_v6, %v2293_v42  ;;  %v2342_v56 = vmul.f32 %v4568_v34, %v4568_v34 }
 0x985   : > { %v4576_v55 = vadd.f32 %v2741_v6, %v2291_v44  ;;  %v2340_v50 = vmul.f32 %v4573_v54, %v4573_v54 }
 0x986   : > { %2350 = vadd.xlane.f32.xlu1 %v2339_v41  ;;  %v2343_v57 = vmul.f32 %v4570_v52, %v4570_v52 }
 0x987   : > { %v2341_v53 = vmul.f32 %v4576_v55, %v4576_v55 }
 0x988   : > { %2344 = vadd.xlane.f32.xlu0 %v2336_v47  ;;  %v4607_v47 = vld [vmem:[#allocation11] ss:$0 sm:$0xff] }
 0x98a   : > { %2346 = vadd.xlane.f32.xlu1 %v2337_v48 }
 0x98c   : > { %2323 = vadd.xlane.f32.xlu0 %v4568_v34 }
 0x98e   : > { %2325 = vadd.xlane.f32.xlu1 %v4570_v52 }
 0x990   : > { %2319 = vadd.xlane.f32.xlu0 %v4573_v54 }
 0x992   : > { %2321 = vadd.xlane.f32.xlu1 %v4576_v55 }
 0x994   : > { %2352 = vadd.xlane.f32.xlu0 %v2340_v50 }
 0x996   : > { %2354 = vadd.xlane.f32.xlu1 %v2341_v53 }
 0x998   : > { %2356 = vadd.xlane.f32.xlu0 %v2342_v56 }
 0x99a   : > { %2358 = vadd.xlane.f32.xlu1 %v2343_v57 }
 0xa09   : > { %v2316_v58 = vpop.xlane.xlu0 %2315 }
 0xa0a   : > { %v2330_v1 = vmul.f32 0.0078125, %v2316_v58 }
 0xa0b   : > { %v2318_v61 = vpop.xlane.xlu1 %2317 }
 0xa0c   : > { %v2331_v63 = vmul.f32 0.0078125, %v2318_v61  ;;  %v2370_v16 = vmul.f32 %v2330_v1, %v2330_v1  ;;  %v2394_v41 = vsub.f32 %v4546_v10, %v2330_v1 }
 0xa0d   : > { %v2312_v0 = vpop.xlane.xlu0 %2311 }
 0xa0e   : > { %v4588_v17 = vmul.f32 0.0078125, %v2312_v0  ;;  %v2371_v4 = vmul.f32 %v2331_v63, %v2331_v63  ;;  %v2395_v51 = vsub.f32 %v4548_v20, %v2331_v63  ;;  %v2743_v63 = vld [vmem:[#allocation13] ss:$0 sm:$0xff] }
 0xa0f   : > { %v2314_v14 = vpop.xlane.xlu1 %2313 }
 0xa10   : > { %v4590_v25 = vmul.f32 0.0078125, %v2314_v14  ;;  %v2368_v13 = vmul.f32 %v4588_v17, %v4588_v17  ;;  %v2392_v61 = vsub.f32 %v4551_v62, %v4588_v17 }
 0xa11   : > { %v2349_v15 = vpop.xlane.xlu0 %2348 }
 0xa12   : > { %v2362_v19 = vmul.f32 0.0078125, %v2349_v15  ;;  %v2369_v5 = vmul.f32 %v4590_v25, %v4590_v25 }
 0xa13   : > { %v2351_v27 = vpop.xlane.xlu1 %2350 }
 0xa14   : > { %v2378_v33 = vsub.f32 %v2362_v19, %v2370_v16  ;;  %v2363_v45 = vmul.f32 0.0078125, %v2351_v27 }
 0xa15   : > { %v2345_v12 = vpop.xlane.xlu0 %2344 }
 0xa16   : > { %v2386_v35 = vmax.f32 %v2378_v33, 0.0  ;;  %v2379_v49 = vsub.f32 %v2363_v45, %v2371_v4  ;;  %v2360_v3 = vmul.f32 0.0078125, %v2345_v12  ;;  %v2393_v33 = vsub.f32 %v4554_v29, %v4590_v25 }
 0xa17   : > { %v2347_v7 = vpop.xlane.xlu1 %2346 }
 0xa18   : > { %v2402_v11 = vadd.f32 1e-05, %v2386_v35  ;;  %v2387_v9 = vmax.f32 %v2379_v49, 0.0  ;;  %v2376_v59 = vsub.f32 %v2360_v3, %v2368_v13  ;;  %v2361_v6 = vmul.f32 0.0078125, %v2347_v7 }
 0xa19   : > { %v2324_v22 = vpop.xlane.xlu0 %2323 }
 0xa1a   : > { %3422 = vrsqrt.f32 %v2402_v11  ;;  %v2403_v21 = vadd.f32 1e-05, %v2387_v9  ;;  %v2384_v36 = vmax.f32 %v2376_v59, 0.0  ;;  %v2377_v30 = vsub.f32 %v2361_v6, %v2369_v5 }
 0xa1b   : > { %v2326_v60 = vpop.xlane.xlu1 %2325  ;;  %v4600_v40 = vmul.f32 0.0078125, %v2324_v22 }
 0xa1c   : > { %3424 = vrsqrt.f32 %v2403_v21  ;;  %v2400_v32 = vadd.f32 1e-05, %v2384_v36  ;;  %v2385_v37 = vmax.f32 %v2377_v30, 0.0  ;;  %v4605_v23 = vmul.f32 0.0078125, %v2326_v60 }
 0xa1d   : > { %v2320_v38 = vpop.xlane.xlu0 %2319  ;;  %v2374_v56 = vmul.f32 %v4600_v40, %v4600_v40 }
 0xa1e   : > { %3426 = vrsqrt.f32 %v2400_v32  ;;  %v2401_v26 = vadd.f32 1e-05, %v2385_v37  ;;  %v4596_v28 = vmul.f32 0.0078125, %v2320_v38  ;;  %v2375_v14 = vmul.f32 %v4605_v23, %v4605_v23 }
 0xa1f   : > { %v2322_v39 = vpop.xlane.xlu1 %2321  ;;  %v2398_v38 = vsub.f32 %v4568_v34, %v4600_v40 }
 0xa20   : > { %3428 = vrsqrt.f32 %v2401_v26  ;;  %v4598_v24 = vmul.f32 0.0078125, %v2322_v39  ;;  %v2372_v18 = vmul.f32 %v4596_v28, %v4596_v28  ;;  %v2396_v36 = vsub.f32 %v4573_v54, %v4596_v28 }
 0xa21   : > { %v2353_v2 = vpop.xlane.xlu0 %2352  ;;  %v2399_v54 = vsub.f32 %v4570_v52, %v4605_v23 }
 0xa22   : > { %v2364_v46 = vmul.f32 0.0078125, %v2353_v2  ;;  %v2373_v42 = vmul.f32 %v4598_v24, %v4598_v24  ;;  %v2397_v60 = vsub.f32 %v4576_v55, %v4598_v24 }
 0xa23   : > { %v2355_v31 = vpop.xlane.xlu1 %2354 }
 0xa24   : > { %v3423_v8 = vpop.eup %3422  ;;  %v2380_v43 = vsub.f32 %v2364_v46, %v2372_v18  ;;  %v2365_v48 = vmul.f32 0.0078125, %v2355_v31 }
 0xa25   : > { %v2418_v44 = vmul.f32 %v3423_v8, %v2394_v41  ;;  %v2357_v50 = vpop.xlane.xlu0 %2356 }
 0xa26   : > { %v3425_v53 = vpop.eup %3424  ;;  %v2388_v10 = vmax.f32 %v2380_v43, 0.0  ;;  %v2381_v57 = vsub.f32 %v2365_v48, %v2373_v42  ;;  %v2366_v58 = vmul.f32 0.0078125, %v2357_v50 }
 0xa27   : > { %v2432_v0 = vmul.f32 %v4607_v47, %v2418_v44  ;;  %v2419_v1 = vmul.f32 %v3425_v53, %v2395_v51  ;;  %v2359_v15 = vpop.xlane.xlu1 %2358 }
 0xa28   : > { %v3427_v20 = vpop.eup %3426  ;;  %v2404_v16 = vadd.f32 1e-05, %v2388_v10  ;;  %v2389_v19 = vmax.f32 %v2381_v57, 0.0  ;;  %v2382_v27 = vsub.f32 %v2366_v58, %v2374_v56  ;;  %v2367_v4 = vmul.f32 0.0078125, %v2359_v15 }
 0xa29   : > { %v2433_v45 = vmul.f32 %v4607_v47, %v2419_v1  ;;  %v2416_v12 = vmul.f32 %v3427_v20, %v2392_v61  ;;  %v2446_v49 = vadd.f32 %v2743_v63, %v2432_v0 }
 0xa2a   : > { %v3429_v62 = vpop.eup %3428  ;;  %3430 = vrsqrt.f32 %v2404_v16  ;;  %v2405_v17 = vadd.f32 1e-05, %v2389_v19  ;;  %v2390_v13 = vmax.f32 %v2382_v27, 0.0  ;;  %v2383_v35 = vsub.f32 %v2367_v4, %v2375_v14 }
 0xa2b   : > { %v2447_v3 = vadd.f32 %v2743_v63, %v2433_v45  ;;  %v2430_v5 = vmul.f32 %v4607_v47, %v2416_v12  ;;  %v2417_v7 = vmul.f32 %v3429_v62, %v2393_v33 }
 0xa2c   : > { %3432 = vrsqrt.f32 %v2405_v17  ;;  %v2406_v11 = vadd.f32 1e-05, %v2390_v13  ;;  %v2391_v9 = vmax.f32 %v2383_v35, 0.0 }
 0xa2d   : > { %v2775_v59 = vpack.c.bf16 %v2447_v3, %v2446_v49  ;;  %v2431_v29 = vmul.f32 %v4607_v47, %v2417_v7  ;;  %v2444_v6 = vadd.f32 %v2743_v63, %v2430_v5 }
 0xa2e   : > { %3434 = vrsqrt.f32 %v2406_v11  ;;  %v2407_v25 = vadd.f32 1e-05, %v2391_v9 }
 0xa2f   : > { %v2445_v22 = vadd.f32 %v2743_v63, %v2431_v29  ;;  %2787 = vst [vmem:[%s4626_s16 + $0x8] sm:$0xff] %v2775_v59  }
 0xa30   : > { %3436 = vrsqrt.f32 %v2407_v25 }
 0xa31   : > { %v2770_v21 = vpack.c.bf16 %v2445_v22, %v2444_v6 }
 0xa33   : > { %2771 = vst [vmem:[%s4626_s16] sm:$0xff] %v2770_v21  }
 0xa34   : > { %v3431_v30 = vpop.eup %3430 }
 0xa35   : > { %v2420_v32 = vmul.f32 %v3431_v30, %v2396_v36 }
 0xa36   : > { %v3433_v37 = vpop.eup %3432 }
 0xa37   : > { %v2434_v26 = vmul.f32 %v4607_v47, %v2420_v32  ;;  %v2421_v39 = vmul.f32 %v3433_v37, %v2397_v60 }
 0xa38   : > { %v3435_v2 = vpop.eup %3434 }
 0xa39   : > { %v2435_v28 = vmul.f32 %v4607_v47, %v2421_v39  ;;  %v2422_v18 = vmul.f32 %v3435_v2, %v2398_v38  ;;  %v2448_v24 = vadd.f32 %v2743_v63, %v2434_v26 }
 0xa3a   : > { %v3437_v55 = vpop.eup %3436 }
 0xa3b   : > { %v2449_v46 = vadd.f32 %v2743_v63, %v2435_v28  ;;  %v2436_v41 = vmul.f32 %v4607_v47, %v2422_v18  ;;  %v2423_v34 = vmul.f32 %v3437_v55, %v2399_v54 }
 0xa3d   : > { %v2780_v40 = vpack.c.bf16 %v2449_v46, %v2448_v24  ;;  %v2437_v31 = vmul.f32 %v4607_v47, %v2423_v34  ;;  %v2450_v8 = vadd.f32 %v2743_v63, %v2436_v41 }
 0xa3f   : > { %v2451_v42 = vadd.f32 %v2743_v63, %v2437_v31  ;;  %2788 = vst [vmem:[%s4626_s16 + $0x10] sm:$0xff] %v2780_v40  }
 0xa41   : > { %v2785_v52 = vpack.c.bf16 %v2451_v42, %v2450_v8 }
 0xa43   : > { %2789 = vst [vmem:[%s4626_s16 + $0x18] sm:$0xff] %v2785_v52  }
 0xa44   : > { %3653 = shalt.err (!%p3650_p8)
}
 0xa45   : > { %s3654_s8 = scalar_lea.hbm %s4648_s28, 512  ;;  %s3658_s9 = scalar_lea.hbm %s4704_s7, 1024 }
 0xa46   : > { %p3655_p7 = scmp.ne.s32.totalorder %s4648_s28, %s3654_s8  ;;  %p3659_p3 = scmp.lt.u32.totalorder %s4648_s28, %s4704_s7 }
 0xa47   : > { %p3660_p0 = scmp.lt.u32.totalorder %s3658_s9, %s3654_s8  ;;  %p3662_p6 = scmp.lt.u32.totalorder %s3654_s8, %s4648_s28 }
 0xa48   : > { %p3656_p9 = pnand %p3655_p7, %p4726_p5 }
 0xa49   : > { %p3661_p2 = por %p3660_p0, %p3659_p3 }
 0xa4a   : > { %p3657_p4 = pneg %p3656_p9 }
 0xa4b   : > { %p3663_p10 = por %p3662_p6, %p3661_p2 }
 0xa4d   : > { %p3664_p1 = pnand %p3663_p10, %p3657_p4 }
 0xa4f   : > { %3667 = shalt.err (!%p3664_p1)
}
 0xa50   : > { %s3736_s19 = smov 4  }
 0xa51   : > { %3156 = dma.vmem_to_hbm [thread:$0]  (%p4726_p5), %s4650_s14, 512, %s4648_s28, %s2493_s12, %s3733_s22, %s3733_s22, %s3736_s19  }
 0xa52 PF: > { %s2521_s30 = sand.u32 1, %s3706_s24   ;;  %p4727_p11 = scmp.ne.s32.totalorder %s4716_s29, 0 }
 0xa53   : > { %p4728_p12 = scmp.ge.s32.totalorder %s3718_s27, 2  ;;  %s2522_s21 = scalar_lea.sflag [#allocation4], %s2521_s30 }
 0xa55   : > { %p3182_p13 = pnand %p4728_p12, %p4727_p11 }
 0xa57   : > { %3701 = dma.done.wait (!%p3182_p13), %s2522_s21, 512  }
 0xa58   : > { %3703 = vsyncadd (!%p3182_p13), %s2522_s21, 4294966784  ;;  %p23_p8 = scmp.ge.s32.totalorder %s3952_s11, 4   ;;  %s4729_s24 = smov %s3710_s25 }
 0xa59   : > { %s4730_s25 = smov %s3714_s26  ;;  %s4731_s26 = smov %s3963_s18 }
 0xa5a   : > { %s4732_s27 = smov %s3952_s11  ;;  %25 = sbr.rel (!%p23_p8) target bundleno = 8 (0x8), region = 117 }
 0xa61   :  { %2527 = vsyncpa [#allocation3], 1 }
 0xa62   :  { %2529 = vsyncpa [#allocation3 + $0x1], 1 }
 0xa63   :  { %2530 = vsyncpa [#allocation6], 1 }
 0xa64   :  { %2531 = vsyncpa [#allocation9], 1 }
 0xa65   :  { %2532 = vsyncpa [#allocation12], 1 }
 0xa66   :  { %2533 = vsyncpa [#allocation4], 1 }
 0xa67   :  { %2535 = vsyncpa [#allocation4 + $0x1], 1 }

// kernel: encoder_forward.11
= control target key start
LH: loop header
LB: loop body
LE: loop exit
PB: predicated region body
PF: predicated region fallthrough
CT: control target
= control target key end

     0   :  { %10 = vsyncpa [#allocation3], 0  ;;  %s1226_s0 = inlined_call_operand.hbm [shape: bf16[128,128], index: 0, kind: input, shape index: {}]   ;;  %s1227_s1 = inlined_call_operand.hbm [shape: f32[1,128], index: 1, kind: input, shape index: {}]   ;;  %s1228_s2 = inlined_call_operand.hbm [shape: f32[1,128], index: 2, kind: input, shape index: {}]   ;;  %s1229_s3 = inlined_call_operand.hbm [shape: bf16[128,128], index: 3, kind: input, shape index: {}]   ;;  %s1230_s4 = inlined_call_operand.hbm [shape: f32[1,128], index: 4, kind: input, shape index: {}]   ;;  %s1231_s5 = inlined_call_operand.hbm [shape: f32[128,128], index: 5, kind: output, shape index: {}]  }
   0x1   :  { %11 = vsyncpa [#allocation6], 0 }
   0x2   :  { %12 = vsyncpa [#allocation9], 0 }
   0x3   :  { %13 = vsyncpa [#allocation4], 0  ;;  %s902_s18 = smov [#allocation5]   ;;  %s762_s22 = scalar_lea.hbm %s1227_s1, 16 }
   0x4   :  { %s32_s19 = sshll.u32 %s902_s18, 4  ;;  %p763_p0 = scmp.ne.s32.totalorder %s1227_s1, %s762_s22  ;;  %s33_s19 = int_to_ptr.vmem [resolvable:$true] %s32_s19 }
   0x5   :  { %p766_p1 = scmp.lt.u32.totalorder %s762_s22, %s1227_s1 }
   0x7   :  { %p768_p2 = pnand %p766_p1, %p763_p0 }
   0x9   :  { %771 = shalt.err (!%p768_p2)
}
   0xa   :  { %s772_s27 = scalar_lea.vmem %s33_s19, 16  ;;  %s776_s28 = scalar_lea.vmem %s33_s19, 32 }
   0xb   :  { %p773_p3 = scmp.ne.s32.totalorder %s33_s19, %s772_s27  ;;  %p777_p4 = scmp.lt.s32.totalorder %s33_s19, %s33_s19 }
   0xc   :  { %p778_p5 = scmp.lt.s32.totalorder %s776_s28, %s772_s27 }
   0xe   :  { %p779_p6 = por %p778_p5, %p777_p4 }
  0x10   :  { %p780_p7 = pnand %p779_p6, %p773_p3 }
  0x12   :  { %783 = shalt.err (!%p780_p7)
}
  0x13   :  { %35 = dma.hbm_to_vmem [thread:$0]  %s1227_s1, 16, %s33_s19, [#allocation6]  }
  0x14   :  { %s903_s6 = smov [#allocation8]   ;;  %s904_s8 = smov [#allocation2]  }
  0x15   :  { %s51_s7 = sshll.u32 %s903_s6, 4  ;;  %s19_s9 = sshll.u32 %s904_s8, 4  ;;  %s52_s7 = int_to_ptr.vmem [resolvable:$true] %s51_s7  ;;  %s20_s9 = int_to_ptr.vmem [resolvable:$true] %s19_s9 }
  0x16   :  { %s784_s12 = scalar_lea.hbm %s1229_s3, 1024 }
  0x17   :  { %p785_p8 = scmp.ne.s32.totalorder %s1229_s3, %s784_s12  ;;  %p788_p9 = scmp.lt.u32.totalorder %s784_s12, %s1229_s3 }
  0x19   :  { %p790_p10 = pnand %p788_p9, %p785_p8 }
  0x1b   :  { %793 = shalt.err (!%p790_p10)
}
  0x1c   :  { %s794_s1 = scalar_lea.vmem %s52_s7, 1024  ;;  %p799_p12 = scmp.lt.s32.totalorder %s52_s7, %s52_s7 }
  0x1d   :  { %p795_p11 = scmp.ne.s32.totalorder %s52_s7, %s794_s1  ;;  %p800_p13 = scmp.lt.s32.totalorder %s794_s1, %s794_s1 }
  0x1f   :  { %p801_p0 = por %p800_p13, %p799_p12 }
  0x21   :  { %p802_p1 = pnand %p801_p0, %p795_p11 }
  0x23   :  { %805 = shalt.err (!%p802_p1)
}
  0x24   :  { %s905_s17 = smov 64   ;;  %s906_s18 = smov 4  }
  0x25   :  { %57 = dma.hbm_to_vmem [thread:$0]  %s1229_s3, 1024, %s52_s7, [#allocation9], %s905_s17, %s905_s17, %s906_s18  }
  0x26   :  { %s806_s23 = scalar_lea.hbm %s1226_s0, 1024 }
  0x27   :  { %p807_p2 = scmp.ne.s32.totalorder %s1226_s0, %s806_s23  ;;  %p810_p3 = scmp.lt.u32.totalorder %s806_s23, %s1226_s0 }
  0x29   :  { %p812_p4 = pnand %p810_p3, %p807_p2 }
  0x2b   :  { %815 = shalt.err (!%p812_p4)
}
  0x2c   :  { %s816_s28 = scalar_lea.vmem %s20_s9, 1024  ;;  %p821_p6 = scmp.lt.s32.totalorder %s20_s9, %s20_s9 }
  0x2d   :  { %p817_p5 = scmp.ne.s32.totalorder %s20_s9, %s816_s28  ;;  %p822_p7 = scmp.lt.s32.totalorder %s816_s28, %s816_s28 }
  0x2f   :  { %p823_p8 = por %p822_p7, %p821_p6 }
  0x31   :  { %p824_p9 = pnand %p823_p8, %p817_p5 }
  0x33   :  { %827 = shalt.err (!%p824_p9)
}
  0x34   :  { %25 = dma.hbm_to_vmem [thread:$0]  %s1226_s0, 1024, %s20_s9, [#allocation3], %s905_s17, %s905_s17, %s906_s18  }
  0x35   :  { %s907_s30 = smov [#allocation7]   ;;  %s908_s7 = smov [#allocation10]  }
  0x36   :  { %s42_s6 = sshll.u32 %s907_s30, 4  ;;  %s64_s8 = sshll.u32 %s908_s7, 4  ;;  %s43_s6 = int_to_ptr.vmem [resolvable:$true] %s42_s6  ;;  %s65_s8 = int_to_ptr.vmem [resolvable:$true] %s64_s8 }
  0x37   :  { %s828_s12 = scalar_lea.hbm %s1228_s2, 16 }
  0x38   :  { %p829_p10 = scmp.ne.s32.totalorder %s1228_s2, %s828_s12  ;;  %p832_p11 = scmp.lt.u32.totalorder %s828_s12, %s1228_s2 }
  0x3a   :  { %p834_p12 = pnand %p832_p11, %p829_p10 }
  0x3c   :  { %837 = shalt.err (!%p834_p12)
}
  0x3d   :  { %s838_s0 = scalar_lea.vmem %s43_s6, 16  ;;  %s842_s9 = scalar_lea.vmem %s43_s6, 32 }
  0x3e   :  { %p839_p13 = scmp.ne.s32.totalorder %s43_s6, %s838_s0  ;;  %p843_p0 = scmp.lt.s32.totalorder %s43_s6, %s43_s6 }
  0x3f   :  { %p844_p1 = scmp.lt.s32.totalorder %s842_s9, %s838_s0 }
  0x41   :  { %p845_p2 = por %p844_p1, %p843_p0 }
  0x43   :  { %p846_p3 = pnand %p845_p2, %p839_p13 }
  0x45   :  { %849 = shalt.err (!%p846_p3)
}
  0x46   :  { %45 = dma.hbm_to_vmem [thread:$0]  %s1228_s2, 16, %s43_s6, [#allocation6]  }
  0x47   :  { %s850_s20 = scalar_lea.hbm %s1230_s4, 16 }
  0x48   :  { %p851_p4 = scmp.ne.s32.totalorder %s1230_s4, %s850_s20  ;;  %p854_p5 = scmp.lt.u32.totalorder %s850_s20, %s1230_s4 }
  0x4a   :  { %p856_p6 = pnand %p854_p5, %p851_p4 }
  0x4c   :  { %859 = shalt.err (!%p856_p6)
}
  0x4d   :  { %s860_s25 = scalar_lea.vmem %s65_s8, 16  ;;  %s864_s26 = scalar_lea.vmem %s65_s8, 32 }
  0x4e   :  { %p861_p7 = scmp.ne.s32.totalorder %s65_s8, %s860_s25  ;;  %p865_p8 = scmp.lt.s32.totalorder %s65_s8, %s65_s8 }
  0x4f   :  { %p866_p9 = scmp.lt.s32.totalorder %s864_s26, %s860_s25 }
  0x51   :  { %p867_p10 = por %p866_p9, %p865_p8 }
  0x53   :  { %p868_p11 = pnand %p867_p10, %p861_p7 }
  0x55   :  { %871 = shalt.err (!%p868_p11)
}
  0x56   :  { %67 = dma.hbm_to_vmem [thread:$0]  %s1230_s4, 16, %s65_s8, [#allocation9]  }
  0x57   :  { %894 = dma.done.wait [#allocation3], 1024  }
  0x58   :  { %895 = vsyncadd [#allocation3], 4294966272 }
  0x59   :  { %896 = dma.done.wait [#allocation6], 32  }
  0x5a   :  { %897 = vsyncadd [#allocation6], 4294967264 }
  0x5b   :  { %898 = dma.done.wait [#allocation9], 1040  }
  0x5c   :  { %899 = vsyncadd [#allocation9], 4294966256  ;;  %v644_v0 = vld [vmem:[#allocation2 + $0x20] sm:$0xff]   ;;  %v641_v4 = vld [vmem:[#allocation2 + $0x8] sm:$0xff]   ;;  %s909_s4 = smov [#allocation11]  }
  0x5d   :  { %v610_v1 = vld [vmem:[#allocation2] sm:$0xff]   ;;  %v1002_v2 = vunpack.c.l.bf16 %v644_v0  ;;  %v1008_v5 = vunpack.c.h.bf16 %v644_v0  ;;  %v1014_v7 = vunpack.c.h.bf16 %v641_v4  ;;  %v1016_v8 = vunpack.c.l.bf16 %v641_v4  ;;  %v645_v9 = vld [vmem:[#allocation2 + $0x28] sm:$0xff]   ;;  %v642_v20 = vld [vmem:[#allocation2 + $0x10] sm:$0xff]   ;;  %s584_s28 = sshll.u32 %s909_s4, 4  ;;  %s585_s28 = int_to_ptr.vmem [resolvable:$true] %s584_s28 }
  0x5e   :  { %v1004_v3 = vunpack.c.l.bf16 %v610_v1  ;;  %v1010_v6 = vunpack.c.h.bf16 %v610_v1  ;;  %v1020_v10 = vunpack.c.h.bf16 %v645_v9  ;;  %v1022_v11 = vunpack.c.l.bf16 %v645_v9  ;;  %v646_v23 = vld [vmem:[#allocation2 + $0x30] sm:$0xff]   ;;  %v722_v26 = vld [vmem:[#allocation8] sm:$0xff]   ;;  %v643_v27 = vld [vmem:[#allocation2 + $0x18] sm:$0xff]   ;;  %s872_s3 = scalar_lea.vmem %s585_s28, 2048  ;;  %p877_p13 = scmp.lt.s32.totalorder %s585_s28, %s585_s28 }
  0x5f   :  { %134 = vadd.xlane.f32.xlu1 %v1002_v2  ;;  %v176_v14 = vmul.f32 %v1008_v5, %v1008_v5  ;;  %v175_v15 = vmul.f32 %v1002_v2, %v1002_v2  ;;  %v170_v16 = vmul.f32 %v1014_v7, %v1014_v7  ;;  %v169_v17 = vmul.f32 %v1016_v8, %v1016_v8  ;;  %v723_v30 = vld [vmem:[#allocation8 + $0x8] sm:$0xff]   ;;  %v647_v31 = vld [vmem:[#allocation2 + $0x38] sm:$0xff]   ;;  %v726_v40 = vld [vmem:[#allocation8 + $0x20] sm:$0xff]   ;;  %p873_p12 = scmp.ne.s32.totalorder %s585_s28, %s872_s3  ;;  %p878_p0 = scmp.lt.s32.totalorder %s872_s3, %s872_s3 }
  0x60   :  { %118 = vadd.xlane.f32.xlu0 %v1004_v3  ;;  %v168_v12 = vmul.f32 %v1010_v6, %v1010_v6  ;;  %v167_v13 = vmul.f32 %v1004_v3, %v1004_v3  ;;  %v178_v18 = vmul.f32 %v1020_v10, %v1020_v10  ;;  %v177_v19 = vmul.f32 %v1022_v11, %v1022_v11  ;;  %v724_v34 = vld [vmem:[#allocation8 + $0x10] sm:$0xff]   ;;  %v725_v37 = vld [vmem:[#allocation8 + $0x18] sm:$0xff]   ;;  %v727_v43 = vld [vmem:[#allocation8 + $0x28] sm:$0xff]  }
  0x61   :  { %v1042_v21 = vunpack.c.h.bf16 %v642_v20  ;;  %v1044_v22 = vunpack.c.l.bf16 %v642_v20  ;;  %v1048_v24 = vunpack.c.h.bf16 %v646_v23  ;;  %v1050_v25 = vunpack.c.l.bf16 %v646_v23  ;;  %664 = vmatprep.subr.bf16.mxu0 %v722_v26  ;;  %696 = vmatprep.subr.bf16.mxu1 %v722_v26  ;;  %v728_v46 = vld [vmem:[#allocation8 + $0x30] sm:$0xff]   ;;  %v729_v47 = vld [vmem:[#allocation8 + $0x38] sm:$0xff]   ;;  %p879_p1 = por %p878_p0, %p877_p13 }
  0x62   :  { %665 = vmatpush3.bf16.msra.mxu0 %v722_v26  ;;  %704 = vmatpush3.bf16.msra.mxu1 %v722_v26  ;;  %v1054_v28 = vunpack.c.h.bf16 %v643_v27  ;;  %v1056_v29 = vunpack.c.l.bf16 %v643_v27  ;;  %v1060_v32 = vunpack.c.h.bf16 %v647_v31  ;;  %v1062_v33 = vunpack.c.l.bf16 %v647_v31 }
  0x63   :  { %136 = vadd.xlane.f32.xlu1 %v1008_v5  ;;  %666 = vmatprep.subr.bf16.mxu0 %v723_v30  ;;  %v172_v35 = vmul.f32 %v1042_v21, %v1042_v21  ;;  %v171_v36 = vmul.f32 %v1044_v22, %v1044_v22  ;;  %v180_v38 = vmul.f32 %v1048_v24, %v1048_v24  ;;  %p880_p2 = pnand %p879_p1, %p873_p12 }
  0x64   :  { %120 = vadd.xlane.f32.xlu0 %v1010_v6  ;;  %697 = vmatprep.subr.bf16.mxu1 %v723_v30  ;;  %v179_v39 = vmul.f32 %v1050_v25, %v1050_v25  ;;  %v174_v41 = vmul.f32 %v1054_v28, %v1054_v28  ;;  %v173_v42 = vmul.f32 %v1056_v29, %v1056_v29 }
  0x65   :  { %v182_v44 = vmul.f32 %v1060_v32, %v1060_v32  ;;  %v181_v45 = vmul.f32 %v1062_v33, %v1062_v33 }
  0x66   :  { %667 = vmatpush3.bf16.msra.mxu0 %v723_v30  ;;  %705 = vmatpush3.bf16.msra.mxu1 %v723_v30 }
  0x67   :  { %124 = vadd.xlane.f32.xlu1 %v1014_v7  ;;  %668 = vmatprep.subr.bf16.mxu0 %v724_v34 }
  0x68   :  { %122 = vadd.xlane.f32.xlu0 %v1016_v8  ;;  %698 = vmatprep.subr.bf16.mxu1 %v724_v34 }
  0x6a   :  { %669 = vmatpush3.bf16.msra.mxu0 %v724_v34  ;;  %706 = vmatpush3.bf16.msra.mxu1 %v724_v34 }
  0x6b   :  { %140 = vadd.xlane.f32.xlu1 %v1020_v10  ;;  %670 = vmatprep.subr.bf16.mxu0 %v725_v37 }
  0x6c   :  { %138 = vadd.xlane.f32.xlu0 %v1022_v11  ;;  %699 = vmatprep.subr.bf16.mxu1 %v725_v37 }
  0x6e   :  { %671 = vmatpush3.bf16.msra.mxu0 %v725_v37  ;;  %707 = vmatpush3.bf16.msra.mxu1 %v725_v37 }
  0x6f   :  { %185 = vadd.xlane.f32.xlu1 %v168_v12  ;;  %672 = vmatprep.subr.bf16.mxu0 %v726_v40 }
  0x70   :  { %183 = vadd.xlane.f32.xlu0 %v167_v13  ;;  %700 = vmatprep.subr.bf16.mxu1 %v726_v40 }
  0x72   :  { %673 = vmatpush3.bf16.msra.mxu0 %v726_v40  ;;  %708 = vmatpush3.bf16.msra.mxu1 %v726_v40 }
  0x73   :  { %201 = vadd.xlane.f32.xlu1 %v176_v14  ;;  %674 = vmatprep.subr.bf16.mxu0 %v727_v43 }
  0x74   :  { %199 = vadd.xlane.f32.xlu0 %v175_v15  ;;  %701 = vmatprep.subr.bf16.mxu1 %v727_v43 }
  0x76   :  { %675 = vmatpush3.bf16.msra.mxu0 %v727_v43  ;;  %709 = vmatpush3.bf16.msra.mxu1 %v727_v43 }
  0x77   :  { %189 = vadd.xlane.f32.xlu1 %v170_v16  ;;  %676 = vmatprep.subr.bf16.mxu0 %v728_v46 }
  0x78   :  { %187 = vadd.xlane.f32.xlu0 %v169_v17  ;;  %702 = vmatprep.subr.bf16.mxu1 %v728_v46 }
  0x7a   :  { %677 = vmatpush3.bf16.msra.mxu0 %v728_v46  ;;  %710 = vmatpush3.bf16.msra.mxu1 %v728_v46 }
  0x7b   :  { %205 = vadd.xlane.f32.xlu1 %v178_v18  ;;  %678 = vmatprep.subr.bf16.mxu0 %v729_v47 }
  0x7c   :  { %203 = vadd.xlane.f32.xlu0 %v177_v19  ;;  %703 = vmatprep.subr.bf16.mxu1 %v729_v47 }
  0x7e   :  { %679 = vmatpush3.bf16.msra.mxu0 %v729_v47  ;;  %711 = vmatpush3.bf16.msra.mxu1 %v729_v47 }
  0x7f   :  { %128 = vadd.xlane.f32.xlu1 %v1042_v21 }
  0x80   :  { %126 = vadd.xlane.f32.xlu0 %v1044_v22 }
  0x83   :  { %144 = vadd.xlane.f32.xlu1 %v1048_v24 }
  0x84   :  { %142 = vadd.xlane.f32.xlu0 %v1050_v25 }
  0x87   :  { %132 = vadd.xlane.f32.xlu1 %v1054_v28 }
  0x88   :  { %130 = vadd.xlane.f32.xlu0 %v1056_v29 }
  0x8b   :  { %148 = vadd.xlane.f32.xlu1 %v1060_v32 }
  0x8c   :  { %146 = vadd.xlane.f32.xlu0 %v1062_v33 }
  0x8f   :  { %193 = vadd.xlane.f32.xlu1 %v172_v35 }
  0x90   :  { %191 = vadd.xlane.f32.xlu0 %v171_v36 }
  0x93   :  { %209 = vadd.xlane.f32.xlu1 %v180_v38 }
  0x94   :  { %207 = vadd.xlane.f32.xlu0 %v179_v39 }
  0x97   :  { %197 = vadd.xlane.f32.xlu1 %v174_v41 }
  0x98   :  { %195 = vadd.xlane.f32.xlu0 %v173_v42 }
  0x9b   :  { %213 = vadd.xlane.f32.xlu1 %v182_v44 }
  0x9c   :  { %211 = vadd.xlane.f32.xlu0 %v181_v45 }
  0xec   :  { %v135_v48 = vpop.xlane.xlu1 %134 }
  0xed   :  { %v119_v49 = vpop.xlane.xlu0 %118  ;;  %v1086_v58 = vmul.f32 0.0078125, %v135_v48 }
  0xee   :  { %v1082_v56 = vmul.f32 0.0078125, %v119_v49 }
  0xef   :  { %v239_v12 = vmul.f32 %v1086_v58, %v1086_v58 }
  0xf0   :  { %v137_v50 = vpop.xlane.xlu1 %136  ;;  %v231_v62 = vmul.f32 %v1082_v56, %v1082_v56 }
  0xf1   :  { %v121_v51 = vpop.xlane.xlu0 %120  ;;  %v1088_v59 = vmul.f32 0.0078125, %v137_v50 }
  0xf2   :  { %v1084_v57 = vmul.f32 0.0078125, %v121_v51 }
  0xf3   :  { %v240_v13 = vmul.f32 %v1088_v59, %v1088_v59 }
  0xf4   :  { %v125_v52 = vpop.xlane.xlu1 %124  ;;  %v232_v63 = vmul.f32 %v1084_v57, %v1084_v57 }
  0xf5   :  { %v123_v53 = vpop.xlane.xlu0 %122  ;;  %v1098_v14 = vmul.f32 0.0078125, %v125_v52 }
  0xf6   :  { %v1100_v23 = vmul.f32 0.0078125, %v123_v53 }
  0xf7   :  { %v234_v34 = vmul.f32 %v1098_v14, %v1098_v14 }
  0xf8   :  { %v141_v54 = vpop.xlane.xlu1 %140  ;;  %v233_v42 = vmul.f32 %v1100_v23, %v1100_v23 }
  0xf9   :  { %v139_v55 = vpop.xlane.xlu0 %138  ;;  %v1104_v35 = vmul.f32 0.0078125, %v141_v54 }
  0xfa   :  { %v1106_v36 = vmul.f32 0.0078125, %v139_v55 }
  0xfb   :  { %v242_v47 = vmul.f32 %v1104_v35, %v1104_v35 }
  0xfc   :  { %v186_v60 = vpop.xlane.xlu1 %185  ;;  %v241_v48 = vmul.f32 %v1106_v36, %v1106_v36 }
  0xfd   :  { %v184_v61 = vpop.xlane.xlu0 %183  ;;  %v216_v0 = vmul.f32 0.0078125, %v186_v60 }
  0xfe   :  { %v215_v1 = vmul.f32 0.0078125, %v184_v61 }
  0xff   :  { %v248_v4 = vsub.f32 %v216_v0, %v232_v63 }
 0x100   :  { %v247_v9 = vsub.f32 %v215_v1, %v231_v62  ;;  %v202_v15 = vpop.xlane.xlu1 %201 }
 0x101   :  { %v200_v16 = vpop.xlane.xlu0 %199  ;;  %v264_v17 = vmax.f32 %v248_v4, 0.0  ;;  %v224_v19 = vmul.f32 0.0078125, %v202_v15  ;;  %v279_v15 = vsub.f32 %v1004_v3, %v1082_v56  ;;  %v287_v3 = vsub.f32 %v1002_v2, %v1086_v58 }
 0x102   :  { %v263_v18 = vmax.f32 %v247_v9, 0.0  ;;  %v223_v20 = vmul.f32 0.0078125, %v200_v16  ;;  %v281_v2 = vsub.f32 %v1016_v8, %v1100_v23 }
 0x103   :  { %v296_v26 = vadd.f32 1e-05, %v264_v17  ;;  %v256_v30 = vsub.f32 %v224_v19, %v240_v13 }
 0x104   :  { %v295_v27 = vadd.f32 1e-05, %v263_v18  ;;  %v255_v31 = vsub.f32 %v223_v20, %v239_v12  ;;  %v190_v37 = vpop.xlane.xlu1 %189  ;;  %v280_v12 = vsub.f32 %v1010_v6, %v1084_v57  ;;  %v1118_v18 = vld [vmem:[#allocation5] ss:$0 sm:$0xff]  ;;  %v288_v6 = vsub.f32 %v1008_v5, %v1088_v59 }
 0x105   :  { %v188_v38 = vpop.xlane.xlu0 %187  ;;  %730 = vrsqrt.f32 %v296_v26  ;;  %v272_v39 = vmax.f32 %v256_v30, 0.0  ;;  %v218_v41 = vmul.f32 0.0078125, %v190_v37  ;;  %v1120_v30 = vld [vmem:[#allocation7] ss:$0 sm:$0xff] }
 0x106   :  { %v271_v40 = vmax.f32 %v255_v31, 0.0  ;;  %732 = vrsqrt.f32 %v295_v27  ;;  %v217_v43 = vmul.f32 0.0078125, %v188_v38 }
 0x107   :  { %v304_v44 = vadd.f32 1e-05, %v272_v39  ;;  %v250_v46 = vsub.f32 %v218_v41, %v234_v34 }
 0x108   :  { %v303_v45 = vadd.f32 1e-05, %v271_v40  ;;  %v249_v49 = vsub.f32 %v217_v43, %v233_v42  ;;  %v206_v50 = vpop.xlane.xlu1 %205  ;;  %v282_v43 = vsub.f32 %v1014_v7, %v1098_v14 }
 0x109   :  { %v204_v51 = vpop.xlane.xlu0 %203  ;;  %734 = vrsqrt.f32 %v304_v44  ;;  %v266_v52 = vmax.f32 %v250_v46, 0.0  ;;  %v226_v53 = vmul.f32 0.0078125, %v206_v50 }
 0x10a   :  { %v225_v54 = vmul.f32 0.0078125, %v204_v51  ;;  %736 = vrsqrt.f32 %v303_v45  ;;  %v265_v55 = vmax.f32 %v249_v49, 0.0 }
 0x10b   :  { %v298_v60 = vadd.f32 1e-05, %v266_v52  ;;  %v258_v61 = vsub.f32 %v226_v53, %v242_v47  ;;  %v290_v52 = vsub.f32 %v1020_v10, %v1104_v35 }
 0x10c   :  { %v257_v62 = vsub.f32 %v225_v54, %v241_v48  ;;  %v297_v63 = vadd.f32 1e-05, %v265_v55  ;;  %v129_v0 = vpop.xlane.xlu1 %128  ;;  %v289_v54 = vsub.f32 %v1022_v11, %v1106_v36 }
 0x10d   :  { %v127_v1 = vpop.xlane.xlu0 %126  ;;  %738 = vrsqrt.f32 %v298_v60  ;;  %v274_v4 = vmax.f32 %v258_v61, 0.0  ;;  %v1135_v58 = vmul.f32 0.0078125, %v129_v0 }
 0x10e   :  { %v273_v9 = vmax.f32 %v257_v62, 0.0  ;;  %740 = vrsqrt.f32 %v297_v63  ;;  %v1139_v7 = vmul.f32 0.0078125, %v127_v1 }
 0x10f   :  { %v731_v13 = vpop.eup %730  ;;  %v306_v16 = vadd.f32 1e-05, %v274_v4  ;;  %v236_v55 = vmul.f32 %v1135_v58, %v1135_v58 }
 0x110   :  { %v305_v17 = vadd.f32 1e-05, %v273_v9  ;;  %v733_v19 = vpop.eup %732  ;;  %v145_v20 = vpop.xlane.xlu1 %144  ;;  %v328_v27 = vmul.f32 %v731_v13, %v280_v12  ;;  %v235_v9 = vmul.f32 %v1139_v7, %v1139_v7 }
 0x111   :  { %v143_v26 = vpop.xlane.xlu0 %142  ;;  %742 = vrsqrt.f32 %v306_v16  ;;  %v327_v31 = vmul.f32 %v733_v19, %v279_v15  ;;  %v1149_v60 = vmul.f32 0.0078125, %v145_v20 }
 0x112   :  { %744 = vrsqrt.f32 %v305_v17  ;;  %v350_v57 = vmul.f32 %v1118_v18, %v328_v27  ;;  %v1151_v61 = vmul.f32 0.0078125, %v143_v26 }
 0x113   :  { %v735_v34 = vpop.eup %734  ;;  %v349_v39 = vmul.f32 %v1118_v18, %v327_v31  ;;  %v244_v16 = vmul.f32 %v1149_v60, %v1149_v60 }
 0x114   :  { %v737_v56 = vpop.eup %736  ;;  %v133_v37 = vpop.xlane.xlu1 %132  ;;  %v372_v40 = vadd.f32 %v1120_v30, %v350_v57  ;;  %v336_v41 = vmul.f32 %v735_v34, %v288_v6  ;;  %v243_v26 = vmul.f32 %v1151_v61, %v1151_v61 }
 0x115   :  { %v131_v38 = vpop.xlane.xlu0 %130  ;;  %v335_v42 = vmul.f32 %v737_v56, %v287_v3  ;;  %v371_v5 = vadd.f32 %v1120_v30, %v349_v39  ;;  %v1164_v27 = vmul.f32 0.0078125, %v133_v37 }
 0x116   :  { %v358_v59 = vmul.f32 %v1118_v18, %v336_v41  ;;  %v1167_v41 = vmul.f32 0.0078125, %v131_v38 }
 0x117   :  { %v739_v44 = vpop.eup %738  ;;  %v387_v47 = vpack.c.bf16 %v372_v40, %v371_v5  ;;  %v357_v49 = vmul.f32 %v1118_v18, %v335_v42  ;;  %v238_v37 = vmul.f32 %v1164_v27, %v1164_v27 }
 0x118   :  { %v741_v45 = vpop.eup %740  ;;  %v149_v46 = vpop.xlane.xlu1 %148  ;;  %v380_v50 = vadd.f32 %v1120_v30, %v358_v59  ;;  %v330_v51 = vmul.f32 %v739_v44, %v282_v43 }
 0x119   :  { %v147_v48 = vpop.xlane.xlu0 %146  ;;  %v329_v14 = vmul.f32 %v741_v45, %v281_v2  ;;  %680 = vmatprep.mubr.bf16.mxu0 %v387_v47  ;;  %v379_v8 = vadd.f32 %v1120_v30, %v357_v49  ;;  %v1172_v2 = vmul.f32 0.0078125, %v149_v46 }
 0x11a   :  { %v352_v23 = vmul.f32 %v1118_v18, %v330_v51  ;;  %v1174_v45 = vmul.f32 0.0078125, %v147_v48 }
 0x11b   :  { %v743_v53 = vpop.eup %742  ;;  %v391_v0 = vpack.c.bf16 %v380_v50, %v379_v8  ;;  %v351_v35 = vmul.f32 %v1118_v18, %v329_v14  ;;  %v246_v46 = vmul.f32 %v1172_v2, %v1172_v2 }
 0x11c   :  { %v745_v62 = vpop.eup %744  ;;  %v194_v63 = vpop.xlane.xlu1 %193  ;;  %v374_v1 = vadd.f32 %v1120_v30, %v352_v23  ;;  %v338_v4 = vmul.f32 %v743_v53, %v290_v52  ;;  %v237_v52 = vmul.f32 %v1167_v41, %v1167_v41  ;;  %v245_v48 = vmul.f32 %v1174_v45, %v1174_v45 }
 0x11d   :  { %v192_v10 = vpop.xlane.xlu0 %191  ;;  %v220_v11 = vmul.f32 0.0078125, %v194_v63  ;;  %v337_v12 = vmul.f32 %v745_v62, %v289_v54  ;;  %688 = vmatprep.mubr.bf16.mxu1 %v391_v0  ;;  %v373_v13 = vadd.f32 %v1120_v30, %v351_v35 }
 0x11e   :  { %v219_v36 = vmul.f32 0.0078125, %v192_v10  ;;  %v360_v15 = vmul.f32 %v1118_v18, %v338_v4 }
 0x11f   :  { %v252_v17 = vsub.f32 %v220_v11, %v236_v55  ;;  %v359_v20 = vmul.f32 %v1118_v18, %v337_v12  ;;  %v388_v6 = vpack.c.bf16 %v374_v1, %v373_v13 }
 0x120   :  { %v251_v19 = vsub.f32 %v219_v36, %v235_v9  ;;  %v210_v31 = vpop.xlane.xlu1 %209  ;;  %v382_v34 = vadd.f32 %v1120_v30, %v360_v15  ;;  %v284_v15 = vsub.f32 %v1042_v21, %v1135_v58  ;;  %v291_v21 = vsub.f32 %v1050_v25, %v1151_v61 }
 0x121   :  { %v208_v57 = vpop.xlane.xlu0 %207  ;;  %v268_v3 = vmax.f32 %v252_v17, 0.0  ;;  %v228_v39 = vmul.f32 0.0078125, %v210_v31  ;;  %681 = vmatmul.mubr.bf16.vlgmr.msra.gmra.mrb[0].mxu0 %v388_v6  ;;  %v381_v42 = vadd.f32 %v1120_v30, %v359_v20  ;;  %v283_v17 = vsub.f32 %v1044_v22, %v1139_v7 }
 0x122   :  { %v267_v56 = vmax.f32 %v251_v19, 0.0  ;;  %v227_v40 = vmul.f32 0.0078125, %v208_v57  ;;  %v292_v57 = vsub.f32 %v1048_v24, %v1149_v60 }
 0x123   :  { %v300_v43 = vadd.f32 1e-05, %v268_v3  ;;  %v260_v59 = vsub.f32 %v228_v39, %v244_v16  ;;  %v392_v49 = vpack.c.bf16 %v382_v34, %v381_v42  ;;  %v286_v42 = vsub.f32 %v1054_v28, %v1164_v27 }
 0x124   :  { %v299_v5 = vadd.f32 1e-05, %v267_v56  ;;  %v259_v44 = vsub.f32 %v227_v40, %v243_v26  ;;  %v198_v47 = vpop.xlane.xlu1 %197  ;;  %v294_v28 = vsub.f32 %v1060_v32, %v1172_v2 }
 0x125   :  { %v196_v50 = vpop.xlane.xlu0 %195  ;;  %746 = vrsqrt.f32 %v300_v43  ;;  %v276_v38 = vmax.f32 %v260_v59, 0.0  ;;  %v222_v14 = vmul.f32 0.0078125, %v198_v47  ;;  %689 = vmatmul.mubr.bf16.vlgmr.msra.gmra.mrb[0].mxu1 %v392_v49  ;;  %v285_v43 = vsub.f32 %v1056_v29, %v1167_v41 }
 0x126   :  { %v275_v51 = vmax.f32 %v259_v44, 0.0  ;;  %748 = vrsqrt.f32 %v299_v5  ;;  %v221_v8 = vmul.f32 0.0078125, %v196_v50  ;;  %v293_v29 = vsub.f32 %v1062_v33, %v1174_v45 }
 0x127   :  { %v308_v23 = vadd.f32 1e-05, %v276_v38  ;;  %v254_v54 = vsub.f32 %v222_v14, %v238_v37 }
 0x128   :  { %v307_v53 = vadd.f32 1e-05, %v275_v51  ;;  %v253_v55 = vsub.f32 %v221_v8, %v237_v52  ;;  %v214_v62 = vpop.xlane.xlu1 %213 }
 0x129   :  { %v212_v63 = vpop.xlane.xlu0 %211  ;;  %750 = vrsqrt.f32 %v308_v23  ;;  %v270_v0 = vmax.f32 %v254_v54, 0.0  ;;  %v230_v10 = vmul.f32 0.0078125, %v214_v62  ;;  %v600_v54 = vld [vmem:[#allocation10] ss:$0 sm:$0xff] }
 0x12a   :  { %v229_v35 = vmul.f32 0.0078125, %v212_v63  ;;  %752 = vrsqrt.f32 %v307_v53  ;;  %v269_v1 = vmax.f32 %v253_v55, 0.0 }
 0x12b   :  { %v302_v4 = vadd.f32 1e-05, %v270_v0  ;;  %v262_v9 = vsub.f32 %v230_v10, %v246_v46 }
 0x12c   :  { %v261_v11 = vsub.f32 %v229_v35, %v245_v48  ;;  %v301_v36 = vadd.f32 1e-05, %v269_v1 }
 0x12d   :  { %754 = vrsqrt.f32 %v302_v4  ;;  %v278_v12 = vmax.f32 %v262_v9, 0.0 }
 0x12e   :  { %v277_v13 = vmax.f32 %v261_v11, 0.0  ;;  %756 = vrsqrt.f32 %v301_v36 }
 0x12f   :  { %v747_v16 = vpop.eup %746  ;;  %v310_v19 = vadd.f32 1e-05, %v278_v12 }
 0x130   :  { %v309_v20 = vadd.f32 1e-05, %v277_v13  ;;  %v749_v26 = vpop.eup %748  ;;  %v332_v31 = vmul.f32 %v747_v16, %v284_v15 }
 0x131   :  { %758 = vrsqrt.f32 %v310_v19  ;;  %v331_v6 = vmul.f32 %v749_v26, %v283_v17 }
 0x132   :  { %760 = vrsqrt.f32 %v309_v20  ;;  %v354_v34 = vmul.f32 %v1118_v18, %v332_v31 }
 0x133   :  { %v751_v3 = vpop.eup %750  ;;  %v353_v58 = vmul.f32 %v1118_v18, %v331_v6 }
 0x134   :  { %v753_v56 = vpop.eup %752  ;;  %v376_v22 = vadd.f32 %v1120_v30, %v354_v34  ;;  %v340_v7 = vmul.f32 %v751_v3, %v292_v57 }
 0x135   :  { %v375_v39 = vadd.f32 %v1120_v30, %v353_v58  ;;  %v339_v40 = vmul.f32 %v753_v56, %v291_v21 }
 0x136   :  { %v362_v24 = vmul.f32 %v1118_v18, %v340_v7 }
 0x137   :  { %v755_v60 = vpop.eup %754  ;;  %v389_v5 = vpack.c.bf16 %v376_v22, %v375_v39  ;;  %v361_v25 = vmul.f32 %v1118_v18, %v339_v40 }
 0x138   :  { %v757_v61 = vpop.eup %756  ;;  %v384_v59 = vadd.f32 %v1120_v30, %v362_v24  ;;  %v334_v44 = vmul.f32 %v755_v60, %v286_v42 }
 0x139   :  { %684 = vmatprep.mubr.bf16.mxu0 %v389_v5  ;;  %v383_v37 = vadd.f32 %v1120_v30, %v361_v25  ;;  %v333_v47 = vmul.f32 %v757_v61, %v285_v43 }
 0x13a   :  { %v356_v27 = vmul.f32 %v1118_v18, %v334_v44 }
 0x13b   :  { %v759_v49 = vpop.eup %758  ;;  %v393_v41 = vpack.c.bf16 %v384_v59, %v383_v37  ;;  %v355_v50 = vmul.f32 %v1118_v18, %v333_v47 }
 0x13c   :  { %v761_v38 = vpop.eup %760  ;;  %v378_v51 = vadd.f32 %v1120_v30, %v356_v27  ;;  %v342_v14 = vmul.f32 %v759_v49, %v294_v28 }
 0x13d   :  { %692 = vmatprep.mubr.bf16.mxu1 %v393_v41  ;;  %v377_v52 = vadd.f32 %v1120_v30, %v355_v50  ;;  %v341_v8 = vmul.f32 %v761_v38, %v293_v29 }
 0x13e   :  { %v364_v23 = vmul.f32 %v1118_v18, %v342_v14 }
 0x13f   :  { %v390_v32 = vpack.c.bf16 %v378_v51, %v377_v52  ;;  %v363_v2 = vmul.f32 %v1118_v18, %v341_v8 }
 0x140   :  { %v386_v53 = vadd.f32 %v1120_v30, %v364_v23 }
 0x141   :  { %685 = vmatmul.mubr.bf16.gmra.mrb[4].mxu0 %v390_v32  ;;  %v385_v33 = vadd.f32 %v1120_v30, %v363_v2 }
 0x143   :  { %v394_v45 = vpack.c.bf16 %v386_v53, %v385_v33 }
 0x145   :  { %693 = vmatmul.mubr.bf16.gmra.mrb[4].mxu1 %v394_v45 }
 0x1f4   :  { %v682_v46 = vpop.f32.mrb[0].mxu0 }
 0x1f5   :  { %v509_v48 = vadd.f32 %v682_v46, %v600_v54  ;;  %v500_v55 = vpop.f32.mrb[1].mxu0 }
 0x1f6   :  { %v501_v62 = vadd.f32 %v600_v54, %v500_v55  ;;  %v683_v63 = vpop.f32.mrb[2].mxu0 }
 0x1f7   :  { %565 = vst [vmem:[#allocation11 + $0x10] sm:$0xff] %v509_v48  ;;  %v512_v0 = vadd.f32 %v683_v63, %v600_v54  ;;  %v503_v10 = vpop.f32.mrb[3].mxu0 }
 0x1f8   :  { %563 = vst [vmem:[#allocation11] sm:$0xff] %v501_v62  ;;  %v504_v35 = vadd.f32 %v600_v54, %v503_v10  ;;  %v690_v1 = vpop.f32.mrb[0].mxu1 }
 0x1f9   :  { %566 = vst [vmem:[#allocation11 + $0x18] sm:$0xff] %v512_v0  ;;  %v541_v18 = vadd.f32 %v690_v1, %v600_v54  ;;  %v532_v4 = vpop.f32.mrb[1].mxu1 }
 0x1fa   :  { %564 = vst [vmem:[#allocation11 + $0x8] sm:$0xff] %v504_v35  ;;  %v533_v9 = vadd.f32 %v600_v54, %v532_v4  ;;  %v691_v30 = vpop.f32.mrb[2].mxu1 }
 0x1fb   :  { %573 = vst [vmem:[#allocation11 + $0x50] sm:$0xff] %v541_v18  ;;  %v544_v11 = vadd.f32 %v691_v30, %v600_v54  ;;  %v535_v36 = vpop.f32.mrb[3].mxu1 }
 0x1fc   :  { %571 = vst [vmem:[#allocation11 + $0x40] sm:$0xff] %v533_v9  ;;  %v536_v12 = vadd.f32 %v600_v54, %v535_v36 }
 0x1fd   :  { %574 = vst [vmem:[#allocation11 + $0x58] sm:$0xff] %v544_v11 }
 0x1fe   :  { %572 = vst [vmem:[#allocation11 + $0x48] sm:$0xff] %v536_v12 }
 0x214   :  { %v686_v13 = vpop.f32.mrb[4].mxu0 }
 0x215   :  { %v525_v15 = vadd.f32 %v686_v13, %v600_v54  ;;  %v516_v16 = vpop.f32.mrb[5].mxu0 }
 0x216   :  { %v517_v17 = vadd.f32 %v600_v54, %v516_v16  ;;  %v687_v19 = vpop.f32.mrb[6].mxu0 }
 0x217   :  { %569 = vst [vmem:[#allocation11 + $0x30] sm:$0xff] %v525_v15  ;;  %v528_v20 = vadd.f32 %v687_v19, %v600_v54  ;;  %v519_v26 = vpop.f32.mrb[7].mxu0 }
 0x218   :  { %567 = vst [vmem:[#allocation11 + $0x20] sm:$0xff] %v517_v17  ;;  %v520_v31 = vadd.f32 %v600_v54, %v519_v26  ;;  %v694_v6 = vpop.f32.mrb[4].mxu1 }
 0x219   :  { %570 = vst [vmem:[#allocation11 + $0x38] sm:$0xff] %v528_v20  ;;  %v557_v57 = vadd.f32 %v694_v6, %v600_v54  ;;  %v548_v34 = vpop.f32.mrb[5].mxu1 }
 0x21a   :  { %568 = vst [vmem:[#allocation11 + $0x28] sm:$0xff] %v520_v31  ;;  %v549_v3 = vadd.f32 %v600_v54, %v548_v34  ;;  %v695_v21 = vpop.f32.mrb[6].mxu1 }
 0x21b   :  { %577 = vst [vmem:[#allocation11 + $0x70] sm:$0xff] %v557_v57  ;;  %v560_v58 = vadd.f32 %v695_v21, %v600_v54  ;;  %v551_v56 = vpop.f32.mrb[7].mxu1 }
 0x21c   :  { %575 = vst [vmem:[#allocation11 + $0x60] sm:$0xff] %v549_v3  ;;  %v552_v22 = vadd.f32 %v600_v54, %v551_v56 }
 0x21d   :  { %578 = vst [vmem:[#allocation11 + $0x78] sm:$0xff] %v560_v58 }
 0x21e   :  { %576 = vst [vmem:[#allocation11 + $0x68] sm:$0xff] %v552_v22 }
 0x21f   :  { %883 = shalt.err (!%p880_p2)
}
 0x220   :  { %s884_s6 = scalar_lea.hbm %s1231_s5, 2048 }
 0x221   :  { %p885_p3 = scmp.ne.s32.totalorder %s1231_s5, %s884_s6  ;;  %p888_p4 = scmp.lt.u32.totalorder %s884_s6, %s1231_s5 }
 0x223   :  { %p890_p5 = pnand %p888_p4, %p885_p3 }
 0x225   :  { %893 = shalt.err (!%p890_p5)
}
 0x226   :  { %s910_s12 = smov 128   ;;  %s911_s13 = smov 8  }
 0x227   :  { %590 = dma.vmem_to_hbm [thread:$0]  %s585_s28, 2048, %s1231_s5, [#allocation4], %s910_s12, %s910_s12, %s911_s13  }
 0x228   :  { %900 = dma.done.wait [#allocation4], 2048  }
 0x229   :  { %901 = vsyncadd [#allocation4], 4294965248 }
 0x22a   :  { %594 = vsyncpa [#allocation3], 1 }
 0x22b   :  { %595 = vsyncpa [#allocation6], 1 }
 0x22c   :  { %596 = vsyncpa [#allocation9], 1 }
 0x22d   :  { %597 = vsyncpa [#allocation4], 1 }

// kernel: encoder_forward.8
= control target key start
LH: loop header
LB: loop body
LE: loop exit
PB: predicated region body
PF: predicated region fallthrough
CT: control target
= control target key end

     0   :  { %s7129_s0 = inlined_call_operand.hbm [shape: bf16[128,128], index: 0, kind: input, shape index: {}]   ;;  %s7130_s1 = inlined_call_operand.hbm [shape: bf16[128,2048], index: 1, kind: input, shape index: {}]   ;;  %s7131_s2 = inlined_call_operand.hbm [shape: f32[1,2048], index: 2, kind: input, shape index: {}]   ;;  %s7132_s3 = inlined_call_operand.hbm [shape: bf16[2048,128], index: 3, kind: input, shape index: {}]   ;;  %s7133_s4 = inlined_call_operand.hbm [shape: f32[1,128], index: 4, kind: input, shape index: {}]   ;;  %s7134_s5 = inlined_call_operand.hbm [shape: f32[1,128], index: 5, kind: input, shape index: {}]   ;;  %s7135_s6 = inlined_call_operand.hbm [shape: f32[1,128], index: 6, kind: input, shape index: {}]   ;;  %s7136_s7 = inlined_call_operand.hbm [shape: bf16[128,128], index: 7, kind: output, shape index: {}]  }
   0x1   :  { %7159 = sst [smem:[#allocation58_spill]] %s7130_s1 }
   0x2   :  { %7160 = sst [smem:[#allocation59_spill]] %s7133_s4 }
   0x3   :  { %7161 = sst [smem:[#allocation60_spill]] %s7134_s5 }
   0x4   :  { %7162 = sst [smem:[#allocation61_spill]] %s7136_s7 }
   0x5   :  { %12 = vsyncpa [#allocation4], 0 }
   0x6   :  { %13 = vsyncpa [#allocation7], 0 }
   0x7   :  { %15 = vsyncpa [#allocation7 + $0x1], 0 }
   0x8   :  { %16 = vsyncpa [#allocation10], 0 }
   0x9   :  { %18 = vsyncpa [#allocation10 + $0x1], 0 }
   0xa   :  { %19 = vsyncpa [#allocation13], 0 }
   0xb   :  { %20 = vsyncpa [#allocation5], 0  ;;  %s5042_s24 = smov 0   ;;  %s5044_s25 = smov 0  }
   0xc   :  { %s5046_s26 = smov 0   ;;  %s5048_s27 = smov 0  }
   0xd   :  { %s5050_s28 = smov 0   ;;  %s5052_s29 = smov 0  }
   0xe LB: > { %7163 = sst [smem:[#allocation22_spill]] %s4967_s25  ;;  %s5071_s30 = sadd.s32 4294967295, %s4983_s29   ;;  %s4983_s29 = sphi %s5052_s29, %s26_s29   ;;  %s4979_s28 = sphi %s5050_s28, %s7316_s28   ;;  %s4975_s27 = sphi %s5048_s27, %s7315_s27   ;;  %s4971_s26 = sphi %s5046_s26, %s7314_s26   ;;  %s4967_s25 = sphi %s5044_s25, %s7313_s25   ;;  %s4963_s24 = sphi %s5042_s24, %s7310_s24  }
   0xf   : > { %7164 = sst [smem:[#allocation23_spill]] %s4975_s27  ;;  %p84_p0 = scmp.ne.s32.totalorder %s4967_s25, %s4963_s24 }
  0x10   : > { %p7137_p1 = scmp.eq.s32.totalorder %s5071_s30, 0  ;;  %p3658_p2 = scmp.ge.s32.totalorder %s4983_s29, 1 }
  0x11   : > { %p236_p3 = scmp.lt.s32.totalorder %s4983_s29, 3  ;;  %s4985_s10 = smov [#allocation11]  }
  0x12   : > { %p5079_p4 = por %p7137_p1, %p84_p0  ;;  %s265_s11 = sshll.u32 %s4985_s10, 4  ;;  %s266_s11 = int_to_ptr.vmem [resolvable:$true] %s265_s11 }
  0x13   : > { %p5083_p5 = pnand %p3658_p2, %p236_p3  ;;  %s4986_s12 = smov [#allocation12]  }
  0x14   : > { %s7165_s8 = scalar_select %p5079_p4, 1, 0 }
  0x15   : > { %s7167_s9 = scalar_select %p5083_p5, 1, 0 }
  0x16   : > { %7166 = sst [smem:[#allocation24_spill]] %s7165_s8  ;;  %p4229_p6 = pneg %p5083_p5 }
  0x17   : > { %s276_s13 = sshll.u32 %s4986_s12, 4  ;;  %s7169_s4 = sld [smem:[#allocation59_spill]]  ;;  %s5095_s13 = int_to_ptr.vmem [resolvable:$true] %s276_s13 }
  0x18   : > { %p5091_p7 = pnand %p4229_p6, %p7137_p1 }
  0x1a   : > { %s7168_s14 = scalar_select %p5091_p7, 1, 0 }
  0x1b   : > { %p5105_p9 = pneg %p5091_p7 }
  0x1d   : > { %s4685_s17 = scalar_lea.hbm %s7169_s4, 16 }
  0x1e   : > { %p4686_p8 = scmp.ne.s32.totalorder %s7169_s4, %s4685_s17  ;;  %p4692_p12 = scmp.lt.u32.totalorder %s4685_s17, %s7169_s4 }
  0x1f   : > { %s7170_s20 = scalar_select %p5105_p9, 1, 0 }
  0x20   : > { %p4688_p10 = pnand %p5105_p9, %p4686_p8 }
  0x22   : > { %p4689_p11 = pneg %p4688_p10 }
  0x24   : > { %p4694_p13 = pnand %p4692_p12, %p4689_p11 }
  0x26   : > { %4697 = shalt.err (!%p4694_p13)
}
  0x27   : > { %s4698_s23 = scalar_lea.vmem %s266_s11, 16  ;;  %s4705_s24 = scalar_lea.vmem %s266_s11, 32 }
  0x28   : > { %p4699_p0 = scmp.ne.s32.totalorder %s266_s11, %s4698_s23  ;;  %p4706_p6 = scmp.lt.s32.totalorder %s266_s11, %s266_s11 }
  0x29   : > { %p4707_p1 = scmp.lt.s32.totalorder %s4705_s24, %s4698_s23 }
  0x2a   : > { %p4701_p2 = pnand %p4699_p0, %p5105_p9 }
  0x2b   : > { %p4708_p4 = por %p4707_p1, %p4706_p6 }
  0x2c   : > { %p4702_p3 = pneg %p4701_p2 }
  0x2e   : > { %p4709_p5 = pnand %p4708_p4, %p4702_p3 }
  0x30   : > { %4712 = shalt.err (!%p4709_p5)
}
  0x31   : > { %4235 = dma.hbm_to_vmem [thread:$0]  (!%p5091_p7), %s7169_s4, 16, %s266_s11, [#allocation10]  }
  0x32   : > { %s7171_s5 = sld [smem:[#allocation60_spill]] }
  0x38   : > { %s4713_s17 = scalar_lea.hbm %s7171_s5, 16 }
  0x39   : > { %p4714_p8 = scmp.ne.s32.totalorder %s7171_s5, %s4713_s17  ;;  %p4720_p4 = scmp.lt.u32.totalorder %s4713_s17, %s7171_s5 }
  0x3b   : > { %p4716_p10 = pnand %p4714_p8, %p5105_p9 }
  0x3d   : > { %p4717_p1 = pneg %p4716_p10 }
  0x3f   : > { %p4722_p5 = pnand %p4720_p4, %p4717_p1 }
  0x41   : > { %4725 = shalt.err (!%p4722_p5)
}
  0x42   : > { %s4726_s11 = scalar_lea.vmem %s5095_s13, 16  ;;  %s4733_s23 = scalar_lea.vmem %s5095_s13, 32 }
  0x43   : > { %p4727_p11 = scmp.ne.s32.totalorder %s5095_s13, %s4726_s11  ;;  %p4734_p0 = scmp.lt.s32.totalorder %s5095_s13, %s5095_s13 }
  0x44   : > { %p4735_p2 = scmp.lt.s32.totalorder %s4733_s23, %s4726_s11 }
  0x45   : > { %p4729_p12 = pnand %p4727_p11, %p5105_p9 }
  0x46   : > { %p4736_p3 = por %p4735_p2, %p4734_p0 }
  0x47   : > { %p4730_p13 = pneg %p4729_p12 }
  0x49   : > { %p4737_p6 = pnand %p4736_p3, %p4730_p13 }
  0x4b   : > { %4740 = shalt.err (!%p4737_p6)
}
  0x4c   : > { %4238 = dma.hbm_to_vmem [thread:$0]  (!%p5091_p7), %s7171_s5, 16, %s5095_s13, [#allocation13]  }
  0x4d   : > { %s35_s12 = sadd.s32 1, %s4979_s28  ;;  %s71_s15 = sadd.s32 1, %s4971_s26 }
  0x4e   : > { %p36_p8 = scmp.ge.s32.totalorder %s35_s12, 2  ;;  %p78_p10 = scmp.ne.s32.totalorder %s4971_s26, %s4967_s25 }
  0x4f   : > { %p79_p1 = scmp.eq.s32.totalorder %s4983_s29, 0  ;;  %p4256_p4 = scmp.lt.s32.totalorder %s4983_s29, 2 }
  0x50   : > { %s7318_s12 = smov (%p36_p8, %s35_s12), 0  ;;  %s7141_s16 = sand.u32 1, %s4983_s29  }
  0x51   : > { %7172 = sst [smem:[#allocation25_spill]] %s7318_s12  ;;  %p80_p5 = por %p79_p1, %p78_p10 }
  0x52   : > { %s68_s17 = ssub.s32 %s4979_s28, %s7318_s12  ;;  %s7140_s18 = sand.u32 1, %s4971_s26  }
  0x53   : > { %p69_p11 = scmp.eq.s32.totalorder %s68_s17, 0  ;;  %s5159_s19 = sshll.u32 %s7140_s18, 9 }
  0x54   : > { %s3842_s13 = sshll.u32 %s4979_s28, 9  ;;  %s7174_s1 = sld [smem:[#allocation58_spill]] }
  0x55   : > { %s5163_s21 = scalar_select %p69_p11, %s4971_s26, %s71_s15  }
  0x56   : > { %s302_s24 = scalar_lea.vmem [#allocation6], %s5159_s19  ;;  %p5173_p12 = pnand %p4256_p4, %p80_p5 }
  0x57   : > { %7173 = sst [smem:[#allocation26_spill]] %s5163_s21  ;;  %s309_s10 = sshll.u32 %s302_s24, 4  ;;  %s5177_s10 = int_to_ptr.vmem [resolvable:$true] %s309_s10 }
  0x58   : > { %s7175_s17 = scalar_select %p5173_p12, 1, 0 }
  0x59   : > { %s5181_s15 = scalar_lea.sflag [#allocation7], %s7141_s16  ;;  %p5187_p0 = pneg %p5173_p12 }
  0x5a   : > { %s5168_s23 = scalar_lea.hbm %s7174_s1, %s3842_s13  ;;  %s4746_s18 = scalar_lea.hbm %s7174_s1, 16384 }
  0x5b   : > { %s4741_s22 = scalar_lea.hbm %s5168_s23, 8192  ;;  %p4747_p6 = scmp.lt.u32.totalorder %s5168_s23, %s7174_s1 }
  0x5c   : > { %p4742_p13 = scmp.ne.s32.totalorder %s5168_s23, %s4741_s22  ;;  %p4748_p8 = scmp.lt.u32.totalorder %s4746_s18, %s4741_s22 }
  0x5d   : > { %s7176_s13 = scalar_select %p5187_p0, 1, 0 }
  0x5e   : > { %p4744_p2 = pnand %p5187_p0, %p4742_p13  ;;  %p4749_p10 = por %p4748_p8, %p4747_p6 }
  0x5f   : > { %p4750_p1 = scmp.lt.u32.totalorder %s4741_s22, %s5168_s23 }
  0x60   : > { %p4745_p3 = pneg %p4744_p2 }
  0x61   : > { %p4751_p4 = por %p4750_p1, %p4749_p10 }
  0x63   : > { %p4752_p5 = pnand %p4751_p4, %p4745_p3 }
  0x65   : > { %4755 = shalt.err (!%p4752_p5)
}
  0x66   : > { %s4756_s16 = scalar_lea.vmem %s5177_s10, 8192  ;;  %s4987_s11 = smov [#allocation6]  }
  0x67   : > { %p4757_p11 = scmp.ne.s32.totalorder %s5177_s10, %s4756_s16  ;;  %s4761_s24 = sshll.u32 %s4987_s11, 4  ;;  %s4762_s24 = int_to_ptr.vmem [resolvable:$false] %s4761_s24 }
  0x68   : > { %s4763_s4 = scalar_lea.vmem %s4762_s24, 16384  ;;  %p4764_p7 = scmp.lt.s32.totalorder %s5177_s10, %s4762_s24 }
  0x69   : > { %p4759_p13 = pnand %p4757_p11, %p5187_p0  ;;  %p4765_p9 = scmp.lt.s32.totalorder %s4763_s4, %s4756_s16 }
  0x6b   : > { %p4760_p2 = pneg %p4759_p13  ;;  %p4766_p6 = por %p4765_p9, %p4764_p7 }
  0x6d   : > { %p4767_p8 = pnand %p4766_p6, %p4760_p2 }
  0x6f   : > { %4770 = shalt.err (!%p4767_p8)
}
  0x70   : > { %s4988_s5 = smov 1024   ;;  %s4989_s18 = smov 512  }
  0x71   : > { %s4990_s22 = smov 32   ;;  %s4991_s1 = smov [#allocation3]  }
  0x72   : > { %4245 = dma.hbm_to_vmem [thread:$0]  (!%p5173_p12), %s5168_s23, 8192, %s5177_s10, %s5181_s15, %s4988_s5, %s4989_s18, %s4990_s22  }
  0x73   : > { %s251_s12 = sshll.u32 %s4991_s1, 4  ;;  %s4771_s16 = scalar_lea.hbm %s7129_s0, 1024  ;;  %s252_s12 = int_to_ptr.vmem [resolvable:$true] %s251_s12 }
  0x74   : > { %p4772_p7 = scmp.ne.s32.totalorder %s7129_s0, %s4771_s16  ;;  %p7177_p9 = scmp.ne.s32.totalorder %s7170_s20, 0 }
  0x75   : > { %p4778_p1 = scmp.lt.u32.totalorder %s4771_s16, %s7129_s0 }
  0x76   : > { %p4774_p3 = pnand %p4772_p7, %p7177_p9 }
  0x78   : > { %p4775_p10 = pneg %p4774_p3 }
  0x7a   : > { %p4780_p4 = pnand %p4778_p1, %p4775_p10 }
  0x7c   : > { %4783 = shalt.err (!%p4780_p4)
}
  0x7d   : > { %s4784_s23 = scalar_lea.vmem %s252_s12, 1024  ;;  %p4792_p2 = scmp.lt.s32.totalorder %s252_s12, %s252_s12 }
  0x7e   : > { %p4785_p5 = scmp.ne.s32.totalorder %s252_s12, %s4784_s23  ;;  %p4793_p6 = scmp.lt.s32.totalorder %s4784_s23, %s4784_s23 }
  0x80   : > { %p4787_p11 = pnand %p4785_p5, %p7177_p9  ;;  %p4794_p8 = por %p4793_p6, %p4792_p2 }
  0x82   : > { %p4788_p13 = pneg %p4787_p11 }
  0x84   : > { %p4795_p12 = pnand %p4794_p8, %p4788_p13 }
  0x86   : > { %4798 = shalt.err (!%p4795_p12)
}
  0x87   : > { %s4992_s1 = smov 64   ;;  %s4993_s7 = smov 4  }
  0x88   : > { %p7178_p7 = scmp.ne.s32.totalorder %s7168_s14, 0  ;;  %s7179_s10 = sand.u32 1, %s4971_s26  }
  0x89   : > { %s3667_s5 = sshll.u32 %s7179_s10, 3  ;;  %s4994_s18 = smov [#allocation14]  }
  0x8a   : > { %4232 = dma.hbm_to_vmem [thread:$0]  (!%p7178_p7), %s7129_s0, 1024, %s252_s12, [#allocation4], %s4992_s1, %s4992_s1, %s4993_s7  }
  0x8b   : > { %s287_s22 = sshll.u32 %s4994_s18, 4  ;;  %s3843_s11 = sshll.u32 %s4979_s28, 7  ;;  %s288_s22 = int_to_ptr.vmem [resolvable:$true] %s287_s22 }
  0x8c   : > { %s4799_s4 = scalar_lea.hbm %s7135_s6, 16 }
  0x8d   : > { %p4800_p12 = scmp.ne.s32.totalorder %s7135_s6, %s4799_s4  ;;  %p4806_p1 = scmp.lt.u32.totalorder %s4799_s4, %s7135_s6 }
  0x8f   : > { %p4802_p3 = pnand %p4800_p12, %p7177_p9 }
  0x91   : > { %p4803_p10 = pneg %p4802_p3 }
  0x93   : > { %p4808_p4 = pnand %p4806_p1, %p4803_p10 }
  0x95   : > { %4811 = shalt.err (!%p4808_p4)
}
  0x96   : > { %s4812_s12 = scalar_lea.vmem %s288_s22, 16  ;;  %s4819_s21 = scalar_lea.vmem %s288_s22, 32 }
  0x97   : > { %p4813_p5 = scmp.ne.s32.totalorder %s288_s22, %s4812_s12  ;;  %p4820_p2 = scmp.lt.s32.totalorder %s288_s22, %s288_s22 }
  0x98   : > { %p4821_p6 = scmp.lt.s32.totalorder %s4819_s21, %s4812_s12 }
  0x99   : > { %p4815_p11 = pnand %p4813_p5, %p7177_p9 }
  0x9a   : > { %p4822_p8 = por %p4821_p6, %p4820_p2 }
  0x9b   : > { %p4816_p13 = pneg %p4815_p11 }
  0x9d   : > { %p4823_p0 = pnand %p4822_p8, %p4816_p13 }
  0x9f   : > { %4826 = shalt.err (!%p4823_p0)
}
  0xa0   : > { %4241 = dma.hbm_to_vmem [thread:$0]  (!%p7178_p7), %s7135_s6, 16, %s288_s22, [#allocation13]  }
  0xa1   : > { %s5256_s16 = scalar_lea.hbm %s7131_s2, %s3843_s11  ;;  %s323_s20 = scalar_lea.vmem [#allocation8], %s3667_s5 }
  0xa2   : > { %s331_s24 = sshll.u32 %s323_s20, 4  ;;  %s4827_s4 = scalar_lea.hbm %s5256_s16, 128  ;;  %s332_s24 = int_to_ptr.vmem [resolvable:$true] %s331_s24 }
  0xa3   : > { %p4828_p0 = scmp.ne.s32.totalorder %s5256_s16, %s4827_s4  ;;  %p7180_p9 = scmp.ne.s32.totalorder %s7176_s13, 0 }
  0xa4   : > { %s4832_s22 = scalar_lea.hbm %s7131_s2, 256  ;;  %p4833_p7 = scmp.lt.u32.totalorder %s5256_s16, %s7131_s2 }
  0xa5   : > { %p4830_p12 = pnand %p4828_p0, %p7180_p9  ;;  %p4834_p10 = scmp.lt.u32.totalorder %s4832_s22, %s4827_s4 }
  0xa6   : > { %p4836_p4 = scmp.lt.u32.totalorder %s4827_s4, %s5256_s16 }
  0xa7   : > { %p4831_p3 = pneg %p4830_p12  ;;  %p4835_p1 = por %p4834_p10, %p4833_p7 }
  0xa9   : > { %p4837_p5 = por %p4836_p4, %p4835_p1 }
  0xab   : > { %p4838_p11 = pnand %p4837_p5, %p4831_p3 }
  0xad   : > { %4841 = shalt.err (!%p4838_p11)
}
  0xae   : > { %s4842_s5 = scalar_lea.vmem %s332_s24, 128  ;;  %s4995_s11 = smov [#allocation8]  }
  0xaf   : > { %p4843_p13 = scmp.ne.s32.totalorder %s332_s24, %s4842_s5  ;;  %s4847_s21 = sshll.u32 %s4995_s11, 4  ;;  %s4848_s21 = int_to_ptr.vmem [resolvable:$false] %s4847_s21 }
  0xb0   : > { %s4849_s8 = scalar_lea.vmem %s4848_s21, 256  ;;  %p4850_p8 = scmp.lt.s32.totalorder %s332_s24, %s4848_s21 }
  0xb1   : > { %p4845_p2 = pnand %p4843_p13, %p7180_p9  ;;  %p4851_p0 = scmp.lt.s32.totalorder %s4849_s8, %s4842_s5 }
  0xb3   : > { %p4846_p6 = pneg %p4845_p2  ;;  %p4852_p12 = por %p4851_p0, %p4850_p8 }
  0xb5   : > { %p4853_p7 = pnand %p4852_p12, %p4846_p6 }
  0xb7   : > { %4856 = shalt.err (!%p4853_p7)
}
  0xb8   : > { %p7181_p10 = scmp.ne.s32.totalorder %s7175_s17, 0  ;;  %s3844_s10 = sshll.u32 %s4979_s28, 13 }
  0xb9   : > { %s5280_s20 = scalar_lea.hbm %s7132_s3, %s3844_s10  ;;  %s342_s4 = scalar_lea.vmem [#allocation9], %s5159_s19 }
  0xba   : > { %4248 = dma.hbm_to_vmem [thread:$0]  (!%p7181_p10), %s5256_s16, 128, %s332_s24, %s5181_s15  }
  0xbb   : > { %s349_s14 = sshll.u32 %s342_s4, 4  ;;  %s7182_s23 = sand.u32 1, %s4983_s29   ;;  %s5283_s14 = int_to_ptr.vmem [resolvable:$true] %s349_s14 }
  0xbc   : > { %s5287_s22 = scalar_lea.sflag [#allocation10], %s7182_s23  ;;  %s4857_s27 = scalar_lea.hbm %s5280_s20, 8192 }
  0xbd   : > { %p4858_p3 = scmp.ne.s32.totalorder %s5280_s20, %s4857_s27  ;;  %s4862_s24 = scalar_lea.hbm %s7132_s3, 16384 }
  0xbe   : > { %p4863_p5 = scmp.lt.u32.totalorder %s5280_s20, %s7132_s3  ;;  %p4864_p11 = scmp.lt.u32.totalorder %s4862_s24, %s4857_s27 }
  0xbf   : > { %p4860_p1 = pnand %p4858_p3, %p7180_p9  ;;  %p4866_p2 = scmp.lt.u32.totalorder %s4857_s27, %s5280_s20 }
  0xc0   : > { %p4865_p13 = por %p4864_p11, %p4863_p5 }
  0xc1   : > { %p4861_p4 = pneg %p4860_p1 }
  0xc2   : > { %p4867_p6 = por %p4866_p2, %p4865_p13 }
  0xc4   : > { %p4868_p8 = pnand %p4867_p6, %p4861_p4 }
  0xc6   : > { %4871 = shalt.err (!%p4868_p8)
}
  0xc7   : > { %s4872_s19 = scalar_lea.vmem %s5283_s14, 8192  ;;  %s4996_s11 = smov [#allocation9]  }
  0xc8   : > { %p4873_p0 = scmp.ne.s32.totalorder %s5283_s14, %s4872_s19  ;;  %s4877_s21 = sshll.u32 %s4996_s11, 4  ;;  %s4878_s21 = int_to_ptr.vmem [resolvable:$false] %s4877_s21 }
  0xc9   : > { %s4879_s8 = scalar_lea.vmem %s4878_s21, 16384  ;;  %p4880_p3 = scmp.lt.s32.totalorder %s5283_s14, %s4878_s21 }
  0xca   : > { %p4875_p12 = pnand %p4873_p0, %p7180_p9  ;;  %p4881_p1 = scmp.lt.s32.totalorder %s4879_s8, %s4872_s19 }
  0xcc   : > { %p4876_p7 = pneg %p4875_p12  ;;  %p4882_p5 = por %p4881_p1, %p4880_p3 }
  0xce   : > { %p4883_p11 = pnand %p4882_p5, %p4876_p7 }
  0xd0   : > { %4886 = shalt.err (!%p4883_p11)
}
  0xd1   : > { %4251 = dma.hbm_to_vmem [thread:$0]  (!%p7181_p10), %s5280_s20, 8192, %s5283_s14, %s5287_s22, %s4992_s1, %s4992_s1, %s4993_s7  }
  0xd2   : > { %p7183_p9 = scmp.ne.s32.totalorder %s7167_s9, 0 }
  0xd4   : > { %361 = sbr.rel (%p7183_p9) target bundleno = 1208 (0x4b8), region = 48 }
  0xdb   : > { %p7184_p4 = scmp.eq.s32.totalorder %s5071_s30, 0 }
  0xdd   : > { %4938 = dma.done.wait (%p7184_p4), [#allocation4], 1024   ;;  %p7185_p13 = pmov %p7184_p4 }
  0xde   : > { %s7186_s13 = sld [smem:[#allocation22_spill]]  ;;  %s7187_s10 = sld [smem:[#allocation24_spill]] }
  0xdf   : > { %4940 = vsyncadd (%p7185_p13), [#allocation4], 4294966272  ;;  %s367_s17 = sand.u32 1, %s5071_s30  }
  0xe0   : > { %s368_s4 = scalar_lea.sflag [#allocation7], %s367_s17 }
  0xe4   : > { %s369_s25 = sand.u32 1, %s7186_s13   ;;  %p7188_p2 = scmp.ne.s32.totalorder %s7187_s10, 0 }
  0xe5   : > { %s3675_s18 = sshll.u32 %s369_s25, 9 }
  0xe6   : > { %s5322_s23 = scalar_lea.vmem [#allocation6], %s3675_s18 }
  0xe7   : > { %4942 = dma.done.wait (%p7188_p2), %s368_s4, 8320  }
  0xe8   : > { %4944 = vsyncadd (%p7188_p2), %s368_s4, 4294958976  ;;  %s5328_s9 = sshll.u32 %s369_s25, 3  ;;  %s386_s7 = scalar_lea.sflag [#allocation10], %s367_s17 }
  0xe9   : > { %s380_s1 = scalar_lea.vmem [#allocation8], %s5328_s9  ;;  %s5331_s20 = scalar_lea.vmem [#allocation9], %s3675_s18 }
  0xea   : > { %4946 = dma.done.wait (%p7188_p2), %s386_s7, 8192  }
  0xeb   : > { %4948 = vsyncadd (%p7188_p2), %s386_s7, 4294959104  ;;  %p7189_p10 = pmov %p7184_p4 }
  0xec   : > { %p7190_p6 = pmov %p7184_p4 }
  0xed   : > { %4950 = dma.done.wait (%p7189_p10), [#allocation10], 16  }
  0xee   : > { %4952 = vsyncadd (%p7190_p6), [#allocation10], 4294967280  ;;  %p7191_p8 = pmov %p7184_p4 }
  0xef   : > { %p7192_p0 = pmov %p7184_p4 }
  0xf0   : > { %4954 = dma.done.wait (%p7191_p8), [#allocation13], 32  }
  0xf1   : > { %4956 = vsyncadd (%p7192_p0), [#allocation13], 4294967264  ;;  %s7193_s14 = sld [smem:[#allocation23_spill]] }
  0xf7   : > { %p3681_p12 = scmp.ne.s32.totalorder %s7193_s14, 0 }
  0xf8   : > { %v4997_v0 = vmov (!%p3681_p12), 0.0  }
  0xf9   : > { %446 = sbr.rel (%p3681_p12) target bundleno = 257 (0x101), region = 80  ;;  %447 = vst [vmem:[#allocation2] sm:$0xff] (!%p3681_p12), %v4997_v0  ;;  %448 = vst [vmem:[#allocation2 + $0x8] sm:$0xff] (!%p3681_p12), %v4997_v0 }
  0xfa   : > { %449 = vst [vmem:[#allocation2 + $0x10] sm:$0xff] (!%p3681_p12), %v4997_v0  ;;  %450 = vst [vmem:[#allocation2 + $0x18] sm:$0xff] (!%p3681_p12), %v4997_v0 }
  0xfb   : > { %451 = vst [vmem:[#allocation2 + $0x20] sm:$0xff] (!%p3681_p12), %v4997_v0  ;;  %452 = vst [vmem:[#allocation2 + $0x28] sm:$0xff] (!%p3681_p12), %v4997_v0 }
  0xfc   : > { %453 = vst [vmem:[#allocation2 + $0x30] sm:$0xff] (!%p3681_p12), %v4997_v0  ;;  %454 = vst [vmem:[#allocation2 + $0x38] sm:$0xff] (!%p3681_p12), %v4997_v0 }
  0xfd   : > { %455 = vst [vmem:[#allocation2 + $0x40] sm:$0xff] (!%p3681_p12), %v4997_v0  ;;  %456 = vst [vmem:[#allocation2 + $0x48] sm:$0xff] (!%p3681_p12), %v4997_v0 }
  0xfe   : > { %457 = vst [vmem:[#allocation2 + $0x50] sm:$0xff] (!%p3681_p12), %v4997_v0  ;;  %458 = vst [vmem:[#allocation2 + $0x58] sm:$0xff] (!%p3681_p12), %v4997_v0 }
  0xff   : > { %459 = vst [vmem:[#allocation2 + $0x60] sm:$0xff] (!%p3681_p12), %v4997_v0  ;;  %460 = vst [vmem:[#allocation2 + $0x68] sm:$0xff] (!%p3681_p12), %v4997_v0 }
 0x100   : > { %461 = vst [vmem:[#allocation2 + $0x70] sm:$0xff] %v4997_v0  ;;  %462 = vst [vmem:[#allocation2 + $0x78] sm:$0xff] %v4997_v0 }
 0x101 PF: > { %v479_v1 = vld [vmem:[%s5322_s23] sm:$0xff]  ;;  %v480_v3 = vld [vmem:[%s5322_s23 + $0x8] sm:$0xff]  ;;  %v4998_v9 = vmov 0   ;;  %v481_v0 = vld [vmem:[%s5322_s23 + $0x10] sm:$0xff]  ;;  %s7306_s22 = sld [smem:[#allocation23_spill]] }
 0x102   : > { %v483_v2 = vld [vmem:[%s5322_s23 + $0x20] sm:$0xff]  ;;  %v484_v5 = vld [vmem:[%s5322_s23 + $0x28] sm:$0xff]  ;;  %985 = vmatprep.mubr.bf16.mxu0 %v4998_v9  ;;  %1098 = vmatprep.mubr.bf16.mxu1 %v4998_v9 }
 0x103   : > { %v3691_v4 = vcombine.high %v479_v1, %v483_v2  ;;  %v3690_v6 = vcombine.low %v479_v1, %v483_v2  ;;  %v487_v7 = vld [vmem:[%s5322_s23 + $0x40] sm:$0xff]  ;;  %v3693_v10 = vcombine.high %v480_v3, %v484_v5  ;;  %v3692_v11 = vcombine.low %v480_v3, %v484_v5  ;;  %v488_v13 = vld [vmem:[%s5322_s23 + $0x48] sm:$0xff]  ;;  %v485_v1 = vld [vmem:[%s5322_s23 + $0x30] sm:$0xff] }
 0x104   : > { %v491_v8 = vld [vmem:[%s5322_s23 + $0x60] sm:$0xff]  ;;  %v492_v14 = vld [vmem:[%s5322_s23 + $0x68] sm:$0xff]  ;;  %v482_v2 = vld [vmem:[%s5322_s23 + $0x18] sm:$0xff] }
 0x105   : > { %v3699_v12 = vcombine.high %v487_v7, %v491_v8  ;;  %v495_v15 = vld [vmem:[%s5322_s23 + $0x80] sm:$0xff]  ;;  %953 = vmatprep.subr.bf16.mxu0 %v3691_v4  ;;  %v3701_v16 = vcombine.high %v488_v13, %v492_v14  ;;  %v496_v18 = vld [vmem:[%s5322_s23 + $0x88] sm:$0xff]  ;;  %1066 = vmatprep.subr.bf16.mxu1 %v3693_v10  ;;  %v3698_v20 = vcombine.low %v487_v7, %v491_v8  ;;  %v486_v3 = vld [vmem:[%s5322_s23 + $0x38] sm:$0xff] }
 0x106   : > { %v499_v17 = vld [vmem:[%s5322_s23 + $0xa0] sm:$0xff]  ;;  %v500_v19 = vld [vmem:[%s5322_s23 + $0xa8] sm:$0xff]  ;;  %954 = vmatpush1.bf16.msra.mxu0 %v3690_v6  ;;  %1067 = vmatpush1.bf16.msra.mxu1 %v3692_v11  ;;  %v3700_v21 = vcombine.low %v488_v13, %v492_v14  ;;  %v3695_v7 = vcombine.high %v481_v0, %v485_v1  ;;  %v489_v8 = vld [vmem:[%s5322_s23 + $0x50] sm:$0xff]  ;;  %v3697_v11 = vcombine.high %v482_v2, %v486_v3 }
 0x107   : > { %955 = vmatprep.subr.bf16.mxu0 %v3699_v12  ;;  %v3707_v22 = vcombine.high %v495_v15, %v499_v17  ;;  %1068 = vmatprep.subr.bf16.mxu1 %v3701_v16  ;;  %v3709_v23 = vcombine.high %v496_v18, %v500_v19  ;;  %v503_v24 = vld [vmem:[%s5322_s23 + $0xc0] sm:$0xff]  ;;  %v504_v26 = vld [vmem:[%s5322_s23 + $0xc8] sm:$0xff]  ;;  %v3706_v28 = vcombine.low %v495_v15, %v499_v17  ;;  %v493_v10 = vld [vmem:[%s5322_s23 + $0x70] sm:$0xff]  ;;  %p3818_p7 = scmp.ne.s32.totalorder %s7306_s22, 1 }
 0x108   : > { %v507_v25 = vld [vmem:[%s5322_s23 + $0xe0] sm:$0xff]  ;;  %v508_v27 = vld [vmem:[%s5322_s23 + $0xe8] sm:$0xff]  ;;  %v3708_v29 = vcombine.low %v496_v18, %v500_v19  ;;  %v490_v12 = vld [vmem:[%s5322_s23 + $0x58] sm:$0xff]  ;;  %v3694_v14 = vcombine.low %v481_v0, %v485_v1  ;;  %v3696_v16 = vcombine.low %v482_v2, %v486_v3  ;;  %v3703_v18 = vcombine.high %v489_v8, %v493_v10 }
 0x109   : > { %v3715_v30 = vcombine.high %v503_v24, %v507_v25  ;;  %v3717_v31 = vcombine.high %v504_v26, %v508_v27  ;;  %v511_v32 = vld [vmem:[%s5322_s23 + $0x100] sm:$0xff]  ;;  %v512_v34 = vld [vmem:[%s5322_s23 + $0x108] sm:$0xff]  ;;  %v3714_v36 = vcombine.low %v503_v24, %v507_v25  ;;  %v3716_v37 = vcombine.low %v504_v26, %v508_v27  ;;  %v494_v13 = vld [vmem:[%s5322_s23 + $0x78] sm:$0xff] }
 0x10a   : > { %956 = vmatpush1.bf16.msra.mxu0 %v3698_v20  ;;  %1069 = vmatpush1.bf16.msra.mxu1 %v3700_v21  ;;  %v515_v33 = vld [vmem:[%s5322_s23 + $0x120] sm:$0xff]  ;;  %v516_v35 = vld [vmem:[%s5322_s23 + $0x128] sm:$0xff]  ;;  %v497_v15 = vld [vmem:[%s5322_s23 + $0x90] sm:$0xff]  ;;  %v3705_v20 = vcombine.high %v490_v12, %v494_v13  ;;  %v3704_v24 = vcombine.low %v490_v12, %v494_v13 }
 0x10b   : > { %957 = vmatprep.subr.bf16.mxu0 %v3707_v22  ;;  %1070 = vmatprep.subr.bf16.mxu1 %v3709_v23  ;;  %v3723_v38 = vcombine.high %v511_v32, %v515_v33  ;;  %v3725_v39 = vcombine.high %v512_v34, %v516_v35  ;;  %v519_v40 = vld [vmem:[%s5322_s23 + $0x140] sm:$0xff]  ;;  %v520_v42 = vld [vmem:[%s5322_s23 + $0x148] sm:$0xff]  ;;  %v3722_v44 = vcombine.low %v511_v32, %v515_v33  ;;  %v501_v17 = vld [vmem:[%s5322_s23 + $0xb0] sm:$0xff] }
 0x10c   : > { %v523_v41 = vld [vmem:[%s5322_s23 + $0x160] sm:$0xff]  ;;  %v524_v43 = vld [vmem:[%s5322_s23 + $0x168] sm:$0xff]  ;;  %v3724_v45 = vcombine.low %v512_v34, %v516_v35  ;;  %v498_v19 = vld [vmem:[%s5322_s23 + $0x98] sm:$0xff]  ;;  %v3702_v22 = vcombine.low %v489_v8, %v493_v10  ;;  %v3711_v25 = vcombine.high %v497_v15, %v501_v17 }
 0x10d   : > { %v3731_v46 = vcombine.high %v519_v40, %v523_v41  ;;  %v3733_v47 = vcombine.high %v520_v42, %v524_v43  ;;  %v527_v48 = vld [vmem:[%s5322_s23 + $0x180] sm:$0xff]  ;;  %v528_v50 = vld [vmem:[%s5322_s23 + $0x188] sm:$0xff]  ;;  %v3730_v52 = vcombine.low %v519_v40, %v523_v41  ;;  %v3732_v53 = vcombine.low %v520_v42, %v524_v43  ;;  %v502_v21 = vld [vmem:[%s5322_s23 + $0xb8] sm:$0xff] }
 0x10e   : > { %958 = vmatpush1.bf16.msra.mxu0 %v3706_v28  ;;  %1071 = vmatpush1.bf16.msra.mxu1 %v3708_v29  ;;  %v531_v49 = vld [vmem:[%s5322_s23 + $0x1a0] sm:$0xff]  ;;  %v532_v51 = vld [vmem:[%s5322_s23 + $0x1a8] sm:$0xff]  ;;  %v505_v26 = vld [vmem:[%s5322_s23 + $0xd0] sm:$0xff]  ;;  %v3713_v27 = vcombine.high %v498_v19, %v502_v21  ;;  %v3712_v33 = vcombine.low %v498_v19, %v502_v21 }
 0x10f   : > { %959 = vmatprep.subr.bf16.mxu0 %v3715_v30  ;;  %1072 = vmatprep.subr.bf16.mxu1 %v3717_v31  ;;  %v3739_v54 = vcombine.high %v527_v48, %v531_v49  ;;  %v535_v55 = vld [vmem:[%s5322_s23 + $0x1c0] sm:$0xff]  ;;  %v3741_v56 = vcombine.high %v528_v50, %v532_v51  ;;  %v536_v58 = vld [vmem:[%s5322_s23 + $0x1c8] sm:$0xff]  ;;  %v3738_v60 = vcombine.low %v527_v48, %v531_v49  ;;  %v509_v28 = vld [vmem:[%s5322_s23 + $0xf0] sm:$0xff] }
 0x110   : > { %v539_v57 = vld [vmem:[%s5322_s23 + $0x1e0] sm:$0xff]  ;;  %v540_v59 = vld [vmem:[%s5322_s23 + $0x1e8] sm:$0xff]  ;;  %v3740_v61 = vcombine.low %v528_v50, %v532_v51  ;;  %v506_v29 = vld [vmem:[%s5322_s23 + $0xd8] sm:$0xff]  ;;  %v3710_v31 = vcombine.low %v497_v15, %v501_v17  ;;  %v3719_v34 = vcombine.high %v505_v26, %v509_v28  ;;  %v3718_v40 = vcombine.low %v505_v26, %v509_v28 }
 0x111   : > { %v3747_v62 = vcombine.high %v535_v55, %v539_v57  ;;  %v3749_v63 = vcombine.high %v536_v58, %v540_v59  ;;  %v3746_v4 = vcombine.low %v535_v55, %v539_v57  ;;  %v3748_v5 = vcombine.low %v536_v58, %v540_v59  ;;  %v5384_v6 = vld [vmem:[#allocation3] sm:$0xff]   ;;  %v5397_v23 = vld [vmem:[#allocation3 + $0x8] sm:$0xff]   ;;  %v510_v30 = vld [vmem:[%s5322_s23 + $0xf8] sm:$0xff] }
 0x112   : > { %960 = vmatpush1.bf16.msra.mxu0 %v3714_v36  ;;  %1073 = vmatpush1.bf16.msra.mxu1 %v3716_v37  ;;  %v513_v32 = vld [vmem:[%s5322_s23 + $0x110] sm:$0xff]  ;;  %v3721_v36 = vcombine.high %v506_v29, %v510_v30  ;;  %v514_v37 = vld [vmem:[%s5322_s23 + $0x118] sm:$0xff]  ;;  %v3720_v42 = vcombine.low %v506_v29, %v510_v30  ;;  %v5444_v12 = vld [vmem:[#allocation3 + $0x28] sm:$0xff]  }
 0x113   : > { %961 = vmatprep.subr.bf16.mxu0 %v3723_v38  ;;  %1074 = vmatprep.subr.bf16.mxu1 %v3725_v39  ;;  %v517_v35 = vld [vmem:[%s5322_s23 + $0x130] sm:$0xff]  ;;  %v518_v38 = vld [vmem:[%s5322_s23 + $0x138] sm:$0xff]  ;;  %v4341_v21 = vld [vmem:[%s5331_s20 + $0x50] sm:$0xff]  }
 0x114   : > { %v5412_v39 = vld [vmem:[#allocation3 + $0x10] sm:$0xff]   ;;  %v3727_v43 = vcombine.high %v513_v32, %v517_v35  ;;  %v3726_v48 = vcombine.low %v513_v32, %v517_v35  ;;  %v3728_v51 = vcombine.low %v514_v37, %v518_v38  ;;  %v4337_v17 = vld [vmem:[%s5331_s20 + $0x48] sm:$0xff]   ;;  %v4347_v26 = vld [vmem:[%s5331_s20 + $0xd8] sm:$0xff]  }
 0x115   : > { %v521_v41 = vld [vmem:[%s5322_s23 + $0x150] sm:$0xff]  ;;  %v4338_v19 = vld [vmem:[%s5331_s20 + $0x8] sm:$0xff]   ;;  %v4348_v28 = vld [vmem:[%s5331_s20 + $0x98] sm:$0xff]  }
 0x116   : > { %962 = vmatpush1.bf16.msra.mxu0 %v3722_v44  ;;  %1075 = vmatpush1.bf16.msra.mxu1 %v3724_v45  ;;  %v525_v44 = vld [vmem:[%s5322_s23 + $0x170] sm:$0xff]  ;;  %v3729_v45 = vcombine.high %v514_v37, %v518_v38  ;;  %v4356_v35 = vld [vmem:[%s5331_s20 + $0xa8] sm:$0xff]   ;;  %v4359_v37 = vld [vmem:[%s5331_s20 + $0xf0] sm:$0xff]  }
 0x117   : > { %963 = vmatprep.subr.bf16.mxu0 %v3731_v46  ;;  %1076 = vmatprep.subr.bf16.mxu1 %v3733_v47  ;;  %v522_v46 = vld [vmem:[%s5322_s23 + $0x158] sm:$0xff]  ;;  %v529_v49 = vld [vmem:[%s5322_s23 + $0x190] sm:$0xff]  ;;  %v3734_v57 = vcombine.low %v521_v41, %v525_v44  ;;  %v4358_v38 = vld [vmem:[%s5331_s20 + $0x30] sm:$0xff]  }
 0x118   : > { %v526_v47 = vld [vmem:[%s5322_s23 + $0x178] sm:$0xff]  ;;  %v533_v50 = vld [vmem:[%s5322_s23 + $0x1b0] sm:$0xff] }
 0x119   : > { %v3737_v55 = vcombine.high %v522_v46, %v526_v47  ;;  %v537_v58 = vld [vmem:[%s5322_s23 + $0x1d0] sm:$0xff]  ;;  %v3742_v1 = vcombine.low %v529_v49, %v533_v50 }
 0x11a   : > { %964 = vmatpush1.bf16.msra.mxu0 %v3730_v52  ;;  %1077 = vmatpush1.bf16.msra.mxu1 %v3732_v53  ;;  %v3735_v52 = vcombine.high %v521_v41, %v525_v44  ;;  %v530_v53 = vld [vmem:[%s5322_s23 + $0x198] sm:$0xff]  ;;  %v541_v59 = vld [vmem:[%s5322_s23 + $0x1f0] sm:$0xff]  ;;  %v4363_v41 = vld [vmem:[%s5331_s20 + $0xf8] sm:$0xff]  }
 0x11b   : > { %965 = vmatprep.subr.bf16.mxu0 %v3739_v54  ;;  %1078 = vmatprep.subr.bf16.mxu1 %v3741_v56  ;;  %v534_v54 = vld [vmem:[%s5322_s23 + $0x1b8] sm:$0xff]  ;;  %v3751_v3 = vcombine.high %v537_v58, %v541_v59  ;;  %v3750_v8 = vcombine.low %v537_v58, %v541_v59  ;;  %v4335_v10 = vld [vmem:[%s5331_s20 + $0xc0] sm:$0xff]  }
 0x11c   : > { %v5426_v56 = vld [vmem:[#allocation3 + $0x18] sm:$0xff]   ;;  %v3745_v0 = vcombine.high %v530_v53, %v534_v54  ;;  %v3744_v2 = vcombine.low %v530_v53, %v534_v54  ;;  %v5450_v13 = vld [vmem:[#allocation3 + $0x30] sm:$0xff]  }
 0x11d   : > { %v4334_v15 = vld [vmem:[%s5331_s20] sm:$0xff]  }
 0x11e   : > { %966 = vmatpush1.bf16.msra.mxu0 %v3738_v60  ;;  %1079 = vmatpush1.bf16.msra.mxu1 %v3740_v61  ;;  %v3736_v60 = vcombine.low %v522_v46, %v526_v47  ;;  %v3743_v61 = vcombine.high %v529_v49, %v533_v50  ;;  %v4349_v29 = vld [vmem:[%s5331_s20 + $0x60] sm:$0xff]   ;;  %v545_v46 = vlaneseq }
 0x11f   : > { %967 = vmatprep.subr.bf16.mxu0 %v3747_v62  ;;  %1080 = vmatprep.subr.bf16.mxu1 %v3749_v63  ;;  %v538_v62 = vld [vmem:[%s5322_s23 + $0x1d8] sm:$0xff]  ;;  %v4351_v30 = vld [vmem:[%s5331_s20 + $0xe0] sm:$0xff]  }
 0x120   : > { %v542_v63 = vld [vmem:[%s5322_s23 + $0x1f8] sm:$0xff]  ;;  %v4352_v32 = vld [vmem:[%s5331_s20 + $0xa0] sm:$0xff]   ;;  %v5524_v47 = vshrl.u32 %v545_v46, 7 }
 0x121   : > { %v4365_v44 = vld [vmem:[%s5331_s20 + $0x140] sm:$0xff]  }
 0x122   : > { %968 = vmatpush1.bf16.msra.mxu0 %v3746_v4  ;;  %1081 = vmatpush1.bf16.msra.mxu1 %v3748_v5  ;;  %v3753_v4 = vcombine.high %v538_v62, %v542_v63  ;;  %v4333_v5 = vld [vmem:[%s5331_s20 + $0x40] sm:$0xff]   ;;  %v555_v49 = vsub.s32 2, %v5524_v47  ;;  %v551_v50 = vsub.s32 1, %v5524_v47 }
 0x123   : > { %1179 = vmatprep.subr.bf16.mxu0 %v3695_v7  ;;  %1292 = vmatprep.subr.bf16.mxu1 %v3697_v11  ;;  %v5437_v7 = vld [vmem:[#allocation3 + $0x20] sm:$0xff]   ;;  %v3752_v11 = vcombine.low %v538_v62, %v542_v63 }
 0x125   : > { %986 = vmatmul.mubr.bf16.vlgmr.msra.gmra.mrb[0].mxu0 %v5384_v6  ;;  %1099 = vmatmul.mubr.bf16.vlgmr.msra.gmra.mrb[0].mxu1 %v5384_v6 }
 0x126   : > { %1180 = vmatpush1.bf16.msra.mxu0 %v3694_v14  ;;  %1293 = vmatpush1.bf16.msra.mxu1 %v3696_v16  ;;  %v5456_v14 = vld [vmem:[#allocation3 + $0x38] sm:$0xff]   ;;  %v4336_v16 = vld [vmem:[%s5331_s20 + $0x80] sm:$0xff]  }
 0x127   : > { %995 = vmatprep.mubr.bf16.mxu0 %v4998_v9  ;;  %1108 = vmatprep.mubr.bf16.mxu1 %v4998_v9 }
 0x128   : > { %1181 = vmatprep.subr.bf16.mxu0 %v3703_v18  ;;  %1294 = vmatprep.subr.bf16.mxu1 %v3705_v20  ;;  %v4339_v18 = vld [vmem:[%s5331_s20 + $0xc8] sm:$0xff]  }
 0x129   : > { %v4340_v20 = vld [vmem:[%s5331_s20 + $0x88] sm:$0xff]  }
 0x12a   : > { %1182 = vmatpush1.bf16.msra.mxu0 %v3702_v22  ;;  %1295 = vmatpush1.bf16.msra.mxu1 %v3704_v24  ;;  %v4343_v22 = vld [vmem:[%s5331_s20 + $0xd0] sm:$0xff]  }
 0x12b   : > { %1183 = vmatprep.subr.bf16.mxu0 %v3711_v25  ;;  %1296 = vmatprep.subr.bf16.mxu1 %v3713_v27  ;;  %v4342_v24 = vld [vmem:[%s5331_s20 + $0x10] sm:$0xff]   ;;  %v4345_v25 = vld [vmem:[%s5331_s20 + $0x58] sm:$0xff]  }
 0x12c   : > { %v4346_v27 = vld [vmem:[%s5331_s20 + $0x18] sm:$0xff]  }
 0x12d   : > { %996 = vmatmul.mubr.bf16.gmra.mrb[4].mxu0 %v5397_v23  ;;  %1109 = vmatmul.mubr.bf16.gmra.mrb[4].mxu1 %v5397_v23 }
 0x12e   : > { %1005 = vmatprep.mubr.bf16.mxu0 %v4998_v9  ;;  %1118 = vmatprep.mubr.bf16.mxu1 %v4998_v9 }
 0x12f   : > { %1184 = vmatpush1.bf16.msra.mxu0 %v3710_v31  ;;  %1297 = vmatpush1.bf16.msra.mxu1 %v3712_v33  ;;  %v4350_v31 = vld [vmem:[%s5331_s20 + $0x20] sm:$0xff]   ;;  %v4355_v33 = vld [vmem:[%s5331_s20 + $0xe8] sm:$0xff]  }
 0x130   : > { %1185 = vmatprep.subr.bf16.mxu0 %v3719_v34  ;;  %1298 = vmatprep.subr.bf16.mxu1 %v3721_v36  ;;  %v4354_v34 = vld [vmem:[%s5331_s20 + $0x28] sm:$0xff]   ;;  %v4357_v36 = vld [vmem:[%s5331_s20 + $0x70] sm:$0xff]  }
 0x133   : > { %1186 = vmatpush1.bf16.msra.mxu0 %v3718_v40  ;;  %1299 = vmatpush1.bf16.msra.mxu1 %v3720_v42  ;;  %v4361_v40 = vld [vmem:[%s5331_s20 + $0x78] sm:$0xff]  }
 0x134   : > { %1187 = vmatprep.subr.bf16.mxu0 %v3727_v43  ;;  %1300 = vmatprep.subr.bf16.mxu1 %v3729_v45  ;;  %v4362_v42 = vld [vmem:[%s5331_s20 + $0x38] sm:$0xff]   ;;  %v4367_v45 = vld [vmem:[%s5331_s20 + $0x1c0] sm:$0xff]  }
 0x135   : > { %1006 = vmatmul.mubr.bf16.gmra.mrb[8].mxu0 %v5412_v39  ;;  %1119 = vmatmul.mubr.bf16.gmra.mrb[8].mxu1 %v5412_v39  ;;  %v4364_v43 = vld [vmem:[%s5331_s20 + $0xb8] sm:$0xff]  }
 0x136   : > { %1015 = vmatprep.mubr.bf16.mxu0 %v4998_v9  ;;  %1128 = vmatprep.mubr.bf16.mxu1 %v4998_v9 }
 0x137   : > { %1188 = vmatpush1.bf16.msra.mxu0 %v3726_v48  ;;  %1301 = vmatpush1.bf16.msra.mxu1 %v3728_v51  ;;  %v5529_v48 = vld [vmem:[%s380_s1] sm:$0xff]  ;;  %v559_v51 = vsub.s32 3, %v5524_v47 }
 0x138   : > { %1189 = vmatprep.subr.bf16.mxu0 %v3735_v52  ;;  %1302 = vmatprep.subr.bf16.mxu1 %v3737_v55  ;;  %v5538_v53 = vrot.slane %v5529_v48, %v555_v49  ;;  %v5541_v54 = vrot.slane %v5529_v48, %v551_v50 }
 0x139   : > { %v5544_v55 = vrot.slane %v5529_v48, %v559_v51 }
 0x13b   : > { %1190 = vmatpush1.bf16.msra.mxu0 %v3734_v57  ;;  %1303 = vmatpush1.bf16.msra.mxu1 %v3736_v60 }
 0x13c   : > { %1191 = vmatprep.subr.bf16.mxu0 %v3743_v61  ;;  %1304 = vmatprep.subr.bf16.mxu1 %v3745_v0 }
 0x13d   : > { %1016 = vmatmul.mubr.bf16.gmra.mrb[12].mxu0 %v5426_v56  ;;  %1129 = vmatmul.mubr.bf16.gmra.mrb[12].mxu1 %v5426_v56 }
 0x13e   : > { %1025 = vmatprep.mubr.bf16.mxu0 %v4998_v9  ;;  %1138 = vmatprep.mubr.bf16.mxu1 %v4998_v9 }
 0x13f   : > { %1192 = vmatpush1.bf16.msra.mxu0 %v3742_v1  ;;  %1305 = vmatpush1.bf16.msra.mxu1 %v3744_v2 }
 0x140   : > { %1193 = vmatprep.subr.bf16.mxu0 %v3751_v3  ;;  %1306 = vmatprep.subr.bf16.mxu1 %v3753_v4 }
 0x143   : > { %1194 = vmatpush1.bf16.msra.mxu0 %v3750_v8  ;;  %1307 = vmatpush1.bf16.msra.mxu1 %v3752_v11 }
 0x144   : > { %3947 = vmatprep.subr.bf16.mxu0 %v4333_v5  ;;  %4011 = vmatprep.subr.bf16.mxu1 %v4335_v10 }
 0x145   : > { %1026 = vmatmul.mubr.bf16.gmra.mrb[16].mxu0 %v5437_v7  ;;  %1139 = vmatmul.mubr.bf16.gmra.mrb[16].mxu1 %v5437_v7 }
 0x146   : > { %1035 = vmatprep.mubr.bf16.mxu0 %v4998_v9  ;;  %1148 = vmatprep.mubr.bf16.mxu1 %v4998_v9 }
 0x14d   : > { %1036 = vmatmul.mubr.bf16.gmra.mrb[20].mxu0 %v5444_v12  ;;  %1149 = vmatmul.mubr.bf16.gmra.mrb[20].mxu1 %v5444_v12 }
 0x14e   : > { %1045 = vmatprep.mubr.bf16.mxu0 %v4998_v9  ;;  %1158 = vmatprep.mubr.bf16.mxu1 %v4998_v9 }
 0x155   : > { %1046 = vmatmul.mubr.bf16.gmra.mrb[24].mxu0 %v5450_v13  ;;  %1159 = vmatmul.mubr.bf16.gmra.mrb[24].mxu1 %v5450_v13 }
 0x156   : > { %1055 = vmatprep.mubr.bf16.mxu0 %v4998_v9  ;;  %1168 = vmatprep.mubr.bf16.mxu1 %v4998_v9 }
 0x15d   : > { %1056 = vmatmul.mubr.bf16.gmra.mrb[28].mxu0 %v5456_v14  ;;  %1169 = vmatmul.mubr.bf16.gmra.mrb[28].mxu1 %v5456_v14 }
 0x15e   : > { %1211 = vmatprep.mubr.bf16.mxu0 %v4998_v9  ;;  %1324 = vmatprep.mubr.bf16.mxu1 %v4998_v9 }
 0x165   : > { %1212 = vmatmul.mubr.bf16.vlgmr.msra.gmra.mrb[32].mxu0 %v5384_v6  ;;  %1325 = vmatmul.mubr.bf16.vlgmr.msra.gmra.mrb[32].mxu1 %v5384_v6  ;;  %v4344_v6 = vld [vmem:[%s5331_s20 + $0x90] sm:$0xff]  }
 0x166   : > { %1221 = vmatprep.mubr.bf16.mxu0 %v4998_v9  ;;  %1334 = vmatprep.mubr.bf16.mxu1 %v4998_v9 }
 0x167   : > { %3948 = vmatpush3.bf16.msra.mxu0 %v4334_v15  ;;  %4012 = vmatpush3.bf16.msra.mxu1 %v4336_v16  ;;  %v563_v15 = vsub.s32 4, %v5524_v47 }
 0x168   : > { %3949 = vmatprep.subr.bf16.mxu0 %v4337_v17  ;;  %4013 = vmatprep.subr.bf16.mxu1 %v4339_v18  ;;  %v571_v18 = vsub.s32 6, %v5524_v47 }
 0x16b   : > { %3950 = vmatpush3.bf16.msra.mxu0 %v4338_v19  ;;  %4014 = vmatpush3.bf16.msra.mxu1 %v4340_v20  ;;  %v567_v19 = vsub.s32 5, %v5524_v47 }
 0x16c   : > { %3951 = vmatprep.subr.bf16.mxu0 %v4341_v21  ;;  %4015 = vmatprep.subr.bf16.mxu1 %v4343_v22 }
 0x16d   : > { %1222 = vmatmul.mubr.bf16.gmra.mrb[36].mxu0 %v5397_v23  ;;  %1335 = vmatmul.mubr.bf16.gmra.mrb[36].mxu1 %v5397_v23  ;;  %v4353_v23 = vld [vmem:[%s5331_s20 + $0x68] sm:$0xff]  }
 0x16e   : > { %1231 = vmatprep.mubr.bf16.mxu0 %v4998_v9  ;;  %1344 = vmatprep.mubr.bf16.mxu1 %v4998_v9 }
 0x16f   : > { %3952 = vmatpush3.bf16.msra.mxu0 %v4342_v24  ;;  %4016 = vmatpush3.bf16.msra.mxu1 %v4344_v6  ;;  %v575_v24 = vsub.s32 7, %v5524_v47 }
 0x170   : > { %3953 = vmatprep.subr.bf16.mxu0 %v4345_v25  ;;  %4017 = vmatprep.subr.bf16.mxu1 %v4347_v26 }
 0x173   : > { %3954 = vmatpush3.bf16.msra.mxu0 %v4346_v27  ;;  %4018 = vmatpush3.bf16.msra.mxu1 %v4348_v28 }
 0x174   : > { %3955 = vmatprep.subr.bf16.mxu0 %v4349_v29  ;;  %4019 = vmatprep.subr.bf16.mxu1 %v4351_v30 }
 0x175   : > { %1232 = vmatmul.mubr.bf16.gmra.mrb[40].mxu0 %v5412_v39  ;;  %1345 = vmatmul.mubr.bf16.gmra.mrb[40].mxu1 %v5412_v39  ;;  %v4360_v39 = vld [vmem:[%s5331_s20 + $0xb0] sm:$0xff]  }
 0x176   : > { %1241 = vmatprep.mubr.bf16.mxu0 %v4998_v9  ;;  %1354 = vmatprep.mubr.bf16.mxu1 %v4998_v9 }
 0x177   : > { %3956 = vmatpush3.bf16.msra.mxu0 %v4350_v31  ;;  %4020 = vmatpush3.bf16.msra.mxu1 %v4352_v32  ;;  %v5563_v32 = vrot.slane %v5529_v48, %v563_v15 }
 0x178   : > { %3957 = vmatprep.subr.bf16.mxu0 %v4353_v23  ;;  %4021 = vmatprep.subr.bf16.mxu1 %v4355_v33 }
 0x179   : > { %7194 = vst [vmem:[#allocation27_spill] sm:$0xff] %v5563_v32 }
 0x17b   : > { %3958 = vmatpush3.bf16.msra.mxu0 %v4354_v34  ;;  %4022 = vmatpush3.bf16.msra.mxu1 %v4356_v35  ;;  %v5566_v35 = vrot.slane %v5529_v48, %v571_v18 }
 0x17c   : > { %3959 = vmatprep.subr.bf16.mxu0 %v4357_v36  ;;  %4023 = vmatprep.subr.bf16.mxu1 %v4359_v37  ;;  %v5569_v36 = vrot.slane %v5529_v48, %v567_v19 }
 0x17d   : > { %1242 = vmatmul.mubr.bf16.gmra.mrb[44].mxu0 %v5426_v56  ;;  %1355 = vmatmul.mubr.bf16.gmra.mrb[44].mxu1 %v5426_v56  ;;  %7195 = vst [vmem:[#allocation28_spill] sm:$0xff] %v5566_v35 }
 0x17e   : > { %1251 = vmatprep.mubr.bf16.mxu0 %v4998_v9  ;;  %1364 = vmatprep.mubr.bf16.mxu1 %v4998_v9  ;;  %7196 = vst [vmem:[#allocation29_spill] sm:$0xff] %v5569_v36 }
 0x17f   : > { %3960 = vmatpush3.bf16.msra.mxu0 %v4358_v38  ;;  %4024 = vmatpush3.bf16.msra.mxu1 %v4360_v39 }
 0x180   : > { %3961 = vmatprep.subr.bf16.mxu0 %v4361_v40  ;;  %4025 = vmatprep.subr.bf16.mxu1 %v4363_v41  ;;  %v5572_v40 = vrot.slane %v5529_v48, %v575_v24 }
 0x182   : > { %7197 = vst [vmem:[#allocation30_spill] sm:$0xff] %v5572_v40  ;;  %v4371_v40 = vld [vmem:[%s5331_s20 + $0x1c8] sm:$0xff]  }
 0x183   : > { %3962 = vmatpush3.bf16.msra.mxu0 %v4362_v42  ;;  %4026 = vmatpush3.bf16.msra.mxu1 %v4364_v43 }
 0x184   : > { %4075 = vmatprep.subr.bf16.mxu0 %v4365_v44  ;;  %4139 = vmatprep.subr.bf16.mxu1 %v4367_v45 }
 0x185   : > { %1252 = vmatmul.mubr.bf16.gmra.mrb[48].mxu0 %v5437_v7  ;;  %1365 = vmatmul.mubr.bf16.gmra.mrb[48].mxu1 %v5437_v7 }
 0x186   : > { %1261 = vmatprep.mubr.bf16.mxu0 %v4998_v9  ;;  %1374 = vmatprep.mubr.bf16.mxu1 %v4998_v9 }
 0x18d   : > { %1262 = vmatmul.mubr.bf16.gmra.mrb[52].mxu0 %v5444_v12  ;;  %1375 = vmatmul.mubr.bf16.gmra.mrb[52].mxu1 %v5444_v12 }
 0x18e   : > { %1271 = vmatprep.mubr.bf16.mxu0 %v4998_v9  ;;  %1384 = vmatprep.mubr.bf16.mxu1 %v4998_v9 }
 0x195   : > { %1272 = vmatmul.mubr.bf16.gmra.mrb[56].mxu0 %v5450_v13  ;;  %1385 = vmatmul.mubr.bf16.gmra.mrb[56].mxu1 %v5450_v13 }
 0x196   : > { %1281 = vmatprep.mubr.bf16.mxu0 %v4998_v9  ;;  %1394 = vmatprep.mubr.bf16.mxu1 %v4998_v9  ;;  %v547_v9 = vsub.s32 0, %v5524_v47 }
 0x198   : > { %v5535_v52 = vrot.slane %v5529_v48, %v547_v9 }
 0x19d   : > { %1282 = vmatmul.mubr.bf16.gmra.mrb[60].mxu0 %v5456_v14  ;;  %1395 = vmatmul.mubr.bf16.gmra.mrb[60].mxu1 %v5456_v14 }
 0x1f8   : > { %v987_v56 = vpop.f32.mrb[0].mxu0  ;;  %v1100_v58 = vpop.f32.mrb[0].mxu1 }
 0x1f9   : > { %v988_v57 = vadd.f32 %v987_v56, %v5535_v52  ;;  %v989_v59 = vpop.f32.mrb[1].mxu0  ;;  %v1101_v60 = vadd.f32 %v1100_v58, %v5538_v53  ;;  %v1102_v62 = vpop.f32.mrb[1].mxu1 }
 0x1fa   : > { %v990_v61 = vadd.f32 %v989_v59, %v5541_v54  ;;  %v991_v63 = vpop.f32.mrb[2].mxu0  ;;  %v1103_v1 = vadd.f32 %v1102_v62, %v5544_v55  ;;  %v1104_v3 = vpop.f32.mrb[2].mxu1 }
 0x1fb   : > { %v1533_v0 = vmul.f32 0.70710677, %v988_v57  ;;  %v992_v2 = vadd.f32 %v991_v63, %v5535_v52  ;;  %v993_v4 = vpop.f32.mrb[3].mxu0  ;;  %v1535_v5 = vmul.f32 0.70710677, %v1101_v60  ;;  %v1106_v10 = vpop.f32.mrb[3].mxu1  ;;  %v1105_v12 = vadd.f32 %v1104_v3, %v5538_v53 }
 0x1fc   : > { %v1534_v7 = vmul.f32 0.70710677, %v990_v61  ;;  %v1536_v8 = vmul.f32 0.70710677, %v1103_v1  ;;  %v994_v13 = vadd.f32 %v993_v4, %v5541_v54  ;;  %v1107_v14 = vadd.f32 %v1106_v10, %v5544_v55 }
 0x1fd   : > { %4397 = verf.f32 %v1533_v0  ;;  %v1541_v11 = vmul.f32 0.70710677, %v992_v2  ;;  %v1543_v16 = vmul.f32 0.70710677, %v1105_v12  ;;  %v1405_v37 = vmul.f32 0.5, %v988_v57 }
 0x1fe   : > { %4399 = verf.f32 %v1535_v5  ;;  %v1542_v20 = vmul.f32 0.70710677, %v994_v13  ;;  %v1544_v21 = vmul.f32 0.70710677, %v1107_v14  ;;  %v1407_v45 = vmul.f32 0.5, %v1101_v60 }
 0x1ff   : > { %4401 = verf.f32 %v1534_v7  ;;  %v5576_v46 = vmul.f32 0.5, %v990_v61  ;;  %v5581_v49 = vmul.f32 0.5, %v1103_v1  ;;  %v1413_v50 = vmul.f32 0.5, %v992_v2 }
 0x200   : > { %4403 = verf.f32 %v1536_v8  ;;  %v997_v17 = vpop.f32.mrb[4].mxu0  ;;  %v1110_v22 = vpop.f32.mrb[4].mxu1  ;;  %v1415_v48 = vmul.f32 0.5, %v1105_v12  ;;  %v5583_v58 = vmul.f32 0.5, %v994_v13  ;;  %v5588_v3 = vmul.f32 0.5, %v1107_v14 }
 0x201   : > { %4405 = verf.f32 %v1541_v11  ;;  %v998_v6 = vadd.f32 %v997_v17, %v5535_v52  ;;  %v1111_v25 = vadd.f32 %v1110_v22, %v5538_v53  ;;  %v999_v26 = vpop.f32.mrb[5].mxu0  ;;  %v1112_v27 = vpop.f32.mrb[5].mxu1 }
 0x202   : > { %4407 = verf.f32 %v1543_v16  ;;  %v1000_v28 = vadd.f32 %v999_v26, %v5541_v54  ;;  %v1113_v29 = vadd.f32 %v1112_v27, %v5544_v55  ;;  %v1001_v30 = vpop.f32.mrb[6].mxu0  ;;  %v1114_v31 = vpop.f32.mrb[6].mxu1 }
 0x203   : > { %4409 = verf.f32 %v1542_v20  ;;  %v1549_v23 = vmul.f32 0.70710677, %v998_v6  ;;  %v1003_v33 = vpop.f32.mrb[7].mxu0  ;;  %v1116_v34 = vpop.f32.mrb[7].mxu1  ;;  %v1551_v38 = vmul.f32 0.70710677, %v1111_v25  ;;  %v1002_v42 = vadd.f32 %v1001_v30, %v5535_v52 }
 0x204   : > { %4411 = verf.f32 %v1544_v21  ;;  %v1550_v39 = vmul.f32 0.70710677, %v1000_v28  ;;  %v1552_v41 = vmul.f32 0.70710677, %v1113_v29  ;;  %v1115_v43 = vadd.f32 %v1114_v31, %v5538_v53 }
 0x205   : > { %4413 = verf.f32 %v1549_v23  ;;  %v5579_v47 = vadd.f32 %v1003_v33, %v5541_v54  ;;  %v1557_v51 = vmul.f32 0.70710677, %v1002_v42  ;;  %v5586_v60 = vadd.f32 %v1116_v34, %v5544_v55 }
 0x206   : > { %4415 = verf.f32 %v1551_v38  ;;  %v1559_v59 = vmul.f32 0.70710677, %v1115_v43  ;;  %v5590_v1 = vmul.f32 0.5, %v998_v6  ;;  %v5592_v8 = vmul.f32 0.5, %v1111_v25 }
 0x207   : > { %v4398_v44 = vpop.eup %4397  ;;  %4417 = verf.f32 %v1550_v39  ;;  %v1558_v10 = vmul.f32 0.70710677, %v5579_v47  ;;  %v5597_v16 = vmul.f32 0.5, %v1000_v28  ;;  %v5599_v14 = vmul.f32 0.5, %v1113_v29 }
 0x208   : > { %v4400_v9 = vpop.eup %4399  ;;  %v1007_v56 = vpop.f32.mrb[8].mxu0  ;;  %v1789_v0 = vadd.f32 1.0, %v4398_v44  ;;  %4419 = verf.f32 %v1552_v41  ;;  %v1560_v20 = vmul.f32 0.70710677, %v5586_v60  ;;  %v5609_v25 = vmul.f32 0.5, %v1002_v42 }
 0x209   : > { %v4402_v57 = vpop.eup %4401  ;;  %v1120_v61 = vpop.f32.mrb[8].mxu1  ;;  %v1791_v7 = vadd.f32 1.0, %v4400_v9  ;;  %4421 = verf.f32 %v1557_v51  ;;  %v1008_v21 = vadd.f32 %v1007_v56, %v5535_v52  ;;  %v5618_v34 = vmul.f32 0.5, %v1115_v43 }
 0x20a   : > { %v1009_v62 = vpop.f32.mrb[9].mxu0  ;;  %v4404_v63 = vpop.eup %4403  ;;  %4423 = verf.f32 %v1559_v59  ;;  %v5605_v24 = vmul.f32 %v1789_v0, %v1405_v37  ;;  %v1121_v26 = vadd.f32 %v1120_v61, %v5538_v53  ;;  %v1790_v28 = vadd.f32 1.0, %v4402_v57 }
 0x20b   : > { %v1122_v2 = vpop.f32.mrb[9].mxu1  ;;  %v1011_v4 = vpop.f32.mrb[10].mxu0  ;;  %4425 = verf.f32 %v1558_v10  ;;  %v5612_v27 = vmul.f32 %v1791_v7, %v1407_v45  ;;  %v1565_v30 = vmul.f32 0.70710677, %v1008_v21  ;;  %v1792_v23 = vadd.f32 1.0, %v4404_v63 }
 0x20c   : > { %v4406_v5 = vpop.eup %4405  ;;  %v1124_v11 = vpop.f32.mrb[10].mxu1  ;;  %v1567_v37 = vmul.f32 0.70710677, %v1121_v26  ;;  %4427 = verf.f32 %v1560_v20  ;;  %v1123_v43 = vadd.f32 %v1122_v2, %v5544_v55  ;;  %v5633_v59 = vmul.f32 %v1790_v28, %v5576_v46 }
 0x20d   : > { %v5595_v12 = vpop.f32.mrb[11].mxu0  ;;  %v4408_v13 = vpop.eup %4407  ;;  %v1797_v15 = vadd.f32 1.0, %v4406_v5  ;;  %4429 = verf.f32 %v1565_v30  ;;  %v1430_v63 = vmul.f32 0.5, %v5579_v47  ;;  %v1012_v0 = vadd.f32 %v1011_v4, %v5535_v52 }
 0x20e   : > { %v5601_v17 = vpop.f32.mrb[11].mxu1  ;;  %v4410_v18 = vpop.eup %4409  ;;  %v1799_v19 = vadd.f32 1.0, %v4408_v13  ;;  %v5642_v2 = vmul.f32 0.5, %v5586_v60  ;;  %4431 = verf.f32 %v1567_v37  ;;  %v1125_v13 = vadd.f32 %v1124_v11, %v5538_v53 }
 0x20f   : > { %v4412_v22 = vpop.eup %4411  ;;  %v5607_v6 = vmul.f32 %v1797_v15, %v1413_v50  ;;  %v1798_v42 = vadd.f32 1.0, %v4410_v18  ;;  %v5648_v18 = vmul.f32 %v1792_v23, %v5581_v49  ;;  %v5653_v4 = vmul.f32 0.5, %v1008_v21 }
 0x210   : > { %v5614_v29 = vmul.f32 %v1799_v19, %v1415_v48  ;;  %v4414_v31 = vpop.eup %4413  ;;  %v1017_v38 = vpop.f32.mrb[12].mxu0  ;;  %v1800_v44 = vadd.f32 1.0, %v4412_v22  ;;  %v1010_v48 = vadd.f32 %v1009_v62, %v5541_v54  ;;  %v1568_v19 = vmul.f32 0.70710677, %v1123_v43 }
 0x211   : > { %v4416_v39 = vpop.eup %4415  ;;  %v5622_v45 = vpop.f32.mrb[12].mxu1  ;;  %v1805_v50 = vadd.f32 1.0, %v4414_v31  ;;  %v5651_v47 = vmul.f32 %v1798_v42, %v5583_v58  ;;  %v5661_v28 = vmul.f32 0.5, %v1121_v26  ;;  %v1573_v58 = vmul.f32 0.70710677, %v1012_v0 }
 0x212   : > { %v5624_v9 = vpop.f32.mrb[13].mxu0  ;;  %v5628_v51 = vpop.f32.mrb[13].mxu1  ;;  %v1807_v61 = vadd.f32 1.0, %v4416_v39  ;;  %v1566_v10 = vmul.f32 0.70710677, %v1010_v48  ;;  %v5656_v60 = vmul.f32 %v1800_v44, %v5588_v3  ;;  %v5666_v21 = vmul.f32 0.5, %v1010_v48 }
 0x213   : > { %v5630_v56 = vpop.f32.mrb[14].mxu0  ;;  %v4418_v57 = vpop.eup %4417  ;;  %v5659_v22 = vmul.f32 %v1805_v50, %v5590_v1  ;;  %v1575_v23 = vmul.f32 0.70710677, %v1125_v13  ;;  %v1014_v3 = vadd.f32 %v5595_v12, %v5541_v54  ;;  %v1127_v26 = vadd.f32 %v5601_v17, %v5544_v55 }
 0x214   : > { %v5637_v5 = vpop.f32.mrb[14].mxu1  ;;  %v5639_v7 = vpop.f32.mrb[15].mxu0  ;;  %v1806_v11 = vadd.f32 1.0, %v4418_v57  ;;  %v5664_v49 = vmul.f32 %v1807_v61, %v5592_v8  ;;  %4433 = verf.f32 %v1566_v10  ;;  %v1018_v8 = vadd.f32 %v1017_v38, %v5535_v52 }
 0x215   : > { %v4420_v62 = vpop.eup %4419  ;;  %v5645_v15 = vpop.f32.mrb[15].mxu1  ;;  %4435 = verf.f32 %v1568_v19  ;;  %v1574_v48 = vmul.f32 0.70710677, %v1014_v3  ;;  %v5689_v38 = vmul.f32 0.5, %v1123_v43  ;;  %v1576_v10 = vmul.f32 0.70710677, %v1127_v26 }
 0x216   : > { %v4422_v46 = vpop.eup %4421  ;;  %v1808_v31 = vadd.f32 1.0, %v4420_v62  ;;  %4437 = verf.f32 %v1573_v58  ;;  %v5684_v62 = vmul.f32 %v1806_v11, %v5597_v16  ;;  %v1581_v58 = vmul.f32 0.70710677, %v1018_v8 }
 0x217   : > { %v4424_v20 = vpop.eup %4423  ;;  %v1813_v1 = vadd.f32 1.0, %v4422_v46  ;;  %4439 = verf.f32 %v1575_v23  ;;  %v1131_v23 = vadd.f32 %v5622_v45, %v5538_v53  ;;  %v5704_v43 = vmul.f32 0.5, %v1125_v13 }
 0x218   : > { %v4426_v30 = vpop.eup %4425  ;;  %v5670_v37 = vpop.f32.mrb[16].mxu0  ;;  %v1815_v44 = vadd.f32 1.0, %v4424_v20  ;;  %v5687_v17 = vmul.f32 %v1808_v31, %v5599_v14  ;;  %4441 = verf.f32 %v1574_v48  ;;  %v5708_v11 = vadd.f32 %v5624_v9, %v5541_v54 }
 0x219   : > { %v5675_v39 = vpop.f32.mrb[16].mxu1  ;;  %v5677_v42 = vpop.f32.mrb[17].mxu0  ;;  %v1814_v50 = vadd.f32 1.0, %v4426_v30  ;;  %v5695_v30 = vmul.f32 0.5, %v1012_v0  ;;  %v5702_v14 = vmul.f32 %v1813_v1, %v5609_v25  ;;  %v5712_v0 = vadd.f32 %v5628_v51, %v5544_v55 }
 0x21a   : > { %v5679_v57 = vpop.f32.mrb[17].mxu1  ;;  %v5681_v12 = vpop.f32.mrb[18].mxu0  ;;  %v5715_v45 = vmul.f32 %v1815_v44, %v5618_v34  ;;  %v1583_v1 = vmul.f32 0.70710677, %v1131_v23  ;;  %v5719_v41 = vmul.f32 0.5, %v1014_v3  ;;  %4443 = verf.f32 %v1576_v10  ;;  %v4368_v44 = vld [vmem:[%s5331_s20 + $0x180] sm:$0xff]  }
 0x21b   : > { %v4428_v61 = vpop.eup %4427  ;;  %v5691_v46 = vpop.f32.mrb[18].mxu1  ;;  %v5717_v48 = vmul.f32 %v1814_v50, %v1430_v63  ;;  %v1582_v9 = vmul.f32 0.70710677, %v5708_v11  ;;  %4445 = verf.f32 %v1581_v58  ;;  %v1584_v51 = vmul.f32 0.70710677, %v5712_v0  ;;  %v4366_v63 = vld [vmem:[%s5331_s20 + $0x100] sm:$0xff]  }
 0x21c   : > { %v5693_v19 = vpop.f32.mrb[19].mxu0  ;;  %v4430_v20 = vpop.eup %4429  ;;  %v1816_v25 = vadd.f32 1.0, %v4428_v61  ;;  %v2062_v33 = vpack.c.bf16 %v5651_v47, %v5633_v59  ;;  %v2064_v34 = vpack.c.bf16 %v5656_v60, %v5648_v18  ;;  %4447 = verf.f32 %v1583_v1  ;;  %v4369_v58 = vld [vmem:[%s5331_s20 + $0x148] sm:$0xff]  }
 0x21d   : > { %v5699_v16 = vpop.f32.mrb[19].mxu1  ;;  %v4432_v31 = vpop.eup %4431  ;;  %v1821_v13 = vadd.f32 1.0, %v4430_v20  ;;  %v1022_v10 = vadd.f32 %v5630_v56, %v5535_v52  ;;  %v1135_v20 = vadd.f32 %v5637_v5, %v5538_v53  ;;  %4449 = verf.f32 %v1582_v9  ;;  %v4370_v5 = vld [vmem:[%s5331_s20 + $0x108] sm:$0xff]  }
 0x21e   : > { %v4434_v61 = vpop.eup %4433  ;;  %v1823_v3 = vadd.f32 1.0, %v4432_v31  ;;  %v5742_v60 = vmul.f32 %v1816_v25, %v5642_v2  ;;  %2669 = vmatprep.mubr.bf16.mxu0 %v2062_v33  ;;  %2766 = vmatprep.mubr.bf16.mxu1 %v2064_v34  ;;  %v1024_v31 = vadd.f32 %v5639_v7, %v5541_v54  ;;  %v5748_v56 = vadd.f32 %v5645_v15, %v5544_v55 }
 0x21f   : > { %v4436_v18 = vpop.eup %4435  ;;  %v5755_v32 = vmul.f32 0.5, %v1127_v26  ;;  %v5757_v2 = vmul.f32 0.5, %v1018_v8  ;;  %4451 = verf.f32 %v1584_v51  ;;  %v1589_v33 = vmul.f32 0.70710677, %v1022_v10 }
 0x220   : > { %v5729_v50 = vpop.f32.mrb[20].mxu0  ;;  %v5737_v59 = vpop.f32.mrb[20].mxu1  ;;  %v7199_v7 = vpack.c.bf16 %v5607_v6, %v5605_v24  ;;  %v7200_v15 = vpack.c.bf16 %v5614_v29, %v5612_v27  ;;  %v5770_v26 = vmul.f32 %v1821_v13, %v5653_v4  ;;  %v1822_v8 = vadd.f32 1.0, %v4434_v61  ;;  %v4372_v24 = vld [vmem:[%s5331_s20 + $0x188] sm:$0xff]   ;;  %v4375_v4 = vld [vmem:[%s5331_s20 + $0x1d0] sm:$0xff]  }
 0x221   : > { %v5739_v47 = vpop.f32.mrb[21].mxu0  ;;  %v5751_v1 = vpop.f32.mrb[21].mxu1  ;;  %v5772_v51 = vmul.f32 0.5, %v1131_v23  ;;  %v5778_v27 = vmul.f32 %v1823_v3, %v5661_v28  ;;  %v1824_v29 = vadd.f32 1.0, %v4436_v18  ;;  %4453 = verf.f32 %v1589_v33  ;;  %v4376_v18 = vld [vmem:[%s5331_s20 + $0x190] sm:$0xff]  }
 0x222   : > { %v5753_v36 = vpop.f32.mrb[22].mxu0  ;;  %v4438_v35 = vpop.eup %4437  ;;  %2670 = vmatmul.mubr.bf16.vlgmr.msra.gmra.mrb[64].mxu0 %v7199_v7  ;;  %2767 = vmatmul.mubr.bf16.vlgmr.msra.gmra.mrb[64].mxu1 %v7200_v15  ;;  %v1590_v7 = vmul.f32 0.70710677, %v1024_v31  ;;  %v4373_v15 = vld [vmem:[%s5331_s20 + $0x150] sm:$0xff]   ;;  %v5783_v23 = vmul.f32 0.5, %v5708_v11  ;;  %v1028_v28 = vadd.f32 %v5670_v37, %v5535_v52  ;;  %v5791_v3 = vmul.f32 %v1822_v8, %v5666_v21  ;;  %v4377_v8 = vld [vmem:[%s5331_s20 + $0x158] sm:$0xff]  }
 0x223   : > { %7198 = vst [vmem:[#allocation31_spill] sm:$0xff] %v5753_v36  ;;  %v5765_v25 = vpop.f32.mrb[22].mxu1  ;;  %v5767_v9 = vpop.f32.mrb[23].mxu0  ;;  %v1591_v36 = vmul.f32 0.70710677, %v1135_v20  ;;  %4076 = vmatpush3.bf16.msra.mxu0 %v4366_v63  ;;  %4140 = vmatpush3.bf16.msra.mxu1 %v4368_v44  ;;  %v1829_v44 = vadd.f32 1.0, %v4438_v35  ;;  %v5801_v33 = vmul.f32 %v1824_v29, %v5689_v38  ;;  %v5816_v38 = vadd.f32 %v5677_v42, %v5541_v54 }
 0x224   : > { %v4440_v34 = vpop.eup %4439  ;;  %v5775_v6 = vpop.f32.mrb[23].mxu1  ;;  %4077 = vmatprep.subr.bf16.mxu0 %v4369_v58  ;;  %4141 = vmatprep.subr.bf16.mxu1 %v4371_v40  ;;  %v1592_v63 = vmul.f32 0.70710677, %v5748_v56  ;;  %v1141_v40 = vadd.f32 %v5675_v39, %v5538_v53  ;;  %v5794_v58 = vmul.f32 0.5, %v5712_v0  ;;  %v4374_v11 = vld [vmem:[%s5331_s20 + $0x110] sm:$0xff]   ;;  %v5803_v21 = vmul.f32 0.5, %v1022_v10 }
 0x225   : > { %7201 = vst [vmem:[#allocation32_spill] sm:$0xff] %v5775_v6  ;;  %v4442_v13 = vpop.eup %4441  ;;  %4455 = verf.f32 %v1591_v36  ;;  %v1831_v61 = vadd.f32 1.0, %v4440_v34  ;;  %v1597_v36 = vmul.f32 0.70710677, %v1028_v28  ;;  %v5805_v34 = vmul.f32 0.5, %v1135_v20 }
 0x226   : > { %4457 = verf.f32 %v1590_v7  ;;  %v4444_v35 = vpop.eup %4443  ;;  %v1830_v39 = vadd.f32 1.0, %v4442_v13  ;;  %v5812_v7 = vmul.f32 0.5, %v1024_v31  ;;  %v5820_v10 = vadd.f32 %v5679_v57, %v5544_v55 }
 0x227   : > { %4459 = verf.f32 %v1592_v63  ;;  %4078 = vmatpush3.bf16.msra.mxu0 %v4370_v5  ;;  %4142 = vmatpush3.bf16.msra.mxu1 %v4372_v24  ;;  %v4446_v24 = vpop.eup %4445  ;;  %v1599_v63 = vmul.f32 0.70710677, %v1141_v40  ;;  %v5828_v13 = vmul.f32 %v1829_v44, %v5695_v30  ;;  %v5831_v31 = vmul.f32 %v1831_v61, %v5704_v43 }
 0x228   : > { %v5798_v37 = vpop.f32.mrb[24].mxu0  ;;  %4079 = vmatprep.subr.bf16.mxu0 %v4373_v15  ;;  %4143 = vmatprep.subr.bf16.mxu1 %v4375_v4  ;;  %v5807_v0 = vpop.f32.mrb[24].mxu1  ;;  %v4379_v15 = vld [vmem:[%s5331_s20 + $0x1d8] sm:$0xff]   ;;  %v5834_v42 = vmul.f32 0.5, %v5748_v56  ;;  %v2070_v57 = vpack.c.bf16 %v5717_v48, %v5684_v62  ;;  %v5843_v6 = vmul.f32 0.5, %v1028_v28  ;;  %4461 = verf.f32 %v1597_v36 }
 0x229   : > { %7202 = vst [vmem:[#allocation33_spill] sm:$0xff] %v5798_v37  ;;  %7203 = vst [vmem:[#allocation34_spill] sm:$0xff] %v5807_v0  ;;  %v5809_v5 = vpop.f32.mrb[25].mxu0  ;;  %v5822_v20 = vpop.f32.mrb[25].mxu1  ;;  %v1832_v37 = vadd.f32 1.0, %v4444_v35  ;;  %v4380_v56 = vld [vmem:[%s5331_s20 + $0x198] sm:$0xff]   ;;  %v5850_v48 = vmul.f32 %v1830_v39, %v5719_v41  ;;  %v2072_v28 = vpack.c.bf16 %v5742_v60, %v5687_v17  ;;  %4463 = verf.f32 %v1599_v63 }
 0x22a   : > { %7204 = vst [vmem:[#allocation35_spill] sm:$0xff] %v5809_v5  ;;  %7205 = vst [vmem:[#allocation36_spill] sm:$0xff] %v5822_v20  ;;  %v5824_v29 = vpop.f32.mrb[26].mxu0  ;;  %v4448_v4 = vpop.eup %4447  ;;  %v1598_v30 = vmul.f32 0.70710677, %v5816_v38  ;;  %v1837_v44 = vadd.f32 1.0, %v4446_v24  ;;  %2677 = vmatprep.mubr.bf16.mxu0 %v2070_v57  ;;  %v2069_v17 = vpack.c.bf16 %v5702_v14, %v5659_v22  ;;  %v2071_v60 = vpack.c.bf16 %v5715_v45, %v5664_v49 }
 0x22b   : > { %7206 = vst [vmem:[#allocation37_spill] sm:$0xff] %v5824_v29  ;;  %v5838_v5 = vpop.f32.mrb[26].mxu1  ;;  %v5840_v20 = vpop.f32.mrb[27].mxu0  ;;  %v4378_v29 = vld [vmem:[%s5331_s20 + $0x118] sm:$0xff]   ;;  %4080 = vmatpush3.bf16.msra.mxu0 %v4374_v11  ;;  %4144 = vmatpush3.bf16.msra.mxu1 %v4376_v18  ;;  %v1600_v61 = vmul.f32 0.70710677, %v5820_v10  ;;  %v1032_v11 = vadd.f32 %v5681_v12, %v5535_v52  ;;  %v5861_v18 = vadd.f32 %v5691_v46, %v5538_v53 }
 0x22c   : > { %v4450_v0 = vpop.eup %4449  ;;  %v5846_v43 = vpop.f32.mrb[27].mxu1  ;;  %4081 = vmatprep.subr.bf16.mxu0 %v4377_v8  ;;  %v5855_v36 = vmul.f32 0.5, %v1141_v40  ;;  %4145 = vmatprep.subr.bf16.mxu1 %v4379_v15  ;;  %v4381_v41 = vld [vmem:[%s5331_s20 + $0x160] sm:$0xff]   ;;  %v1839_v24 = vadd.f32 1.0, %v4448_v4  ;;  %v5870_v40 = vmul.f32 %v1832_v37, %v5755_v32  ;;  %4465 = verf.f32 %v1598_v30  ;;  %v4385_v37 = vld [vmem:[%s5331_s20 + $0x168] sm:$0xff]  }
 0x22d   : > { %v4452_v62 = vpop.eup %4451  ;;  %v4383_v35 = vld [vmem:[%s5331_s20 + $0x1e0] sm:$0xff]   ;;  %v1838_v57 = vadd.f32 1.0, %v4450_v0  ;;  %2774 = vmatprep.mubr.bf16.mxu1 %v2072_v28  ;;  %v1605_v8 = vmul.f32 0.70710677, %v1032_v11  ;;  %4467 = verf.f32 %v1600_v61  ;;  %v1607_v22 = vmul.f32 0.70710677, %v5861_v18  ;;  %2678 = vmatmul.mubr.bf16.gmra.mrb[68].mxu0 %v2069_v17 }
 0x22e   : > { %v4454_v39 = vpop.eup %4453  ;;  %v1840_v46 = vadd.f32 1.0, %v4452_v62  ;;  %v4382_v0 = vld [vmem:[%s5331_s20 + $0x120] sm:$0xff]   ;;  %2775 = vmatmul.mubr.bf16.gmra.mrb[68].mxu1 %v2071_v60  ;;  %v1034_v32 = vadd.f32 %v5693_v19, %v5541_v54  ;;  %v1147_v49 = vadd.f32 %v5699_v16, %v5544_v55  ;;  %v5891_v62 = vmul.f32 0.5, %v5816_v38  ;;  %v4386_v60 = vld [vmem:[%s5331_s20 + $0x128] sm:$0xff]  }
 0x22f   : > { %v4456_v12 = vpop.eup %4455  ;;  %4082 = vmatpush3.bf16.msra.mxu0 %v4378_v29  ;;  %4146 = vmatpush3.bf16.msra.mxu1 %v4380_v56  ;;  %v4384_v15 = vld [vmem:[%s5331_s20 + $0x1a0] sm:$0xff]   ;;  %v4387_v29 = vld [vmem:[%s5331_s20 + $0x1e8] sm:$0xff]   ;;  %v5888_v56 = vmul.f32 %v1837_v44, %v5757_v2  ;;  %4469 = verf.f32 %v1605_v8  ;;  %v5895_v19 = vadd.f32 %v5729_v50, %v5535_v52  ;;  %v5902_v28 = vmul.f32 %v1839_v24, %v5772_v51 }
 0x230   : > { %v5872_v63 = vpop.f32.mrb[28].mxu0  ;;  %v4458_v4 = vpop.eup %4457  ;;  %4083 = vmatprep.subr.bf16.mxu0 %v4381_v41  ;;  %4147 = vmatprep.subr.bf16.mxu1 %v4383_v35  ;;  %v5905_v2 = vmul.f32 %v1838_v57, %v5783_v23  ;;  %v1845_v44 = vadd.f32 1.0, %v4454_v39  ;;  %v5908_v38 = vmul.f32 0.5, %v5820_v10  ;;  %v4388_v8 = vld [vmem:[%s5331_s20 + $0x1a8] sm:$0xff]   ;;  %4471 = verf.f32 %v1607_v22  ;;  %v4389_v57 = vld [vmem:[%s5331_s20 + $0x170] sm:$0xff]  }
 0x231   : > { %v5881_v14 = vpop.f32.mrb[28].mxu1  ;;  %v5883_v45 = vpop.f32.mrb[29].mxu0  ;;  %v1606_v41 = vmul.f32 0.70710677, %v1034_v32  ;;  %v1608_v35 = vmul.f32 0.70710677, %v1147_v49  ;;  %v5919_v23 = vmul.f32 %v1840_v46, %v5794_v58  ;;  %v5927_v22 = vadd.f32 %v5737_v59, %v5538_v53 }
 0x232   : > { %v4460_v30 = vpop.eup %4459  ;;  %v5897_v16 = vpop.f32.mrb[29].mxu1  ;;  %v1846_v10 = vadd.f32 1.0, %v4458_v4  ;;  %v5921_v24 = vmul.f32 0.5, %v1032_v11  ;;  %v5931_v58 = vadd.f32 %v5739_v47, %v5541_v54  ;;  %v4391_v46 = vld [vmem:[%s5331_s20 + $0x1f0] sm:$0xff]   ;;  %v5935_v11 = vmul.f32 0.5, %v5861_v18 }
 0x233   : > { %v5899_v61 = vpop.f32.mrb[30].mxu0  ;;  %v5910_v17 = vpop.f32.mrb[30].mxu1  ;;  %4084 = vmatpush3.bf16.msra.mxu0 %v4382_v0  ;;  %4148 = vmatpush3.bf16.msra.mxu1 %v4384_v15  ;;  %v1848_v39 = vadd.f32 1.0, %v4460_v30  ;;  %4473 = verf.f32 %v1606_v41  ;;  %v5939_v0 = vadd.f32 %v5751_v1, %v5544_v55  ;;  %v2078_v15 = vpack.c.bf16 %v5850_v48, %v5791_v3  ;;  %v4390_v1 = vld [vmem:[%s5331_s20 + $0x130] sm:$0xff]  }
 0x234   : > { %7207 = vst [vmem:[#allocation38_spill] sm:$0xff] %v5899_v61  ;;  %v5912_v50 = vpop.f32.mrb[31].mxu0  ;;  %v1847_v61 = vadd.f32 1.0, %v4456_v12  ;;  %v5916_v51 = vpop.f32.mrb[31].mxu1  ;;  %4085 = vmatprep.subr.bf16.mxu0 %v4385_v37  ;;  %4149 = vmatprep.subr.bf16.mxu1 %v4387_v29  ;;  %v1613_v12 = vmul.f32 0.70710677, %v5895_v19  ;;  %4475 = verf.f32 %v1608_v35  ;;  %v5944_v59 = vmul.f32 %v1845_v44, %v5803_v21 }
 0x235   : > { %7208 = vst [vmem:[#allocation39_spill] sm:$0xff] %v5912_v50  ;;  %v4462_v50 = vpop.eup %4461  ;;  %v5949_v37 = vmul.f32 0.5, %v1034_v32  ;;  %v1615_v18 = vmul.f32 0.70710677, %v5927_v22  ;;  %v4392_v30 = vld [vmem:[%s5331_s20 + $0x1b0] sm:$0xff]   ;;  %v5957_v3 = vmul.f32 %v1846_v10, %v5812_v7  ;;  %v5959_v21 = vmul.f32 0.5, %v1147_v49  ;;  %2685 = vmatprep.mubr.bf16.mxu0 %v2078_v15 }
 0x236   : > { %v4464_v4 = vpop.eup %4463  ;;  %v5947_v47 = vmul.f32 %v1847_v61, %v5805_v34  ;;  %v1853_v48 = vadd.f32 1.0, %v4462_v50  ;;  %v1614_v44 = vmul.f32 0.70710677, %v5931_v58  ;;  %v4393_v32 = vld [vmem:[%s5331_s20 + $0x178] sm:$0xff]   ;;  %4477 = verf.f32 %v1613_v12  ;;  %v7209_v10 = vld [vmem:[#allocation31_spill] sm:$0xff] }
 0x237   : > { %4086 = vmatpush3.bf16.msra.mxu0 %v4386_v60  ;;  %4150 = vmatpush3.bf16.msra.mxu1 %v4388_v8  ;;  %v4466_v61 = vpop.eup %4465  ;;  %v5966_v60 = vmul.f32 %v1848_v39, %v5834_v42  ;;  %v1616_v8 = vmul.f32 0.70710677, %v5939_v0  ;;  %v2080_v7 = vpack.c.bf16 %v5870_v40, %v5801_v33  ;;  %v1855_v35 = vadd.f32 1.0, %v4464_v4  ;;  %v4395_v33 = vld [vmem:[%s5331_s20 + $0x1f8] sm:$0xff]  }
 0x238   : > { %v5952_v29 = vpop.f32.mrb[32].mxu0  ;;  %v5962_v34 = vpop.f32.mrb[32].mxu1  ;;  %4087 = vmatprep.subr.bf16.mxu0 %v4389_v57  ;;  %4151 = vmatprep.subr.bf16.mxu1 %v4391_v46  ;;  %4479 = verf.f32 %v1615_v18  ;;  %v1042_v57 = vadd.f32 %v7209_v10, %v5535_v52  ;;  %v1155_v42 = vadd.f32 %v5765_v25, %v5538_v53  ;;  %v5985_v15 = vmul.f32 0.5, %v5895_v19  ;;  %v4394_v10 = vld [vmem:[%s5331_s20 + $0x138] sm:$0xff]  }
 0x239   : > { %v5971_v49 = vpop.f32.mrb[33].mxu0  ;;  %v5973_v50 = vpop.f32.mrb[33].mxu1  ;;  %4481 = verf.f32 %v1614_v44  ;;  %2782 = vmatprep.mubr.bf16.mxu1 %v2080_v7  ;;  %v2077_v46 = vpack.c.bf16 %v5828_v13, %v5770_v26  ;;  %v2079_v4 = vpack.c.bf16 %v5831_v31, %v5778_v27  ;;  %v4396_v44 = vld [vmem:[%s5331_s20 + $0x1b8] sm:$0xff]   ;;  %v1044_v27 = vadd.f32 %v5767_v9, %v5541_v54  ;;  %v7212_v31 = vld [vmem:[#allocation32_spill] sm:$0xff] }
 0x23a   : > { %v4468_v41 = vpop.eup %4467  ;;  %v5979_v39 = vpop.f32.mrb[34].mxu0  ;;  %4483 = verf.f32 %v1616_v8  ;;  %v1621_v19 = vmul.f32 0.70710677, %v1042_v57  ;;  %v1623_v13 = vmul.f32 0.70710677, %v1155_v42  ;;  %v6010_v8 = vmul.f32 0.5, %v5927_v22 }
 0x23b   : > { %7210 = vst [vmem:[#allocation31_spill] sm:$0xff] %v5979_v39  ;;  %v5981_v12 = vpop.f32.mrb[34].mxu1  ;;  %v4470_v40 = vpop.eup %4469  ;;  %4088 = vmatpush3.bf16.msra.mxu0 %v4390_v1  ;;  %v1854_v39 = vadd.f32 1.0, %v4466_v61  ;;  %4152 = vmatpush3.bf16.msra.mxu1 %v4392_v30  ;;  %v1856_v26 = vadd.f32 1.0, %v4468_v41  ;;  %v1157_v1 = vadd.f32 %v7212_v31, %v5544_v55  ;;  %v7213_v30 = vld [vmem:[#allocation33_spill] sm:$0xff]  ;;  %v6013_v41 = vmul.f32 0.5, %v5931_v58 }
 0x23c   : > { %7211 = vst [vmem:[#allocation40_spill] sm:$0xff] %v5981_v12  ;;  %v5991_v18 = vpop.f32.mrb[35].mxu0  ;;  %v5993_v25 = vpop.f32.mrb[35].mxu1  ;;  %v5997_v12 = vmul.f32 %v1853_v48, %v5843_v6  ;;  %4089 = vmatprep.subr.bf16.mxu0 %v4393_v32  ;;  %2686 = vmatmul.mubr.bf16.gmra.mrb[72].mxu0 %v2077_v46  ;;  %v6005_v6 = vmul.f32 %v1855_v35, %v5855_v36  ;;  %v1861_v48 = vadd.f32 1.0, %v4470_v40  ;;  %4485 = verf.f32 %v1621_v19 }
 0x23d   : > { %v4472_v7 = vpop.eup %4471  ;;  %2783 = vmatmul.mubr.bf16.gmra.mrb[72].mxu1 %v2079_v4  ;;  %v1048_v32 = vadd.f32 %v7213_v30, %v5535_v52  ;;  %4153 = vmatprep.subr.bf16.mxu1 %v4395_v33  ;;  %4487 = verf.f32 %v1623_v13  ;;  %v1622_v9 = vmul.f32 0.70710677, %v1044_v27  ;;  %v6018_v40 = vmul.f32 0.5, %v5939_v0  ;;  %v7215_v33 = vld [vmem:[#allocation34_spill] sm:$0xff] }
 0x23e   : > { %v4474_v61 = vpop.eup %4473  ;;  %v1863_v35 = vadd.f32 1.0, %v4472_v7  ;;  %v1624_v4 = vmul.f32 0.70710677, %v1157_v1  ;;  %v1161_v19 = vadd.f32 %v7215_v33, %v5538_v53  ;;  %v6025_v22 = vmul.f32 %v1854_v39, %v5891_v62 }
 0x23f   : > { %4090 = vmatpush3.bf16.msra.mxu0 %v4394_v10  ;;  %v4476_v36 = vpop.eup %4475  ;;  %4154 = vmatpush3.bf16.msra.mxu1 %v4396_v44  ;;  %v6028_v58 = vmul.f32 %v1856_v26, %v5908_v38  ;;  %4489 = verf.f32 %v1622_v9  ;;  %v1629_v10 = vmul.f32 0.70710677, %v1048_v32  ;;  %v6035_v0 = vmul.f32 %v1861_v48, %v5921_v24  ;;  %v7221_v26 = vld [vmem:[#allocation35_spill] sm:$0xff] }
 0x240   : > { %v6015_v46 = vpop.f32.mrb[36].mxu0  ;;  %v6022_v31 = vpop.f32.mrb[36].mxu1  ;;  %v1862_v30 = vadd.f32 1.0, %v4474_v61  ;;  %v6037_v33 = vmul.f32 0.5, %v1042_v57  ;;  %v1864_v39 = vadd.f32 1.0, %v4476_v36  ;;  %4491 = verf.f32 %v1624_v4 }
 0x241   : > { %7214 = vst [vmem:[#allocation32_spill] sm:$0xff] %v6015_v46  ;;  %7216 = vst [vmem:[#allocation33_spill] sm:$0xff] %v6022_v31  ;;  %v6030_v13 = vpop.f32.mrb[37].mxu0  ;;  %v6032_v7 = vpop.f32.mrb[37].mxu1  ;;  %v6039_v31 = vmul.f32 0.5, %v1155_v42  ;;  %v1050_v9 = vadd.f32 %v7221_v26, %v5541_v54  ;;  %v6054_v42 = vmul.f32 %v1863_v35, %v5935_v11  ;;  %v6056_v61 = vmul.f32 0.5, %v1044_v27 }
 0x242   : > { %7217 = vst [vmem:[#allocation34_spill] sm:$0xff] %v6030_v13  ;;  %7218 = vst [vmem:[#allocation41_spill] sm:$0xff] %v6032_v7  ;;  %v6041_v44 = vpop.f32.mrb[38].mxu0  ;;  %v6043_v62 = vpop.f32.mrb[38].mxu1  ;;  %v7222_v7 = vld [vmem:[#allocation36_spill] sm:$0xff]  ;;  %v2086_v36 = vpack.c.bf16 %v5957_v3, %v5905_v2  ;;  %v6062_v26 = vmul.f32 0.5, %v1048_v32  ;;  %4493 = verf.f32 %v1629_v10  ;;  %v2088_v27 = vpack.c.bf16 %v5966_v60, %v5919_v23 }
 0x243   : > { %7219 = vst [vmem:[#allocation42_spill] sm:$0xff] %v6041_v44  ;;  %7220 = vst [vmem:[#allocation43_spill] sm:$0xff] %v6043_v62  ;;  %v4478_v38 = vpop.eup %4477  ;;  %v1163_v13 = vadd.f32 %v7222_v7, %v5544_v55  ;;  %v6049_v24 = vpop.f32.mrb[39].mxu0  ;;  %v1631_v62 = vmul.f32 0.70710677, %v1161_v19  ;;  %v6060_v44 = vmul.f32 0.5, %v1157_v1  ;;  %v6072_v2 = vmul.f32 %v1864_v39, %v5959_v21 }
 0x244   : > { %7223 = vst [vmem:[#allocation35_spill] sm:$0xff] %v6049_v24  ;;  %v6051_v48 = vpop.f32.mrb[39].mxu1  ;;  %v4480_v57 = vpop.eup %4479  ;;  %v1630_v7 = vmul.f32 0.70710677, %v1050_v9  ;;  %v6067_v46 = vmul.f32 0.5, %v1161_v19  ;;  %2693 = vmatprep.mubr.bf16.mxu0 %v2086_v36  ;;  %v1869_v3 = vadd.f32 1.0, %v4478_v38  ;;  %v1165_v35 = vadd.f32 %v5838_v5, %v5538_v53  ;;  %2790 = vmatprep.mubr.bf16.mxu1 %v2088_v27 }
 0x245   : > { %7224 = vst [vmem:[#allocation36_spill] sm:$0xff] %v6051_v48  ;;  %v4482_v4 = vpop.eup %4481  ;;  %v6065_v48 = vmul.f32 %v1862_v30, %v5949_v37  ;;  %v1632_v11 = vmul.f32 0.70710677, %v1163_v13  ;;  %v7225_v1 = vld [vmem:[#allocation37_spill] sm:$0xff]  ;;  %v1871_v19 = vadd.f32 1.0, %v4480_v57  ;;  %4495 = verf.f32 %v1631_v62 }
 0x246   : > { %v4484_v24 = vpop.eup %4483  ;;  %v1052_v32 = vadd.f32 %v7225_v1, %v5535_v52  ;;  %v2085_v30 = vpack.c.bf16 %v5944_v59, %v5888_v56  ;;  %v2087_v23 = vpack.c.bf16 %v5947_v47, %v5902_v28  ;;  %v1870_v39 = vadd.f32 1.0, %v4482_v4 }
 0x247   : > { %v4486_v37 = vpop.eup %4485  ;;  %v1872_v36 = vadd.f32 1.0, %v4484_v24  ;;  %4497 = verf.f32 %v1630_v7  ;;  %v1639_v62 = vmul.f32 0.70710677, %v1165_v35  ;;  %v1054_v56 = vadd.f32 %v5840_v20, %v5541_v54 }
 0x248   : > { %v6078_v10 = vpop.f32.mrb[40].mxu0  ;;  %v6084_v21 = vpop.f32.mrb[40].mxu1  ;;  %v1637_v5 = vmul.f32 0.70710677, %v1052_v32  ;;  %4499 = verf.f32 %v1632_v11  ;;  %2694 = vmatmul.mubr.bf16.gmra.mrb[76].mxu0 %v2085_v30  ;;  %2791 = vmatmul.mubr.bf16.gmra.mrb[76].mxu1 %v2087_v23  ;;  %v1167_v28 = vadd.f32 %v5846_v43, %v5544_v55  ;;  %v1877_v24 = vadd.f32 1.0, %v4486_v37 }
 0x249   : > { %v6086_v60 = vpop.f32.mrb[41].mxu0  ;;  %v4488_v38 = vpop.eup %4487  ;;  %v1058_v7 = vadd.f32 %v5872_v63, %v5535_v52  ;;  %v6105_v20 = vmul.f32 %v1869_v3, %v5985_v15  ;;  %v6107_v30 = vmul.f32 0.5, %v1050_v9  ;;  %v1171_v43 = vadd.f32 %v5881_v14, %v5538_v53 }
 0x24a   : > { %v6088_v1 = vpop.f32.mrb[41].mxu1  ;;  %v6094_v59 = vpop.f32.mrb[42].mxu0  ;;  %v1879_v4 = vadd.f32 1.0, %v4488_v38  ;;  %4501 = verf.f32 %v1637_v5  ;;  %v6112_v37 = vmul.f32 %v1871_v19, %v6010_v8  ;;  %v6114_v38 = vmul.f32 0.5, %v1163_v13 }
 0x24b   : > { %v6096_v47 = vpop.f32.mrb[42].mxu1  ;;  %v4490_v57 = vpop.eup %4489  ;;  %4503 = verf.f32 %v1639_v62  ;;  %v1638_v63 = vmul.f32 0.70710677, %v1054_v56  ;;  %v1640_v5 = vmul.f32 0.70710677, %v1167_v28  ;;  %v6120_v15 = vmul.f32 %v1872_v36, %v6018_v40 }
 0x24c   : > { %v6100_v11 = vpop.f32.mrb[43].mxu0  ;;  %v6102_v27 = vpop.f32.mrb[43].mxu1  ;;  %v1878_v9 = vadd.f32 1.0, %v4490_v57  ;;  %v6122_v3 = vmul.f32 0.5, %v1052_v32  ;;  %v6125_v14 = vmul.f32 %v1877_v24, %v6037_v33  ;;  %v6128_v8 = vmul.f32 %v1879_v4, %v6039_v31 }
 0x24d   : > { %7226 = vst [vmem:[#allocation37_spill] sm:$0xff] %v6100_v11  ;;  %7227 = vst [vmem:[#allocation44_spill] sm:$0xff] %v6102_v27  ;;  %v4492_v23 = vpop.eup %4491  ;;  %v6117_v11 = vmul.f32 %v1870_v39, %v6013_v41  ;;  %v6130_v13 = vmul.f32 0.5, %v1165_v35  ;;  %v1645_v19 = vmul.f32 0.70710677, %v1058_v7  ;;  %4505 = verf.f32 %v1638_v63 }
 0x24e   : > { %v4494_v62 = vpop.eup %4493  ;;  %v1880_v41 = vadd.f32 1.0, %v4492_v23  ;;  %v1647_v39 = vmul.f32 0.70710677, %v1171_v43  ;;  %v1060_v40 = vadd.f32 %v5883_v45, %v5541_v54  ;;  %v6140_v33 = vmul.f32 0.5, %v1054_v56 }
 0x24f   : > { %4507 = verf.f32 %v1640_v5  ;;  %v1173_v31 = vadd.f32 %v5897_v16, %v5544_v55  ;;  %v2094_v35 = vpack.c.bf16 %v6065_v48, %v6025_v22  ;;  %v4496_v4 = vpop.eup %4495  ;;  %v6151_v45 = vmul.f32 %v1878_v9, %v6056_v61  ;;  %v7232_v9 = vld [vmem:[#allocation38_spill] sm:$0xff] }
 0x250   : > { %v6132_v27 = vpop.f32.mrb[44].mxu0  ;;  %v6136_v32 = vpop.f32.mrb[44].mxu1  ;;  %v1885_v23 = vadd.f32 1.0, %v4494_v62  ;;  %v6153_v63 = vmul.f32 0.5, %v1167_v28  ;;  %v1646_v56 = vmul.f32 0.70710677, %v1060_v40  ;;  %4509 = verf.f32 %v1645_v19 }
 0x251   : > { %7228 = vst [vmem:[#allocation45_spill] sm:$0xff] %v6136_v32  ;;  %v6138_v36 = vpop.f32.mrb[45].mxu0  ;;  %v6146_v57 = vpop.f32.mrb[45].mxu1  ;;  %v6159_v32 = vmul.f32 0.5, %v1058_v7  ;;  %v1648_v22 = vmul.f32 0.70710677, %v1173_v31  ;;  %2701 = vmatprep.mubr.bf16.mxu0 %v2094_v35  ;;  %v2096_v48 = vpack.c.bf16 %v6072_v2, %v6028_v58  ;;  %v6166_v28 = vmul.f32 %v1880_v41, %v6060_v44 }
 0x252   : > { %7229 = vst [vmem:[#allocation46_spill] sm:$0xff] %v6138_v36  ;;  %v6148_v24 = vpop.f32.mrb[46].mxu0  ;;  %v6155_v36 = vpop.f32.mrb[46].mxu1  ;;  %4511 = verf.f32 %v1647_v39  ;;  %v1062_v62 = vadd.f32 %v7232_v9, %v5535_v52  ;;  %v1175_v7 = vadd.f32 %v5910_v17, %v5538_v53  ;;  %v1887_v19 = vadd.f32 1.0, %v4496_v4  ;;  %v7233_v53 = vld [vmem:[#allocation39_spill] sm:$0xff] }
 0x253   : > { %7230 = vst [vmem:[#allocation47_spill] sm:$0xff] %v6148_v24  ;;  %v6157_v5 = vpop.f32.mrb[47].mxu0  ;;  %v4498_v16 = vpop.eup %4497  ;;  %4513 = verf.f32 %v1646_v56  ;;  %2798 = vmatprep.mubr.bf16.mxu1 %v2096_v48  ;;  %v2093_v58 = vpack.c.bf16 %v6035_v0, %v5997_v12  ;;  %v2095_v2 = vpack.c.bf16 %v6054_v42, %v6005_v6  ;;  %v6176_v41 = vmul.f32 0.5, %v1171_v43  ;;  %v7234_v6 = vld [vmem:[#allocation27_spill] sm:$0xff]  ;;  %v7235_v43 = vld [vmem:[#allocation28_spill] sm:$0xff] }
 0x254   : > { %7231 = vst [vmem:[#allocation48_spill] sm:$0xff] %v6157_v5  ;;  %v6163_v24 = vpop.f32.mrb[47].mxu1  ;;  %v4500_v61 = vpop.eup %4499  ;;  %v1886_v44 = vadd.f32 1.0, %v4498_v16  ;;  %4515 = verf.f32 %v1648_v22  ;;  %v1653_v39 = vmul.f32 0.70710677, %v1062_v62  ;;  %v1064_v17 = vadd.f32 %v7233_v53, %v5541_v54 }
 0x255   : > { %v4502_v5 = vpop.eup %4501  ;;  %v1888_v52 = vadd.f32 1.0, %v4500_v61  ;;  %v1655_v9 = vmul.f32 0.70710677, %v1175_v7  ;;  %2702 = vmatmul.mubr.bf16.gmra.mrb[80].mxu0 %v2093_v58  ;;  %2799 = vmatmul.mubr.bf16.gmra.mrb[80].mxu1 %v2095_v2  ;;  %v1177_v4 = vadd.f32 %v5916_v51, %v5544_v55  ;;  %v1214_v42 = vadd.f32 %v5952_v29, %v7234_v6 }
 0x256   : > { %v4504_v35 = vpop.eup %4503  ;;  %v1893_v0 = vadd.f32 1.0, %v4502_v5  ;;  %4517 = verf.f32 %v1653_v39  ;;  %v1327_v56 = vadd.f32 %v5962_v34, %v7235_v43  ;;  %v6193_v48 = vmul.f32 %v1885_v23, %v6062_v26 }
 0x257   : > { %v1895_v54 = vadd.f32 1.0, %v4504_v35  ;;  %4519 = verf.f32 %v1655_v9  ;;  %v1654_v55 = vmul.f32 0.70710677, %v1064_v17  ;;  %v4506_v61 = vpop.eup %4505  ;;  %v6200_v29 = vmul.f32 %v1887_v19, %v6067_v46 }
 0x258   : > { %v6182_v12 = vpop.f32.mrb[48].mxu0  ;;  %v6188_v16 = vpop.f32.mrb[48].mxu1  ;;  %v6202_v58 = vmul.f32 0.5, %v1060_v40  ;;  %v6204_v34 = vmul.f32 0.5, %v1173_v31  ;;  %v1656_v2 = vmul.f32 0.70710677, %v1177_v4  ;;  %v6209_v23 = vmul.f32 %v1886_v44, %v6107_v30 }
 0x259   : > { %v6190_v22 = vpop.f32.mrb[49].mxu0  ;;  %v6195_v51 = vpop.f32.mrb[49].mxu1  ;;  %v6212_v35 = vmul.f32 %v1888_v52, %v6114_v38  ;;  %v6214_v9 = vmul.f32 0.5, %v1062_v62  ;;  %v1537_v53 = vmul.f32 0.70710677, %v1214_v42  ;;  %v6221_v40 = vmul.f32 %v1893_v0, %v6122_v3  ;;  %v7242_v62 = vld [vmem:[#allocation29_spill] sm:$0xff] }
 0x25a   : > { %7236 = vst [vmem:[#allocation38_spill] sm:$0xff] %v6190_v22  ;;  %7237 = vst [vmem:[#allocation39_spill] sm:$0xff] %v6195_v51  ;;  %v6197_v5 = vpop.f32.mrb[50].mxu0  ;;  %v6206_v39 = vpop.f32.mrb[50].mxu1  ;;  %v6223_v31 = vmul.f32 0.5, %v1175_v7  ;;  %4521 = verf.f32 %v1654_v55  ;;  %v6226_v30 = vmul.f32 %v1895_v54, %v6130_v13  ;;  %v1894_v38 = vadd.f32 1.0, %v4506_v61 }
 0x25b   : > { %7238 = vst [vmem:[#allocation27_spill] sm:$0xff] %v6197_v5  ;;  %7239 = vst [vmem:[#allocation28_spill] sm:$0xff] %v6206_v39  ;;  %v4508_v26 = vpop.eup %4507  ;;  %v6216_v5 = vpop.f32.mrb[51].mxu0  ;;  %v1539_v19 = vmul.f32 0.70710677, %v1327_v56  ;;  %4523 = verf.f32 %v1656_v2  ;;  %v1216_v44 = vadd.f32 %v5971_v49, %v7242_v62  ;;  %v2102_v7 = vpack.c.bf16 %v6151_v45, %v6117_v11 }
 0x25c   : > { %7240 = vst [vmem:[#allocation49_spill] sm:$0xff] %v6216_v5  ;;  %v6218_v46 = vpop.f32.mrb[51].mxu1  ;;  %v4510_v39 = vpop.eup %4509  ;;  %v1896_v5 = vadd.f32 1.0, %v4508_v26  ;;  %4525 = verf.f32 %v1537_v53  ;;  %v6234_v55 = vmul.f32 0.5, %v1064_v17  ;;  %v6236_v51 = vmul.f32 0.5, %v1177_v4  ;;  %v7247_v53 = vld [vmem:[#allocation31_spill] sm:$0xff] }
 0x25d   : > { %7241 = vst [vmem:[#allocation50_spill] sm:$0xff] %v6218_v46  ;;  %v4512_v52 = vpop.eup %4511  ;;  %v7243_v46 = vld [vmem:[#allocation30_spill] sm:$0xff]  ;;  %4527 = verf.f32 %v1539_v19  ;;  %v1538_v13 = vmul.f32 0.70710677, %v1216_v44  ;;  %v6240_v49 = vmul.f32 0.5, %v1214_v42  ;;  %v6242_v2 = vmul.f32 0.5, %v1327_v56  ;;  %2709 = vmatprep.mubr.bf16.mxu0 %v2102_v7 }
 0x25e   : > { %v1329_v3 = vadd.f32 %v5973_v50, %v7243_v46  ;;  %v4514_v0 = vpop.eup %4513  ;;  %v2104_v50 = vpack.c.bf16 %v6166_v28, %v6120_v15  ;;  %v6251_v17 = vmul.f32 %v1894_v38, %v6140_v33  ;;  %v1901_v4 = vadd.f32 1.0, %v4510_v39  ;;  %v7248_v42 = vld [vmem:[#allocation40_spill] sm:$0xff] }
 0x25f   : > { %v4516_v61 = vpop.eup %4515  ;;  %v1218_v19 = vadd.f32 %v7247_v53, %v7234_v6  ;;  %v1331_v56 = vadd.f32 %v7248_v42, %v7235_v43  ;;  %v6262_v15 = vmul.f32 %v1896_v5, %v6153_v63  ;;  %v1903_v28 = vadd.f32 1.0, %v4512_v52  ;;  %v7252_v5 = vld [vmem:[#allocation32_spill] sm:$0xff] }
 0x260   : > { %v6238_v54 = vpop.f32.mrb[52].mxu0  ;;  %v1540_v26 = vmul.f32 0.70710677, %v1329_v3  ;;  %v6246_v11 = vpop.f32.mrb[52].mxu1  ;;  %2806 = vmatprep.mubr.bf16.mxu1 %v2104_v50  ;;  %v2101_v33 = vpack.c.bf16 %v6125_v14, %v6105_v20  ;;  %v2103_v39 = vpack.c.bf16 %v6128_v8, %v6112_v37  ;;  %4529 = verf.f32 %v1538_v13 }
 0x261   : > { %7244 = vst [vmem:[#allocation29_spill] sm:$0xff] %v6238_v54  ;;  %7245 = vst [vmem:[#allocation30_spill] sm:$0xff] %v6246_v11  ;;  %v6248_v45 = vpop.f32.mrb[53].mxu0  ;;  %v6257_v54 = vpop.f32.mrb[53].mxu1  ;;  %v1547_v63 = vmul.f32 0.70710677, %v1331_v56  ;;  %v1220_v20 = vadd.f32 %v5991_v18, %v7242_v62  ;;  %v1333_v37 = vadd.f32 %v5993_v25, %v7243_v46  ;;  %v1224_v52 = vadd.f32 %v7252_v5, %v7234_v6 }
 0x262   : > { %7246 = vst [vmem:[#allocation51_spill] sm:$0xff] %v6248_v45  ;;  %7249 = vst [vmem:[#allocation31_spill] sm:$0xff] %v6257_v54  ;;  %v6259_v7 = vpop.f32.mrb[54].mxu0  ;;  %v4518_v22 = vpop.eup %4517  ;;  %v1902_v54 = vadd.f32 1.0, %v4514_v0  ;;  %v1904_v45 = vadd.f32 1.0, %v4516_v61  ;;  %4531 = verf.f32 %v1540_v26  ;;  %2710 = vmatmul.mubr.bf16.gmra.mrb[84].mxu0 %v2101_v33  ;;  %2807 = vmatmul.mubr.bf16.gmra.mrb[84].mxu1 %v2103_v39  ;;  %v6281_v13 = vmul.f32 %v1901_v4, %v6159_v32  ;;  %v7253_v26 = vld [vmem:[#allocation33_spill] sm:$0xff] }
 0x263   : > { %7250 = vst [vmem:[#allocation40_spill] sm:$0xff] %v6259_v7  ;;  %v6268_v38 = vpop.f32.mrb[54].mxu1  ;;  %v6270_v53 = vpop.f32.mrb[55].mxu0  ;;  %v1545_v7 = vmul.f32 0.70710677, %v1218_v19  ;;  %v1909_v14 = vadd.f32 1.0, %v4518_v22  ;;  %v6284_v61 = vmul.f32 %v1903_v28, %v6176_v41  ;;  %v6288_v18 = vadd.f32 %v7253_v26, %v7235_v43 }
 0x264   : > { %v4520_v42 = vpop.eup %4519  ;;  %v6272_v11 = vpop.f32.mrb[55].mxu1  ;;  %v6290_v25 = vmul.f32 0.5, %v1216_v44  ;;  %v6292_v22 = vmul.f32 0.5, %v1329_v3  ;;  %v1548_v33 = vmul.f32 0.70710677, %v1333_v37  ;;  %v6298_v32 = vmul.f32 %v1904_v45, %v6204_v34 }
 0x265   : > { %7251 = vst [vmem:[#allocation52_spill] sm:$0xff] %v6272_v11  ;;  %v1911_v8 = vadd.f32 1.0, %v4520_v42  ;;  %4533 = verf.f32 %v1545_v7  ;;  %v4522_v0 = vpop.eup %4521  ;;  %v1546_v7 = vmul.f32 0.70710677, %v1220_v20  ;;  %v6295_v42 = vmul.f32 %v1902_v54, %v6202_v58 }
 0x266   : > { %4535 = verf.f32 %v1547_v63  ;;  %v4524_v50 = vpop.eup %4523  ;;  %v1417_v41 = vmul.f32 0.5, %v1218_v19  ;;  %v1553_v4 = vmul.f32 0.70710677, %v1224_v52  ;;  %v6305_v44 = vmul.f32 %v1909_v14, %v6214_v9  ;;  %v7258_v19 = vld [vmem:[#allocation34_spill] sm:$0xff] }
 0x267   : > { %v4526_v39 = vpop.eup %4525  ;;  %v6308_v3 = vmul.f32 %v1911_v8, %v6223_v31  ;;  %v1910_v26 = vadd.f32 1.0, %v4522_v0  ;;  %v1419_v11 = vmul.f32 0.5, %v1331_v56  ;;  %v6314_v34 = vmul.f32 0.5, %v1220_v20  ;;  %v7260_v56 = vld [vmem:[#allocation41_spill] sm:$0xff] }
 0x268   : > { %v6300_v28 = vpop.f32.mrb[56].mxu0  ;;  %v6302_v63 = vpop.f32.mrb[56].mxu1  ;;  %4537 = verf.f32 %v1546_v7  ;;  %v1555_v45 = vmul.f32 0.70710677, %v6288_v18  ;;  %v1793_v31 = vadd.f32 1.0, %v4526_v39  ;;  %v1339_v8 = vadd.f32 %v7260_v56, %v7243_v46 }
 0x269   : > { %7254 = vst [vmem:[#allocation32_spill] sm:$0xff] %v6300_v28  ;;  %7255 = vst [vmem:[#allocation33_spill] sm:$0xff] %v6302_v63  ;;  %v4528_v5 = vpop.eup %4527  ;;  %v6310_v58 = vpop.f32.mrb[57].mxu0  ;;  %v6319_v63 = vadd.f32 %v7258_v19, %v7242_v62  ;;  %4539 = verf.f32 %v1548_v33  ;;  %v2110_v20 = vpack.c.bf16 %v6251_v17, %v6209_v23  ;;  %v6334_v28 = vmul.f32 0.5, %v1333_v37 }
 0x26a   : > { %7256 = vst [vmem:[#allocation53_spill] sm:$0xff] %v6310_v58  ;;  %v6312_v54 = vpop.f32.mrb[57].mxu1  ;;  %v6321_v9 = vpop.f32.mrb[58].mxu0  ;;  %v1795_v58 = vadd.f32 1.0, %v4528_v5  ;;  %4541 = verf.f32 %v1553_v4  ;;  %v1556_v33 = vmul.f32 0.70710677, %v1339_v8  ;;  %v2112_v39 = vpack.c.bf16 %v6262_v15, %v6212_v35 }
 0x26b   : > { %7257 = vst [vmem:[#allocation54_spill] sm:$0xff] %v6312_v54  ;;  %7259 = vst [vmem:[#allocation34_spill] sm:$0xff] %v6321_v9  ;;  %v6323_v14 = vpop.f32.mrb[58].mxu1  ;;  %v6329_v0 = vpop.f32.mrb[59].mxu0  ;;  %v1912_v54 = vadd.f32 1.0, %v4524_v50  ;;  %4543 = verf.f32 %v1555_v45  ;;  %2717 = vmatprep.mubr.bf16.mxu0 %v2110_v20  ;;  %v6339_v23 = vmul.f32 %v1910_v26, %v6234_v55  ;;  %v6341_v17 = vmul.f32 0.5, %v1224_v52 }
 0x26c   : > { %v6331_v7 = vpop.f32.mrb[59].mxu1  ;;  %v1554_v19 = vmul.f32 0.70710677, %v6319_v63  ;;  %v4530_v9 = vpop.eup %4529  ;;  %v7262_v50 = vld [vmem:[#allocation42_spill] sm:$0xff]  ;;  %v7263_v5 = vld [vmem:[#allocation43_spill] sm:$0xff]  ;;  %v6348_v45 = vmul.f32 %v1793_v31, %v6240_v49  ;;  %2814 = vmatprep.mubr.bf16.mxu1 %v2112_v39  ;;  %v2109_v35 = vpack.c.bf16 %v6221_v40, %v6193_v48  ;;  %v2111_v55 = vpack.c.bf16 %v6226_v30, %v6200_v29  ;;  %v7266_v29 = vld [vmem:[#allocation36_spill] sm:$0xff] }
 0x26d   : > { %7261 = vst [vmem:[#allocation41_spill] sm:$0xff] %v6331_v7  ;;  %v4532_v56 = vpop.eup %4531  ;;  %v1228_v4 = vadd.f32 %v7262_v50, %v7234_v6  ;;  %v1341_v7 = vadd.f32 %v7263_v5, %v7235_v43  ;;  %v6357_v26 = vmul.f32 %v1795_v58, %v6242_v2  ;;  %v7265_v48 = vld [vmem:[#allocation35_spill] sm:$0xff]  ;;  %v1343_v30 = vadd.f32 %v7266_v29, %v7243_v46 }
 0x26e   : > { %4545 = verf.f32 %v1554_v19  ;;  %2718 = vmatmul.mubr.bf16.gmra.mrb[88].mxu0 %v2109_v35  ;;  %2815 = vmatmul.mubr.bf16.gmra.mrb[88].mxu1 %v2111_v55  ;;  %v1230_v40 = vadd.f32 %v7265_v48, %v7242_v62  ;;  %v1794_v2 = vadd.f32 1.0, %v4530_v9  ;;  %v1796_v58 = vadd.f32 1.0, %v4532_v56 }
 0x26f   : > { %v4534_v37 = vpop.eup %4533  ;;  %4547 = verf.f32 %v1556_v33  ;;  %v1561_v50 = vmul.f32 0.70710677, %v1228_v4  ;;  %v1563_v31 = vmul.f32 0.70710677, %v1341_v7  ;;  %v1347_v29 = vadd.f32 %v6084_v21, %v7235_v43 }
 0x270   : > { %v6354_v15 = vpop.f32.mrb[60].mxu0  ;;  %v4536_v52 = vpop.eup %4535  ;;  %v1801_v20 = vadd.f32 1.0, %v4534_v37  ;;  %v1234_v37 = vadd.f32 %v6078_v10, %v7234_v6  ;;  %v1562_v48 = vmul.f32 0.70710677, %v1230_v40  ;;  %v2040_v56 = vmul.f32 %v1912_v54, %v6236_v51 }
 0x271   : > { %v6359_v5 = vpop.f32.mrb[60].mxu1  ;;  %v1803_v49 = vadd.f32 1.0, %v4536_v52  ;;  %v6365_v19 = vpop.f32.mrb[61].mxu0  ;;  %4549 = verf.f32 %v1561_v50  ;;  %v1427_v50 = vmul.f32 0.5, %v6288_v18  ;;  %v1426_v21 = vmul.f32 0.5, %v6319_v63 }
 0x272   : > { %7264 = vst [vmem:[#allocation42_spill] sm:$0xff] %v6359_v5  ;;  %7267 = vst [vmem:[#allocation43_spill] sm:$0xff] %v6365_v19  ;;  %v6367_v39 = vpop.f32.mrb[61].mxu1  ;;  %v6369_v33 = vmul.f32 %v1801_v20, %v1417_v41  ;;  %v6373_v52 = vpop.f32.mrb[62].mxu0  ;;  %4551 = verf.f32 %v1563_v31  ;;  %v1564_v20 = vmul.f32 0.70710677, %v1343_v30  ;;  %v6396_v51 = vmul.f32 %v1796_v58, %v6292_v22 }
 0x273   : > { %7268 = vst [vmem:[#allocation35_spill] sm:$0xff] %v6367_v39  ;;  %7269 = vst [vmem:[#allocation36_spill] sm:$0xff] %v6373_v52  ;;  %v6375_v35 = vpop.f32.mrb[62].mxu1  ;;  %v6377_v55 = vmul.f32 %v1803_v49, %v1419_v11  ;;  %v6381_v19 = vpop.f32.mrb[63].mxu0  ;;  %v1428_v49 = vmul.f32 0.5, %v1339_v8  ;;  %4553 = verf.f32 %v1562_v48  ;;  %v1433_v52 = vmul.f32 0.5, %v1228_v4 }
 0x274   : > { %7270 = vst [vmem:[#allocation55_spill] sm:$0xff] %v6375_v35  ;;  %7271 = vst [vmem:[#allocation56_spill] sm:$0xff] %v6381_v19  ;;  %v6383_v9 = vpop.f32.mrb[63].mxu1  ;;  %v4538_v41 = vpop.eup %4537  ;;  %v1569_v54 = vmul.f32 0.70710677, %v1234_v37  ;;  %v6398_v39 = vmul.f32 0.5, %v1341_v7  ;;  %4555 = verf.f32 %v1564_v20  ;;  %v1236_v18 = vadd.f32 %v6086_v60, %v7242_v62 }
 0x275   : > { %7272 = vst [vmem:[#allocation57_spill] sm:$0xff] %v6383_v9  ;;  %v4540_v35 = vpop.eup %4539  ;;  %v6393_v9 = vmul.f32 %v1794_v2, %v6290_v25  ;;  %v1802_v10 = vadd.f32 1.0, %v4538_v41  ;;  %v1571_v11 = vmul.f32 0.70710677, %v1347_v29  ;;  %v1349_v25 = vadd.f32 %v6088_v1, %v7243_v46 }
 0x276   : > { %v4542_v19 = vpop.eup %4541  ;;  %v1804_v5 = vadd.f32 1.0, %v4540_v35  ;;  %v6404_v8 = vmul.f32 0.5, %v1230_v40  ;;  %v6406_v22 = vmul.f32 0.5, %v1343_v30  ;;  %4557 = verf.f32 %v1569_v54 }
 0x277   : > { %v4544_v31 = vpop.eup %4543  ;;  %v2118_v4 = vpack.c.bf16 %v6339_v23, %v6295_v42  ;;  %v1809_v2 = vadd.f32 1.0, %v4542_v19  ;;  %v6410_v35 = vmul.f32 0.5, %v1234_v37  ;;  %v1570_v48 = vmul.f32 0.70710677, %v1236_v18 }
 0x278   : > { %v4546_v63 = vpop.eup %4545  ;;  %v1811_v58 = vadd.f32 1.0, %v4544_v31  ;;  %4559 = verf.f32 %v1571_v11  ;;  %v1572_v60 = vmul.f32 0.70710677, %v1349_v25  ;;  %v2120_v1 = vpack.c.bf16 %v2040_v56, %v6298_v32 }
 0x279   : > { %v4548_v7 = vpop.eup %4547  ;;  %2725 = vmatprep.mubr.bf16.mxu0 %v2118_v4  ;;  %v1238_v40 = vadd.f32 %v6094_v59, %v7234_v6  ;;  %v6416_v30 = vmul.f32 %v1802_v10, %v6314_v34  ;;  %v6419_v41 = vmul.f32 %v1804_v5, %v6334_v28  ;;  %v1351_v42 = vadd.f32 %v6096_v47, %v7235_v43 }
 0x27a   : > { %v2117_v23 = vpack.c.bf16 %v6305_v44, %v6281_v13  ;;  %v1810_v37 = vadd.f32 1.0, %v4546_v63  ;;  %v6425_v20 = vmul.f32 0.5, %v1347_v29  ;;  %4561 = verf.f32 %v1570_v48  ;;  %2822 = vmatprep.mubr.bf16.mxu1 %v2120_v1  ;;  %v7273_v13 = vld [vmem:[#allocation37_spill] sm:$0xff]  ;;  %v7274_v29 = vld [vmem:[#allocation44_spill] sm:$0xff] }
 0x27b   : > { %v4550_v19 = vpop.eup %4549  ;;  %v1577_v32 = vmul.f32 0.70710677, %v1238_v40  ;;  %v1812_v56 = vadd.f32 1.0, %v4548_v7  ;;  %4563 = verf.f32 %v1572_v60  ;;  %v1579_v34 = vmul.f32 0.70710677, %v1351_v42 }
 0x27c   : > { %v4552_v59 = vpop.eup %4551  ;;  %2726 = vmatmul.mubr.bf16.gmra.mrb[92].mxu0 %v2117_v23  ;;  %v2119_v28 = vpack.c.bf16 %v6308_v3, %v6284_v61  ;;  %v6430_v47 = vmul.f32 %v1809_v2, %v6341_v17  ;;  %v6432_v5 = vmul.f32 %v1811_v58, %v1427_v50  ;;  %v1240_v44 = vadd.f32 %v7273_v13, %v7242_v62 }
 0x27d   : > { %v1353_v10 = vadd.f32 %v7274_v29, %v7243_v46  ;;  %v4554_v11 = vpop.eup %4553  ;;  %v1817_v54 = vadd.f32 1.0, %v4550_v19  ;;  %v6438_v31 = vmul.f32 0.5, %v1236_v18  ;;  %4565 = verf.f32 %v1577_v32  ;;  %v7276_v19 = vld [vmem:[#allocation46_spill] sm:$0xff] }
 0x27e   : > { %2823 = vmatmul.mubr.bf16.gmra.mrb[92].mxu1 %v2119_v28  ;;  %v1244_v61 = vadd.f32 %v6132_v27, %v7234_v6  ;;  %v1819_v3 = vadd.f32 1.0, %v4552_v59  ;;  %v6442_v17 = vmul.f32 0.5, %v1349_v25  ;;  %4567 = verf.f32 %v1579_v34  ;;  %v4556_v63 = vpop.eup %4555  ;;  %v7275_v27 = vld [vmem:[#allocation45_spill] sm:$0xff] }
 0x27f   : > { %v1578_v50 = vmul.f32 0.70710677, %v1240_v44  ;;  %v6444_v4 = vmul.f32 %v1810_v37, %v1426_v21  ;;  %v6446_v7 = vmul.f32 %v1812_v56, %v1428_v49  ;;  %v6448_v2 = vmul.f32 0.5, %v1238_v40 }
 0x280   : > { %v1580_v58 = vmul.f32 0.70710677, %v1353_v10  ;;  %v4558_v18 = vpop.eup %4557  ;;  %v1818_v48 = vadd.f32 1.0, %v4554_v11  ;;  %v6450_v60 = vmul.f32 0.5, %v1351_v42  ;;  %v1357_v1 = vadd.f32 %v7275_v27, %v7235_v43 }
 0x281   : > { %4569 = verf.f32 %v1578_v50  ;;  %v6454_v25 = vmul.f32 %v1817_v54, %v1433_v52  ;;  %v1585_v23 = vmul.f32 0.70710677, %v1244_v61  ;;  %v1246_v21 = vadd.f32 %v7276_v19, %v7242_v62 }
 0x282   : > { %v1359_v49 = vadd.f32 %v6146_v57, %v7243_v46  ;;  %v4560_v40 = vpop.eup %4559  ;;  %v6461_v37 = vmul.f32 %v1819_v3, %v6398_v39  ;;  %v1820_v32 = vadd.f32 1.0, %v4556_v63  ;;  %v6463_v42 = vmul.f32 0.5, %v1240_v44 }
 0x283   : > { %v1587_v59 = vmul.f32 0.70710677, %v1357_v1  ;;  %v1825_v56 = vadd.f32 1.0, %v4558_v18  ;;  %v6465_v34 = vmul.f32 0.5, %v1353_v10  ;;  %4571 = verf.f32 %v1580_v58  ;;  %v7277_v10 = vld [vmem:[#allocation47_spill] sm:$0xff] }
 0x284   : > { %v1586_v52 = vmul.f32 0.70710677, %v1246_v21  ;;  %v4562_v28 = vpop.eup %4561  ;;  %v6468_v13 = vmul.f32 %v1818_v48, %v6404_v8  ;;  %v6470_v29 = vmul.f32 0.5, %v1244_v61  ;;  %v1588_v57 = vmul.f32 0.70710677, %v1359_v49  ;;  %v7278_v61 = vld [vmem:[#allocation48_spill] sm:$0xff] }
 0x285   : > { %v2066_v39 = vpack.c.bf16 %v6416_v30, %v6393_v9  ;;  %v4564_v11 = vpop.eup %4563  ;;  %v1827_v54 = vadd.f32 1.0, %v4560_v40  ;;  %4573 = verf.f32 %v1585_v23  ;;  %v2068_v44 = vpack.c.bf16 %v6419_v41, %v6396_v51 }
 0x286   : > { %v1248_v3 = vadd.f32 %v7277_v10, %v7234_v6  ;;  %v6479_v50 = vmul.f32 %v1820_v32, %v6406_v22  ;;  %4575 = verf.f32 %v1587_v59  ;;  %v1361_v8 = vadd.f32 %v6155_v36, %v7235_v43 }
 0x287   : > { %2863 = vmatprep.mubr.bf16.mxu0 %v2066_v39  ;;  %v1250_v9 = vadd.f32 %v7278_v61, %v7242_v62  ;;  %v4566_v30 = vpop.eup %4565  ;;  %v6486_v63 = vmul.f32 %v1825_v56, %v6410_v35  ;;  %v6488_v58 = vmul.f32 0.5, %v1357_v1  ;;  %4577 = verf.f32 %v1586_v52  ;;  %2960 = vmatprep.mubr.bf16.mxu1 %v2068_v44 }
 0x288   : > { %v1593_v51 = vmul.f32 0.70710677, %v1248_v3  ;;  %v7279_v22 = vpack.c.bf16 %v6369_v33, %v6348_v45  ;;  %v4568_v41 = vpop.eup %4567  ;;  %v1826_v18 = vadd.f32 1.0, %v4562_v28  ;;  %v1828_v48 = vadd.f32 1.0, %v4564_v11 }
 0x289   : > { %4579 = verf.f32 %v1588_v57  ;;  %v1595_v36 = vmul.f32 0.70710677, %v1361_v8  ;;  %v7280_v27 = vpack.c.bf16 %v6377_v55, %v6357_v26  ;;  %v6497_v35 = vmul.f32 %v1827_v54, %v6425_v20  ;;  %v7281_v57 = vld [vmem:[#allocation38_spill] sm:$0xff] }
 0x28a   : > { %2864 = vmatmul.mubr.bf16.vlgmr.msra.gmra.mrb[96].mxu0 %v7279_v22  ;;  %v6499_v1 = vmul.f32 0.5, %v1246_v21  ;;  %v1594_v23 = vmul.f32 0.70710677, %v1250_v9  ;;  %v1363_v19 = vadd.f32 %v6163_v24, %v7243_v46  ;;  %v6503_v33 = vmul.f32 0.5, %v1359_v49 }
 0x28b   : > { %2961 = vmatmul.mubr.bf16.vlgmr.msra.gmra.mrb[96].mxu1 %v7280_v27  ;;  %v4570_v45 = vpop.eup %4569  ;;  %4581 = verf.f32 %v1593_v51  ;;  %v1254_v40 = vadd.f32 %v6182_v12, %v7234_v6  ;;  %v1367_v26 = vadd.f32 %v6188_v16, %v7235_v43  ;;  %v1833_v55 = vadd.f32 1.0, %v4566_v30 }
 0x28c   : > { %v1835_v32 = vadd.f32 1.0, %v4568_v41  ;;  %4583 = verf.f32 %v1595_v36  ;;  %v1596_v20 = vmul.f32 0.70710677, %v1363_v19  ;;  %v6510_v21 = vmul.f32 %v1826_v18, %v6438_v31  ;;  %v7282_v31 = vld [vmem:[#allocation39_spill] sm:$0xff]  ;;  %v7284_v36 = vld [vmem:[#allocation28_spill] sm:$0xff] }
 0x28d   : > { %v6513_v59 = vmul.f32 %v1828_v48, %v6442_v17  ;;  %4585 = verf.f32 %v1594_v23  ;;  %v1601_v24 = vmul.f32 0.70710677, %v1254_v40  ;;  %v4572_v49 = vpop.eup %4571  ;;  %v1834_v56 = vadd.f32 1.0, %v4570_v45 }
 0x28e   : > { %v6515_v52 = vmul.f32 0.5, %v1248_v3  ;;  %v6517_v12 = vmul.f32 0.5, %v1361_v8  ;;  %v6519_v28 = vmul.f32 0.5, %v1250_v9  ;;  %4587 = verf.f32 %v1596_v20  ;;  %v7285_v20 = vld [vmem:[#allocation49_spill] sm:$0xff] }
 0x28f   : > { %v1603_v16 = vmul.f32 0.70710677, %v1367_v26  ;;  %v1256_v39 = vadd.f32 %v7281_v57, %v7242_v62  ;;  %v1369_v11 = vadd.f32 %v7282_v31, %v7243_v46  ;;  %v4574_v17 = vpop.eup %4573  ;;  %v6526_v54 = vmul.f32 %v1833_v55, %v6448_v2 }
 0x290   : > { %v6529_v44 = vmul.f32 %v1835_v32, %v6450_v60  ;;  %4589 = verf.f32 %v1601_v24  ;;  %v2074_v10 = vpack.c.bf16 %v6468_v13, %v6444_v4  ;;  %v4576_v3 = vpop.eup %4575  ;;  %v1836_v8 = vadd.f32 1.0, %v4572_v49  ;;  %v7283_v13 = vld [vmem:[#allocation27_spill] sm:$0xff]  ;;  %v7286_v49 = vld [vmem:[#allocation50_spill] sm:$0xff] }
 0x291   : > { %v6533_v61 = vmul.f32 0.5, %v1363_v19  ;;  %v6535_v9 = vmul.f32 0.5, %v1254_v40  ;;  %v1602_v30 = vmul.f32 0.70710677, %v1256_v39  ;;  %v4578_v51 = vpop.eup %4577  ;;  %v6538_v22 = vmul.f32 %v1834_v56, %v6463_v42  ;;  %v7287_v56 = vld [vmem:[#allocation29_spill] sm:$0xff] }
 0x292   : > { %v6540_v2 = vmul.f32 0.5, %v1367_v26  ;;  %v1604_v41 = vmul.f32 0.70710677, %v1369_v11  ;;  %2871 = vmatprep.mubr.bf16.mxu0 %v2074_v10  ;;  %v2076_v60 = vpack.c.bf16 %v6479_v50, %v6446_v7  ;;  %v1841_v4 = vadd.f32 1.0, %v4574_v17 }
 0x293   : > { %v4580_v18 = vpop.eup %4579  ;;  %4591 = verf.f32 %v1603_v16  ;;  %v1258_v48 = vadd.f32 %v7283_v13, %v7234_v6  ;;  %v1371_v27 = vadd.f32 %v7284_v36, %v7235_v43  ;;  %v1843_v23 = vadd.f32 1.0, %v4576_v3  ;;  %v7289_v13 = vld [vmem:[#allocation51_spill] sm:$0xff] }
 0x294   : > { %4593 = verf.f32 %v1602_v30  ;;  %2968 = vmatprep.mubr.bf16.mxu1 %v2076_v60  ;;  %v2073_v42 = vpack.c.bf16 %v6454_v25, %v6430_v47  ;;  %v2075_v19 = vpack.c.bf16 %v6461_v37, %v6432_v5  ;;  %v1964_v7 = vmul.f32 %v1836_v8, %v6465_v34  ;;  %v7288_v60 = vld [vmem:[#allocation30_spill] sm:$0xff] }
 0x295   : > { %v4582_v45 = vpop.eup %4581  ;;  %v1842_v50 = vadd.f32 1.0, %v4578_v51  ;;  %4595 = verf.f32 %v1604_v41  ;;  %v1609_v40 = vmul.f32 0.70710677, %v1258_v48  ;;  %v1844_v55 = vadd.f32 1.0, %v4580_v18 }
 0x296   : > { %v4584_v26 = vpop.eup %4583  ;;  %v1611_v32 = vmul.f32 0.70710677, %v1371_v27  ;;  %2872 = vmatmul.mubr.bf16.gmra.mrb[100].mxu0 %v2073_v42  ;;  %2969 = vmatmul.mubr.bf16.gmra.mrb[100].mxu1 %v2075_v19  ;;  %v1260_v24 = vadd.f32 %v7285_v20, %v7242_v62  ;;  %v1373_v47 = vadd.f32 %v7286_v49, %v7243_v46  ;;  %v6558_v5 = vmul.f32 %v1841_v4, %v6470_v29 }
 0x297   : > { %v4586_v25 = vpop.eup %4585  ;;  %v6560_v37 = vmul.f32 0.5, %v1256_v39  ;;  %v6562_v34 = vmul.f32 0.5, %v1369_v11  ;;  %v1264_v16 = vadd.f32 %v7287_v56, %v7234_v6  ;;  %v6567_v57 = vmul.f32 %v1843_v23, %v6488_v58 }
 0x298   : > { %v1849_v31 = vadd.f32 1.0, %v4582_v45  ;;  %4597 = verf.f32 %v1609_v40  ;;  %v1610_v17 = vmul.f32 0.70710677, %v1260_v24  ;;  %v4588_v10 = vpop.eup %4587  ;;  %v6570_v3 = vmul.f32 %v1842_v50, %v6499_v1 }
 0x299   : > { %v1851_v8 = vadd.f32 1.0, %v4584_v26  ;;  %4599 = verf.f32 %v1611_v32  ;;  %v1612_v29 = vmul.f32 0.70710677, %v1373_v47  ;;  %v6573_v11 = vmul.f32 %v1844_v55, %v6503_v33  ;;  %v7290_v33 = vld [vmem:[#allocation31_spill] sm:$0xff] }
 0x29a   : > { %v4590_v39 = vpop.eup %4589  ;;  %v1850_v30 = vadd.f32 1.0, %v4586_v25  ;;  %v6575_v51 = vmul.f32 0.5, %v1258_v48  ;;  %4601 = verf.f32 %v1610_v17  ;;  %v6577_v58 = vmul.f32 0.5, %v1371_v27 }
 0x29b   : > { %4603 = verf.f32 %v1612_v29  ;;  %v1617_v41 = vmul.f32 0.70710677, %v1264_v16  ;;  %v1377_v18 = vadd.f32 %v7288_v60, %v7235_v43  ;;  %v6582_v1 = vmul.f32 %v1849_v31, %v6515_v52  ;;  %v7293_v29 = vld [vmem:[#allocation32_spill] sm:$0xff] }
 0x29c   : > { %v1852_v4 = vadd.f32 1.0, %v4588_v10  ;;  %v1266_v36 = vadd.f32 %v7289_v13, %v7242_v62  ;;  %v1379_v23 = vadd.f32 %v7290_v33, %v7243_v46  ;;  %v6589_v42 = vmul.f32 %v1851_v8, %v6517_v12 }
 0x29d   : > { %v4592_v48 = vpop.eup %4591  ;;  %v1857_v27 = vadd.f32 1.0, %v4590_v39  ;;  %v1619_v19 = vmul.f32 0.70710677, %v1377_v18  ;;  %v2082_v45 = vpack.c.bf16 %v6538_v22, %v6510_v21  ;;  %v6594_v52 = vmul.f32 %v1850_v30, %v6519_v28  ;;  %v7291_v28 = vld [vmem:[#allocation40_spill] sm:$0xff] }
 0x29e   : > { %v4594_v50 = vpop.eup %4593  ;;  %v6596_v40 = vmul.f32 0.5, %v1260_v24  ;;  %v6598_v26 = vmul.f32 0.5, %v1373_v47  ;;  %v1618_v55 = vmul.f32 0.70710677, %v1266_v36  ;;  %v6600_v20 = vmul.f32 0.5, %v1264_v16 }
 0x29f   : > { %v4596_v32 = vpop.eup %4595  ;;  %4605 = verf.f32 %v1617_v41  ;;  %v1620_v12 = vmul.f32 0.70710677, %v1379_v23  ;;  %2879 = vmatprep.mubr.bf16.mxu0 %v2082_v45  ;;  %v2084_v49 = vpack.c.bf16 %v1964_v7, %v6513_v59  ;;  %v6604_v25 = vmul.f32 %v1852_v4, %v6533_v61 }
 0x2a0   : > { %v1859_v21 = vadd.f32 1.0, %v4592_v48  ;;  %v1268_v22 = vadd.f32 %v7291_v28, %v7234_v6  ;;  %v1381_v24 = vadd.f32 %v6268_v38, %v7235_v43  ;;  %v6611_v47 = vmul.f32 %v1857_v27, %v6535_v9  ;;  %v7292_v9 = vld [vmem:[#allocation52_spill] sm:$0xff] }
 0x2a1   : > { %4607 = verf.f32 %v1619_v19  ;;  %2976 = vmatprep.mubr.bf16.mxu1 %v2084_v49  ;;  %v2081_v56 = vpack.c.bf16 %v6526_v54, %v6486_v63  ;;  %v2083_v59 = vpack.c.bf16 %v6529_v44, %v6497_v35  ;;  %v1858_v7 = vadd.f32 1.0, %v4594_v50 }
 0x2a2   : > { %v4598_v61 = vpop.eup %4597  ;;  %v1860_v16 = vadd.f32 1.0, %v4596_v32  ;;  %4609 = verf.f32 %v1618_v55  ;;  %v1625_v31 = vmul.f32 0.70710677, %v1268_v22  ;;  %v1627_v10 = vmul.f32 0.70710677, %v1381_v24  ;;  %v7295_v32 = vld [vmem:[#allocation53_spill] sm:$0xff] }
 0x2a3   : > { %v4600_v17 = vpop.eup %4599  ;;  %4611 = verf.f32 %v1620_v12  ;;  %2880 = vmatmul.mubr.bf16.gmra.mrb[104].mxu0 %v2081_v56  ;;  %2977 = vmatmul.mubr.bf16.gmra.mrb[104].mxu1 %v2083_v59  ;;  %v1270_v38 = vadd.f32 %v6270_v53, %v7242_v62  ;;  %v1383_v8 = vadd.f32 %v7292_v9, %v7243_v46  ;;  %v6622_v54 = vmul.f32 %v1859_v21, %v6540_v2  ;;  %v7294_v53 = vld [vmem:[#allocation33_spill] sm:$0xff] }
 0x2a4   : > { %v4602_v63 = vpop.eup %4601  ;;  %v6624_v35 = vmul.f32 0.5, %v1377_v18  ;;  %v6626_v44 = vmul.f32 0.5, %v1266_v36  ;;  %v1274_v39 = vadd.f32 %v7293_v29, %v7234_v6  ;;  %v1865_v41 = vadd.f32 1.0, %v4598_v61 }
 0x2a5   : > { %v4604_v30 = vpop.eup %4603  ;;  %v6630_v60 = vmul.f32 0.5, %v1379_v23  ;;  %4613 = verf.f32 %v1625_v31  ;;  %v1387_v4 = vadd.f32 %v7294_v53, %v7235_v43  ;;  %v1867_v13 = vadd.f32 1.0, %v4600_v17 }
 0x2a6   : > { %4615 = verf.f32 %v1627_v10  ;;  %v1626_v33 = vmul.f32 0.70710677, %v1270_v38  ;;  %v1628_v2 = vmul.f32 0.70710677, %v1383_v8  ;;  %v6635_v18 = vmul.f32 %v1858_v7, %v6560_v37  ;;  %v7296_v37 = vld [vmem:[#allocation54_spill] sm:$0xff] }
 0x2a7   : > { %v6638_v36 = vmul.f32 %v1860_v16, %v6562_v34  ;;  %v6640_v48 = vmul.f32 0.5, %v1268_v22  ;;  %v1633_v27 = vmul.f32 0.70710677, %v1274_v39  ;;  %v1866_v19 = vadd.f32 1.0, %v4602_v63 }
 0x2a8   : > { %v1868_v23 = vadd.f32 1.0, %v4604_v30  ;;  %v6642_v45 = vmul.f32 0.5, %v1381_v24  ;;  %4617 = verf.f32 %v1626_v33  ;;  %v1635_v55 = vmul.f32 0.70710677, %v1387_v4  ;;  %v7299_v33 = vld [vmem:[#allocation42_spill] sm:$0xff] }
 0x2a9   : > { %v4606_v50 = vpop.eup %4605  ;;  %4619 = verf.f32 %v1628_v2  ;;  %v1276_v12 = vadd.f32 %v7295_v32, %v7242_v62  ;;  %v1389_v49 = vadd.f32 %v7296_v37, %v7243_v46  ;;  %v6649_v34 = vmul.f32 %v1865_v41, %v6575_v51  ;;  %v7298_v41 = vld [vmem:[#allocation41_spill] sm:$0xff] }
 0x2aa   : > { %v6652_v21 = vmul.f32 %v1867_v13, %v6577_v58  ;;  %v2090_v28 = vpack.c.bf16 %v6594_v52, %v6570_v3  ;;  %v2092_v22 = vpack.c.bf16 %v6604_v25, %v6573_v11  ;;  %v6658_v56 = vmul.f32 0.5, %v1270_v38  ;;  %v7297_v52 = vld [vmem:[#allocation34_spill] sm:$0xff] }
 0x2ab   : > { %v4608_v24 = vpop.eup %4607  ;;  %v6660_v59 = vmul.f32 0.5, %v1383_v8  ;;  %4621 = verf.f32 %v1633_v27  ;;  %v1634_v61 = vmul.f32 0.70710677, %v1276_v12  ;;  %v6663_v51 = vmul.f32 %v1866_v19, %v6596_v40 }
 0x2ac   : > { %v4610_v7 = vpop.eup %4609  ;;  %v1873_v16 = vadd.f32 1.0, %v4606_v50  ;;  %v6665_v58 = vmul.f32 0.5, %v1274_v39  ;;  %v1636_v31 = vmul.f32 0.70710677, %v1389_v49  ;;  %2887 = vmatprep.mubr.bf16.mxu0 %v2090_v28  ;;  %2984 = vmatprep.mubr.bf16.mxu1 %v2092_v22  ;;  %v6668_v11 = vmul.f32 %v1868_v23, %v6598_v26 }
 0x2ad   : > { %v4612_v3 = vpop.eup %4611  ;;  %4623 = verf.f32 %v1635_v55  ;;  %v1278_v25 = vadd.f32 %v7297_v52, %v7234_v6  ;;  %v1391_v17 = vadd.f32 %v6323_v14, %v7235_v43  ;;  %v6674_v10 = vmul.f32 0.5, %v1387_v4 }
 0x2ae   : > { %4625 = verf.f32 %v1634_v61  ;;  %v2089_v40 = vpack.c.bf16 %v6582_v1, %v6558_v5  ;;  %v2091_v38 = vpack.c.bf16 %v6589_v42, %v6567_v57  ;;  %v1875_v8 = vadd.f32 1.0, %v4608_v24 }
 0x2af   : > { %v4614_v9 = vpop.eup %4613  ;;  %v1874_v26 = vadd.f32 1.0, %v4610_v7  ;;  %4627 = verf.f32 %v1636_v31  ;;  %v1641_v63 = vmul.f32 0.70710677, %v1278_v25  ;;  %v1876_v39 = vadd.f32 1.0, %v4612_v3 }
 0x2b0   : > { %v4616_v29 = vpop.eup %4615  ;;  %v1643_v30 = vmul.f32 0.70710677, %v1391_v17  ;;  %2888 = vmatmul.mubr.bf16.gmra.mrb[108].mxu0 %v2089_v40  ;;  %2985 = vmatmul.mubr.bf16.gmra.mrb[108].mxu1 %v2091_v38  ;;  %v1280_v14 = vadd.f32 %v6329_v0, %v7242_v62  ;;  %v1393_v53 = vadd.f32 %v7298_v41, %v7243_v46  ;;  %v6685_v5 = vmul.f32 %v1873_v16, %v6600_v20  ;;  %v7301_v16 = vld [vmem:[#allocation35_spill] sm:$0xff] }
 0x2b1   : > { %v6687_v57 = vmul.f32 0.5, %v1276_v12  ;;  %4629 = verf.f32 %v1641_v63  ;;  %v6691_v1 = vadd.f32 %v6354_v15, %v7234_v6  ;;  %v1881_v4 = vadd.f32 1.0, %v4614_v9 }
 0x2b2   : > { %v4618_v42 = vpop.eup %4617  ;;  %4631 = verf.f32 %v1643_v30  ;;  %v1642_v13 = vmul.f32 0.70710677, %v1280_v14  ;;  %v6695_v0 = vadd.f32 %v7299_v33, %v7235_v43  ;;  %v6698_v27 = vmul.f32 %v1875_v8, %v6624_v35 }
 0x2b3   : > { %v4620_v2 = vpop.eup %4619  ;;  %v1883_v20 = vadd.f32 1.0, %v4616_v29  ;;  %v6700_v19 = vmul.f32 0.5, %v1389_v49  ;;  %v1644_v23 = vmul.f32 0.70710677, %v1393_v53  ;;  %v6703_v50 = vmul.f32 %v1874_v26, %v6626_v44  ;;  %v7300_v44 = vld [vmem:[#allocation43_spill] sm:$0xff] }
 0x2b4   : > { %v6706_v15 = vmul.f32 %v1876_v39, %v6630_v60  ;;  %v1882_v55 = vadd.f32 1.0, %v4618_v42  ;;  %4633 = verf.f32 %v1642_v13  ;;  %v1884_v12 = vadd.f32 1.0, %v4620_v2 }
 0x2b5   : > { %v4622_v32 = vpop.eup %4621  ;;  %v1513_v37 = vmul.f32 0.5, %v1278_v25  ;;  %4635 = verf.f32 %v1644_v23  ;;  %v1649_v28 = vmul.f32 0.70710677, %v6691_v1  ;;  %v6710_v35 = vmul.f32 %v1881_v4, %v6640_v48  ;;  %v7305_v4 = vld [vmem:[#allocation57_spill] sm:$0xff] }
 0x2b6   : > { %v1515_v49 = vmul.f32 0.5, %v1391_v17  ;;  %v1651_v22 = vmul.f32 0.70710677, %v6695_v0  ;;  %v6715_v24 = vadd.f32 %v7300_v44, %v7242_v62  ;;  %v6718_v61 = vmul.f32 %v1883_v20, %v6642_v45 }
 0x2b7   : > { %v4624_v60 = vpop.eup %4623  ;;  %v1514_v7 = vmul.f32 0.5, %v1280_v14  ;;  %v6722_v31 = vadd.f32 %v7301_v16, %v7243_v46  ;;  %v2098_v48 = vpack.c.bf16 %v6663_v51, %v6635_v18  ;;  %v2010_v52 = vmul.f32 %v1882_v55, %v6658_v56  ;;  %v7302_v18 = vld [vmem:[#allocation36_spill] sm:$0xff]  ;;  %v7303_v56 = vld [vmem:[#allocation55_spill] sm:$0xff] }
 0x2b8   : > { %v4626_v3 = vpop.eup %4625  ;;  %v1889_v25 = vadd.f32 1.0, %v4622_v32  ;;  %v1516_v17 = vmul.f32 0.5, %v1393_v53  ;;  %v1650_v40 = vmul.f32 0.70710677, %v6715_v24  ;;  %v2012_v9 = vmul.f32 %v1884_v12, %v6660_v59 }
 0x2b9   : > { %v4628_v38 = vpop.eup %4627  ;;  %4637 = verf.f32 %v1649_v28  ;;  %v1652_v45 = vmul.f32 0.70710677, %v6722_v31  ;;  %2895 = vmatprep.mubr.bf16.mxu0 %v2098_v48  ;;  %v2100_v8 = vpack.c.bf16 %v6668_v11, %v6638_v36  ;;  %v1891_v26 = vadd.f32 1.0, %v4624_v60 }
 0x2ba   : > { %4639 = verf.f32 %v1651_v22  ;;  %v1288_v51 = vadd.f32 %v7302_v18, %v7234_v6  ;;  %v1401_v63 = vadd.f32 %v7303_v56, %v7235_v43  ;;  %v1890_v39 = vadd.f32 1.0, %v4626_v3  ;;  %v7304_v43 = vld [vmem:[#allocation56_spill] sm:$0xff] }
 0x2bb   : > { %v4630_v29 = vpop.eup %4629  ;;  %4641 = verf.f32 %v1650_v40  ;;  %2992 = vmatprep.mubr.bf16.mxu1 %v2100_v8  ;;  %v2097_v59 = vpack.c.bf16 %v6649_v34, %v6611_v47  ;;  %v2099_v30 = vpack.c.bf16 %v6652_v21, %v6622_v54  ;;  %v1892_v36 = vadd.f32 1.0, %v4628_v38 }
 0x2bc   : > { %v4632_v14 = vpop.eup %4631  ;;  %v1897_v11 = vadd.f32 1.0, %v4630_v29  ;;  %4643 = verf.f32 %v1652_v45  ;;  %v1657_v41 = vmul.f32 0.70710677, %v1288_v51  ;;  %v1659_v6 = vmul.f32 0.70710677, %v1401_v63 }
 0x2bd   : > { %v1899_v53 = vadd.f32 1.0, %v4632_v14  ;;  %2896 = vmatmul.mubr.bf16.gmra.mrb[112].mxu0 %v2097_v59  ;;  %2993 = vmatmul.mubr.bf16.gmra.mrb[112].mxu1 %v2099_v30  ;;  %v1290_v42 = vadd.f32 %v7304_v43, %v7242_v62  ;;  %v1403_v13 = vadd.f32 %v7305_v4, %v7243_v46  ;;  %v2106_v54 = vpack.c.bf16 %v2010_v52, %v6703_v50 }
 0x2be   : > { %v4634_v33 = vpop.eup %4633  ;;  %v2025_v47 = vmul.f32 %v1897_v11, %v1513_v37  ;;  %4645 = verf.f32 %v1657_v41  ;;  %v2108_v34 = vpack.c.bf16 %v2012_v9, %v6706_v15  ;;  %v2017_v2 = vmul.f32 %v1889_v25, %v6665_v58 }
 0x2bf   : > { %v4636_v21 = vpop.eup %4635  ;;  %v2027_v20 = vmul.f32 %v1899_v53, %v1515_v49  ;;  %v1898_v23 = vadd.f32 1.0, %v4634_v33  ;;  %4647 = verf.f32 %v1659_v6  ;;  %v2019_v55 = vmul.f32 %v1891_v26, %v6674_v10  ;;  %2903 = vmatprep.mubr.bf16.mxu0 %v2106_v54 }
 0x2c0   : > { %v1900_v32 = vadd.f32 1.0, %v4636_v21  ;;  %v1658_v62 = vmul.f32 0.70710677, %v1290_v42  ;;  %v1660_v12 = vmul.f32 0.70710677, %v1403_v13  ;;  %3000 = vmatprep.mubr.bf16.mxu1 %v2108_v34  ;;  %v2018_v46 = vmul.f32 %v1890_v39, %v6687_v57 }
 0x2c1   : > { %v2026_v37 = vmul.f32 %v1898_v23, %v1514_v7  ;;  %v2105_v50 = vpack.c.bf16 %v6710_v35, %v6685_v5  ;;  %v2107_v15 = vpack.c.bf16 %v6718_v61, %v6698_v27  ;;  %v2020_v58 = vmul.f32 %v1892_v36, %v6700_v19 }
 0x2c2   : > { %v2028_v28 = vmul.f32 %v1900_v32, %v1516_v17  ;;  %4649 = verf.f32 %v1658_v62  ;;  %v2113_v49 = vpack.c.bf16 %v2025_v47, %v2017_v2  ;;  %v2115_v44 = vpack.c.bf16 %v2027_v20, %v2019_v55 }
 0x2c3   : > { %v4638_v10 = vpop.eup %4637  ;;  %4651 = verf.f32 %v1660_v12  ;;  %v2114_v22 = vpack.c.bf16 %v2026_v37, %v2018_v46  ;;  %v1521_v19 = vmul.f32 0.5, %v6691_v1  ;;  %v1529_v7 = vmul.f32 0.5, %v1288_v51 }
 0x2c4   : > { %v4640_v60 = vpop.eup %4639  ;;  %v2116_v16 = vpack.c.bf16 %v2028_v28, %v2020_v58  ;;  %v1905_v5 = vadd.f32 1.0, %v4638_v10  ;;  %v1523_v52 = vmul.f32 0.5, %v6695_v0  ;;  %v1531_v25 = vmul.f32 0.5, %v1401_v63 }
 0x2c5   : > { %v4642_v48 = vpop.eup %4641  ;;  %2904 = vmatmul.mubr.bf16.gmra.mrb[116].mxu0 %v2105_v50  ;;  %3001 = vmatmul.mubr.bf16.gmra.mrb[116].mxu1 %v2107_v15  ;;  %v1907_v27 = vadd.f32 1.0, %v4640_v60  ;;  %v1522_v29 = vmul.f32 0.5, %v6715_v24  ;;  %v1530_v39 = vmul.f32 0.5, %v1290_v42  ;;  %v1524_v51 = vmul.f32 0.5, %v6722_v31 }
 0x2c6   : > { %v4644_v57 = vpop.eup %4643  ;;  %2911 = vmatprep.mubr.bf16.mxu0 %v2114_v22  ;;  %3008 = vmatprep.mubr.bf16.mxu1 %v2116_v16  ;;  %v2033_v40 = vmul.f32 %v1905_v5, %v1521_v19  ;;  %v1906_v38 = vadd.f32 1.0, %v4642_v48  ;;  %v1532_v0 = vmul.f32 0.5, %v1403_v13 }
 0x2c7   : > { %v2035_v8 = vmul.f32 %v1907_v27, %v1523_v52  ;;  %v1908_v26 = vadd.f32 1.0, %v4644_v57 }
 0x2c8   : > { %v4646_v35 = vpop.eup %4645  ;;  %v2034_v14 = vmul.f32 %v1906_v38, %v1522_v29 }
 0x2c9   : > { %v4648_v61 = vpop.eup %4647  ;;  %v1913_v3 = vadd.f32 1.0, %v4646_v35  ;;  %v2036_v11 = vmul.f32 %v1908_v26, %v1524_v51 }
 0x2ca   : > { %v1915_v17 = vadd.f32 1.0, %v4648_v61 }
 0x2cb   : > { %v2041_v9 = vmul.f32 %v1913_v3, %v1529_v7 }
 0x2cc   : > { %v4650_v45 = vpop.eup %4649  ;;  %v2043_v18 = vmul.f32 %v1915_v17, %v1531_v25 }
 0x2cd   : > { %v4652_v56 = vpop.eup %4651  ;;  %v1914_v59 = vadd.f32 1.0, %v4650_v45  ;;  %2912 = vmatmul.mubr.bf16.gmra.mrb[120].mxu0 %v2113_v49  ;;  %3009 = vmatmul.mubr.bf16.gmra.mrb[120].mxu1 %v2115_v44  ;;  %v2121_v1 = vpack.c.bf16 %v2041_v9, %v2033_v40 }
 0x2ce   : > { %v1916_v63 = vadd.f32 1.0, %v4652_v56  ;;  %v2123_v30 = vpack.c.bf16 %v2043_v18, %v2035_v8 }
 0x2cf   : > { %v2042_v36 = vmul.f32 %v1914_v59, %v1530_v39 }
 0x2d0   : > { %v2044_v41 = vmul.f32 %v1916_v63, %v1532_v0 }
 0x2d1   : > { %v2122_v53 = vpack.c.bf16 %v2042_v36, %v2034_v14 }
 0x2d2   : > { %v2124_v6 = vpack.c.bf16 %v2044_v41, %v2036_v11 }
 0x2d3   : > { %2919 = vmatprep.mubr.bf16.mxu0 %v2122_v53 }
 0x2d4   : > { %3016 = vmatprep.mubr.bf16.mxu1 %v2124_v6 }
 0x2d5   : > { %2920 = vmatmul.mubr.bf16.gmra.mrb[124].mxu0 %v2121_v1  ;;  %3017 = vmatmul.mubr.bf16.gmra.mrb[124].mxu1 %v2123_v30 }
 0x2f5   : > { %v3963_v24 = vpop.f32.mrb[64].mxu0  ;;  %v4027_v43 = vpop.f32.mrb[64].mxu1 }
 0x2f6   : > { %v3964_v42 = vpop.f32.mrb[65].mxu0  ;;  %v4028_v4 = vpop.f32.mrb[65].mxu1 }
 0x2f7   : > { %v3965_v33 = vadd.f32 %v3964_v42, %v3963_v24  ;;  %v4029_v47 = vadd.f32 %v4028_v4, %v4027_v43  ;;  %v3966_v31 = vpop.f32.mrb[66].mxu0  ;;  %v4030_v13 = vpop.f32.mrb[66].mxu1 }
 0x2f8   : > { %v3967_v54 = vpop.f32.mrb[67].mxu0  ;;  %v4031_v34 = vpop.f32.mrb[67].mxu1 }
 0x2f9   : > { %v6758_v21 = vadd.f32 %v4029_v47, %v3965_v33  ;;  %v3968_v2 = vadd.f32 %v3967_v54, %v3966_v31  ;;  %v4032_v20 = vadd.f32 %v4031_v34, %v4030_v13 }
 0x2fb   : > { %v6760_v23 = vadd.f32 %v4032_v20, %v3968_v2 }
 0x300   : > { %v3969_v55 = vpop.f32.mrb[68].mxu0 }
 0x301   : > { %v4033_v32 = vpop.f32.mrb[68].mxu1  ;;  %v3970_v62 = vpop.f32.mrb[69].mxu0 }
 0x302   : > { %v4034_v12 = vpop.f32.mrb[69].mxu1  ;;  %v3971_v46 = vadd.f32 %v3970_v62, %v3969_v55  ;;  %v3972_v50 = vpop.f32.mrb[70].mxu0 }
 0x303   : > { %v4035_v37 = vadd.f32 %v4034_v12, %v4033_v32  ;;  %v4036_v15 = vpop.f32.mrb[70].mxu1  ;;  %v3973_v58 = vpop.f32.mrb[71].mxu0 }
 0x304   : > { %v4037_v28 = vpop.f32.mrb[71].mxu1  ;;  %v3974_v10 = vadd.f32 %v3973_v58, %v3972_v50 }
 0x305   : > { %v6762_v49 = vadd.f32 %v4035_v37, %v3971_v46  ;;  %v4038_v22 = vadd.f32 %v4037_v28, %v4036_v15 }
 0x307   : > { %v6764_v44 = vadd.f32 %v4038_v22, %v3974_v10 }
 0x30f   : > { %v3975_v60 = vpop.f32.mrb[72].mxu0 }
 0x310   : > { %v4039_v16 = vpop.f32.mrb[72].mxu1  ;;  %v3976_v48 = vpop.f32.mrb[73].mxu0 }
 0x311   : > { %v4040_v57 = vpop.f32.mrb[73].mxu1  ;;  %v3977_v5 = vadd.f32 %v3976_v48, %v3975_v60  ;;  %v3978_v27 = vpop.f32.mrb[74].mxu0 }
 0x312   : > { %v4041_v35 = vadd.f32 %v4040_v57, %v4039_v16  ;;  %v4042_v61 = vpop.f32.mrb[74].mxu1  ;;  %v3979_v19 = vpop.f32.mrb[75].mxu0 }
 0x313   : > { %v4043_v7 = vpop.f32.mrb[75].mxu1  ;;  %v3980_v52 = vadd.f32 %v3979_v19, %v3978_v27 }
 0x314   : > { %v6766_v3 = vadd.f32 %v4041_v35, %v3977_v5  ;;  %v4044_v25 = vadd.f32 %v4043_v7, %v4042_v61 }
 0x316   : > { %v6768_v17 = vadd.f32 %v4044_v25, %v3980_v52 }
 0x31b   : > { %v3981_v40 = vpop.f32.mrb[76].mxu0  ;;  %v4045_v38 = vpop.f32.mrb[76].mxu1 }
 0x31c   : > { %v3982_v9 = vpop.f32.mrb[77].mxu0  ;;  %v4046_v45 = vpop.f32.mrb[77].mxu1 }
 0x31d   : > { %v3983_v8 = vadd.f32 %v3982_v9, %v3981_v40  ;;  %v4047_v26 = vadd.f32 %v4046_v45, %v4045_v38  ;;  %v3984_v18 = vpop.f32.mrb[78].mxu0  ;;  %v4048_v56 = vpop.f32.mrb[78].mxu1 }
 0x31e   : > { %v3985_v29 = vpop.f32.mrb[79].mxu0  ;;  %v4049_v39 = vpop.f32.mrb[79].mxu1 }
 0x31f   : > { %v6770_v59 = vadd.f32 %v4047_v26, %v3983_v8  ;;  %v3986_v1 = vadd.f32 %v3985_v29, %v3984_v18  ;;  %v4050_v51 = vadd.f32 %v4049_v39, %v4048_v56 }
 0x321   : > { %v6772_v0 = vadd.f32 %v4050_v51, %v3986_v1 }
 0x328   : > { %v3987_v63 = vpop.f32.mrb[80].mxu0  ;;  %v4051_v30 = vpop.f32.mrb[80].mxu1 }
 0x329   : > { %v3988_v14 = vpop.f32.mrb[81].mxu0  ;;  %v4052_v36 = vpop.f32.mrb[81].mxu1 }
 0x32a   : > { %v3989_v11 = vadd.f32 %v3988_v14, %v3987_v63  ;;  %v4053_v41 = vadd.f32 %v4052_v36, %v4051_v30  ;;  %v3990_v53 = vpop.f32.mrb[82].mxu0  ;;  %v4054_v6 = vpop.f32.mrb[82].mxu1 }
 0x32b   : > { %v3991_v24 = vpop.f32.mrb[83].mxu0  ;;  %v4055_v43 = vpop.f32.mrb[83].mxu1 }
 0x32c   : > { %v6774_v42 = vadd.f32 %v4053_v41, %v3989_v11  ;;  %v3992_v4 = vadd.f32 %v3991_v24, %v3990_v53  ;;  %v4056_v33 = vadd.f32 %v4055_v43, %v4054_v6 }
 0x32e   : > { %v6776_v47 = vadd.f32 %v4056_v33, %v3992_v4 }
 0x335   : > { %v3993_v31 = vpop.f32.mrb[84].mxu0  ;;  %v4057_v13 = vpop.f32.mrb[84].mxu1 }
 0x336   : > { %v3994_v54 = vpop.f32.mrb[85].mxu0  ;;  %v4058_v34 = vpop.f32.mrb[85].mxu1 }
 0x337   : > { %v3995_v2 = vadd.f32 %v3994_v54, %v3993_v31  ;;  %v4059_v20 = vadd.f32 %v4058_v34, %v4057_v13  ;;  %v3996_v55 = vpop.f32.mrb[86].mxu0  ;;  %v4060_v32 = vpop.f32.mrb[86].mxu1  ;;  %v2045_v31 = vld [vmem:[#allocation2] sm:$0xff] }
 0x338   : > { %v3997_v62 = vpop.f32.mrb[87].mxu0  ;;  %v4061_v12 = vpop.f32.mrb[87].mxu1 }
 0x339   : > { %v6778_v46 = vadd.f32 %v4059_v20, %v3995_v2  ;;  %v3998_v37 = vadd.f32 %v3997_v62, %v3996_v55  ;;  %v4062_v50 = vadd.f32 %v4061_v12, %v4060_v32  ;;  %v2046_v2 = vld [vmem:[#allocation2 + $0x8] sm:$0xff] }
 0x33b   : > { %v6780_v15 = vadd.f32 %v4062_v50, %v3998_v37 }
 0x341   : > { %v3999_v58 = vpop.f32.mrb[88].mxu0  ;;  %v4063_v28 = vpop.f32.mrb[88].mxu1 }
 0x342   : > { %v4000_v10 = vpop.f32.mrb[89].mxu0  ;;  %v4064_v22 = vpop.f32.mrb[89].mxu1 }
 0x343   : > { %v4001_v60 = vadd.f32 %v4000_v10, %v3999_v58  ;;  %v4065_v16 = vadd.f32 %v4064_v22, %v4063_v28  ;;  %v4002_v48 = vpop.f32.mrb[90].mxu0  ;;  %v4066_v57 = vpop.f32.mrb[90].mxu1 }
 0x344   : > { %v4003_v5 = vpop.f32.mrb[91].mxu0  ;;  %v4067_v35 = vpop.f32.mrb[91].mxu1 }
 0x345   : > { %v6782_v27 = vadd.f32 %v4065_v16, %v4001_v60  ;;  %v4004_v61 = vadd.f32 %v4003_v5, %v4002_v48  ;;  %v4068_v19 = vadd.f32 %v4067_v35, %v4066_v57  ;;  %v2047_v57 = vld [vmem:[#allocation2 + $0x10] sm:$0xff] }
 0x347   : > { %v6784_v7 = vadd.f32 %v4068_v19, %v4004_v61  ;;  %v2048_v61 = vld [vmem:[#allocation2 + $0x18] sm:$0xff] }
 0x34f   : > { %v4005_v52 = vpop.f32.mrb[92].mxu0 }
 0x350   : > { %v4006_v25 = vpop.f32.mrb[93].mxu0 }
 0x351   : > { %v4069_v40 = vpop.f32.mrb[92].mxu1  ;;  %v4007_v38 = vadd.f32 %v4006_v25, %v4005_v52  ;;  %v4008_v9 = vpop.f32.mrb[94].mxu0 }
 0x352   : > { %v4070_v45 = vpop.f32.mrb[93].mxu1  ;;  %v4009_v8 = vpop.f32.mrb[95].mxu0 }
 0x353   : > { %v4071_v26 = vadd.f32 %v4070_v45, %v4069_v40  ;;  %v4072_v18 = vpop.f32.mrb[94].mxu1  ;;  %v4010_v56 = vadd.f32 %v4009_v8, %v4008_v9 }
 0x354   : > { %v4073_v29 = vpop.f32.mrb[95].mxu1 }
 0x355   : > { %v6786_v39 = vadd.f32 %v4071_v26, %v4007_v38  ;;  %v4074_v1 = vadd.f32 %v4073_v29, %v4072_v18 }
 0x357   : > { %v6788_v51 = vadd.f32 %v4074_v1, %v4010_v56 }
 0x35d   : > { %v4091_v63 = vpop.f32.mrb[96].mxu0 }
 0x35e   : > { %v4155_v30 = vpop.f32.mrb[96].mxu1  ;;  %v4092_v14 = vpop.f32.mrb[97].mxu0 }
 0x35f   : > { %v4093_v36 = vadd.f32 %v4092_v14, %v4091_v63  ;;  %v4156_v11 = vpop.f32.mrb[97].mxu1  ;;  %v4094_v41 = vpop.f32.mrb[98].mxu0 }
 0x360   : > { %v4157_v53 = vadd.f32 %v4156_v11, %v4155_v30  ;;  %v4158_v6 = vpop.f32.mrb[98].mxu1  ;;  %v4095_v24 = vpop.f32.mrb[99].mxu0  ;;  %v2049_v30 = vld [vmem:[#allocation2 + $0x20] sm:$0xff]  ;;  %v2050_v11 = vld [vmem:[#allocation2 + $0x28] sm:$0xff] }
 0x361   : > { %v2866_v43 = vadd.f32 %v4093_v36, %v6758_v21  ;;  %v4096_v4 = vadd.f32 %v4095_v24, %v4094_v41  ;;  %v4159_v33 = vpop.f32.mrb[99].mxu1 }
 0x362   : > { %v4160_v13 = vadd.f32 %v4159_v33, %v4158_v6 }
 0x363   : > { %v2963_v54 = vadd.f32 %v4157_v53, %v2866_v43  ;;  %v2869_v34 = vadd.f32 %v4096_v4, %v6760_v23 }
 0x365   : > { %v3025_v20 = vadd.f32 %v2963_v54, %v2045_v31  ;;  %v2966_v55 = vadd.f32 %v4160_v13, %v2869_v34 }
 0x367   : > { %3041 = vst [vmem:[#allocation2] sm:$0xff] %v3025_v20  ;;  %v3026_v32 = vadd.f32 %v2966_v55, %v2046_v2 }
 0x369   : > { %3042 = vst [vmem:[#allocation2 + $0x8] sm:$0xff] %v3026_v32  ;;  %v4097_v62 = vpop.f32.mrb[100].mxu0  ;;  %v4161_v12 = vpop.f32.mrb[100].mxu1  ;;  %v2051_v32 = vld [vmem:[#allocation2 + $0x30] sm:$0xff] }
 0x36a   : > { %v4098_v37 = vpop.f32.mrb[101].mxu0  ;;  %v4162_v50 = vpop.f32.mrb[101].mxu1 }
 0x36b   : > { %v4099_v58 = vadd.f32 %v4098_v37, %v4097_v62  ;;  %v4163_v28 = vadd.f32 %v4162_v50, %v4161_v12  ;;  %v4100_v21 = vpop.f32.mrb[102].mxu0  ;;  %v4164_v10 = vpop.f32.mrb[102].mxu1  ;;  %v2052_v37 = vld [vmem:[#allocation2 + $0x38] sm:$0xff] }
 0x36c   : > { %v4101_v22 = vpop.f32.mrb[103].mxu0  ;;  %v4165_v60 = vpop.f32.mrb[103].mxu1 }
 0x36d   : > { %v2874_v16 = vadd.f32 %v4099_v58, %v6762_v49  ;;  %v4102_v48 = vadd.f32 %v4101_v22, %v4100_v21  ;;  %v4166_v23 = vadd.f32 %v4165_v60, %v4164_v10 }
 0x36f   : > { %v2971_v5 = vadd.f32 %v4163_v28, %v2874_v16  ;;  %v2877_v35 = vadd.f32 %v4102_v48, %v6764_v44 }
 0x371   : > { %v3027_v19 = vadd.f32 %v2971_v5, %v2047_v57  ;;  %v2974_v52 = vadd.f32 %v4166_v23, %v2877_v35 }
 0x373   : > { %3043 = vst [vmem:[#allocation2 + $0x10] sm:$0xff] %v3027_v19  ;;  %v3028_v25 = vadd.f32 %v2974_v52, %v2048_v61  ;;  %v2053_v19 = vld [vmem:[#allocation2 + $0x40] sm:$0xff] }
 0x375   : > { %3044 = vst [vmem:[#allocation2 + $0x18] sm:$0xff] %v3028_v25 }
 0x376   : > { %v4103_v40 = vpop.f32.mrb[104].mxu0  ;;  %v4167_v38 = vpop.f32.mrb[104].mxu1 }
 0x377   : > { %v4104_v9 = vpop.f32.mrb[105].mxu0  ;;  %v4168_v45 = vpop.f32.mrb[105].mxu1 }
 0x378   : > { %v4105_v8 = vadd.f32 %v4104_v9, %v4103_v40  ;;  %v4169_v26 = vadd.f32 %v4168_v45, %v4167_v38  ;;  %v4106_v18 = vpop.f32.mrb[106].mxu0  ;;  %v4170_v49 = vpop.f32.mrb[106].mxu1  ;;  %v2054_v40 = vld [vmem:[#allocation2 + $0x48] sm:$0xff] }
 0x379   : > { %v4107_v56 = vpop.f32.mrb[107].mxu0  ;;  %v4171_v29 = vpop.f32.mrb[107].mxu1 }
 0x37a   : > { %v2882_v1 = vadd.f32 %v4105_v8, %v6766_v3  ;;  %v4108_v63 = vadd.f32 %v4107_v56, %v4106_v18  ;;  %v4172_v44 = vadd.f32 %v4171_v29, %v4170_v49 }
 0x37c   : > { %v2979_v14 = vadd.f32 %v4169_v26, %v2882_v1  ;;  %v2885_v36 = vadd.f32 %v4108_v63, %v6768_v17 }
 0x37e   : > { %v3029_v41 = vadd.f32 %v2979_v14, %v2049_v30  ;;  %v2982_v53 = vadd.f32 %v4172_v44, %v2885_v36  ;;  %v2055_v36 = vld [vmem:[#allocation2 + $0x50] sm:$0xff] }
 0x380   : > { %3045 = vst [vmem:[#allocation2 + $0x20] sm:$0xff] %v3029_v41  ;;  %v3030_v6 = vadd.f32 %v2982_v53, %v2050_v11  ;;  %v2056_v53 = vld [vmem:[#allocation2 + $0x58] sm:$0xff] }
 0x382   : > { %3046 = vst [vmem:[#allocation2 + $0x28] sm:$0xff] %v3030_v6 }
 0x383   : > { %v4109_v24 = vpop.f32.mrb[108].mxu0  ;;  %v4173_v43 = vpop.f32.mrb[108].mxu1 }
 0x384   : > { %v4110_v4 = vpop.f32.mrb[109].mxu0  ;;  %v4174_v33 = vpop.f32.mrb[109].mxu1 }
 0x385   : > { %v4111_v31 = vadd.f32 %v4110_v4, %v4109_v24  ;;  %v4175_v13 = vadd.f32 %v4174_v33, %v4173_v43  ;;  %v4112_v54 = vpop.f32.mrb[110].mxu0  ;;  %v4176_v3 = vpop.f32.mrb[110].mxu1 }
 0x386   : > { %v4113_v34 = vpop.f32.mrb[111].mxu0  ;;  %v4177_v2 = vpop.f32.mrb[111].mxu1 }
 0x387   : > { %v2890_v20 = vadd.f32 %v4111_v31, %v6770_v59  ;;  %v4114_v55 = vadd.f32 %v4113_v34, %v4112_v54  ;;  %v4178_v17 = vadd.f32 %v4177_v2, %v4176_v3 }
 0x389   : > { %v2987_v62 = vadd.f32 %v4175_v13, %v2890_v20  ;;  %v2893_v12 = vadd.f32 %v4114_v55, %v6772_v0 }
 0x38b   : > { %v3031_v50 = vadd.f32 %v2987_v62, %v2051_v32  ;;  %v2990_v58 = vadd.f32 %v4178_v17, %v2893_v12  ;;  %v2057_v32 = vld [vmem:[#allocation2 + $0x60] sm:$0xff] }
 0x38d   : > { %3047 = vst [vmem:[#allocation2 + $0x30] sm:$0xff] %v3031_v50  ;;  %v3032_v28 = vadd.f32 %v2990_v58, %v2052_v37  ;;  %v2058_v37 = vld [vmem:[#allocation2 + $0x68] sm:$0xff] }
 0x38f   : > { %3048 = vst [vmem:[#allocation2 + $0x38] sm:$0xff] %v3032_v28 }
 0x390   : > { %v4115_v21 = vpop.f32.mrb[112].mxu0  ;;  %v4179_v10 = vpop.f32.mrb[112].mxu1 }
 0x391   : > { %v4116_v22 = vpop.f32.mrb[113].mxu0  ;;  %v4180_v60 = vpop.f32.mrb[113].mxu1 }
 0x392   : > { %v4117_v16 = vadd.f32 %v4116_v22, %v4115_v21  ;;  %v4181_v48 = vadd.f32 %v4180_v60, %v4179_v10  ;;  %v4118_v23 = vpop.f32.mrb[114].mxu0  ;;  %v4182_v59 = vpop.f32.mrb[114].mxu1 }
 0x393   : > { %v4119_v57 = vpop.f32.mrb[115].mxu0  ;;  %v4183_v5 = vpop.f32.mrb[115].mxu1 }
 0x394   : > { %v2898_v35 = vadd.f32 %v4117_v16, %v6774_v42  ;;  %v4120_v61 = vadd.f32 %v4119_v57, %v4118_v23  ;;  %v4184_v0 = vadd.f32 %v4183_v5, %v4182_v59 }
 0x396   : > { %v2995_v52 = vadd.f32 %v4181_v48, %v2898_v35  ;;  %v2901_v25 = vadd.f32 %v4120_v61, %v6776_v47  ;;  %v2059_v61 = vld [vmem:[#allocation2 + $0x70] sm:$0xff] }
 0x398   : > { %v3033_v38 = vadd.f32 %v2995_v52, %v2053_v19  ;;  %v2998_v9 = vadd.f32 %v4184_v0, %v2901_v25  ;;  %v4121_v45 = vpop.f32.mrb[116].mxu0  ;;  %v4185_v8 = vpop.f32.mrb[116].mxu1  ;;  %v2060_v52 = vld [vmem:[#allocation2 + $0x78] sm:$0xff] }
 0x399   : > { %v4122_v26 = vpop.f32.mrb[117].mxu0  ;;  %v4186_v18 = vpop.f32.mrb[117].mxu1 }
 0x39a   : > { %3049 = vst [vmem:[#allocation2 + $0x40] sm:$0xff] %v3033_v38  ;;  %v3034_v49 = vadd.f32 %v2998_v9, %v2054_v40  ;;  %v4123_v56 = vadd.f32 %v4122_v26, %v4121_v45  ;;  %v4187_v29 = vadd.f32 %v4186_v18, %v4185_v8  ;;  %v4124_v1 = vpop.f32.mrb[118].mxu0  ;;  %v4188_v63 = vpop.f32.mrb[118].mxu1  ;;  %v3933_v9 = vld [vmem:[#allocation3 + $0x8] sm:$0xff] (!%p3818_p7)   ;;  %v3095_v45 = vld [vmem:[#allocation2 + $0x10] sm:$0xff] (!%p3818_p7)  ;;  %v3862_v26 = vld [vmem:[#allocation3] sm:$0xff] (!%p3818_p7)  }
 0x39b   : > { %v4125_v42 = vpop.f32.mrb[119].mxu0  ;;  %v4189_v44 = vpop.f32.mrb[119].mxu1  ;;  %v3867_v8 = vunpack.c.l.bf16 (!%p3818_p7), %v3933_v9  ;;  %v3868_v18 = vunpack.c.h.bf16 (!%p3818_p7), %v3933_v9 }
 0x39c   : > { %3050 = vst [vmem:[#allocation2 + $0x48] sm:$0xff] %v3034_v49  ;;  %v2906_v30 = vadd.f32 %v4123_v56, %v6778_v46  ;;  %v4126_v14 = vadd.f32 %v4125_v42, %v4124_v1  ;;  %v4190_v47 = vadd.f32 %v4189_v44, %v4188_v63  ;;  %v3096_v49 = vld [vmem:[#allocation2 + $0x18] sm:$0xff] (!%p3818_p7)  ;;  %v6807_v56 = vld [vmem:[#allocation11] ss:$0 sm:$0xff] (!%p3818_p7)  ;;  %v3094_v1 = vld [vmem:[#allocation2 + $0x8] sm:$0xff] (!%p3818_p7) }
 0x39d   : > { %v3934_v63 = vld [vmem:[#allocation3 + $0x10] sm:$0xff] (!%p3818_p7)   ;;  %v3111_v42 = vadd.f32 (!%p3818_p7), %v3867_v8, %v3095_v45  ;;  %v3112_v44 = vadd.f32 (!%p3818_p7), %v3868_v18, %v3096_v49 }
 0x39e   : > { %v3003_v11 = vadd.f32 %v4187_v29, %v2906_v30  ;;  %v2909_v41 = vadd.f32 %v4126_v14, %v6780_v15  ;;  %v3863_v29 = vunpack.c.l.bf16 (!%p3818_p7), %v3862_v26  ;;  %v3872_v30 = vunpack.c.h.bf16 (!%p3818_p7), %v3934_v63 }
 0x3a0   : > { %v3035_v6 = vadd.f32 %v3003_v11, %v2055_v36  ;;  %v3006_v24 = vadd.f32 %v4190_v47, %v2909_v41  ;;  %v4127_v43 = vpop.f32.mrb[120].mxu0  ;;  %v4191_v4 = vpop.f32.mrb[120].mxu1  ;;  %v3098_v36 = vld [vmem:[#allocation2 + $0x28] sm:$0xff] (!%p3818_p7)  ;;  %v3871_v11 = vunpack.c.l.bf16 (!%p3818_p7), %v3934_v63  ;;  %v3935_v41 = vld [vmem:[#allocation3 + $0x18] sm:$0xff] (!%p3818_p7)  }
 0x3a1   : > { %v4128_v33 = vpop.f32.mrb[121].mxu0  ;;  %v4192_v31 = vpop.f32.mrb[121].mxu1 }
 0x3a2   : > { %3051 = vst [vmem:[#allocation2 + $0x50] sm:$0xff] %v3035_v6  ;;  %v3036_v13 = vadd.f32 %v3006_v24, %v2056_v53  ;;  %v4129_v54 = vadd.f32 %v4128_v33, %v4127_v43  ;;  %v4193_v3 = vadd.f32 %v4192_v31, %v4191_v4  ;;  %v4130_v34 = vpop.f32.mrb[122].mxu0  ;;  %v4194_v2 = vpop.f32.mrb[122].mxu1  ;;  %v6810_v53 = vadd.f32 (!%p3818_p7), %v6807_v56, %v3111_v42  ;;  %v3097_v6 = vld [vmem:[#allocation2 + $0x20] sm:$0xff] (!%p3818_p7) }
 0x3a3   : > { %v4131_v46 = vpop.f32.mrb[123].mxu0  ;;  %v4195_v20 = vpop.f32.mrb[123].mxu1  ;;  %v6817_v43 = vadd.f32 (!%p3818_p7), %v6807_v56, %v3112_v44  ;;  %v3114_v4 = vadd.f32 (!%p3818_p7), %v3872_v30, %v3098_v36  ;;  %v3876_v33 = vunpack.c.h.bf16 (!%p3818_p7), %v3935_v41 }
 0x3a4   : > { %3052 = vst [vmem:[#allocation2 + $0x58] sm:$0xff] %v3036_v13  ;;  %v2914_v55 = vadd.f32 %v4129_v54, %v6782_v27  ;;  %v4132_v17 = vadd.f32 %v4131_v46, %v4130_v34  ;;  %v4196_v15 = vadd.f32 %v4195_v20, %v4194_v2  ;;  %3154 = vadd.xlane.f32.xlu1 (!%p3818_p7), %v6810_v53  ;;  %v3100_v54 = vld [vmem:[#allocation2 + $0x38] sm:$0xff] (!%p3818_p7)  ;;  %v3936_v34 = vld [vmem:[#allocation3 + $0x20] sm:$0xff] (!%p3818_p7)   ;;  %v3099_v2 = vld [vmem:[#allocation2 + $0x30] sm:$0xff] (!%p3818_p7) }
 0x3a5   : > { %v3113_v13 = vadd.f32 (!%p3818_p7), %v3871_v11, %v3097_v6  ;;  %v6825_v46 = vadd.f32 (!%p3818_p7), %v6807_v56, %v3114_v4  ;;  %v3116_v20 = vadd.f32 (!%p3818_p7), %v3876_v33, %v3100_v54  ;;  %v3202_v42 = vmul.f32 (!%p3818_p7), %v6817_v43, %v6817_v43 }
 0x3a6   : > { %v3011_v62 = vadd.f32 %v4193_v3, %v2914_v55  ;;  %v2917_v12 = vadd.f32 %v4132_v17, %v6784_v7  ;;  %v3875_v3 = vunpack.c.l.bf16 (!%p3818_p7), %v3935_v41  ;;  %v3880_v55 = vunpack.c.h.bf16 (!%p3818_p7), %v3936_v34 }
 0x3a7   : > { %v6829_v17 = vadd.f32 (!%p3818_p7), %v6807_v56, %v3113_v13  ;;  %v3201_v44 = vmul.f32 (!%p3818_p7), %v6810_v53, %v6810_v53 }
 0x3a8   : > { %v3037_v50 = vadd.f32 %v3011_v62, %v2057_v32  ;;  %v3014_v58 = vadd.f32 %v4196_v15, %v2917_v12  ;;  %v4133_v28 = vpop.f32.mrb[124].mxu0  ;;  %v4197_v21 = vpop.f32.mrb[124].mxu1  ;;  %3156 = vadd.xlane.f32.xlu1 (!%p3818_p7), %v6817_v43  ;;  %v3115_v15 = vadd.f32 (!%p3818_p7), %v3875_v3, %v3099_v2  ;;  %v3102_v32 = vld [vmem:[#allocation2 + $0x48] sm:$0xff] (!%p3818_p7)  ;;  %v3879_v62 = vunpack.c.l.bf16 (!%p3818_p7), %v3936_v34 }
 0x3a9   : > { %v4134_v10 = vpop.f32.mrb[125].mxu0  ;;  %v4198_v22 = vpop.f32.mrb[125].mxu1  ;;  %v3937_v12 = vld [vmem:[#allocation3 + $0x28] sm:$0xff] (!%p3818_p7)   ;;  %v3203_v30 = vmul.f32 (!%p3818_p7), %v6829_v17, %v6829_v17 }
 0x3aa   : > { %3053 = vst [vmem:[#allocation2 + $0x60] sm:$0xff] %v3037_v50  ;;  %v3038_v60 = vadd.f32 %v3014_v58, %v2058_v37  ;;  %v4135_v16 = vadd.f32 %v4134_v10, %v4133_v28  ;;  %v4199_v48 = vadd.f32 %v4198_v22, %v4197_v21  ;;  %v4136_v23 = vpop.f32.mrb[126].mxu0  ;;  %v4200_v59 = vpop.f32.mrb[126].mxu1  ;;  %v3101_v37 = vld [vmem:[#allocation2 + $0x40] sm:$0xff] (!%p3818_p7)  ;;  %v6833_v50 = vadd.f32 (!%p3818_p7), %v6807_v56, %v3116_v20 }
 0x3ab   : > { %v4137_v27 = vpop.f32.mrb[127].mxu0  ;;  %v4201_v57 = vpop.f32.mrb[127].mxu1  ;;  %v3118_v58 = vadd.f32 (!%p3818_p7), %v3880_v55, %v3102_v32  ;;  %v3884_v28 = vunpack.c.h.bf16 (!%p3818_p7), %v3937_v12  ;;  %v6837_v21 = vadd.f32 (!%p3818_p7), %v6807_v56, %v3115_v15  ;;  %v3117_v10 = vadd.f32 (!%p3818_p7), %v3879_v62, %v3101_v37  ;;  %v3104_v22 = vld [vmem:[#allocation2 + $0x58] sm:$0xff] (!%p3818_p7) }
 0x3ac   : > { %3054 = vst [vmem:[#allocation2 + $0x68] sm:$0xff] %v3038_v60  ;;  %v2922_v5 = vadd.f32 %v4135_v16, %v6786_v39  ;;  %v4138_v35 = vadd.f32 %v4137_v27, %v4136_v23  ;;  %v4202_v7 = vadd.f32 %v4201_v57, %v4200_v59  ;;  %v3093_v39 = vld [vmem:[#allocation2] sm:$0xff] (!%p3818_p7)  ;;  %3160 = vadd.xlane.f32.xlu1 (!%p3818_p7), %v6825_v46  ;;  %v3883_v60 = vunpack.c.l.bf16 (!%p3818_p7), %v3937_v12  ;;  %v3938_v16 = vld [vmem:[#allocation3 + $0x30] sm:$0xff] (!%p3818_p7)  }
 0x3ad   : > { %v3109_v14 = vadd.f32 (!%p3818_p7), %v3863_v29, %v3093_v39  ;;  %v6841_v23 = vadd.f32 (!%p3818_p7), %v6807_v56, %v3118_v58  ;;  %v3120_v59 = vadd.f32 (!%p3818_p7), %v3884_v28, %v3104_v22  ;;  %v3888_v27 = vunpack.c.h.bf16 (!%p3818_p7), %v3938_v16 }
 0x3ae   : > { %v3019_v0 = vadd.f32 %v4199_v48, %v2922_v5  ;;  %v2925_v19 = vadd.f32 %v4138_v35, %v6788_v51  ;;  %3060 = sbr.rel (%p3818_p7) target bundleno = 1176 (0x498), region = 84  ;;  %v3864_v51 = vunpack.c.h.bf16 (!%p3818_p7), %v3862_v26  ;;  %v3103_v48 = vld [vmem:[#allocation2 + $0x50] sm:$0xff] (!%p3818_p7)  ;;  %v6845_v57 = vadd.f32 (!%p3818_p7), %v6807_v56, %v3117_v10 }
 0x3af   : > { %v6813_v24 = vadd.f32 (!%p3818_p7), %v6807_v56, %v3109_v14  ;;  %v3119_v5 = vadd.f32 (!%p3818_p7), %v3883_v60, %v3103_v48  ;;  %v3206_v14 = vmul.f32 (!%p3818_p7), %v6833_v50, %v6833_v50  ;;  %v3208_v36 = vmul.f32 (!%p3818_p7), %v6841_v23, %v6841_v23 }
 0x3b0   : > { %v3039_v25 = vadd.f32 %v3019_v0, %v2059_v61  ;;  %v3022_v40 = vadd.f32 %v4202_v7, %v2925_v19  ;;  %v3110_v47 = vadd.f32 (!%p3818_p7), %v3864_v51, %v3094_v1  ;;  %3164 = vadd.xlane.f32.xlu1 (!%p3818_p7), %v6833_v50  ;;  %v3887_v7 = vunpack.c.l.bf16 (!%p3818_p7), %v3938_v16  ;;  %v3939_v61 = vld [vmem:[#allocation3 + $0x38] sm:$0xff] (!%p3818_p7)  }
 0x3b1   : > { %3150 = vadd.xlane.f32.xlu0 (!%p3818_p7), %v6813_v24  ;;  %v3105_v0 = vld [vmem:[#allocation2 + $0x60] sm:$0xff] (!%p3818_p7)  ;;  %v6849_v19 = vadd.f32 (!%p3818_p7), %v6807_v56, %v3120_v59  ;;  %v3891_v45 = vunpack.c.l.bf16 (!%p3818_p7), %v3939_v61  ;;  %v3199_v63 = vmul.f32 (!%p3818_p7), %v6813_v24, %v6813_v24  ;;  %v3207_v11 = vmul.f32 (!%p3818_p7), %v6845_v57, %v6845_v57 }
 0x3b2   : > { %3055 = vst [vmem:[#allocation2 + $0x70] sm:$0xff] %v3039_v25  ;;  %v3040_v38 = vadd.f32 %v3022_v40, %v2060_v52  ;;  %v6821_v31 = vadd.f32 (!%p3818_p7), %v6807_v56, %v3110_v47  ;;  %v3892_v25 = vunpack.c.h.bf16 (!%p3818_p7), %v3939_v61  ;;  %v6853_v40 = vadd.f32 (!%p3818_p7), %v6807_v56, %v3119_v5 }
 0x3b3   : > { %v3106_v35 = vld [vmem:[#allocation2 + $0x68] sm:$0xff] (!%p3818_p7)  ;;  %v3205_v47 = vmul.f32 (!%p3818_p7), %v6837_v21, %v6837_v21  ;;  %v3210_v41 = vmul.f32 (!%p3818_p7), %v6849_v19, %v6849_v19 }
 0x3b4   : > { %3056 = vst [vmem:[#allocation2 + $0x78] sm:$0xff] %v3040_v38  ;;  %3168 = vadd.xlane.f32.xlu1 (!%p3818_p7), %v6841_v23  ;;  %v3122_v52 = vadd.f32 (!%p3818_p7), %v3888_v27, %v3106_v35  ;;  %v3121_v38 = vadd.f32 (!%p3818_p7), %v3887_v7, %v3105_v0  ;;  %v3200_v1 = vmul.f32 (!%p3818_p7), %v6821_v31, %v6821_v31 }
 0x3b5   : > { %3152 = vadd.xlane.f32.xlu0 %v6821_v31  ;;  %v3209_v6 = vmul.f32 %v6853_v40, %v6853_v40 }
 0x3b6   : > { %v6857_v26 = vadd.f32 %v6807_v56, %v3122_v52  ;;  %v6861_v18 = vadd.f32 %v6807_v56, %v3121_v38 }
 0x3b8   : > { %3172 = vadd.xlane.f32.xlu1 %v6849_v19  ;;  %v3212_v4 = vmul.f32 %v6857_v26, %v6857_v26  ;;  %v3211_v33 = vmul.f32 %v6861_v18, %v6861_v18 }
 0x3b9   : > { %3158 = vadd.xlane.f32.xlu0 %v6829_v17  ;;  %v3107_v8 = vld [vmem:[#allocation2 + $0x70] sm:$0xff] }
 0x3ba   : > { %v3123_v49 = vadd.f32 %v3891_v45, %v3107_v8 }
 0x3bb   : > { %v3108_v9 = vld [vmem:[#allocation2 + $0x78] sm:$0xff] }
 0x3bc   : > { %v3124_v39 = vadd.f32 %v3892_v25, %v3108_v9  ;;  %3176 = vadd.xlane.f32.xlu1 %v6857_v26  ;;  %v6869_v51 = vadd.f32 %v6807_v56, %v3123_v49 }
 0x3bd   : > { %3162 = vadd.xlane.f32.xlu0 %v6837_v21 }
 0x3be   : > { %v6865_v29 = vadd.f32 %v6807_v56, %v3124_v39  ;;  %v3204_v56 = vmul.f32 %v6825_v46, %v6825_v46  ;;  %v3213_v54 = vmul.f32 %v6869_v51, %v6869_v51 }
 0x3c0   : > { %3180 = vadd.xlane.f32.xlu1 %v6865_v29  ;;  %v3214_v13 = vmul.f32 %v6865_v29, %v6865_v29 }
 0x3c1   : > { %3166 = vadd.xlane.f32.xlu0 %v6845_v57 }
 0x3c4   : > { %3217 = vadd.xlane.f32.xlu1 %v3200_v1 }
 0x3c5   : > { %3170 = vadd.xlane.f32.xlu0 %v6853_v40 }
 0x3c8   : > { %3221 = vadd.xlane.f32.xlu1 %v3202_v42 }
 0x3c9   : > { %3174 = vadd.xlane.f32.xlu0 %v6861_v18 }
 0x3cc   : > { %3225 = vadd.xlane.f32.xlu1 %v3204_v56 }
 0x3cd   : > { %3178 = vadd.xlane.f32.xlu0 %v6869_v51 }
 0x3d0   : > { %3229 = vadd.xlane.f32.xlu1 %v3206_v14 }
 0x3d1   : > { %3215 = vadd.xlane.f32.xlu0 %v3199_v63 }
 0x3d4   : > { %3233 = vadd.xlane.f32.xlu1 %v3208_v36 }
 0x3d5   : > { %3219 = vadd.xlane.f32.xlu0 %v3201_v44 }
 0x3d8   : > { %3237 = vadd.xlane.f32.xlu1 %v3210_v41 }
 0x3d9   : > { %3223 = vadd.xlane.f32.xlu0 %v3203_v30 }
 0x3dc   : > { %3241 = vadd.xlane.f32.xlu1 %v3212_v4 }
 0x3dd   : > { %3227 = vadd.xlane.f32.xlu0 %v3205_v47 }
 0x3e0   : > { %3245 = vadd.xlane.f32.xlu1 %v3214_v13 }
 0x3e1   : > { %3231 = vadd.xlane.f32.xlu0 %v3207_v11 }
 0x3e5   : > { %3235 = vadd.xlane.f32.xlu0 %v3209_v6 }
 0x3e9   : > { %3239 = vadd.xlane.f32.xlu0 %v3211_v33 }
 0x3ed   : > { %3243 = vadd.xlane.f32.xlu0 %v3213_v54 }
 0x431   : > { %v3155_v3 = vpop.xlane.xlu1 %3154 }
 0x432   : > { %v6915_v59 = vmul.f32 0.0078125, %v3155_v3 }
 0x434   : > { %v3265_v25 = vmul.f32 %v6915_v59, %v6915_v59  ;;  %v3313_v8 = vsub.f32 %v6810_v53, %v6915_v59 }
 0x435   : > { %v3157_v2 = vpop.xlane.xlu1 %3156 }
 0x436   : > { %v6919_v5 = vmul.f32 0.0078125, %v3157_v2 }
 0x438   : > { %v3266_v49 = vmul.f32 %v6919_v5, %v6919_v5  ;;  %v3314_v63 = vsub.f32 %v6817_v43, %v6919_v5 }
 0x439   : > { %v3161_v55 = vpop.xlane.xlu1 %3160 }
 0x43a   : > { %v6923_v61 = vmul.f32 0.0078125, %v3161_v55 }
 0x43c   : > { %v3268_v14 = vmul.f32 %v6923_v61, %v6923_v61  ;;  %v3316_v6 = vsub.f32 %v6825_v46, %v6923_v61 }
 0x43d   : > { %v3165_v32 = vpop.xlane.xlu1 %3164 }
 0x43e   : > { %v3151_v34 = vpop.xlane.xlu0 %3150  ;;  %v6941_v44 = vmul.f32 0.0078125, %v3165_v32 }
 0x43f   : > { %v6917_v27 = vmul.f32 0.0078125, %v3151_v34 }
 0x440   : > { %v3318_v55 = vsub.f32 %v6833_v50, %v6941_v44 }
 0x441   : > { %v3169_v12 = vpop.xlane.xlu1 %3168  ;;  %v3263_v38 = vmul.f32 %v6917_v27, %v6917_v27  ;;  %v3311_v39 = vsub.f32 %v6813_v24, %v6917_v27 }
 0x442   : > { %v3153_v20 = vpop.xlane.xlu0 %3152  ;;  %v6953_v3 = vmul.f32 0.0078125, %v3169_v12 }
 0x443   : > { %v6911_v16 = vmul.f32 0.0078125, %v3153_v20  ;;  %v3270_v20 = vmul.f32 %v6941_v44, %v6941_v44 }
 0x445   : > { %v3173_v58 = vpop.xlane.xlu1 %3172  ;;  %v3264_v7 = vmul.f32 %v6911_v16, %v6911_v16  ;;  %v3312_v42 = vsub.f32 %v6821_v31, %v6911_v16 }
 0x446   : > { %v3159_v15 = vpop.xlane.xlu0 %3158 }
 0x447   : > { %v6929_v9 = vmul.f32 0.0078125, %v3159_v15 }
 0x449   : > { %v6905_v10 = vpop.xlane.xlu1 %3176  ;;  %v3267_v4 = vmul.f32 %v6929_v9, %v6929_v9  ;;  %v3315_v54 = vsub.f32 %v6829_v17, %v6929_v9 }
 0x44a   : > { %v3163_v62 = vpop.xlane.xlu0 %3162 }
 0x44b   : > { %v6945_v47 = vmul.f32 0.0078125, %v3163_v62 }
 0x44d   : > { %v6909_v60 = vpop.xlane.xlu1 %3180 }
 0x44e   : > { %v3167_v37 = vpop.xlane.xlu0 %3166 }
 0x451   : > { %v3218_v35 = vpop.xlane.xlu1 %3217 }
 0x452   : > { %v3171_v28 = vpop.xlane.xlu0 %3170  ;;  %v3248_v0 = vmul.f32 0.0078125, %v3218_v35  ;;  %v3269_v35 = vmul.f32 %v6945_v47, %v6945_v47 }
 0x454   : > { %v3280_v1 = vsub.f32 %v3248_v0, %v3264_v7 }
 0x455   : > { %v3222_v30 = vpop.xlane.xlu1 %3221 }
 0x456   : > { %v6907_v22 = vpop.xlane.xlu0 %3174  ;;  %v3296_v36 = vmax.f32 %v3280_v1, 0.0  ;;  %v3250_v11 = vmul.f32 0.0078125, %v3222_v30  ;;  %v6965_v1 = vmul.f32 0.0078125, %v3167_v37 }
 0x458   : > { %v3328_v34 = vadd.f32 1e-05, %v3296_v36  ;;  %v3282_v2 = vsub.f32 %v3250_v11, %v3266_v49  ;;  %v3272_v49 = vmul.f32 %v6953_v3, %v6953_v3  ;;  %v6969_v36 = vmul.f32 0.0078125, %v3173_v58 }
 0x459   : > { %v3226_v62 = vpop.xlane.xlu1 %3225  ;;  %v6979_v58 = vmul.f32 0.0078125, %v6907_v22 }
 0x45a   : > { %v6913_v48 = vpop.xlane.xlu0 %3178  ;;  %4653 = vrsqrt.f32 %v3328_v34  ;;  %v3298_v7 = vmax.f32 %v3282_v2, 0.0  ;;  %v3252_v0 = vmul.f32 0.0078125, %v3226_v62  ;;  %v3271_v62 = vmul.f32 %v6965_v1, %v6965_v1 }
 0x45e   : > { %v3216_v52 = vpop.xlane.xlu0 %3215 }
 0x45f   : > { %v3247_v45 = vmul.f32 0.0078125, %v3216_v52 }
 0x461   : > { %v3279_v56 = vsub.f32 %v3247_v45, %v3263_v38 }
 0x462   : > { %v3220_v41 = vpop.xlane.xlu0 %3219 }
 0x463   : > { %v3295_v33 = vmax.f32 %v3279_v56, 0.0  ;;  %v3249_v13 = vmul.f32 0.0078125, %v3220_v41  ;;  %v3284_v56 = vsub.f32 %v3252_v0, %v3268_v14  ;;  %v6984_v0 = vmul.f32 0.0078125, %v6909_v60 }
 0x464   : > { %v6994_v60 = vmul.f32 %v6979_v58, %v6979_v58 }
 0x465   : > { %v3327_v15 = vadd.f32 1e-05, %v3295_v33  ;;  %v3281_v32 = vsub.f32 %v3249_v13, %v3265_v25  ;;  %v3330_v25 = vadd.f32 1e-05, %v3298_v7  ;;  %v3230_v33 = vpop.xlane.xlu1 %3229  ;;  %v6971_v13 = vmul.f32 0.0078125, %v3171_v28 }
 0x466   : > { %v3224_v52 = vpop.xlane.xlu0 %3223  ;;  %v3300_v34 = vmax.f32 %v3284_v56, 0.0  ;;  %v3254_v2 = vmul.f32 0.0078125, %v3230_v33  ;;  %v3274_v28 = vmul.f32 %v6969_v36, %v6969_v36  ;;  %v4654_v33 = vpop.eup %4653 }
 0x467   : > { %4655 = vrsqrt.f32 %v3327_v15  ;;  %v3297_v38 = vmax.f32 %v3281_v32, 0.0  ;;  %v3251_v45 = vmul.f32 0.0078125, %v3224_v52  ;;  %v6974_v32 = vmul.f32 0.0078125, %v6905_v10 }
 0x468   : > { %4657 = vrsqrt.f32 %v3330_v25  ;;  %v3286_v7 = vsub.f32 %v3254_v2, %v3270_v20 }
 0x469   : > { %v3329_v11 = vadd.f32 1e-05, %v3297_v38  ;;  %v3283_v41 = vsub.f32 %v3251_v45, %v3267_v4  ;;  %v3332_v4 = vadd.f32 1e-05, %v3300_v34  ;;  %v3234_v38 = vpop.xlane.xlu1 %3233  ;;  %v3273_v45 = vmul.f32 %v6971_v13, %v6971_v13  ;;  %v6999_v34 = vld [vmem:[#allocation12] ss:$0 sm:$0xff] }
 0x46a   : > { %v3228_v15 = vpop.xlane.xlu0 %3227  ;;  %v3302_v25 = vmax.f32 %v3286_v7, 0.0  ;;  %v3256_v56 = vmul.f32 0.0078125, %v3234_v38  ;;  %v6990_v22 = vmul.f32 %v6974_v32, %v6974_v32  ;;  %v7008_v38 = vld [vmem:[#allocation14] ss:$0 sm:$0xff] }
 0x46b   : > { %4659 = vrsqrt.f32 %v3329_v11  ;;  %v3299_v37 = vmax.f32 %v3283_v41, 0.0  ;;  %v3253_v14 = vmul.f32 0.0078125, %v3228_v15 }
 0x46c   : > { %4661 = vrsqrt.f32 %v3332_v4  ;;  %v3334_v2 = vadd.f32 1e-05, %v3302_v25  ;;  %v3288_v15 = vsub.f32 %v3256_v56, %v3272_v49  ;;  %v3360_v4 = vmul.f32 %v4654_v33, %v3312_v42 }
 0x46d   : > { %v3331_v52 = vadd.f32 1e-05, %v3299_v37  ;;  %v3285_v10 = vsub.f32 %v3253_v14, %v3269_v35  ;;  %v6997_v35 = vmul.f32 0.0078125, %v6913_v48  ;;  %v7003_v14 = vmul.f32 %v6984_v0, %v6984_v0 }
 0x46e   : > { %v3232_v11 = vpop.xlane.xlu0 %3231  ;;  %v3304_v49 = vmax.f32 %v3288_v15, 0.0 }
 0x46f   : > { %4663 = vrsqrt.f32 %v3331_v52  ;;  %v3301_v20 = vmax.f32 %v3285_v10, 0.0  ;;  %v3255_v41 = vmul.f32 0.0078125, %v3232_v11  ;;  %v3238_v10 = vpop.xlane.xlu1 %3237  ;;  %v3382_v11 = vmul.f32 %v6999_v34, %v3360_v4 }
 0x470   : > { %4665 = vrsqrt.f32 %v3334_v2  ;;  %v3258_v25 = vmul.f32 0.0078125, %v3238_v10  ;;  %v7016_v16 = vmul.f32 %v6997_v35, %v6997_v35 }
 0x471   : > { %v4656_v37 = vpop.eup %4655  ;;  %v3333_v7 = vadd.f32 1e-05, %v3301_v20  ;;  %v3287_v52 = vsub.f32 %v3255_v41, %v3271_v62  ;;  %v3336_v62 = vadd.f32 1e-05, %v3304_v49  ;;  %v3404_v27 = vadd.f32 %v7008_v38, %v3382_v11 }
 0x472   : > { %v3359_v48 = vmul.f32 %v4656_v37, %v3311_v39  ;;  %v3236_v56 = vpop.xlane.xlu0 %3235  ;;  %v4658_v31 = vpop.eup %4657  ;;  %v3290_v20 = vsub.f32 %v3258_v25, %v3274_v28 }
 0x473   : > { %4667 = vrsqrt.f32 %v3333_v7  ;;  %v3303_v30 = vmax.f32 %v3287_v52, 0.0  ;;  %v3257_v12 = vmul.f32 0.0078125, %v3236_v56  ;;  %v3362_v39 = vmul.f32 %v4658_v31, %v3314_v63  ;;  %v3242_v2 = vpop.xlane.xlu1 %3241 }
 0x474   : > { %v3381_v42 = vmul.f32 %v6999_v34, %v3359_v48  ;;  %4669 = vrsqrt.f32 %v3336_v62  ;;  %v3306_v4 = vmax.f32 %v3290_v20, 0.0  ;;  %v3260_v10 = vmul.f32 0.0078125, %v3242_v2 }
 0x475   : > { %v4660_v24 = vpop.eup %4659  ;;  %v3335_v41 = vadd.f32 1e-05, %v3303_v30  ;;  %v3289_v33 = vsub.f32 %v3257_v12, %v3273_v45  ;;  %v3384_v28 = vmul.f32 %v6999_v34, %v3362_v39 }
 0x476   : > { %v3403_v15 = vadd.f32 %v7008_v38, %v3381_v42  ;;  %v3361_v37 = vmul.f32 %v4660_v24, %v3313_v8  ;;  %v3240_v7 = vpop.xlane.xlu0 %3239  ;;  %v4662_v48 = vpop.eup %4661  ;;  %v3338_v63 = vadd.f32 1e-05, %v3306_v4  ;;  %v3292_v8 = vsub.f32 %v3260_v10, %v6990_v22 }
 0x477   : > { %4671 = vrsqrt.f32 %v3335_v41  ;;  %v3305_v52 = vmax.f32 %v3289_v33, 0.0  ;;  %v3259_v12 = vmul.f32 0.0078125, %v3240_v7  ;;  %v3406_v45 = vadd.f32 %v7008_v38, %v3384_v28  ;;  %v3246_v49 = vpop.xlane.xlu1 %3245 }
 0x478   : > { %v3896_v43 = vpack.c.bf16 %v3404_v27, %v3403_v15  ;;  %v3383_v5 = vmul.f32 %v6999_v34, %v3361_v37  ;;  %v3364_v53 = vmul.f32 %v4662_v48, %v3316_v6  ;;  %4673 = vrsqrt.f32 %v3338_v63 }
 0x479   : > { %v4664_v30 = vpop.eup %4663  ;;  %v3337_v59 = vadd.f32 1e-05, %v3305_v52  ;;  %v3291_v11 = vsub.f32 %v3259_v12, %v6994_v60  ;;  %v3308_v46 = vmax.f32 %v3292_v8, 0.0  ;;  %v3262_v61 = vmul.f32 0.0078125, %v3246_v49 }
 0x47a   : > { %3897 = vst [vmem:[#allocation15] sm:$0xff] %v3896_v43   ;;  %v3405_v25 = vadd.f32 %v7008_v38, %v3383_v5  ;;  %v3363_v56 = vmul.f32 %v4664_v30, %v3315_v54  ;;  %v3244_v31 = vpop.xlane.xlu0 %3243  ;;  %v3386_v42 = vmul.f32 %v6999_v34, %v3364_v53  ;;  %v4666_v6 = vpop.eup %4665  ;;  %v7307_v41 = vsub.f32 %v6837_v21, %v6945_v47 }
 0x47b   : > { %4675 = vrsqrt.f32 %v3337_v59  ;;  %v3307_v20 = vmax.f32 %v3291_v11, 0.0  ;;  %v3261_v24 = vmul.f32 0.0078125, %v3244_v31  ;;  %v3366_v17 = vmul.f32 %v4666_v6, %v3318_v55 }
 0x47c   : > { %v3901_v62 = vpack.c.bf16 %v3406_v45, %v3405_v25  ;;  %v3385_v22 = vmul.f32 %v6999_v34, %v3363_v56  ;;  %v3408_v39 = vadd.f32 %v7008_v38, %v3386_v42  ;;  %v3340_v9 = vadd.f32 1e-05, %v3308_v46 }
 0x47d   : > { %v4668_v27 = vpop.eup %4667  ;;  %v3294_v54 = vsub.f32 %v3262_v61, %v7003_v14  ;;  %v3339_v2 = vadd.f32 1e-05, %v3307_v20  ;;  %v3293_v15 = vsub.f32 %v3261_v24, %v7016_v16  ;;  %v3319_v37 = vsub.f32 %v6845_v57, %v6965_v1 }
 0x47e   : > { %3940 = vst [vmem:[#allocation15 + $0x8] sm:$0xff] %v3901_v62   ;;  %v3407_v60 = vadd.f32 %v7008_v38, %v3385_v22  ;;  %v3365_v33 = vmul.f32 %v4668_v27, %v7307_v41  ;;  %v3388_v4 = vmul.f32 %v6999_v34, %v3366_v17  ;;  %4677 = vrsqrt.f32 %v3340_v9  ;;  %v4670_v44 = vpop.eup %4669 }
 0x47f   : > { %v3310_v50 = vmax.f32 %v3294_v54, 0.0  ;;  %4679 = vrsqrt.f32 %v3339_v2  ;;  %v3309_v7 = vmax.f32 %v3293_v15, 0.0  ;;  %v7308_v47 = vsub.f32 %v6841_v23, %v6953_v3 }
 0x480   : > { %v3906_v55 = vpack.c.bf16 %v3408_v39, %v3407_v60  ;;  %v3387_v14 = vmul.f32 %v6999_v34, %v3365_v33  ;;  %v3410_v21 = vadd.f32 %v7008_v38, %v3388_v4  ;;  %v3322_v48 = vsub.f32 %v6849_v19, %v6969_v36 }
 0x481   : > { %v4672_v28 = vpop.eup %4671  ;;  %v3368_v16 = vmul.f32 %v4670_v44, %v7308_v47  ;;  %v3342_v52 = vadd.f32 1e-05, %v3310_v50  ;;  %v3341_v10 = vadd.f32 1e-05, %v3309_v7  ;;  %v3321_v63 = vsub.f32 %v6853_v40, %v6971_v13 }
 0x482   : > { %3941 = vst [vmem:[#allocation15 + $0x10] sm:$0xff] %v3906_v55   ;;  %v3409_v57 = vadd.f32 %v7008_v38, %v3387_v14  ;;  %v3367_v1 = vmul.f32 %v4672_v28, %v3319_v37  ;;  %v4674_v5 = vpop.eup %4673  ;;  %v3324_v36 = vsub.f32 %v6857_v26, %v6974_v32  ;;  %v3323_v49 = vsub.f32 %v6861_v18, %v6979_v58 }
 0x483   : > { %v3390_v43 = vmul.f32 %v6999_v34, %v3368_v16  ;;  %4681 = vrsqrt.f32 %v3342_v52  ;;  %v3370_v45 = vmul.f32 %v4674_v5, %v3322_v48  ;;  %v3326_v46 = vsub.f32 %v6865_v29, %v6984_v0 }
 0x484   : > { %v3911_v12 = vpack.c.bf16 %v3410_v21, %v3409_v57  ;;  %v3389_v23 = vmul.f32 %v6999_v34, %v3367_v1  ;;  %4683 = vrsqrt.f32 %v3341_v10  ;;  %v3325_v6 = vsub.f32 %v6869_v51, %v6997_v35 }
 0x485   : > { %v4676_v3 = vpop.eup %4675  ;;  %v3412_v30 = vadd.f32 %v7008_v38, %v3390_v43  ;;  %v3392_v19 = vmul.f32 %v6999_v34, %v3370_v45 }
 0x486   : > { %3942 = vst [vmem:[#allocation15 + $0x18] sm:$0xff] %v3911_v12   ;;  %v3411_v53 = vadd.f32 %v7008_v38, %v3389_v23  ;;  %v3369_v59 = vmul.f32 %v4676_v3, %v3321_v63 }
 0x487   : > { %v3414_v25 = vadd.f32 %v7008_v38, %v3392_v19 }
 0x488   : > { %v3916_v8 = vpack.c.bf16 %v3412_v30, %v3411_v53  ;;  %v3391_v40 = vmul.f32 %v6999_v34, %v3369_v59  ;;  %v4678_v13 = vpop.eup %4677 }
 0x489   : > { %v4680_v56 = vpop.eup %4679  ;;  %v3372_v31 = vmul.f32 %v4678_v13, %v3324_v36 }
 0x48a   : > { %3943 = vst [vmem:[#allocation15 + $0x20] sm:$0xff] %v3916_v8   ;;  %v3413_v11 = vadd.f32 %v7008_v38, %v3391_v40  ;;  %v3371_v42 = vmul.f32 %v4680_v56, %v3323_v49 }
 0x48b   : > { %v3394_v26 = vmul.f32 %v6999_v34, %v3372_v31 }
 0x48c   : > { %v3921_v61 = vpack.c.bf16 %v3414_v25, %v3413_v11  ;;  %v3393_v18 = vmul.f32 %v6999_v34, %v3371_v42 }
 0x48d   : > { %v4682_v32 = vpop.eup %4681  ;;  %v3416_v62 = vadd.f32 %v7008_v38, %v3394_v26 }
 0x48e   : > { %v4684_v58 = vpop.eup %4683  ;;  %3944 = vst [vmem:[#allocation15 + $0x28] sm:$0xff] %v3921_v61   ;;  %v3374_v22 = vmul.f32 %v4682_v32, %v3326_v46  ;;  %v3415_v20 = vadd.f32 %v7008_v38, %v3393_v18 }
 0x48f   : > { %v3373_v24 = vmul.f32 %v4684_v58, %v3325_v6 }
 0x490   : > { %v3396_v27 = vmul.f32 %v6999_v34, %v3374_v22  ;;  %v3926_v29 = vpack.c.bf16 %v3416_v62, %v3415_v20 }
 0x491   : > { %v3395_v0 = vmul.f32 %v6999_v34, %v3373_v24 }
 0x492   : > { %v3418_v39 = vadd.f32 %v7008_v38, %v3396_v27  ;;  %3945 = vst [vmem:[#allocation15 + $0x30] sm:$0xff] %v3926_v29  }
 0x493   : > { %v3417_v51 = vadd.f32 %v7008_v38, %v3395_v0 }
 0x495   : > { %v3931_v35 = vpack.c.bf16 %v3418_v39, %v3417_v51 }
 0x497   : > { %3946 = vst [vmem:[#allocation15 + $0x38] sm:$0xff] %v3931_v35  }
 0x498 PF: > { %p4261_p3 = scmp.eq.s32.totalorder %s5071_s30, 1  ;;  %s4999_s27 = smov [#allocation15]  }
 0x499   : > { %s3508_s15 = sshll.u32 %s4999_s27, 4  ;;  %s3509_s15 = int_to_ptr.vmem [resolvable:$true] %s3508_s15 }
 0x49a   : > { %s4887_s16 = scalar_lea.vmem %s3509_s15, 1024  ;;  %p4894_p9 = scmp.lt.s32.totalorder %s3509_s15, %s3509_s15 }
 0x49b   : > { %p4888_p1 = scmp.ne.s32.totalorder %s3509_s15, %s4887_s16  ;;  %p4895_p4 = scmp.lt.s32.totalorder %s4887_s16, %s4887_s16 }
 0x49d   : > { %p4889_p5 = pnand %p4888_p1, %p4261_p3  ;;  %p4896_p13 = por %p4895_p4, %p4894_p9 }
 0x49f   : > { %p4890_p11 = pneg %p4889_p5 }
 0x4a1   : > { %p4897_p2 = pnand %p4896_p13, %p4890_p11 }
 0x4a3   : > { %4900 = shalt.err (!%p4897_p2)
}
 0x4a4   : > { %s7309_s5 = sld [smem:[#allocation61_spill]] }
 0x4aa   : > { %s4901_s19 = scalar_lea.hbm %s7309_s5, 1024 }
 0x4ab   : > { %p4902_p10 = scmp.ne.s32.totalorder %s7309_s5, %s4901_s19  ;;  %p4907_p0 = scmp.lt.u32.totalorder %s4901_s19, %s7309_s5 }
 0x4ad   : > { %p4903_p6 = pnand %p4902_p10, %p4261_p3 }
 0x4af   : > { %p4904_p8 = pneg %p4903_p6 }
 0x4b1   : > { %p4909_p12 = pnand %p4907_p0, %p4904_p8 }
 0x4b3   : > { %4912 = shalt.err (!%p4909_p12)
}
 0x4b4   : > { %s5000_s10 = smov 64   ;;  %s5001_s17 = smov 4  }
 0x4b5   : > { %4226 = dma.vmem_to_hbm [thread:$0]  (%p4261_p3), %s3509_s15, 1024, %s7309_s5, [#allocation5], %s5000_s10, %s5000_s10, %s5001_s17  }
 0x4b6   : > { %4958 = dma.done.wait (%p4261_p3), [#allocation5], 1024  }
 0x4b7   : > { %4960 = vsyncadd (%p4261_p3), [#allocation5], 4294966272 }
 0x4b8 PF: > { %s26_s29 = sadd.s32 1, %s4983_s29   ;;  %s7310_s24 = sld [smem:[#allocation22_spill]] }
 0x4b9   : > { %p23_p7 = scmp.ge.s32.totalorder %s26_s29, 4   ;;  %s7311_s4 = sld [smem:[#allocation26_spill]] }
 0x4ba   : > { %s7312_s23 = sld [smem:[#allocation25_spill]]  ;;  %s7313_s25 = smov %s4971_s26 }
 0x4bb   : > { %s7315_s27 = smov %s4979_s28  ;;  %25 = sbr.rel (!%p23_p7) target bundleno = 14 (0xe), region = 136 }
 0x4bf   : > { %s7314_s26 = smov %s7311_s4 }
 0x4c0   : > { %s7316_s28 = smov %s7312_s23 }
 0x4c2   :  { %3524 = vsyncpa [#allocation4], 1 }
 0x4c3   :  { %3526 = vsyncpa [#allocation4 + $0x1], 1 }
 0x4c4   :  { %3527 = vsyncpa [#allocation7], 1 }
 0x4c5   :  { %3529 = vsyncpa [#allocation7 + $0x1], 1 }
 0x4c6   :  { %3530 = vsyncpa [#allocation10], 1 }
 0x4c7   :  { %3532 = vsyncpa [#allocation10 + $0x1], 1 }
 0x4c8   :  { %3533 = vsyncpa [#allocation13], 1 }
 0x4c9   :  { %3534 = vsyncpa [#allocation5], 1 }
 0x4ca   :  { %3536 = vsyncpa [#allocation5 + $0x1], 1 }

</bundles_post_ra>
